<compile_context>
chip_gen: v6e
topology: v6e:2x2x1
jax: 0.10.0
libtpu: 0.0.40
codegen_flags: <defaults>
</compile_context>

<pallas_src>
import numpy as np

import jax
import jax.numpy as jnp
from jax.experimental import pallas as pl
from jax.experimental.pallas import tpu as pltpu

LANES = 128
SPATIAL = [28, 14, 7, 4, 2]          # 28 -> 14 -> 7 -> 4 -> 2 (k3, s2, p1)


def _round_up(x, m):
    return (x + m - 1) // m * m


# -----------------------------------------------------------------------------
# Constant gather-matrix builder (host-side, trace-time constant)
# -----------------------------------------------------------------------------
def _build_conv_gather(hi, wi, m_in, ho, wo, m_out):
    """0/1 matrix (9*m_out, m_in): row k*m_out+o selects the input pixel that
    conv tap k reads for output pixel o.  Out-of-bounds taps (the conv's zero
    padding) and junk/pad rows are all-zero rows/columns.

    NOTE: padded 'junk' activation rows hold ReLU(shift), NOT zero; correctness
    relies on the columns >= hi*wi (and rows whose output index >= ho*wo) being
    all-zero here, which this builder guarantees."""
    g = np.zeros((9 * m_out, m_in), np.float32)
    for ky in range(3):
        for kx in range(3):
            k = ky * 3 + kx
            for oy in range(ho):
                for ox in range(wo):
                    iy = 2 * oy + ky - 1
                    ix = 2 * ox + kx - 1
                    if 0 <= iy < hi and 0 <= ix < wi:
                        g[k * m_out + oy * wo + ox, iy * wi + ix] = 1.0
    return g


# -----------------------------------------------------------------------------
# The single fused kernel: a tile of images, 4x (conv+BN+ReLU) + flatten + FC
# -----------------------------------------------------------------------------
def _fused_kernel(p_ref, w1_ref, b1_ref,
                  g2_ref, w2_ref, b2_ref,
                  g3_ref, w3_ref, b3_ref,
                  g4_ref, w4_ref, b4_ref,
                  wfc_ref, bfc_ref, o_ref):
    f32 = jnp.float32
    bf16 = jnp.bfloat16
    bt = p_ref.shape[0]

    def conv_block(x, g_ref, w_ref, b_ref):
        # x: (m_in, 128) bf16.  Per-tap 0/1 gather (also applies zero padding),
        # lane-concat of the 9 gathered maps, then ONE deep matmul.
        m_out = g_ref.shape[0] // 9
        parts = []
        for k in range(9):                                   # static unroll
            gk = g_ref[k * m_out:(k + 1) * m_out, :]         # static slice
            pk = jnp.dot(gk, x, preferred_element_type=f32)  # (m_out, 128)
            parts.append(pk.astype(bf16))                    # exact (0/1 sel.)
        p = jnp.concatenate(parts, axis=-1)                  # (m_out, 9*128)
        y = jnp.dot(p, w_ref[...], preferred_element_type=f32)
        y = jnp.maximum(y + b_ref[...], 0.0)
        return y.astype(bf16)

    def one_image(b, carry):
        # ---- layer 1: pre-gathered patches (m1, 9) @ W1 (9, 128) ----
        x = jnp.dot(p_ref[b], w1_ref[...], preferred_element_type=f32)
        x = jnp.maximum(x + b1_ref[...], 0.0).astype(bf16)   # (m1, 128)
        x = conv_block(x, g2_ref, w2_ref, b2_ref)            # 14x14 -> 7x7
        x = conv_block(x, g3_ref, w3_ref, b3_ref)            # 7x7  -> 4x4
        x = conv_block(x, g4_ref, w4_ref, b4_ref)            # 4x4  -> 2x2
        # ---- flatten (NCHW order) + FC: 4 spatial taps, rows 0..3 are real --
        y = bfc_ref[...]                                     # (1, ncls) f32
        for k in range(4):
            y = y + jnp.dot(x[k:k + 1, :],
                            wfc_ref[k * LANES:(k + 1) * LANES, :],
                            preferred_element_type=f32)
        o_ref[b] = y                                         # (1, ncls)
        return carry

    jax.lax.fori_loop(0, bt, one_image, 0, unroll=2)


# -----------------------------------------------------------------------------
# One-time parameter preparation (run OUTSIDE the jit'd forward)
# -----------------------------------------------------------------------------
def prepare_params(params, classes, eps=1e-5):
    ncls = _round_up(max(classes, 1), LANES)
    # padded row counts of each layer's output (16-aligned for bf16 sublane
    # tiles): 196->208, 49->64, 16, 4->16
    m_pad = [_round_up(s * s, 16) for s in SPATIAL[1:]]
    for m, s in zip(m_pad, SPATIAL[1:]):
        # Junk rows (>= s*s) hold ReLU(shift); gather builders must keep the
        # matching columns all-zero (they do, columns are only set for < s*s).
        assert m >= s * s and m % 16 == 0

    layers_w, layers_b = [], []
    for i, lp in enumerate(params["layers"]):
        cout, cin = lp["w"].shape[0], lp["w"].shape[1]
        scale = lp["gamma"] / jnp.sqrt(lp["var"] + eps)
        shift = lp["beta"] - lp["mean"] * scale + lp["b"] * scale
        # (Cout,Cin,3,3) -> (ky,kx,Cin,Cout) -> (9,Cin,Cout), BN scale folded in
        w = jnp.transpose(lp["w"], (2, 3, 1, 0)).reshape(9, cin, cout)
        w = w * scale[None, None, :]
        if i == 0:
            wp = (jnp.zeros((9, LANES), jnp.float32)
                  .at[:, :cout].set(w[:, 0, :]))
        else:
            wp = (jnp.zeros((9, LANES, LANES), jnp.float32)
                  .at[:, :cin, :cout].set(w)
                  .reshape(9 * LANES, LANES))       # stacked (1152, 128)
        bp = jnp.zeros((1, LANES), jnp.float32).at[0, :cout].set(shift)
        layers_w.append(wp.astype(jnp.bfloat16))
        layers_b.append(bp)

    # gather matrices for layers 2..4 (columns index the previous layer's rows)
    gs = []
    for l in range(1, 4):
        hi, ho = SPATIAL[l], SPATIAL[l + 1]
        gs.append(jnp.asarray(
            _build_conv_gather(hi, hi, m_pad[l - 1], ho, ho, m_pad[l]),
            dtype=jnp.bfloat16))

    # FC: PyTorch flatten order is (C,H,W); tap k = h*2+w reads activation row
    # k of the final 2x2 map.  Stacked as (4*128, ncls): row k*128+c.
    fc_w, fc_b = params["fc_w"], params["fc_b"]              # (cls,256), (cls,)
    wfc = jnp.transpose(fc_w.reshape(classes, 64, 4), (2, 1, 0))  # (4,64,cls)
    wfc_p = (jnp.zeros((4, LANES, ncls), jnp.float32)
             .at[:, :64, :classes].set(wfc)
             .reshape(4 * LANES, ncls).astype(jnp.bfloat16))
    bfc_p = jnp.zeros((1, ncls), jnp.float32).at[0, :classes].set(fc_b)

    return dict(classes=classes, ncls=ncls, m_pad=m_pad,
                w=layers_w, b=layers_b, g=gs, wfc=wfc_p, bfc=bfc_p)


# -----------------------------------------------------------------------------
# Forward pass
# -----------------------------------------------------------------------------
def _im2col_first(x_nchw, m_pad1):
    """3x3 / stride-2 / pad-1 patches of the (B,1,H,W) input -> (B,m_pad1,9) bf16."""
    B, _, H, W = x_nchw.shape
    ho = (H - 1) // 2 + 1
    wo = (W - 1) // 2 + 1
    xp = jnp.pad(x_nchw[:, 0, :, :].astype(jnp.float32), ((0, 0), (1, 1), (1, 1)))
    cols = []
    for ky in range(3):
        for kx in range(3):
            cols.append(jax.lax.slice(
                xp, (0, ky, kx),
                (B, ky + 2 * (ho - 1) + 1, kx + 2 * (wo - 1) + 1),
                (1, 2, 2)))
    p = jnp.stack(cols, axis=-1).reshape(B, ho * wo, 9)
    p = jnp.pad(p, ((0, 0), (0, m_pad1 - ho * wo), (0, 0)))
    return p.astype(jnp.bfloat16)


def omniglot_cnn_forward(x_nchw, prep, b_tile=8):
    B = x_nchw.shape[0]
    assert x_nchw.shape[1] == 1 and x_nchw.shape[2] == SPATIAL[0] \
        and x_nchw.shape[3] == SPATIAL[0]
    m_pad = prep["m_pad"]
    m1 = m_pad[0]
    ncls = prep["ncls"]

    patches = _im2col_first(x_nchw, m1)                      # (B, m1, 9) bf16

    # Batch tiling: bt images per grid step.  For v7x (2 TensorCores sharing
    # the "parallel" axis) pick b_tile so the grid length is a multiple of 2.
    bt = min(b_tile, B)
    b_padded = _round_up(B, bt)
    if b_padded != B:
        patches = jnp.pad(patches, ((0, b_padded - B), (0, 0), (0, 0)))
    grid = (b_padded // bt,)

    def resident(arr):   # full-array block, VMEM-resident across grid steps
        n = arr.ndim
        return pl.BlockSpec(arr.shape, lambda i, n=n: (0,) * n)

    in_specs = [pl.BlockSpec((bt, m1, 9), lambda i: (i, 0, 0))]
    args = [patches]
    for l in range(4):
        if l >= 1:
            in_specs.append(resident(prep["g"][l - 1]))
            args.append(prep["g"][l - 1])
        in_specs.append(resident(prep["w"][l])); args.append(prep["w"][l])
        in_specs.append(resident(prep["b"][l])); args.append(prep["b"][l])
    in_specs += [resident(prep["wfc"]), resident(prep["bfc"])]
    args += [prep["wfc"], prep["bfc"]]

    # Advisory cost estimate so XLA overlaps the im2col producer with this call.
    flops_img = 2 * m1 * 9 * LANES
    m_in = m1
    for m_out in m_pad[1:]:
        flops_img += 2 * 9 * m_out * m_in * LANES            # per-tap gathers
        flops_img += 2 * m_out * (9 * LANES) * LANES         # deep conv matmul
        m_in = m_out
    flops_img += 2 * 4 * LANES * ncls                        # FC
    resident_bytes = sum(int(np.prod(a.shape)) * a.dtype.itemsize
                         for a in args[1:])
    cost = pl.CostEstimate(
        flops=int(flops_img * b_padded),
        transcendentals=0,
        bytes_accessed=int(b_padded * (m1 * 9 * 2 + ncls * 4) + resident_bytes))

    out = pl.pallas_call(
        _fused_kernel,
        out_shape=jax.ShapeDtypeStruct((b_padded, 1, ncls), jnp.float32),
        grid=grid,
        in_specs=in_specs,
        out_specs=pl.BlockSpec((bt, 1, ncls), lambda i: (i, 0, 0)),
        compiler_params=pltpu.CompilerParams(
            dimension_semantics=("parallel",)),
        cost_estimate=cost,
    )(*args)
    return out[:B, 0, :prep["classes"]]


# -----------------------------------------------------------------------------
# Deterministic parameter init (shapes from the PyTorch __init__)
# -----------------------------------------------------------------------------
def init_params(key, classes):
    layers = []
    for cin, cout in [(1, 64), (64, 64), (64, 64), (64, 64)]:
        key, k1, k2, k3, k4, k5, k6 = jax.random.split(key, 7)
        layers.append(dict(
            w=jax.random.normal(k1, (cout, cin, 3, 3), jnp.float32) * 0.1,
            b=jax.random.normal(k2, (cout,), jnp.float32) * 0.01,
            gamma=jax.random.uniform(k3, (cout,), jnp.float32, 0.5, 1.5),
            beta=jax.random.normal(k4, (cout,), jnp.float32) * 0.1,
            mean=jax.random.normal(k5, (cout,), jnp.float32) * 0.1,
            var=jax.random.uniform(k6, (cout,), jnp.float32, 0.5, 1.5),
        ))
    key, kf1, kf2 = jax.random.split(key, 3)
    fc_w = jax.random.normal(kf1, (classes, 64 * 2 * 2), jnp.float32) * 0.05
    fc_b = jax.random.normal(kf2, (classes,), jnp.float32) * 0.01
    return dict(layers=layers, fc_w=fc_w, fc_b=fc_b)


if __name__ == "__main__":
    classes = 10
    key = jax.random.PRNGKey(0)
    kp, kx = jax.random.split(key)
    params = init_params(kp, classes)
    prep = prepare_params(params, classes)          # one-time, outside the jit

    # Omniglot-style input: NCHW, 1 channel, 28x28 (28 -> 14 -> 7 -> 4 -> 2)
    x = jax.random.normal(kx, (2, 1, 28, 28), jnp.float32)

    fwd = jax.jit(lambda inp: omniglot_cnn_forward(inp, prep))
    out = fwd(x)
    jax.block_until_ready(out)
    assert out.shape == (2, classes) and out.dtype == jnp.float32
    print("KERNEL_OK")
</pallas_src>

<mosaic_0001>
module attributes {stable_mosaic.version = 11 : i64} {
  func.func @_fused_kernel(%arg0: i32, %arg1: memref<2x208x9xbf16, #tpu.memory_space<vmem>>, %arg2: memref<9x128xbf16, #tpu.memory_space<vmem>>, %arg3: memref<1x128xf32, #tpu.memory_space<vmem>>, %arg4: memref<576x208xbf16, #tpu.memory_space<vmem>>, %arg5: memref<1152x128xbf16, #tpu.memory_space<vmem>>, %arg6: memref<1x128xf32, #tpu.memory_space<vmem>>, %arg7: memref<144x64xbf16, #tpu.memory_space<vmem>>, %arg8: memref<1152x128xbf16, #tpu.memory_space<vmem>>, %arg9: memref<1x128xf32, #tpu.memory_space<vmem>>, %arg10: memref<144x16xbf16, #tpu.memory_space<vmem>>, %arg11: memref<1152x128xbf16, #tpu.memory_space<vmem>>, %arg12: memref<1x128xf32, #tpu.memory_space<vmem>>, %arg13: memref<512x128xbf16, #tpu.memory_space<vmem>>, %arg14: memref<1x128xf32, #tpu.memory_space<vmem>>, %arg15: memref<2x1x128xf32, #tpu.memory_space<vmem>>) attributes {dimension_semantics = [#tpu.dimension_semantics<parallel>], iteration_bounds = array<i64: 1>, scalar_prefetch = 0 : i64, scratch_operands = 0 : i64, tpu.core_type = #tpu.core_type<tc>, window_params = [{transform_indices = @transform_0, window_bounds = array<i64: 2, 208, 9>}, {pipeline_mode = #tpu.pipeline_mode<synchronous>, transform_indices = @transform_1, window_bounds = array<i64: 9, 128>}, {pipeline_mode = #tpu.pipeline_mode<synchronous>, transform_indices = @transform_2, window_bounds = array<i64: 1, 128>}, {pipeline_mode = #tpu.pipeline_mode<synchronous>, transform_indices = @transform_3, window_bounds = array<i64: 576, 208>}, {pipeline_mode = #tpu.pipeline_mode<synchronous>, transform_indices = @transform_4, window_bounds = array<i64: 1152, 128>}, {pipeline_mode = #tpu.pipeline_mode<synchronous>, transform_indices = @transform_5, window_bounds = array<i64: 1, 128>}, {pipeline_mode = #tpu.pipeline_mode<synchronous>, transform_indices = @transform_6, window_bounds = array<i64: 144, 64>}, {pipeline_mode = #tpu.pipeline_mode<synchronous>, transform_indices = @transform_7, window_bounds = array<i64: 1152, 128>}, {pipeline_mode = #tpu.pipeline_mode<synchronous>, transform_indices = @transform_8, window_bounds = array<i64: 1, 128>}, {pipeline_mode = #tpu.pipeline_mode<synchronous>, transform_indices = @transform_9, window_bounds = array<i64: 144, 16>}, {pipeline_mode = #tpu.pipeline_mode<synchronous>, transform_indices = @transform_10, window_bounds = array<i64: 1152, 128>}, {pipeline_mode = #tpu.pipeline_mode<synchronous>, transform_indices = @transform_11, window_bounds = array<i64: 1, 128>}, {pipeline_mode = #tpu.pipeline_mode<synchronous>, transform_indices = @transform_12, window_bounds = array<i64: 512, 128>}, {pipeline_mode = #tpu.pipeline_mode<synchronous>, transform_indices = @transform_13, window_bounds = array<i64: 1, 128>}, {transform_indices = @transform_14, window_bounds = array<i64: 2, 1, 128>}]} {
    %c0_i32 = arith.constant 0 : i32
    %0 = arith.index_cast %c0_i32 : i32 to index
    %c0 = arith.constant 0 : index
    %c0_0 = arith.constant 0 : index
    %1 = vector.load %arg1[%0, %c0, %c0_0] : memref<2x208x9xbf16, #tpu.memory_space<vmem>>, vector<1x208x9xbf16>
    %2 = vector.shape_cast %1 : vector<1x208x9xbf16> to vector<208x9xbf16>
    %c0_1 = arith.constant 0 : index
    %c0_2 = arith.constant 0 : index
    %3 = vector.load %arg2[%c0_1, %c0_2] : memref<9x128xbf16, #tpu.memory_space<vmem>>, vector<9x128xbf16>
    %cst = arith.constant dense<0.000000e+00> : vector<208x128xf32>
    %4 = tpu.matmul %2, %3, %cst {dimension_numbers = #tpu.dot_dimension_numbers<[1], [0], [0], [1], [0, 0, 1, 1], [], []>} : vector<208x9xbf16>, vector<9x128xbf16>, vector<208x128xf32> -> vector<208x128xf32>
    %c0_3 = arith.constant 0 : index
    %c0_4 = arith.constant 0 : index
    %5 = vector.load %arg3[%c0_3, %c0_4] : memref<1x128xf32, #tpu.memory_space<vmem>>, vector<1x128xf32>
    %6 = vector.broadcast %5 : vector<1x128xf32> to vector<208x128xf32>
    %7 = arith.addf %4, %6 : vector<208x128xf32>
    %cst_5 = arith.constant 0.000000e+00 : f32
    %8 = vector.broadcast %cst_5 : f32 to vector<208x128xf32>
    %9 = arith.maximumf %7, %8 : vector<208x128xf32>
    %10 = arith.truncf %9 : vector<208x128xf32> to vector<208x128xbf16>
    %c0_6 = arith.constant 0 : index
    %c0_7 = arith.constant 0 : index
    %11 = vector.load %arg4[%c0_6, %c0_7] : memref<576x208xbf16, #tpu.memory_space<vmem>>, vector<64x208xbf16>
    %cst_8 = arith.constant dense<0.000000e+00> : vector<64x128xf32>
    %12 = tpu.matmul %11, %10, %cst_8 {dimension_numbers = #tpu.dot_dimension_numbers<[1], [0], [0], [1], [0, 0, 1, 1], [], []>} : vector<64x208xbf16>, vector<208x128xbf16>, vector<64x128xf32> -> vector<64x128xf32>
    %13 = arith.truncf %12 : vector<64x128xf32> to vector<64x128xbf16>
    %c64 = arith.constant 64 : index
    %c0_9 = arith.constant 0 : index
    %14 = vector.load %arg4[%c64, %c0_9] : memref<576x208xbf16, #tpu.memory_space<vmem>>, vector<64x208xbf16>
    %cst_10 = arith.constant dense<0.000000e+00> : vector<64x128xf32>
    %15 = tpu.matmul %14, %10, %cst_10 {dimension_numbers = #tpu.dot_dimension_numbers<[1], [0], [0], [1], [0, 0, 1, 1], [], []>} : vector<64x208xbf16>, vector<208x128xbf16>, vector<64x128xf32> -> vector<64x128xf32>
    %16 = arith.truncf %15 : vector<64x128xf32> to vector<64x128xbf16>
    %c128 = arith.constant 128 : index
    %c0_11 = arith.constant 0 : index
    %17 = vector.load %arg4[%c128, %c0_11] : memref<576x208xbf16, #tpu.memory_space<vmem>>, vector<64x208xbf16>
    %cst_12 = arith.constant dense<0.000000e+00> : vector<64x128xf32>
    %18 = tpu.matmul %17, %10, %cst_12 {dimension_numbers = #tpu.dot_dimension_numbers<[1], [0], [0], [1], [0, 0, 1, 1], [], []>} : vector<64x208xbf16>, vector<208x128xbf16>, vector<64x128xf32> -> vector<64x128xf32>
    %19 = arith.truncf %18 : vector<64x128xf32> to vector<64x128xbf16>
    %c192 = arith.constant 192 : index
    %c0_13 = arith.constant 0 : index
    %20 = vector.load %arg4[%c192, %c0_13] : memref<576x208xbf16, #tpu.memory_space<vmem>>, vector<64x208xbf16>
    %cst_14 = arith.constant dense<0.000000e+00> : vector<64x128xf32>
    %21 = tpu.matmul %20, %10, %cst_14 {dimension_numbers = #tpu.dot_dimension_numbers<[1], [0], [0], [1], [0, 0, 1, 1], [], []>} : vector<64x208xbf16>, vector<208x128xbf16>, vector<64x128xf32> -> vector<64x128xf32>
    %22 = arith.truncf %21 : vector<64x128xf32> to vector<64x128xbf16>
    %c256 = arith.constant 256 : index
    %c0_15 = arith.constant 0 : index
    %23 = vector.load %arg4[%c256, %c0_15] : memref<576x208xbf16, #tpu.memory_space<vmem>>, vector<64x208xbf16>
    %cst_16 = arith.constant dense<0.000000e+00> : vector<64x128xf32>
    %24 = tpu.matmul %23, %10, %cst_16 {dimension_numbers = #tpu.dot_dimension_numbers<[1], [0], [0], [1], [0, 0, 1, 1], [], []>} : vector<64x208xbf16>, vector<208x128xbf16>, vector<64x128xf32> -> vector<64x128xf32>
    %25 = arith.truncf %24 : vector<64x128xf32> to vector<64x128xbf16>
    %c320 = arith.constant 320 : index
    %c0_17 = arith.constant 0 : index
    %26 = vector.load %arg4[%c320, %c0_17] : memref<576x208xbf16, #tpu.memory_space<vmem>>, vector<64x208xbf16>
    %cst_18 = arith.constant dense<0.000000e+00> : vector<64x128xf32>
    %27 = tpu.matmul %26, %10, %cst_18 {dimension_numbers = #tpu.dot_dimension_numbers<[1], [0], [0], [1], [0, 0, 1, 1], [], []>} : vector<64x208xbf16>, vector<208x128xbf16>, vector<64x128xf32> -> vector<64x128xf32>
    %28 = arith.truncf %27 : vector<64x128xf32> to vector<64x128xbf16>
    %c384 = arith.constant 384 : index
    %c0_19 = arith.constant 0 : index
    %29 = vector.load %arg4[%c384, %c0_19] : memref<576x208xbf16, #tpu.memory_space<vmem>>, vector<64x208xbf16>
    %cst_20 = arith.constant dense<0.000000e+00> : vector<64x128xf32>
    %30 = tpu.matmul %29, %10, %cst_20 {dimension_numbers = #tpu.dot_dimension_numbers<[1], [0], [0], [1], [0, 0, 1, 1], [], []>} : vector<64x208xbf16>, vector<208x128xbf16>, vector<64x128xf32> -> vector<64x128xf32>
    %31 = arith.truncf %30 : vector<64x128xf32> to vector<64x128xbf16>
    %c448 = arith.constant 448 : index
    %c0_21 = arith.constant 0 : index
    %32 = vector.load %arg4[%c448, %c0_21] : memref<576x208xbf16, #tpu.memory_space<vmem>>, vector<64x208xbf16>
    %cst_22 = arith.constant dense<0.000000e+00> : vector<64x128xf32>
    %33 = tpu.matmul %32, %10, %cst_22 {dimension_numbers = #tpu.dot_dimension_numbers<[1], [0], [0], [1], [0, 0, 1, 1], [], []>} : vector<64x208xbf16>, vector<208x128xbf16>, vector<64x128xf32> -> vector<64x128xf32>
    %34 = arith.truncf %33 : vector<64x128xf32> to vector<64x128xbf16>
    %c512 = arith.constant 512 : index
    %c0_23 = arith.constant 0 : index
    %35 = vector.load %arg4[%c512, %c0_23] : memref<576x208xbf16, #tpu.memory_space<vmem>>, vector<64x208xbf16>
    %cst_24 = arith.constant dense<0.000000e+00> : vector<64x128xf32>
    %36 = tpu.matmul %35, %10, %cst_24 {dimension_numbers = #tpu.dot_dimension_numbers<[1], [0], [0], [1], [0, 0, 1, 1], [], []>} : vector<64x208xbf16>, vector<208x128xbf16>, vector<64x128xf32> -> vector<64x128xf32>
    %37 = arith.truncf %36 : vector<64x128xf32> to vector<64x128xbf16>
    %38 = tpu.concatenate %13, %16, %19, %22, %25, %28, %31, %34, %37 in 1 : vector<64x128xbf16>, vector<64x128xbf16>, vector<64x128xbf16>, vector<64x128xbf16>, vector<64x128xbf16>, vector<64x128xbf16>, vector<64x128xbf16>, vector<64x128xbf16>, vector<64x128xbf16> -> vector<64x1152xbf16>
    %c0_25 = arith.constant 0 : index
    %c0_26 = arith.constant 0 : index
    %39 = vector.load %arg5[%c0_25, %c0_26] : memref<1152x128xbf16, #tpu.memory_space<vmem>>, vector<1152x128xbf16>
    %cst_27 = arith.constant dense<0.000000e+00> : vector<64x128xf32>
    %40 = tpu.matmul %38, %39, %cst_27 {dimension_numbers = #tpu.dot_dimension_numbers<[1], [0], [0], [1], [0, 0, 1, 1], [], []>} : vector<64x1152xbf16>, vector<1152x128xbf16>, vector<64x128xf32> -> vector<64x128xf32>
    %c0_28 = arith.constant 0 : index
    %c0_29 = arith.constant 0 : index
    %41 = vector.load %arg6[%c0_28, %c0_29] : memref<1x128xf32, #tpu.memory_space<vmem>>, vector<1x128xf32>
    %42 = vector.broadcast %41 : vector<1x128xf32> to vector<64x128xf32>
    %43 = arith.addf %40, %42 : vector<64x128xf32>
    %cst_30 = arith.constant 0.000000e+00 : f32
    %44 = vector.broadcast %cst_30 : f32 to vector<64x128xf32>
    %45 = arith.maximumf %43, %44 : vector<64x128xf32>
    %46 = arith.truncf %45 : vector<64x128xf32> to vector<64x128xbf16>
    %c0_31 = arith.constant 0 : index
    %c0_32 = arith.constant 0 : index
    %47 = vector.load %arg7[%c0_31, %c0_32] : memref<144x64xbf16, #tpu.memory_space<vmem>>, vector<16x64xbf16>
    %cst_33 = arith.constant dense<0.000000e+00> : vector<16x128xf32>
    %48 = tpu.matmul %47, %46, %cst_33 {dimension_numbers = #tpu.dot_dimension_numbers<[1], [0], [0], [1], [0, 0, 1, 1], [], []>} : vector<16x64xbf16>, vector<64x128xbf16>, vector<16x128xf32> -> vector<16x128xf32>
    %49 = arith.truncf %48 : vector<16x128xf32> to vector<16x128xbf16>
    %c16 = arith.constant 16 : index
    %c0_34 = arith.constant 0 : index
    %50 = vector.load %arg7[%c16, %c0_34] : memref<144x64xbf16, #tpu.memory_space<vmem>>, vector<16x64xbf16>
    %cst_35 = arith.constant dense<0.000000e+00> : vector<16x128xf32>
    %51 = tpu.matmul %50, %46, %cst_35 {dimension_numbers = #tpu.dot_dimension_numbers<[1], [0], [0], [1], [0, 0, 1, 1], [], []>} : vector<16x64xbf16>, vector<64x128xbf16>, vector<16x128xf32> -> vector<16x128xf32>
    %52 = arith.truncf %51 : vector<16x128xf32> to vector<16x128xbf16>
    %c32 = arith.constant 32 : index
    %c0_36 = arith.constant 0 : index
    %53 = vector.load %arg7[%c32, %c0_36] : memref<144x64xbf16, #tpu.memory_space<vmem>>, vector<16x64xbf16>
    %cst_37 = arith.constant dense<0.000000e+00> : vector<16x128xf32>
    %54 = tpu.matmul %53, %46, %cst_37 {dimension_numbers = #tpu.dot_dimension_numbers<[1], [0], [0], [1], [0, 0, 1, 1], [], []>} : vector<16x64xbf16>, vector<64x128xbf16>, vector<16x128xf32> -> vector<16x128xf32>
    %55 = arith.truncf %54 : vector<16x128xf32> to vector<16x128xbf16>
    %c48 = arith.constant 48 : index
    %c0_38 = arith.constant 0 : index
    %56 = vector.load %arg7[%c48, %c0_38] : memref<144x64xbf16, #tpu.memory_space<vmem>>, vector<16x64xbf16>
    %cst_39 = arith.constant dense<0.000000e+00> : vector<16x128xf32>
    %57 = tpu.matmul %56, %46, %cst_39 {dimension_numbers = #tpu.dot_dimension_numbers<[1], [0], [0], [1], [0, 0, 1, 1], [], []>} : vector<16x64xbf16>, vector<64x128xbf16>, vector<16x128xf32> -> vector<16x128xf32>
    %58 = arith.truncf %57 : vector<16x128xf32> to vector<16x128xbf16>
    %c64_40 = arith.constant 64 : index
    %c0_41 = arith.constant 0 : index
    %59 = vector.load %arg7[%c64_40, %c0_41] : memref<144x64xbf16, #tpu.memory_space<vmem>>, vector<16x64xbf16>
    %cst_42 = arith.constant dense<0.000000e+00> : vector<16x128xf32>
    %60 = tpu.matmul %59, %46, %cst_42 {dimension_numbers = #tpu.dot_dimension_numbers<[1], [0], [0], [1], [0, 0, 1, 1], [], []>} : vector<16x64xbf16>, vector<64x128xbf16>, vector<16x128xf32> -> vector<16x128xf32>
    %61 = arith.truncf %60 : vector<16x128xf32> to vector<16x128xbf16>
    %c80 = arith.constant 80 : index
    %c0_43 = arith.constant 0 : index
    %62 = vector.load %arg7[%c80, %c0_43] : memref<144x64xbf16, #tpu.memory_space<vmem>>, vector<16x64xbf16>
    %cst_44 = arith.constant dense<0.000000e+00> : vector<16x128xf32>
    %63 = tpu.matmul %62, %46, %cst_44 {dimension_numbers = #tpu.dot_dimension_numbers<[1], [0], [0], [1], [0, 0, 1, 1], [], []>} : vector<16x64xbf16>, vector<64x128xbf16>, vector<16x128xf32> -> vector<16x128xf32>
    %64 = arith.truncf %63 : vector<16x128xf32> to vector<16x128xbf16>
    %c96 = arith.constant 96 : index
    %c0_45 = arith.constant 0 : index
    %65 = vector.load %arg7[%c96, %c0_45] : memref<144x64xbf16, #tpu.memory_space<vmem>>, vector<16x64xbf16>
    %cst_46 = arith.constant dense<0.000000e+00> : vector<16x128xf32>
    %66 = tpu.matmul %65, %46, %cst_46 {dimension_numbers = #tpu.dot_dimension_numbers<[1], [0], [0], [1], [0, 0, 1, 1], [], []>} : vector<16x64xbf16>, vector<64x128xbf16>, vector<16x128xf32> -> vector<16x128xf32>
    %67 = arith.truncf %66 : vector<16x128xf32> to vector<16x128xbf16>
    %c112 = arith.constant 112 : index
    %c0_47 = arith.constant 0 : index
    %68 = vector.load %arg7[%c112, %c0_47] : memref<144x64xbf16, #tpu.memory_space<vmem>>, vector<16x64xbf16>
    %cst_48 = arith.constant dense<0.000000e+00> : vector<16x128xf32>
    %69 = tpu.matmul %68, %46, %cst_48 {dimension_numbers = #tpu.dot_dimension_numbers<[1], [0], [0], [1], [0, 0, 1, 1], [], []>} : vector<16x64xbf16>, vector<64x128xbf16>, vector<16x128xf32> -> vector<16x128xf32>
    %70 = arith.truncf %69 : vector<16x128xf32> to vector<16x128xbf16>
    %c128_49 = arith.constant 128 : index
    %c0_50 = arith.constant 0 : index
    %71 = vector.load %arg7[%c128_49, %c0_50] : memref<144x64xbf16, #tpu.memory_space<vmem>>, vector<16x64xbf16>
    %cst_51 = arith.constant dense<0.000000e+00> : vector<16x128xf32>
    %72 = tpu.matmul %71, %46, %cst_51 {dimension_numbers = #tpu.dot_dimension_numbers<[1], [0], [0], [1], [0, 0, 1, 1], [], []>} : vector<16x64xbf16>, vector<64x128xbf16>, vector<16x128xf32> -> vector<16x128xf32>
    %73 = arith.truncf %72 : vector<16x128xf32> to vector<16x128xbf16>
    %74 = tpu.concatenate %49, %52, %55, %58, %61, %64, %67, %70, %73 in 1 : vector<16x128xbf16>, vector<16x128xbf16>, vector<16x128xbf16>, vector<16x128xbf16>, vector<16x128xbf16>, vector<16x128xbf16>, vector<16x128xbf16>, vector<16x128xbf16>, vector<16x128xbf16> -> vector<16x1152xbf16>
    %c0_52 = arith.constant 0 : index
    %c0_53 = arith.constant 0 : index
    %75 = vector.load %arg8[%c0_52, %c0_53] : memref<1152x128xbf16, #tpu.memory_space<vmem>>, vector<1152x128xbf16>
    %cst_54 = arith.constant dense<0.000000e+00> : vector<16x128xf32>
    %76 = tpu.matmul %74, %75, %cst_54 {dimension_numbers = #tpu.dot_dimension_numbers<[1], [0], [0], [1], [0, 0, 1, 1], [], []>} : vector<16x1152xbf16>, vector<1152x128xbf16>, vector<16x128xf32> -> vector<16x128xf32>
    %c0_55 = arith.constant 0 : index
    %c0_56 = arith.constant 0 : index
    %77 = vector.load %arg9[%c0_55, %c0_56] : memref<1x128xf32, #tpu.memory_space<vmem>>, vector<1x128xf32>
    %78 = vector.broadcast %77 : vector<1x128xf32> to vector<16x128xf32>
    %79 = arith.addf %76, %78 : vector<16x128xf32>
    %cst_57 = arith.constant 0.000000e+00 : f32
    %80 = vector.broadcast %cst_57 : f32 to vector<16x128xf32>
    %81 = arith.maximumf %79, %80 : vector<16x128xf32>
    %82 = arith.truncf %81 : vector<16x128xf32> to vector<16x128xbf16>
    %c0_58 = arith.constant 0 : index
    %c0_59 = arith.constant 0 : index
    %83 = vector.load %arg10[%c0_58, %c0_59] : memref<144x16xbf16, #tpu.memory_space<vmem>>, vector<16x16xbf16>
    %cst_60 = arith.constant dense<0.000000e+00> : vector<16x128xf32>
    %84 = tpu.matmul %83, %82, %cst_60 {dimension_numbers = #tpu.dot_dimension_numbers<[1], [0], [0], [1], [0, 0, 1, 1], [], []>} : vector<16x16xbf16>, vector<16x128xbf16>, vector<16x128xf32> -> vector<16x128xf32>
    %85 = arith.truncf %84 : vector<16x128xf32> to vector<16x128xbf16>
    %c16_61 = arith.constant 16 : index
    %c0_62 = arith.constant 0 : index
    %86 = vector.load %arg10[%c16_61, %c0_62] : memref<144x16xbf16, #tpu.memory_space<vmem>>, vector<16x16xbf16>
    %cst_63 = arith.constant dense<0.000000e+00> : vector<16x128xf32>
    %87 = tpu.matmul %86, %82, %cst_63 {dimension_numbers = #tpu.dot_dimension_numbers<[1], [0], [0], [1], [0, 0, 1, 1], [], []>} : vector<16x16xbf16>, vector<16x128xbf16>, vector<16x128xf32> -> vector<16x128xf32>
    %88 = arith.truncf %87 : vector<16x128xf32> to vector<16x128xbf16>
    %c32_64 = arith.constant 32 : index
    %c0_65 = arith.constant 0 : index
    %89 = vector.load %arg10[%c32_64, %c0_65] : memref<144x16xbf16, #tpu.memory_space<vmem>>, vector<16x16xbf16>
    %cst_66 = arith.constant dense<0.000000e+00> : vector<16x128xf32>
    %90 = tpu.matmul %89, %82, %cst_66 {dimension_numbers = #tpu.dot_dimension_numbers<[1], [0], [0], [1], [0, 0, 1, 1], [], []>} : vector<16x16xbf16>, vector<16x128xbf16>, vector<16x128xf32> -> vector<16x128xf32>
    %91 = arith.truncf %90 : vector<16x128xf32> to vector<16x128xbf16>
    %c48_67 = arith.constant 48 : index
    %c0_68 = arith.constant 0 : index
    %92 = vector.load %arg10[%c48_67, %c0_68] : memref<144x16xbf16, #tpu.memory_space<vmem>>, vector<16x16xbf16>
    %cst_69 = arith.constant dense<0.000000e+00> : vector<16x128xf32>
    %93 = tpu.matmul %92, %82, %cst_69 {dimension_numbers = #tpu.dot_dimension_numbers<[1], [0], [0], [1], [0, 0, 1, 1], [], []>} : vector<16x16xbf16>, vector<16x128xbf16>, vector<16x128xf32> -> vector<16x128xf32>
    %94 = arith.truncf %93 : vector<16x128xf32> to vector<16x128xbf16>
    %c64_70 = arith.constant 64 : index
    %c0_71 = arith.constant 0 : index
    %95 = vector.load %arg10[%c64_70, %c0_71] : memref<144x16xbf16, #tpu.memory_space<vmem>>, vector<16x16xbf16>
    %cst_72 = arith.constant dense<0.000000e+00> : vector<16x128xf32>
    %96 = tpu.matmul %95, %82, %cst_72 {dimension_numbers = #tpu.dot_dimension_numbers<[1], [0], [0], [1], [0, 0, 1, 1], [], []>} : vector<16x16xbf16>, vector<16x128xbf16>, vector<16x128xf32> -> vector<16x128xf32>
    %97 = arith.truncf %96 : vector<16x128xf32> to vector<16x128xbf16>
    %c80_73 = arith.constant 80 : index
    %c0_74 = arith.constant 0 : index
    %98 = vector.load %arg10[%c80_73, %c0_74] : memref<144x16xbf16, #tpu.memory_space<vmem>>, vector<16x16xbf16>
    %cst_75 = arith.constant dense<0.000000e+00> : vector<16x128xf32>
    %99 = tpu.matmul %98, %82, %cst_75 {dimension_numbers = #tpu.dot_dimension_numbers<[1], [0], [0], [1], [0, 0, 1, 1], [], []>} : vector<16x16xbf16>, vector<16x128xbf16>, vector<16x128xf32> -> vector<16x128xf32>
    %100 = arith.truncf %99 : vector<16x128xf32> to vector<16x128xbf16>
    %c96_76 = arith.constant 96 : index
    %c0_77 = arith.constant 0 : index
    %101 = vector.load %arg10[%c96_76, %c0_77] : memref<144x16xbf16, #tpu.memory_space<vmem>>, vector<16x16xbf16>
    %cst_78 = arith.constant dense<0.000000e+00> : vector<16x128xf32>
    %102 = tpu.matmul %101, %82, %cst_78 {dimension_numbers = #tpu.dot_dimension_numbers<[1], [0], [0], [1], [0, 0, 1, 1], [], []>} : vector<16x16xbf16>, vector<16x128xbf16>, vector<16x128xf32> -> vector<16x128xf32>
    %103 = arith.truncf %102 : vector<16x128xf32> to vector<16x128xbf16>
    %c112_79 = arith.constant 112 : index
    %c0_80 = arith.constant 0 : index
    %104 = vector.load %arg10[%c112_79, %c0_80] : memref<144x16xbf16, #tpu.memory_space<vmem>>, vector<16x16xbf16>
    %cst_81 = arith.constant dense<0.000000e+00> : vector<16x128xf32>
    %105 = tpu.matmul %104, %82, %cst_81 {dimension_numbers = #tpu.dot_dimension_numbers<[1], [0], [0], [1], [0, 0, 1, 1], [], []>} : vector<16x16xbf16>, vector<16x128xbf16>, vector<16x128xf32> -> vector<16x128xf32>
    %106 = arith.truncf %105 : vector<16x128xf32> to vector<16x128xbf16>
    %c128_82 = arith.constant 128 : index
    %c0_83 = arith.constant 0 : index
    %107 = vector.load %arg10[%c128_82, %c0_83] : memref<144x16xbf16, #tpu.memory_space<vmem>>, vector<16x16xbf16>
    %cst_84 = arith.constant dense<0.000000e+00> : vector<16x128xf32>
    %108 = tpu.matmul %107, %82, %cst_84 {dimension_numbers = #tpu.dot_dimension_numbers<[1], [0], [0], [1], [0, 0, 1, 1], [], []>} : vector<16x16xbf16>, vector<16x128xbf16>, vector<16x128xf32> -> vector<16x128xf32>
    %109 = arith.truncf %108 : vector<16x128xf32> to vector<16x128xbf16>
    %110 = tpu.concatenate %85, %88, %91, %94, %97, %100, %103, %106, %109 in 1 : vector<16x128xbf16>, vector<16x128xbf16>, vector<16x128xbf16>, vector<16x128xbf16>, vector<16x128xbf16>, vector<16x128xbf16>, vector<16x128xbf16>, vector<16x128xbf16>, vector<16x128xbf16> -> vector<16x1152xbf16>
    %c0_85 = arith.constant 0 : index
    %c0_86 = arith.constant 0 : index
    %111 = vector.load %arg11[%c0_85, %c0_86] : memref<1152x128xbf16, #tpu.memory_space<vmem>>, vector<1152x128xbf16>
    %cst_87 = arith.constant dense<0.000000e+00> : vector<16x128xf32>
    %112 = tpu.matmul %110, %111, %cst_87 {dimension_numbers = #tpu.dot_dimension_numbers<[1], [0], [0], [1], [0, 0, 1, 1], [], []>} : vector<16x1152xbf16>, vector<1152x128xbf16>, vector<16x128xf32> -> vector<16x128xf32>
    %c0_88 = arith.constant 0 : index
    %c0_89 = arith.constant 0 : index
    %113 = vector.load %arg12[%c0_88, %c0_89] : memref<1x128xf32, #tpu.memory_space<vmem>>, vector<1x128xf32>
    %114 = vector.broadcast %113 : vector<1x128xf32> to vector<16x128xf32>
    %115 = arith.addf %112, %114 : vector<16x128xf32>
    %cst_90 = arith.constant 0.000000e+00 : f32
    %116 = vector.broadcast %cst_90 : f32 to vector<16x128xf32>
    %117 = arith.maximumf %115, %116 : vector<16x128xf32>
    %118 = arith.truncf %117 : vector<16x128xf32> to vector<16x128xbf16>
    %c0_91 = arith.constant 0 : index
    %c0_92 = arith.constant 0 : index
    %119 = vector.load %arg14[%c0_91, %c0_92] : memref<1x128xf32, #tpu.memory_space<vmem>>, vector<1x128xf32>
    %120 = vector.extract_strided_slice %118 {offsets = [0, 0], sizes = [1, 128], strides = [1, 1]} : vector<16x128xbf16> to vector<1x128xbf16>
    %c0_93 = arith.constant 0 : index
    %c0_94 = arith.constant 0 : index
    %121 = vector.load %arg13[%c0_93, %c0_94] : memref<512x128xbf16, #tpu.memory_space<vmem>>, vector<128x128xbf16>
    %cst_95 = arith.constant dense<0.000000e+00> : vector<1x128xf32>
    %122 = tpu.matmul %120, %121, %cst_95 {dimension_numbers = #tpu.dot_dimension_numbers<[1], [0], [0], [1], [0, 0, 1, 1], [], []>} : vector<1x128xbf16>, vector<128x128xbf16>, vector<1x128xf32> -> vector<1x128xf32>
    %123 = arith.addf %119, %122 : vector<1x128xf32>
    %124 = vector.extract_strided_slice %118 {offsets = [1, 0], sizes = [1, 128], strides = [1, 1]} : vector<16x128xbf16> to vector<1x128xbf16>
    %c128_96 = arith.constant 128 : index
    %c0_97 = arith.constant 0 : index
    %125 = vector.load %arg13[%c128_96, %c0_97] : memref<512x128xbf16, #tpu.memory_space<vmem>>, vector<128x128xbf16>
    %cst_98 = arith.constant dense<0.000000e+00> : vector<1x128xf32>
    %126 = tpu.matmul %124, %125, %cst_98 {dimension_numbers = #tpu.dot_dimension_numbers<[1], [0], [0], [1], [0, 0, 1, 1], [], []>} : vector<1x128xbf16>, vector<128x128xbf16>, vector<1x128xf32> -> vector<1x128xf32>
    %127 = arith.addf %123, %126 : vector<1x128xf32>
    %128 = vector.extract_strided_slice %118 {offsets = [2, 0], sizes = [1, 128], strides = [1, 1]} : vector<16x128xbf16> to vector<1x128xbf16>
    %c256_99 = arith.constant 256 : index
    %c0_100 = arith.constant 0 : index
    %129 = vector.load %arg13[%c256_99, %c0_100] : memref<512x128xbf16, #tpu.memory_space<vmem>>, vector<128x128xbf16>
    %cst_101 = arith.constant dense<0.000000e+00> : vector<1x128xf32>
    %130 = tpu.matmul %128, %129, %cst_101 {dimension_numbers = #tpu.dot_dimension_numbers<[1], [0], [0], [1], [0, 0, 1, 1], [], []>} : vector<1x128xbf16>, vector<128x128xbf16>, vector<1x128xf32> -> vector<1x128xf32>
    %131 = arith.addf %127, %130 : vector<1x128xf32>
    %132 = vector.extract_strided_slice %118 {offsets = [3, 0], sizes = [1, 128], strides = [1, 1]} : vector<16x128xbf16> to vector<1x128xbf16>
    %c384_102 = arith.constant 384 : index
    %c0_103 = arith.constant 0 : index
    %133 = vector.load %arg13[%c384_102, %c0_103] : memref<512x128xbf16, #tpu.memory_space<vmem>>, vector<128x128xbf16>
    %cst_104 = arith.constant dense<0.000000e+00> : vector<1x128xf32>
    %134 = tpu.matmul %132, %133, %cst_104 {dimension_numbers = #tpu.dot_dimension_numbers<[1], [0], [0], [1], [0, 0, 1, 1], [], []>} : vector<1x128xbf16>, vector<128x128xbf16>, vector<1x128xf32> -> vector<1x128xf32>
    %135 = arith.addf %131, %134 : vector<1x128xf32>
    %136 = arith.index_cast %c0_i32 : i32 to index
    %c0_105 = arith.constant 0 : index
    %c0_106 = arith.constant 0 : index
    %137 = vector.load %arg15[%136, %c0_105, %c0_106] : memref<2x1x128xf32, #tpu.memory_space<vmem>>, vector<1x1x128xf32>
    %138 = vector.shape_cast %137 : vector<1x1x128xf32> to vector<1x128xf32>
    %139 = vector.shape_cast %135 : vector<1x128xf32> to vector<1x1x128xf32>
    tpu.vector_store %arg15[%136, %c0_105, %c0_106], %139 {strides = array<i32>} : memref<2x1x128xf32, #tpu.memory_space<vmem>>, vector<1x1x128xf32>,
    %c1_i32 = arith.constant 1 : i32
    %140 = arith.index_cast %c1_i32 : i32 to index
    %c0_107 = arith.constant 0 : index
    %c0_108 = arith.constant 0 : index
    %141 = vector.load %arg1[%140, %c0_107, %c0_108] : memref<2x208x9xbf16, #tpu.memory_space<vmem>>, vector<1x208x9xbf16>
    %142 = vector.shape_cast %141 : vector<1x208x9xbf16> to vector<208x9xbf16>
    %c0_109 = arith.constant 0 : index
    %c0_110 = arith.constant 0 : index
    %143 = vector.load %arg2[%c0_109, %c0_110] : memref<9x128xbf16, #tpu.memory_space<vmem>>, vector<9x128xbf16>
    %cst_111 = arith.constant dense<0.000000e+00> : vector<208x128xf32>
    %144 = tpu.matmul %142, %143, %cst_111 {dimension_numbers = #tpu.dot_dimension_numbers<[1], [0], [0], [1], [0, 0, 1, 1], [], []>} : vector<208x9xbf16>, vector<9x128xbf16>, vector<208x128xf32> -> vector<208x128xf32>
    %c0_112 = arith.constant 0 : index
    %c0_113 = arith.constant 0 : index
    %145 = vector.load %arg3[%c0_112, %c0_113] : memref<1x128xf32, #tpu.memory_space<vmem>>, vector<1x128xf32>
    %146 = vector.broadcast %145 : vector<1x128xf32> to vector<208x128xf32>
    %147 = arith.addf %144, %146 : vector<208x128xf32>
    %cst_114 = arith.constant 0.000000e+00 : f32
    %148 = vector.broadcast %cst_114 : f32 to vector<208x128xf32>
    %149 = arith.maximumf %147, %148 : vector<208x128xf32>
    %150 = arith.truncf %149 : vector<208x128xf32> to vector<208x128xbf16>
    %c0_115 = arith.constant 0 : index
    %c0_116 = arith.constant 0 : index
    %151 = vector.load %arg4[%c0_115, %c0_116] : memref<576x208xbf16, #tpu.memory_space<vmem>>, vector<64x208xbf16>
    %cst_117 = arith.constant dense<0.000000e+00> : vector<64x128xf32>
    %152 = tpu.matmul %151, %150, %cst_117 {dimension_numbers = #tpu.dot_dimension_numbers<[1], [0], [0], [1], [0, 0, 1, 1], [], []>} : vector<64x208xbf16>, vector<208x128xbf16>, vector<64x128xf32> -> vector<64x128xf32>
    %153 = arith.truncf %152 : vector<64x128xf32> to vector<64x128xbf16>
    %c64_118 = arith.constant 64 : index
    %c0_119 = arith.constant 0 : index
    %154 = vector.load %arg4[%c64_118, %c0_119] : memref<576x208xbf16, #tpu.memory_space<vmem>>, vector<64x208xbf16>
    %cst_120 = arith.constant dense<0.000000e+00> : vector<64x128xf32>
    %155 = tpu.matmul %154, %150, %cst_120 {dimension_numbers = #tpu.dot_dimension_numbers<[1], [0], [0], [1], [0, 0, 1, 1], [], []>} : vector<64x208xbf16>, vector<208x128xbf16>, vector<64x128xf32> -> vector<64x128xf32>
    %156 = arith.truncf %155 : vector<64x128xf32> to vector<64x128xbf16>
    %c128_121 = arith.constant 128 : index
    %c0_122 = arith.constant 0 : index
    %157 = vector.load %arg4[%c128_121, %c0_122] : memref<576x208xbf16, #tpu.memory_space<vmem>>, vector<64x208xbf16>
    %cst_123 = arith.constant dense<0.000000e+00> : vector<64x128xf32>
    %158 = tpu.matmul %157, %150, %cst_123 {dimension_numbers = #tpu.dot_dimension_numbers<[1], [0], [0], [1], [0, 0, 1, 1], [], []>} : vector<64x208xbf16>, vector<208x128xbf16>, vector<64x128xf32> -> vector<64x128xf32>
    %159 = arith.truncf %158 : vector<64x128xf32> to vector<64x128xbf16>
    %c192_124 = arith.constant 192 : index
    %c0_125 = arith.constant 0 : index
    %160 = vector.load %arg4[%c192_124, %c0_125] : memref<576x208xbf16, #tpu.memory_space<vmem>>, vector<64x208xbf16>
    %cst_126 = arith.constant dense<0.000000e+00> : vector<64x128xf32>
    %161 = tpu.matmul %160, %150, %cst_126 {dimension_numbers = #tpu.dot_dimension_numbers<[1], [0], [0], [1], [0, 0, 1, 1], [], []>} : vector<64x208xbf16>, vector<208x128xbf16>, vector<64x128xf32> -> vector<64x128xf32>
    %162 = arith.truncf %161 : vector<64x128xf32> to vector<64x128xbf16>
    %c256_127 = arith.constant 256 : index
    %c0_128 = arith.constant 0 : index
    %163 = vector.load %arg4[%c256_127, %c0_128] : memref<576x208xbf16, #tpu.memory_space<vmem>>, vector<64x208xbf16>
    %cst_129 = arith.constant dense<0.000000e+00> : vector<64x128xf32>
    %164 = tpu.matmul %163, %150, %cst_129 {dimension_numbers = #tpu.dot_dimension_numbers<[1], [0], [0], [1], [0, 0, 1, 1], [], []>} : vector<64x208xbf16>, vector<208x128xbf16>, vector<64x128xf32> -> vector<64x128xf32>
    %165 = arith.truncf %164 : vector<64x128xf32> to vector<64x128xbf16>
    %c320_130 = arith.constant 320 : index
    %c0_131 = arith.constant 0 : index
    %166 = vector.load %arg4[%c320_130, %c0_131] : memref<576x208xbf16, #tpu.memory_space<vmem>>, vector<64x208xbf16>
    %cst_132 = arith.constant dense<0.000000e+00> : vector<64x128xf32>
    %167 = tpu.matmul %166, %150, %cst_132 {dimension_numbers = #tpu.dot_dimension_numbers<[1], [0], [0], [1], [0, 0, 1, 1], [], []>} : vector<64x208xbf16>, vector<208x128xbf16>, vector<64x128xf32> -> vector<64x128xf32>
    %168 = arith.truncf %167 : vector<64x128xf32> to vector<64x128xbf16>
    %c384_133 = arith.constant 384 : index
    %c0_134 = arith.constant 0 : index
    %169 = vector.load %arg4[%c384_133, %c0_134] : memref<576x208xbf16, #tpu.memory_space<vmem>>, vector<64x208xbf16>
    %cst_135 = arith.constant dense<0.000000e+00> : vector<64x128xf32>
    %170 = tpu.matmul %169, %150, %cst_135 {dimension_numbers = #tpu.dot_dimension_numbers<[1], [0], [0], [1], [0, 0, 1, 1], [], []>} : vector<64x208xbf16>, vector<208x128xbf16>, vector<64x128xf32> -> vector<64x128xf32>
    %171 = arith.truncf %170 : vector<64x128xf32> to vector<64x128xbf16>
    %c448_136 = arith.constant 448 : index
    %c0_137 = arith.constant 0 : index
    %172 = vector.load %arg4[%c448_136, %c0_137] : memref<576x208xbf16, #tpu.memory_space<vmem>>, vector<64x208xbf16>
    %cst_138 = arith.constant dense<0.000000e+00> : vector<64x128xf32>
    %173 = tpu.matmul %172, %150, %cst_138 {dimension_numbers = #tpu.dot_dimension_numbers<[1], [0], [0], [1], [0, 0, 1, 1], [], []>} : vector<64x208xbf16>, vector<208x128xbf16>, vector<64x128xf32> -> vector<64x128xf32>
    %174 = arith.truncf %173 : vector<64x128xf32> to vector<64x128xbf16>
    %c512_139 = arith.constant 512 : index
    %c0_140 = arith.constant 0 : index
    %175 = vector.load %arg4[%c512_139, %c0_140] : memref<576x208xbf16, #tpu.memory_space<vmem>>, vector<64x208xbf16>
    %cst_141 = arith.constant dense<0.000000e+00> : vector<64x128xf32>
    %176 = tpu.matmul %175, %150, %cst_141 {dimension_numbers = #tpu.dot_dimension_numbers<[1], [0], [0], [1], [0, 0, 1, 1], [], []>} : vector<64x208xbf16>, vector<208x128xbf16>, vector<64x128xf32> -> vector<64x128xf32>
    %177 = arith.truncf %176 : vector<64x128xf32> to vector<64x128xbf16>
    %178 = tpu.concatenate %153, %156, %159, %162, %165, %168, %171, %174, %177 in 1 : vector<64x128xbf16>, vector<64x128xbf16>, vector<64x128xbf16>, vector<64x128xbf16>, vector<64x128xbf16>, vector<64x128xbf16>, vector<64x128xbf16>, vector<64x128xbf16>, vector<64x128xbf16> -> vector<64x1152xbf16>
    %c0_142 = arith.constant 0 : index
    %c0_143 = arith.constant 0 : index
    %179 = vector.load %arg5[%c0_142, %c0_143] : memref<1152x128xbf16, #tpu.memory_space<vmem>>, vector<1152x128xbf16>
    %cst_144 = arith.constant dense<0.000000e+00> : vector<64x128xf32>
    %180 = tpu.matmul %178, %179, %cst_144 {dimension_numbers = #tpu.dot_dimension_numbers<[1], [0], [0], [1], [0, 0, 1, 1], [], []>} : vector<64x1152xbf16>, vector<1152x128xbf16>, vector<64x128xf32> -> vector<64x128xf32>
    %c0_145 = arith.constant 0 : index
    %c0_146 = arith.constant 0 : index
    %181 = vector.load %arg6[%c0_145, %c0_146] : memref<1x128xf32, #tpu.memory_space<vmem>>, vector<1x128xf32>
    %182 = vector.broadcast %181 : vector<1x128xf32> to vector<64x128xf32>
    %183 = arith.addf %180, %182 : vector<64x128xf32>
    %cst_147 = arith.constant 0.000000e+00 : f32
    %184 = vector.broadcast %cst_147 : f32 to vector<64x128xf32>
    %185 = arith.maximumf %183, %184 : vector<64x128xf32>
    %186 = arith.truncf %185 : vector<64x128xf32> to vector<64x128xbf16>
    %c0_148 = arith.constant 0 : index
    %c0_149 = arith.constant 0 : index
    %187 = vector.load %arg7[%c0_148, %c0_149] : memref<144x64xbf16, #tpu.memory_space<vmem>>, vector<16x64xbf16>
    %cst_150 = arith.constant dense<0.000000e+00> : vector<16x128xf32>
    %188 = tpu.matmul %187, %186, %cst_150 {dimension_numbers = #tpu.dot_dimension_numbers<[1], [0], [0], [1], [0, 0, 1, 1], [], []>} : vector<16x64xbf16>, vector<64x128xbf16>, vector<16x128xf32> -> vector<16x128xf32>
    %189 = arith.truncf %188 : vector<16x128xf32> to vector<16x128xbf16>
    %c16_151 = arith.constant 16 : index
    %c0_152 = arith.constant 0 : index
    %190 = vector.load %arg7[%c16_151, %c0_152] : memref<144x64xbf16, #tpu.memory_space<vmem>>, vector<16x64xbf16>
    %cst_153 = arith.constant dense<0.000000e+00> : vector<16x128xf32>
    %191 = tpu.matmul %190, %186, %cst_153 {dimension_numbers = #tpu.dot_dimension_numbers<[1], [0], [0], [1], [0, 0, 1, 1], [], []>} : vector<16x64xbf16>, vector<64x128xbf16>, vector<16x128xf32> -> vector<16x128xf32>
    %192 = arith.truncf %191 : vector<16x128xf32> to vector<16x128xbf16>
    %c32_154 = arith.constant 32 : index
    %c0_155 = arith.constant 0 : index
    %193 = vector.load %arg7[%c32_154, %c0_155] : memref<144x64xbf16, #tpu.memory_space<vmem>>, vector<16x64xbf16>
    %cst_156 = arith.constant dense<0.000000e+00> : vector<16x128xf32>
    %194 = tpu.matmul %193, %186, %cst_156 {dimension_numbers = #tpu.dot_dimension_numbers<[1], [0], [0], [1], [0, 0, 1, 1], [], []>} : vector<16x64xbf16>, vector<64x128xbf16>, vector<16x128xf32> -> vector<16x128xf32>
    %195 = arith.truncf %194 : vector<16x128xf32> to vector<16x128xbf16>
    %c48_157 = arith.constant 48 : index
    %c0_158 = arith.constant 0 : index
    %196 = vector.load %arg7[%c48_157, %c0_158] : memref<144x64xbf16, #tpu.memory_space<vmem>>, vector<16x64xbf16>
    %cst_159 = arith.constant dense<0.000000e+00> : vector<16x128xf32>
    %197 = tpu.matmul %196, %186, %cst_159 {dimension_numbers = #tpu.dot_dimension_numbers<[1], [0], [0], [1], [0, 0, 1, 1], [], []>} : vector<16x64xbf16>, vector<64x128xbf16>, vector<16x128xf32> -> vector<16x128xf32>
    %198 = arith.truncf %197 : vector<16x128xf32> to vector<16x128xbf16>
    %c64_160 = arith.constant 64 : index
    %c0_161 = arith.constant 0 : index
    %199 = vector.load %arg7[%c64_160, %c0_161] : memref<144x64xbf16, #tpu.memory_space<vmem>>, vector<16x64xbf16>
    %cst_162 = arith.constant dense<0.000000e+00> : vector<16x128xf32>
    %200 = tpu.matmul %199, %186, %cst_162 {dimension_numbers = #tpu.dot_dimension_numbers<[1], [0], [0], [1], [0, 0, 1, 1], [], []>} : vector<16x64xbf16>, vector<64x128xbf16>, vector<16x128xf32> -> vector<16x128xf32>
    %201 = arith.truncf %200 : vector<16x128xf32> to vector<16x128xbf16>
    %c80_163 = arith.constant 80 : index
    %c0_164 = arith.constant 0 : index
    %202 = vector.load %arg7[%c80_163, %c0_164] : memref<144x64xbf16, #tpu.memory_space<vmem>>, vector<16x64xbf16>
    %cst_165 = arith.constant dense<0.000000e+00> : vector<16x128xf32>
    %203 = tpu.matmul %202, %186, %cst_165 {dimension_numbers = #tpu.dot_dimension_numbers<[1], [0], [0], [1], [0, 0, 1, 1], [], []>} : vector<16x64xbf16>, vector<64x128xbf16>, vector<16x128xf32> -> vector<16x128xf32>
    %204 = arith.truncf %203 : vector<16x128xf32> to vector<16x128xbf16>
    %c96_166 = arith.constant 96 : index
    %c0_167 = arith.constant 0 : index
    %205 = vector.load %arg7[%c96_166, %c0_167] : memref<144x64xbf16, #tpu.memory_space<vmem>>, vector<16x64xbf16>
    %cst_168 = arith.constant dense<0.000000e+00> : vector<16x128xf32>
    %206 = tpu.matmul %205, %186, %cst_168 {dimension_numbers = #tpu.dot_dimension_numbers<[1], [0], [0], [1], [0, 0, 1, 1], [], []>} : vector<16x64xbf16>, vector<64x128xbf16>, vector<16x128xf32> -> vector<16x128xf32>
    %207 = arith.truncf %206 : vector<16x128xf32> to vector<16x128xbf16>
    %c112_169 = arith.constant 112 : index
    %c0_170 = arith.constant 0 : index
    %208 = vector.load %arg7[%c112_169, %c0_170] : memref<144x64xbf16, #tpu.memory_space<vmem>>, vector<16x64xbf16>
    %cst_171 = arith.constant dense<0.000000e+00> : vector<16x128xf32>
    %209 = tpu.matmul %208, %186, %cst_171 {dimension_numbers = #tpu.dot_dimension_numbers<[1], [0], [0], [1], [0, 0, 1, 1], [], []>} : vector<16x64xbf16>, vector<64x128xbf16>, vector<16x128xf32> -> vector<16x128xf32>
    %210 = arith.truncf %209 : vector<16x128xf32> to vector<16x128xbf16>
    %c128_172 = arith.constant 128 : index
    %c0_173 = arith.constant 0 : index
    %211 = vector.load %arg7[%c128_172, %c0_173] : memref<144x64xbf16, #tpu.memory_space<vmem>>, vector<16x64xbf16>
    %cst_174 = arith.constant dense<0.000000e+00> : vector<16x128xf32>
    %212 = tpu.matmul %211, %186, %cst_174 {dimension_numbers = #tpu.dot_dimension_numbers<[1], [0], [0], [1], [0, 0, 1, 1], [], []>} : vector<16x64xbf16>, vector<64x128xbf16>, vector<16x128xf32> -> vector<16x128xf32>
    %213 = arith.truncf %212 : vector<16x128xf32> to vector<16x128xbf16>
    %214 = tpu.concatenate %189, %192, %195, %198, %201, %204, %207, %210, %213 in 1 : vector<16x128xbf16>, vector<16x128xbf16>, vector<16x128xbf16>, vector<16x128xbf16>, vector<16x128xbf16>, vector<16x128xbf16>, vector<16x128xbf16>, vector<16x128xbf16>, vector<16x128xbf16> -> vector<16x1152xbf16>
    %c0_175 = arith.constant 0 : index
    %c0_176 = arith.constant 0 : index
    %215 = vector.load %arg8[%c0_175, %c0_176] : memref<1152x128xbf16, #tpu.memory_space<vmem>>, vector<1152x128xbf16>
    %cst_177 = arith.constant dense<0.000000e+00> : vector<16x128xf32>
    %216 = tpu.matmul %214, %215, %cst_177 {dimension_numbers = #tpu.dot_dimension_numbers<[1], [0], [0], [1], [0, 0, 1, 1], [], []>} : vector<16x1152xbf16>, vector<1152x128xbf16>, vector<16x128xf32> -> vector<16x128xf32>
    %c0_178 = arith.constant 0 : index
    %c0_179 = arith.constant 0 : index
    %217 = vector.load %arg9[%c0_178, %c0_179] : memref<1x128xf32, #tpu.memory_space<vmem>>, vector<1x128xf32>
    %218 = vector.broadcast %217 : vector<1x128xf32> to vector<16x128xf32>
    %219 = arith.addf %216, %218 : vector<16x128xf32>
    %cst_180 = arith.constant 0.000000e+00 : f32
    %220 = vector.broadcast %cst_180 : f32 to vector<16x128xf32>
    %221 = arith.maximumf %219, %220 : vector<16x128xf32>
    %222 = arith.truncf %221 : vector<16x128xf32> to vector<16x128xbf16>
    %c0_181 = arith.constant 0 : index
    %c0_182 = arith.constant 0 : index
    %223 = vector.load %arg10[%c0_181, %c0_182] : memref<144x16xbf16, #tpu.memory_space<vmem>>, vector<16x16xbf16>
    %cst_183 = arith.constant dense<0.000000e+00> : vector<16x128xf32>
    %224 = tpu.matmul %223, %222, %cst_183 {dimension_numbers = #tpu.dot_dimension_numbers<[1], [0], [0], [1], [0, 0, 1, 1], [], []>} : vector<16x16xbf16>, vector<16x128xbf16>, vector<16x128xf32> -> vector<16x128xf32>
    %225 = arith.truncf %224 : vector<16x128xf32> to vector<16x128xbf16>
    %c16_184 = arith.constant 16 : index
    %c0_185 = arith.constant 0 : index
    %226 = vector.load %arg10[%c16_184, %c0_185] : memref<144x16xbf16, #tpu.memory_space<vmem>>, vector<16x16xbf16>
    %cst_186 = arith.constant dense<0.000000e+00> : vector<16x128xf32>
    %227 = tpu.matmul %226, %222, %cst_186 {dimension_numbers = #tpu.dot_dimension_numbers<[1], [0], [0], [1], [0, 0, 1, 1], [], []>} : vector<16x16xbf16>, vector<16x128xbf16>, vector<16x128xf32> -> vector<16x128xf32>
    %228 = arith.truncf %227 : vector<16x128xf32> to vector<16x128xbf16>
    %c32_187 = arith.constant 32 : index
    %c0_188 = arith.constant 0 : index
    %229 = vector.load %arg10[%c32_187, %c0_188] : memref<144x16xbf16, #tpu.memory_space<vmem>>, vector<16x16xbf16>
    %cst_189 = arith.constant dense<0.000000e+00> : vector<16x128xf32>
    %230 = tpu.matmul %229, %222, %cst_189 {dimension_numbers = #tpu.dot_dimension_numbers<[1], [0], [0], [1], [0, 0, 1, 1], [], []>} : vector<16x16xbf16>, vector<16x128xbf16>, vector<16x128xf32> -> vector<16x128xf32>
    %231 = arith.truncf %230 : vector<16x128xf32> to vector<16x128xbf16>
    %c48_190 = arith.constant 48 : index
    %c0_191 = arith.constant 0 : index
    %232 = vector.load %arg10[%c48_190, %c0_191] : memref<144x16xbf16, #tpu.memory_space<vmem>>, vector<16x16xbf16>
    %cst_192 = arith.constant dense<0.000000e+00> : vector<16x128xf32>
    %233 = tpu.matmul %232, %222, %cst_192 {dimension_numbers = #tpu.dot_dimension_numbers<[1], [0], [0], [1], [0, 0, 1, 1], [], []>} : vector<16x16xbf16>, vector<16x128xbf16>, vector<16x128xf32> -> vector<16x128xf32>
    %234 = arith.truncf %233 : vector<16x128xf32> to vector<16x128xbf16>
    %c64_193 = arith.constant 64 : index
    %c0_194 = arith.constant 0 : index
    %235 = vector.load %arg10[%c64_193, %c0_194] : memref<144x16xbf16, #tpu.memory_space<vmem>>, vector<16x16xbf16>
    %cst_195 = arith.constant dense<0.000000e+00> : vector<16x128xf32>
    %236 = tpu.matmul %235, %222, %cst_195 {dimension_numbers = #tpu.dot_dimension_numbers<[1], [0], [0], [1], [0, 0, 1, 1], [], []>} : vector<16x16xbf16>, vector<16x128xbf16>, vector<16x128xf32> -> vector<16x128xf32>
    %237 = arith.truncf %236 : vector<16x128xf32> to vector<16x128xbf16>
    %c80_196 = arith.constant 80 : index
    %c0_197 = arith.constant 0 : index
    %238 = vector.load %arg10[%c80_196, %c0_197] : memref<144x16xbf16, #tpu.memory_space<vmem>>, vector<16x16xbf16>
    %cst_198 = arith.constant dense<0.000000e+00> : vector<16x128xf32>
    %239 = tpu.matmul %238, %222, %cst_198 {dimension_numbers = #tpu.dot_dimension_numbers<[1], [0], [0], [1], [0, 0, 1, 1], [], []>} : vector<16x16xbf16>, vector<16x128xbf16>, vector<16x128xf32> -> vector<16x128xf32>
    %240 = arith.truncf %239 : vector<16x128xf32> to vector<16x128xbf16>
    %c96_199 = arith.constant 96 : index
    %c0_200 = arith.constant 0 : index
    %241 = vector.load %arg10[%c96_199, %c0_200] : memref<144x16xbf16, #tpu.memory_space<vmem>>, vector<16x16xbf16>
    %cst_201 = arith.constant dense<0.000000e+00> : vector<16x128xf32>
    %242 = tpu.matmul %241, %222, %cst_201 {dimension_numbers = #tpu.dot_dimension_numbers<[1], [0], [0], [1], [0, 0, 1, 1], [], []>} : vector<16x16xbf16>, vector<16x128xbf16>, vector<16x128xf32> -> vector<16x128xf32>
    %243 = arith.truncf %242 : vector<16x128xf32> to vector<16x128xbf16>
    %c112_202 = arith.constant 112 : index
    %c0_203 = arith.constant 0 : index
    %244 = vector.load %arg10[%c112_202, %c0_203] : memref<144x16xbf16, #tpu.memory_space<vmem>>, vector<16x16xbf16>
    %cst_204 = arith.constant dense<0.000000e+00> : vector<16x128xf32>
    %245 = tpu.matmul %244, %222, %cst_204 {dimension_numbers = #tpu.dot_dimension_numbers<[1], [0], [0], [1], [0, 0, 1, 1], [], []>} : vector<16x16xbf16>, vector<16x128xbf16>, vector<16x128xf32> -> vector<16x128xf32>
    %246 = arith.truncf %245 : vector<16x128xf32> to vector<16x128xbf16>
    %c128_205 = arith.constant 128 : index
    %c0_206 = arith.constant 0 : index
    %247 = vector.load %arg10[%c128_205, %c0_206] : memref<144x16xbf16, #tpu.memory_space<vmem>>, vector<16x16xbf16>
    %cst_207 = arith.constant dense<0.000000e+00> : vector<16x128xf32>
    %248 = tpu.matmul %247, %222, %cst_207 {dimension_numbers = #tpu.dot_dimension_numbers<[1], [0], [0], [1], [0, 0, 1, 1], [], []>} : vector<16x16xbf16>, vector<16x128xbf16>, vector<16x128xf32> -> vector<16x128xf32>
    %249 = arith.truncf %248 : vector<16x128xf32> to vector<16x128xbf16>
    %250 = tpu.concatenate %225, %228, %231, %234, %237, %240, %243, %246, %249 in 1 : vector<16x128xbf16>, vector<16x128xbf16>, vector<16x128xbf16>, vector<16x128xbf16>, vector<16x128xbf16>, vector<16x128xbf16>, vector<16x128xbf16>, vector<16x128xbf16>, vector<16x128xbf16> -> vector<16x1152xbf16>
    %c0_208 = arith.constant 0 : index
    %c0_209 = arith.constant 0 : index
    %251 = vector.load %arg11[%c0_208, %c0_209] : memref<1152x128xbf16, #tpu.memory_space<vmem>>, vector<1152x128xbf16>
    %cst_210 = arith.constant dense<0.000000e+00> : vector<16x128xf32>
    %252 = tpu.matmul %250, %251, %cst_210 {dimension_numbers = #tpu.dot_dimension_numbers<[1], [0], [0], [1], [0, 0, 1, 1], [], []>} : vector<16x1152xbf16>, vector<1152x128xbf16>, vector<16x128xf32> -> vector<16x128xf32>
    %c0_211 = arith.constant 0 : index
    %c0_212 = arith.constant 0 : index
    %253 = vector.load %arg12[%c0_211, %c0_212] : memref<1x128xf32, #tpu.memory_space<vmem>>, vector<1x128xf32>
    %254 = vector.broadcast %253 : vector<1x128xf32> to vector<16x128xf32>
    %255 = arith.addf %252, %254 : vector<16x128xf32>
    %cst_213 = arith.constant 0.000000e+00 : f32
    %256 = vector.broadcast %cst_213 : f32 to vector<16x128xf32>
    %257 = arith.maximumf %255, %256 : vector<16x128xf32>
    %258 = arith.truncf %257 : vector<16x128xf32> to vector<16x128xbf16>
    %c0_214 = arith.constant 0 : index
    %c0_215 = arith.constant 0 : index
    %259 = vector.load %arg14[%c0_214, %c0_215] : memref<1x128xf32, #tpu.memory_space<vmem>>, vector<1x128xf32>
    %260 = vector.extract_strided_slice %258 {offsets = [0, 0], sizes = [1, 128], strides = [1, 1]} : vector<16x128xbf16> to vector<1x128xbf16>
    %c0_216 = arith.constant 0 : index
    %c0_217 = arith.constant 0 : index
    %261 = vector.load %arg13[%c0_216, %c0_217] : memref<512x128xbf16, #tpu.memory_space<vmem>>, vector<128x128xbf16>
    %cst_218 = arith.constant dense<0.000000e+00> : vector<1x128xf32>
    %262 = tpu.matmul %260, %261, %cst_218 {dimension_numbers = #tpu.dot_dimension_numbers<[1], [0], [0], [1], [0, 0, 1, 1], [], []>} : vector<1x128xbf16>, vector<128x128xbf16>, vector<1x128xf32> -> vector<1x128xf32>
    %263 = arith.addf %259, %262 : vector<1x128xf32>
    %264 = vector.extract_strided_slice %258 {offsets = [1, 0], sizes = [1, 128], strides = [1, 1]} : vector<16x128xbf16> to vector<1x128xbf16>
    %c128_219 = arith.constant 128 : index
    %c0_220 = arith.constant 0 : index
    %265 = vector.load %arg13[%c128_219, %c0_220] : memref<512x128xbf16, #tpu.memory_space<vmem>>, vector<128x128xbf16>
    %cst_221 = arith.constant dense<0.000000e+00> : vector<1x128xf32>
    %266 = tpu.matmul %264, %265, %cst_221 {dimension_numbers = #tpu.dot_dimension_numbers<[1], [0], [0], [1], [0, 0, 1, 1], [], []>} : vector<1x128xbf16>, vector<128x128xbf16>, vector<1x128xf32> -> vector<1x128xf32>
    %267 = arith.addf %263, %266 : vector<1x128xf32>
    %268 = vector.extract_strided_slice %258 {offsets = [2, 0], sizes = [1, 128], strides = [1, 1]} : vector<16x128xbf16> to vector<1x128xbf16>
    %c256_222 = arith.constant 256 : index
    %c0_223 = arith.constant 0 : index
    %269 = vector.load %arg13[%c256_222, %c0_223] : memref<512x128xbf16, #tpu.memory_space<vmem>>, vector<128x128xbf16>
    %cst_224 = arith.constant dense<0.000000e+00> : vector<1x128xf32>
    %270 = tpu.matmul %268, %269, %cst_224 {dimension_numbers = #tpu.dot_dimension_numbers<[1], [0], [0], [1], [0, 0, 1, 1], [], []>} : vector<1x128xbf16>, vector<128x128xbf16>, vector<1x128xf32> -> vector<1x128xf32>
    %271 = arith.addf %267, %270 : vector<1x128xf32>
    %272 = vector.extract_strided_slice %258 {offsets = [3, 0], sizes = [1, 128], strides = [1, 1]} : vector<16x128xbf16> to vector<1x128xbf16>
    %c384_225 = arith.constant 384 : index
    %c0_226 = arith.constant 0 : index
    %273 = vector.load %arg13[%c384_225, %c0_226] : memref<512x128xbf16, #tpu.memory_space<vmem>>, vector<128x128xbf16>
    %cst_227 = arith.constant dense<0.000000e+00> : vector<1x128xf32>
    %274 = tpu.matmul %272, %273, %cst_227 {dimension_numbers = #tpu.dot_dimension_numbers<[1], [0], [0], [1], [0, 0, 1, 1], [], []>} : vector<1x128xbf16>, vector<128x128xbf16>, vector<1x128xf32> -> vector<1x128xf32>
    %275 = arith.addf %271, %274 : vector<1x128xf32>
    %276 = arith.index_cast %c1_i32 : i32 to index
    %c0_228 = arith.constant 0 : index
    %c0_229 = arith.constant 0 : index
    %277 = vector.load %arg15[%276, %c0_228, %c0_229] : memref<2x1x128xf32, #tpu.memory_space<vmem>>, vector<1x1x128xf32>
    %278 = vector.shape_cast %277 : vector<1x1x128xf32> to vector<1x128xf32>
    %279 = vector.shape_cast %275 : vector<1x128xf32> to vector<1x1x128xf32>
    tpu.vector_store %arg15[%276, %c0_228, %c0_229], %279 {strides = array<i32>} : memref<2x1x128xf32, #tpu.memory_space<vmem>>, vector<1x1x128xf32>,
    %c2_i32 = arith.constant 2 : i32
    return
  }
  func.func @transform_0(%arg0: i32) -> (i32, i32, i32) {
    %c0_i32 = arith.constant 0 : i32
    %c0_i32_0 = arith.constant 0 : i32
    %c0_i32_1 = arith.constant 0 : i32
    return %arg0, %c0_i32, %c0_i32_0 : i32, i32, i32
  }
  func.func @transform_1(%arg0: i32) -> (i32, i32) {
    %c0_i32 = arith.constant 0 : i32
    %c0_i32_0 = arith.constant 0 : i32
    %c0_i32_1 = arith.constant 0 : i32
    return %c0_i32, %c0_i32_0 : i32, i32
  }
  func.func @transform_2(%arg0: i32) -> (i32, i32) {
    %c0_i32 = arith.constant 0 : i32
    %c0_i32_0 = arith.constant 0 : i32
    %c0_i32_1 = arith.constant 0 : i32
    return %c0_i32, %c0_i32_0 : i32, i32
  }
  func.func @transform_3(%arg0: i32) -> (i32, i32) {
    %c0_i32 = arith.constant 0 : i32
    %c0_i32_0 = arith.constant 0 : i32
    %c0_i32_1 = arith.constant 0 : i32
    return %c0_i32, %c0_i32_0 : i32, i32
  }
  func.func @transform_4(%arg0: i32) -> (i32, i32) {
    %c0_i32 = arith.constant 0 : i32
    %c0_i32_0 = arith.constant 0 : i32
    %c0_i32_1 = arith.constant 0 : i32
    return %c0_i32, %c0_i32_0 : i32, i32
  }
  func.func @transform_5(%arg0: i32) -> (i32, i32) {
    %c0_i32 = arith.constant 0 : i32
    %c0_i32_0 = arith.constant 0 : i32
    %c0_i32_1 = arith.constant 0 : i32
    return %c0_i32, %c0_i32_0 : i32, i32
  }
  func.func @transform_6(%arg0: i32) -> (i32, i32) {
    %c0_i32 = arith.constant 0 : i32
    %c0_i32_0 = arith.constant 0 : i32
    %c0_i32_1 = arith.constant 0 : i32
    return %c0_i32, %c0_i32_0 : i32, i32
  }
  func.func @transform_7(%arg0: i32) -> (i32, i32) {
    %c0_i32 = arith.constant 0 : i32
    %c0_i32_0 = arith.constant 0 : i32
    %c0_i32_1 = arith.constant 0 : i32
    return %c0_i32, %c0_i32_0 : i32, i32
  }
  func.func @transform_8(%arg0: i32) -> (i32, i32) {
    %c0_i32 = arith.constant 0 : i32
    %c0_i32_0 = arith.constant 0 : i32
    %c0_i32_1 = arith.constant 0 : i32
    return %c0_i32, %c0_i32_0 : i32, i32
  }
  func.func @transform_9(%arg0: i32) -> (i32, i32) {
    %c0_i32 = arith.constant 0 : i32
    %c0_i32_0 = arith.constant 0 : i32
    %c0_i32_1 = arith.constant 0 : i32
    return %c0_i32, %c0_i32_0 : i32, i32
  }
  func.func @transform_10(%arg0: i32) -> (i32, i32) {
    %c0_i32 = arith.constant 0 : i32
    %c0_i32_0 = arith.constant 0 : i32
    %c0_i32_1 = arith.constant 0 : i32
    return %c0_i32, %c0_i32_0 : i32, i32
  }
  func.func @transform_11(%arg0: i32) -> (i32, i32) {
    %c0_i32 = arith.constant 0 : i32
    %c0_i32_0 = arith.constant 0 : i32
    %c0_i32_1 = arith.constant 0 : i32
    return %c0_i32, %c0_i32_0 : i32, i32
  }
  func.func @transform_12(%arg0: i32) -> (i32, i32) {
    %c0_i32 = arith.constant 0 : i32
    %c0_i32_0 = arith.constant 0 : i32
    %c0_i32_1 = arith.constant 0 : i32
    return %c0_i32, %c0_i32_0 : i32, i32
  }
  func.func @transform_13(%arg0: i32) -> (i32, i32) {
    %c0_i32 = arith.constant 0 : i32
    %c0_i32_0 = arith.constant 0 : i32
    %c0_i32_1 = arith.constant 0 : i32
    return %c0_i32, %c0_i32_0 : i32, i32
  }
  func.func @transform_14(%arg0: i32) -> (i32, i32, i32) {
    %c0_i32 = arith.constant 0 : i32
    %c0_i32_0 = arith.constant 0 : i32
    %c0_i32_1 = arith.constant 0 : i32
    return %arg0, %c0_i32, %c0_i32_0 : i32, i32, i32
  }
}

</mosaic_0001>

<bundles_post_ra>
// kernel: _lambda_.1
= control target key start
LH: loop header
LB: loop body
LE: loop exit
PB: predicated region body
PF: predicated region fallthrough
CT: control target
= control target key end

     0   :  { %19 = vsyncpa [#allocation3], 0  ;;  %s17112_s0 = inlined_call_operand.vmem [shape: bf16[2,208,9], index: 0, kind: input, shape index: {}]   ;;  %s17113_s1 = inlined_call_operand.vmem [shape: bf16[9,128], index: 1, kind: input, shape index: {}]   ;;  %s17114_s2 = inlined_call_operand.hbm [shape: f32[1,128], index: 2, kind: input, shape index: {}]   ;;  %s17115_s3 = inlined_call_operand.hbm [shape: bf16[576,208], index: 3, kind: input, shape index: {}]   ;;  %s17116_s4 = inlined_call_operand.hbm [shape: bf16[1152,128], index: 4, kind: input, shape index: {}]   ;;  %s17117_s5 = inlined_call_operand.hbm [shape: f32[1,128], index: 5, kind: input, shape index: {}]   ;;  %s17118_s6 = inlined_call_operand.hbm [shape: bf16[144,64], index: 6, kind: input, shape index: {}]   ;;  %s17119_s7 = inlined_call_operand.vmem [shape: bf16[1152,128], index: 7, kind: input, shape index: {}]   ;;  %s17120_s8 = inlined_call_operand.hbm [shape: f32[1,128], index: 8, kind: input, shape index: {}]   ;;  %s17121_s9 = inlined_call_operand.vmem [shape: bf16[144,16], index: 9, kind: input, shape index: {}]   ;;  %s17122_s10 = inlined_call_operand.vmem [shape: bf16[1152,128], index: 10, kind: input, shape index: {}]   ;;  %s17123_s11 = inlined_call_operand.vmem [shape: f32[1,128], index: 11, kind: input, shape index: {}]   ;;  %s17124_s12 = inlined_call_operand.vmem [shape: bf16[512,128], index: 12, kind: input, shape index: {}]   ;;  %s17125_s13 = inlined_call_operand.vmem [shape: f32[1,128], index: 13, kind: input, shape index: {}]   ;;  %s17126_s14 = inlined_call_operand.hbm [shape: f32[2,1,128], index: 14, kind: output, shape index: {}]  }
   0x1   :  { %20 = vsyncpa [#allocation6], 0 }
   0x2   :  { %21 = vsyncpa [#allocation9], 0 }
   0x3   :  { %22 = vsyncpa [#allocation12], 0 }
   0x4   :  { %23 = vsyncpa [#allocation4], 0  ;;  %s14286_s29 = smov [#allocation5]  }
   0x5   :  { %s43_s30 = sshll.u32 %s14286_s29, 4  ;;  %s44_s30 = int_to_ptr.vmem [resolvable:$true] %s43_s30 }
   0x6   :  { %s14144_s15 = scalar_lea.vmem %s44_s30, 9216  ;;  %p14149_p1 = scmp.lt.s32.totalorder %s44_s30, %s44_s30 }
   0x7   :  { %p14145_p0 = scmp.ne.s32.totalorder %s44_s30, %s14144_s15  ;;  %p14150_p2 = scmp.lt.s32.totalorder %s14144_s15, %s14144_s15 }
   0x9   :  { %p14151_p3 = por %p14150_p2, %p14149_p1 }
   0xb   :  { %p14152_p4 = pnand %p14151_p3, %p14145_p0 }
   0xd   :  { %14155 = shalt.err (!%p14152_p4)
}
   0xe   :  { %s14287_s16 = smov 128   ;;  %s14288_s17 = smov 8  }
   0xf   :  { %49 = dma.hbm_to_vmem [thread:$0]  %s17115_s3, 9216, %s44_s30, [#allocation6], %s14287_s16, %s14287_s16, %s14288_s17  }
  0x10   :  { %s14289_s20 = smov [#allocation8]   ;;  %s14290_s22 = smov [#allocation2]  }
  0x11   :  { %s68_s21 = sshll.u32 %s14289_s20, 4  ;;  %s34_s23 = sshll.u32 %s14290_s22, 4  ;;  %s69_s21 = int_to_ptr.vmem [resolvable:$true] %s68_s21  ;;  %s35_s23 = int_to_ptr.vmem [resolvable:$true] %s34_s23 }
  0x12   :  { %s14164_s24 = scalar_lea.vmem %s69_s21, 16  ;;  %s14168_s25 = scalar_lea.vmem %s69_s21, 32 }
  0x13   :  { %p14165_p5 = scmp.ne.s32.totalorder %s69_s21, %s14164_s24  ;;  %p14169_p6 = scmp.lt.s32.totalorder %s69_s21, %s69_s21 }
  0x14   :  { %p14170_p7 = scmp.lt.s32.totalorder %s14168_s25, %s14164_s24 }
  0x16   :  { %p14171_p8 = por %p14170_p7, %p14169_p6 }
  0x18   :  { %p14172_p9 = pnand %p14171_p8, %p14165_p5 }
  0x1a   :  { %14175 = shalt.err (!%p14172_p9)
}
  0x1b   :  { %71 = dma.hbm_to_vmem [thread:$0]  %s17117_s5, 16, %s69_s21, [#allocation9]  }
  0x1c   :  { %s14184_s28 = scalar_lea.vmem %s35_s23, 16  ;;  %s14188_s3 = scalar_lea.vmem %s35_s23, 32 }
  0x1d   :  { %p14185_p10 = scmp.ne.s32.totalorder %s35_s23, %s14184_s28  ;;  %p14189_p11 = scmp.lt.s32.totalorder %s35_s23, %s35_s23 }
  0x1e   :  { %p14190_p12 = scmp.lt.s32.totalorder %s14188_s3, %s14184_s28 }
  0x20   :  { %p14191_p13 = por %p14190_p12, %p14189_p11 }
  0x22   :  { %p14192_p0 = pnand %p14191_p13, %p14185_p10 }
  0x24   :  { %14195 = shalt.err (!%p14192_p0)
}
  0x25   :  { %37 = dma.hbm_to_vmem [thread:$0]  %s17114_s2, 16, %s35_s23, [#allocation3]  }
  0x26   :  { %s14291_s15 = smov [#allocation7]  }
  0x27   :  { %s55_s16 = sshll.u32 %s14291_s15, 4  ;;  %s56_s16 = int_to_ptr.vmem [resolvable:$true] %s55_s16 }
  0x28   :  { %s14204_s17 = scalar_lea.vmem %s56_s16, 9216  ;;  %p14209_p2 = scmp.lt.s32.totalorder %s56_s16, %s56_s16 }
  0x29   :  { %p14205_p1 = scmp.ne.s32.totalorder %s56_s16, %s14204_s17  ;;  %p14210_p3 = scmp.lt.s32.totalorder %s14204_s17, %s14204_s17 }
  0x2b   :  { %p14211_p4 = por %p14210_p3, %p14209_p2 }
  0x2d   :  { %p14212_p5 = pnand %p14211_p4, %p14205_p1 }
  0x2f   :  { %14215 = shalt.err (!%p14212_p5)
}
  0x30   :  { %s14292_s5 = smov 64   ;;  %s14293_s18 = smov 4  }
  0x31   :  { %61 = dma.hbm_to_vmem [thread:$0]  %s17116_s4, 9216, %s56_s16, [#allocation6], %s14292_s5, %s14292_s5, %s14293_s18  }
  0x32   :  { %s14294_s21 = smov [#allocation10]   ;;  %s14295_s24 = smov [#allocation11]  }
  0x33   :  { %s77_s22 = sshll.u32 %s14294_s21, 4  ;;  %s92_s2 = sshll.u32 %s14295_s24, 4  ;;  %s78_s22 = int_to_ptr.vmem [resolvable:$true] %s77_s22  ;;  %s93_s2 = int_to_ptr.vmem [resolvable:$true] %s92_s2 }
  0x34   :  { %s14224_s23 = scalar_lea.vmem %s78_s22, 1152  ;;  %p14229_p7 = scmp.lt.s32.totalorder %s78_s22, %s78_s22 }
  0x35   :  { %p14225_p6 = scmp.ne.s32.totalorder %s78_s22, %s14224_s23  ;;  %p14230_p8 = scmp.lt.s32.totalorder %s14224_s23, %s14224_s23 }
  0x37   :  { %p14231_p9 = por %p14230_p8, %p14229_p7 }
  0x39   :  { %p14232_p10 = pnand %p14231_p9, %p14225_p6 }
  0x3b   :  { %14235 = shalt.err (!%p14232_p10)
}
  0x3c   :  { %83 = dma.hbm_to_vmem [thread:$0]  %s17118_s6, 1152, %s78_s22, [#allocation9], %s14292_s5, %s14292_s5, %s14293_s18  }
  0x3d   :  { %s14244_s27 = scalar_lea.vmem %s93_s2, 16  ;;  %s14248_s4 = scalar_lea.vmem %s93_s2, 32 }
  0x3e   :  { %p14245_p11 = scmp.ne.s32.totalorder %s93_s2, %s14244_s27  ;;  %p14249_p12 = scmp.lt.s32.totalorder %s93_s2, %s93_s2 }
  0x3f   :  { %p14250_p13 = scmp.lt.s32.totalorder %s14248_s4, %s14244_s27 }
  0x41   :  { %p14251_p0 = por %p14250_p13, %p14249_p12 }
  0x43   :  { %p14252_p1 = pnand %p14251_p0, %p14245_p11 }
  0x45   :  { %14255 = shalt.err (!%p14252_p1)
}
  0x46   :  { %95 = dma.hbm_to_vmem [thread:$0]  %s17120_s8, 16, %s93_s2, [#allocation12]  }
  0x47   :  { %14276 = dma.done.wait [#allocation3], 16  }
  0x48   :  { %14277 = vsyncadd [#allocation3], 4294967280 }
  0x49   :  { %14278 = dma.done.wait [#allocation6], 18432  }
  0x4a   :  { %14279 = vsyncadd [#allocation6], 4294948864 }
  0x4b   :  { %14280 = dma.done.wait [#allocation9], 1168  }
  0x4c   :  { %14281 = vsyncadd [#allocation9], 4294966128 }
  0x4d   :  { %14282 = dma.done.wait [#allocation12], 16  }
  0x4e   :  { %14283 = vsyncadd [#allocation12], 4294967280  ;;  %vm270_vm0 = vcmask 1043456   ;;  %v17129_v0 = vmov 0.0   ;;  %vm14297_vm1 = vmmov 0   ;;  %vm271_vm2 = vcmask 1044480  }
  0x4f   :  { %12619 = vmatprep.subr.bf16.mxu0 %v17129_v0  ;;  %13339 = vmatprep.subr.bf16.mxu1 %v17129_v0  ;;  %v14298_v1 = vmov 65535   ;;  %v13360_v4 = vld [vmem:[%s17113_s1] sm:$0x1f]   ;;  %vm230_vm3 = vcmask 72704   ;;  %v13366_v7 = vld [vmem:[%s17112_s0 + $0x38] sm:$0xff]   ;;  %v13363_v8 = vld [vmem:[%s17112_s0 + $0x8] sm:$0xff]  }
  0x50   :  { %12621 = vmatprep.mubr.msk.bf16.mxu0 %vm14297_vm1, %v17129_v0  ;;  %12649 = vmatprep.mubr.msk.bf16.mxu1 %vm14297_vm1, %v17129_v0  ;;  %v272_v2 = vsel %vm270_vm0, 4294967295, %v14298_v1  ;;  %v13362_v6 = vld [vmem:[%s17112_s0] sm:$0xff]   ;;  %v13364_v10 = vld [vmem:[%s17112_s0 + $0x10] sm:$0xff]   ;;  %v13370_v11 = vld [vmem:[%s17112_s0 + $0x48] sm:$0xff]   ;;  %v17127_v19 = vmov 0   ;;  %vm497_vm4 = vcmask 654336  }
  0x51   :  { %v14402_v3 = vsel %vm271_vm2, %v272_v2, 0  ;;  %v13368_v9 = vld [vmem:[%s17112_s0 + $0x40] sm:$0xff]   ;;  %v13365_v12 = vld [vmem:[%s17112_s0 + $0x18] sm:$0xff]   ;;  %v13372_v13 = vld [vmem:[%s17112_s0 + $0x50] sm:$0xff]   ;;  %vm2506_vm5 = vcmask 523264   ;;  %vm3766_vm6 = vcmask 130048  }
  0x52   :  { %v275_v5 = vand.u32 %v13360_v4, %v14402_v3  ;;  %v13367_v14 = vld [vmem:[%s17112_s0 + $0x20] sm:$0xff]   ;;  %v13373_v15 = vld [vmem:[%s17112_s0 + $0x58] sm:$0xff]   ;;  %v13369_v16 = vld [vmem:[%s17112_s0 + $0x28] sm:$0xff]  }
  0x53   :  { %v13374_v17 = vld [vmem:[%s17112_s0 + $0x60] sm:$0xff]   ;;  %v13371_v18 = vld [vmem:[%s17112_s0 + $0x30] sm:$0xff]  }
  0x54   :  { %12620 = vmatpush3.bf16.msra.mxu0 %v275_v5  ;;  %13340 = vmatpush3.bf16.msra.mxu1 %v275_v5  ;;  %v13377_v20 = vld [vmem:[#allocation5 + $0x4] ss:$8 sps:$4 sm:$0xff]   ;;  %v14486_v22 = vld [vmem:[#allocation2] ss:$0 sm:$0xff] }
  0x55   :  { %510 = vmatprep.subr.bf16.mxu1 %v17127_v19  ;;  %760 = vmatprep.subr.bf16.mxu0 %v17127_v19  ;;  %v13380_v21 = vld [vmem:[#allocation5 + $0x84] ss:$8 sps:$4 sm:$0xff]  }
  0x57   :  { %12622 = vmatmul.mubr.msk.bf16.vlgmr.msra.gmra.mxu0 %vm230_vm3, %v13362_v6  ;;  %12650 = vmatmul.mubr.msk.bf16.vlgmr.msra.gmra.mxu1 %vm230_vm3, %v13366_v7 }
  0x58   :  { %12625 = vmatprep.mubr.msk.bf16.mxu0 %vm14297_vm1, %v17129_v0  ;;  %12653 = vmatprep.mubr.msk.bf16.mxu1 %vm14297_vm1, %v17129_v0 }
  0x5f   :  { %12626 = vmatmul.mubr.msk.bf16.gmra.mxu0 %vm230_vm3, %v13363_v8  ;;  %12654 = vmatmul.mubr.msk.bf16.gmra.mxu1 %vm230_vm3, %v13368_v9 }
  0x60   :  { %12629 = vmatprep.mubr.msk.bf16.mxu0 %vm14297_vm1, %v17129_v0  ;;  %12657 = vmatprep.mubr.msk.bf16.mxu1 %vm14297_vm1, %v17129_v0 }
  0x67   :  { %12630 = vmatmul.mubr.msk.bf16.gmra.mxu0 %vm230_vm3, %v13364_v10  ;;  %12658 = vmatmul.mubr.msk.bf16.gmra.mxu1 %vm230_vm3, %v13370_v11 }
  0x68   :  { %12633 = vmatprep.mubr.msk.bf16.mxu0 %vm14297_vm1, %v17129_v0  ;;  %12661 = vmatprep.mubr.msk.bf16.mxu1 %vm14297_vm1, %v17129_v0 }
  0x6f   :  { %12634 = vmatmul.mubr.msk.bf16.gmra.mxu0 %vm230_vm3, %v13365_v12  ;;  %12662 = vmatmul.mubr.msk.bf16.gmra.mxu1 %vm230_vm3, %v13372_v13 }
  0x70   :  { %12637 = vmatprep.mubr.msk.bf16.mxu0 %vm14297_vm1, %v17129_v0  ;;  %12665 = vmatprep.mubr.msk.bf16.mxu1 %vm14297_vm1, %v17129_v0 }
  0x77   :  { %12638 = vmatmul.mubr.msk.bf16.gmra.mxu0 %vm230_vm3, %v13367_v14  ;;  %12666 = vmatmul.mubr.msk.bf16.gmra.mxu1 %vm230_vm3, %v13373_v15 }
  0x78   :  { %12641 = vmatprep.mubr.msk.bf16.mxu0 %vm14297_vm1, %v17129_v0  ;;  %12669 = vmatprep.mubr.msk.bf16.mxu1 %vm14297_vm1, %v17129_v0 }
  0x7f   :  { %12642 = vmatmul.mubr.msk.bf16.gmra.mxu0 %vm230_vm3, %v13369_v16  ;;  %12670 = vmatmul.mubr.msk.bf16.gmra.mxu1 %vm230_vm3, %v13374_v17 }
  0x80   :  { %12645 = vmatprep.mubr.msk.bf16.mxu0 %vm14297_vm1, %v17129_v0  ;;  %10825 = vmatprep.mubr.msk.bf16.mxu1 %vm497_vm4, %v13377_v20 }
  0x87   :  { %12646 = vmatmul.mubr.msk.bf16.gmra.mxu0 %vm230_vm3, %v13371_v18 }
  0x88   :  { %10849 = vmatprep.mubr.msk.bf16.mxu0 %vm497_vm4, %v13380_v21 }
 0x117   :  { %v311_v23 = vpop.f32.mrf.mxu0  ;;  %v367_v25 = vpop.f32.mrf.mxu1 }
 0x118   :  { %v312_v24 = vadd.f32 %v14486_v22, %v311_v23  ;;  %v368_v27 = vadd.f32 %v14486_v22, %v367_v25 }
 0x119   :  { %v12623_v26 = vpop.f32.mrf.mxu0  ;;  %v12651_v28 = vpop.f32.mrf.mxu1 }
 0x11a   :  { %v428_v33 = vmax.f32 %v368_v27, 0.0  ;;  %v414_v35 = vmax.f32 %v312_v24, 0.0 }
 0x11b   :  { %v314_v29 = vpop.f32.mrf.mxu0  ;;  %v370_v31 = vpop.f32.mrf.mxu1 }
 0x11c   :  { %v315_v30 = vadd.f32 %v14486_v22, %v314_v29  ;;  %v371_v34 = vadd.f32 %v14486_v22, %v370_v31 }
 0x11d   :  { %v12624_v32 = vpop.f32.mrf.mxu0  ;;  %v12652_v37 = vpop.f32.mrf.mxu1 }
 0x11e   :  { %v415_v36 = vmax.f32 %v315_v30, 0.0  ;;  %v429_v39 = vmax.f32 %v371_v34, 0.0 }
 0x11f   :  { %v319_v38 = vpop.f32.mrf.mxu0  ;;  %v375_v42 = vpop.f32.mrf.mxu1 }
 0x120   :  { %v14492_v40 = vpack.c.bf16 %v415_v36, %v414_v35  ;;  %v320_v41 = vadd.f32 %v14486_v22, %v319_v38  ;;  %v14495_v44 = vpack.c.bf16 %v429_v39, %v428_v33  ;;  %v376_v45 = vadd.f32 %v14486_v22, %v375_v42 }
 0x121   :  { %v12627_v43 = vpop.f32.mrf.mxu0  ;;  %v12655_v46 = vpop.f32.mrf.mxu1 }
 0x122   :  { %511 = vmatpush1.bf16.msra.mxu1 %v14495_v44  ;;  %761 = vmatpush1.bf16.msra.mxu0 %v14495_v44  ;;  %v430_v51 = vmax.f32 %v376_v45, 0.0  ;;  %v416_v53 = vmax.f32 %v320_v41, 0.0 }
 0x123   :  { %v322_v47 = vpop.f32.mrf.mxu0  ;;  %v378_v49 = vpop.f32.mrf.mxu1  ;;  %512 = vmatprep.subr.bf16.mxu1 %v17127_v19  ;;  %762 = vmatprep.subr.bf16.mxu0 %v17127_v19 }
 0x124   :  { %v323_v48 = vadd.f32 %v14486_v22, %v322_v47  ;;  %v379_v52 = vadd.f32 %v14486_v22, %v378_v49 }
 0x125   :  { %v12628_v50 = vpop.f32.mrf.mxu0  ;;  %v12656_v55 = vpop.f32.mrf.mxu1 }
 0x126   :  { %v417_v54 = vmax.f32 %v323_v48, 0.0  ;;  %v431_v57 = vmax.f32 %v379_v52, 0.0 }
 0x127   :  { %v14504_v56 = vpop.f32.mrf.mxu0  ;;  %v383_v59 = vpop.f32.mrf.mxu1 }
 0x128   :  { %v14506_v58 = vpack.c.bf16 %v417_v54, %v416_v53  ;;  %v14508_v61 = vpack.c.bf16 %v431_v57, %v430_v51  ;;  %v384_v62 = vadd.f32 %v14486_v22, %v383_v59 }
 0x129   :  { %v12631_v60 = vpop.f32.mrf.mxu0  ;;  %v12659_v63 = vpop.f32.mrf.mxu1 }
 0x12a   :  { %v432_v2 = vmax.f32 %v384_v62, 0.0 }
 0x12b   :  { %v330_v1 = vpop.f32.mrf.mxu0  ;;  %v386_v4 = vpop.f32.mrf.mxu1 }
 0x12c   :  { %v387_v6 = vadd.f32 %v14486_v22, %v386_v4  ;;  %v331_v60 = vadd.f32 %v14486_v22, %v330_v1  ;;  %v328_v4 = vadd.f32 %v14486_v22, %v14504_v56 }
 0x12d   :  { %v12632_v5 = vpop.f32.mrf.mxu0  ;;  %v12660_v7 = vpop.f32.mrf.mxu1 }
 0x12e   :  { %v433_v9 = vmax.f32 %v387_v6, 0.0  ;;  %v419_v5 = vmax.f32 %v331_v60, 0.0  ;;  %v418_v7 = vmax.f32 %v328_v4, 0.0  ;;  %v13425_v60 = vld [vmem:[#allocation5 + $0xc4] ss:$8 sps:$4 sm:$0xff]  }
 0x12f   :  { %v335_v8 = vpop.f32.mrf.mxu0  ;;  %v14512_v10 = vpop.f32.mrf.mxu1  ;;  %v13426_v4 = vld [vmem:[#allocation5 + $0x180] ss:$8 sps:$4 sm:$0xff]  }
 0x130   :  { %v14514_v12 = vpack.c.bf16 %v433_v9, %v432_v2  ;;  %v336_v55 = vadd.f32 %v14486_v22, %v335_v8  ;;  %v14553_v56 = vpack.c.bf16 %v419_v5, %v418_v7  ;;  %v13429_v5 = vld [vmem:[#allocation5 + $0xd4] ss:$8 sps:$4 sm:$0xff]  }
 0x131   :  { %v12635_v11 = vpop.f32.mrf.mxu0  ;;  %v12663_v13 = vpop.f32.mrf.mxu1  ;;  %v13450_v7 = vld [vmem:[#allocation5 + $0x194] ss:$8 sps:$4 sm:$0xff]  }
 0x132   :  { %v420_v62 = vmax.f32 %v336_v55, 0.0  ;;  %v13413_v55 = vld [vmem:[#allocation5 + $0x70] ss:$8 sps:$4 sm:$0xff]  }
 0x133   :  { %v338_v14 = vpop.f32.mrf.mxu0  ;;  %v14516_v15 = vpop.f32.mrf.mxu1 }
 0x134   :  { %v339_v57 = vadd.f32 %v14486_v22, %v338_v14 }
 0x135   :  { %v12636_v16 = vpop.f32.mrf.mxu0  ;;  %v12664_v17 = vpop.f32.mrf.mxu1 }
 0x136   :  { %v421_v63 = vmax.f32 %v339_v57, 0.0  ;;  %v13422_v57 = vld [vmem:[#allocation5 + $0x130] ss:$8 sps:$4 sm:$0xff]  }
 0x137   :  { %v343_v18 = vpop.f32.mrf.mxu0  ;;  %v399_v20 = vpop.f32.mrf.mxu1 }
 0x138   :  { %v344_v48 = vadd.f32 %v14486_v22, %v343_v18  ;;  %v14547_v6 = vpack.c.bf16 %v421_v63, %v420_v62  ;;  %v400_v1 = vadd.f32 %v14486_v22, %v399_v20  ;;  %v392_v18 = vadd.f32 %v14486_v22, %v14512_v10  ;;  %v13428_v62 = vld [vmem:[#allocation5 + $0x184] ss:$8 sps:$4 sm:$0xff]   ;;  %v13423_v63 = vld [vmem:[#allocation5 + $0xc0] ss:$8 sps:$4 sm:$0xff]  }
 0x139   :  { %v12639_v21 = vpop.f32.mrf.mxu0  ;;  %v12667_v23 = vpop.f32.mrf.mxu1  ;;  %v395_v20 = vadd.f32 %v14486_v22, %v14516_v15  ;;  %v13375_v15 = vld [vmem:[#allocation5] ss:$8 sps:$4 sm:$0xff]  }
 0x13a   :  { %v422_v53 = vmax.f32 %v344_v48, 0.0  ;;  %v436_v13 = vmax.f32 %v400_v1, 0.0  ;;  %v434_v23 = vmax.f32 %v392_v18, 0.0  ;;  %v13408_v48 = vld [vmem:[#allocation5 + $0x64] ss:$8 sps:$4 sm:$0xff]  }
 0x13b   :  { %v346_v24 = vpop.f32.mrf.mxu0  ;;  %v402_v25 = vpop.f32.mrf.mxu1  ;;  %v13431_v1 = vld [vmem:[#allocation5 + $0xd0] ss:$8 sps:$4 sm:$0xff]  }
 0x13c   :  { %v347_v49 = vadd.f32 %v14486_v22, %v346_v24  ;;  %v403_v8 = vadd.f32 %v14486_v22, %v402_v25  ;;  %v435_v24 = vmax.f32 %v395_v20, 0.0  ;;  %v13378_v25 = vld [vmem:[#allocation5 + $0x80] ss:$8 sps:$4 sm:$0xff]   ;;  %v13437_v18 = vld [vmem:[#allocation5 + $0xf0] ss:$8 sps:$4 sm:$0xff]  }
 0x13d   :  { %v12640_v26 = vpop.f32.mrf.mxu0  ;;  %v12668_v27 = vpop.f32.mrf.mxu1  ;;  %v13458_v20 = vld [vmem:[#allocation5 + $0x1b0] ss:$8 sps:$4 sm:$0xff]  }
 0x13e   :  { %v423_v54 = vmax.f32 %v347_v49, 0.0  ;;  %v437_v14 = vmax.f32 %v403_v8, 0.0  ;;  %v14587_v10 = vpack.c.bf16 %v435_v24, %v434_v23  ;;  %v13381_v26 = vld [vmem:[#allocation5 + $0x14] ss:$8 sps:$4 sm:$0xff]   ;;  %v13417_v49 = vld [vmem:[#allocation5 + $0x124] ss:$8 sps:$4 sm:$0xff]  }
 0x13f   :  { %v351_v28 = vpop.f32.mrf.mxu0  ;;  %v407_v29 = vpop.f32.mrf.mxu1  ;;  %v13384_v27 = vld [vmem:[#allocation5 + $0x94] ss:$8 sps:$4 sm:$0xff]   ;;  %v13452_v8 = vld [vmem:[#allocation5 + $0x190] ss:$8 sps:$4 sm:$0xff]   ;;  %v13440_v23 = vld [vmem:[#allocation5 + $0x144] ss:$8 sps:$4 sm:$0xff]  }
 0x140   :  { %v352_v45 = vadd.f32 %v14486_v22, %v351_v28  ;;  %v14539_v2 = vpack.c.bf16 %v423_v54, %v422_v53  ;;  %v408_v9 = vadd.f32 %v14486_v22, %v407_v29  ;;  %v13383_v28 = vld [vmem:[#allocation5 + $0x10] ss:$8 sps:$4 sm:$0xff]   ;;  %v13411_v53 = vld [vmem:[#allocation5 + $0x74] ss:$8 sps:$4 sm:$0xff]   ;;  %v13461_v24 = vld [vmem:[#allocation5 + $0x204] ss:$8 sps:$4 sm:$0xff]  }
 0x141   :  { %v12643_v30 = vpop.f32.mrf.mxu0  ;;  %v12671_v31 = vpop.f32.mrf.mxu1  ;;  %v13386_v29 = vld [vmem:[#allocation5 + $0x90] ss:$8 sps:$4 sm:$0xff]   ;;  %v13420_v54 = vld [vmem:[#allocation5 + $0x134] ss:$8 sps:$4 sm:$0xff]  }
 0x142   :  { %v424_v52 = vmax.f32 %v352_v45, 0.0  ;;  %v438_v16 = vmax.f32 %v408_v9, 0.0  ;;  %v13387_v30 = vld [vmem:[#allocation5 + $0x24] ss:$8 sps:$4 sm:$0xff]   ;;  %v13414_v45 = vld [vmem:[#allocation5 + $0x114] ss:$8 sps:$4 sm:$0xff]  }
 0x143   :  { %v354_v32 = vpop.f32.mrf.mxu0  ;;  %v410_v33 = vpop.f32.mrf.mxu1  ;;  %v13390_v31 = vld [vmem:[#allocation5 + $0xa4] ss:$8 sps:$4 sm:$0xff]  }
 0x144   :  { %v355_v41 = vadd.f32 %v14486_v22, %v354_v32  ;;  %v411_v11 = vadd.f32 %v14486_v22, %v410_v33  ;;  %v13389_v32 = vld [vmem:[#allocation5 + $0x20] ss:$8 sps:$4 sm:$0xff]   ;;  %v13432_v9 = vld [vmem:[#allocation5 + $0xe4] ss:$8 sps:$4 sm:$0xff]  }
 0x145   :  { %v12644_v34 = vpop.f32.mrf.mxu0  ;;  %v12672_v35 = vpop.f32.mrf.mxu1  ;;  %v13392_v33 = vld [vmem:[#allocation5 + $0xa0] ss:$8 sps:$4 sm:$0xff]  }
 0x146   :  { %v425_v50 = vmax.f32 %v355_v41, 0.0  ;;  %v439_v17 = vmax.f32 %v411_v11, 0.0  ;;  %v13393_v34 = vld [vmem:[#allocation5 + $0x34] ss:$8 sps:$4 sm:$0xff]   ;;  %v13399_v41 = vld [vmem:[#allocation5 + $0x40] ss:$8 sps:$4 sm:$0xff]  }
 0x147   :  { %v359_v36 = vpop.f32.mrf.mxu0  ;;  %v13396_v35 = vld [vmem:[#allocation5 + $0xb4] ss:$8 sps:$4 sm:$0xff]   ;;  %v13453_v11 = vld [vmem:[#allocation5 + $0x1a4] ss:$8 sps:$4 sm:$0xff]  }
 0x148   :  { %v360_v38 = vadd.f32 %v14486_v22, %v359_v36  ;;  %v14532_v59 = vpack.c.bf16 %v425_v50, %v424_v52  ;;  %v14575_v21 = vpack.c.bf16 %v439_v17, %v438_v16  ;;  %v13395_v36 = vld [vmem:[#allocation5 + $0x30] ss:$8 sps:$4 sm:$0xff]   ;;  %v13410_v50 = vld [vmem:[#allocation5 + $0x60] ss:$8 sps:$4 sm:$0xff]   ;;  %v13435_v16 = vld [vmem:[#allocation5 + $0xf4] ss:$8 sps:$4 sm:$0xff]  }
 0x149   :  { %v12647_v37 = vpop.f32.mrf.mxu0  ;;  %v13419_v52 = vld [vmem:[#allocation5 + $0x120] ss:$8 sps:$4 sm:$0xff]   ;;  %v13456_v17 = vld [vmem:[#allocation5 + $0x1b4] ss:$8 sps:$4 sm:$0xff]  }
 0x14a   :  { %v426_v46 = vmax.f32 %v360_v38, 0.0  ;;  %v13398_v37 = vld [vmem:[#allocation5 + $0xb0] ss:$8 sps:$4 sm:$0xff]   ;;  %v13401_v38 = vld [vmem:[#allocation5 + $0x44] ss:$8 sps:$4 sm:$0xff]  }
 0x14b   :  { %v362_v39 = vpop.f32.mrf.mxu0 }
 0x14c   :  { %v363_v42 = vadd.f32 %v14486_v22, %v362_v39  ;;  %v14581_v22 = vpack.c.bf16 %v437_v14, %v436_v13  ;;  %v13404_v39 = vld [vmem:[#allocation5 + $0x104] ss:$8 sps:$4 sm:$0xff]   ;;  %v13434_v13 = vld [vmem:[#allocation5 + $0xe0] ss:$8 sps:$4 sm:$0xff]  }
 0x14d   :  { %v12648_v43 = vpop.f32.mrf.mxu0  ;;  %v13455_v14 = vld [vmem:[#allocation5 + $0x1a0] ss:$8 sps:$4 sm:$0xff]  }
 0x14e   :  { %v427_v47 = vmax.f32 %v363_v42, 0.0  ;;  %v13402_v42 = vld [vmem:[#allocation5 + $0x100] ss:$8 sps:$4 sm:$0xff]   ;;  %v13405_v43 = vld [vmem:[#allocation5 + $0x54] ss:$8 sps:$4 sm:$0xff]  }
 0x150   :  { %v14524_v51 = vpack.c.bf16 %v427_v47, %v426_v46  ;;  %v13407_v46 = vld [vmem:[#allocation5 + $0x50] ss:$8 sps:$4 sm:$0xff]  }
 0x151   :  { %v13416_v47 = vld [vmem:[#allocation5 + $0x110] ss:$8 sps:$4 sm:$0xff]  }
 0x152   :  { %513 = vmatpush1.bf16.msra.mxu1 %v14524_v51  ;;  %763 = vmatpush1.bf16.msra.mxu0 %v14524_v51 }
 0x153   :  { %514 = vmatprep.subr.bf16.mxu1 %v17127_v19  ;;  %764 = vmatprep.subr.bf16.mxu0 %v17127_v19 }
 0x156   :  { %515 = vmatpush1.bf16.msra.mxu1 %v14532_v59  ;;  %765 = vmatpush1.bf16.msra.mxu0 %v14532_v59 }
 0x157   :  { %516 = vmatprep.subr.bf16.mxu1 %v17127_v19  ;;  %766 = vmatprep.subr.bf16.mxu0 %v17127_v19 }
 0x15a   :  { %517 = vmatpush1.bf16.msra.mxu1 %v14539_v2  ;;  %767 = vmatpush1.bf16.msra.mxu0 %v14539_v2 }
 0x15b   :  { %518 = vmatprep.subr.bf16.mxu1 %v17127_v19  ;;  %768 = vmatprep.subr.bf16.mxu0 %v17127_v19 }
 0x15e   :  { %519 = vmatpush1.bf16.msra.mxu1 %v14547_v6  ;;  %769 = vmatpush1.bf16.msra.mxu0 %v14547_v6 }
 0x15f   :  { %520 = vmatprep.subr.bf16.mxu1 %v17127_v19  ;;  %770 = vmatprep.subr.bf16.mxu0 %v17127_v19 }
 0x162   :  { %521 = vmatpush1.bf16.msra.mxu1 %v14553_v56  ;;  %771 = vmatpush1.bf16.msra.mxu0 %v14553_v56 }
 0x163   :  { %522 = vmatprep.subr.bf16.mxu1 %v17127_v19  ;;  %772 = vmatprep.subr.bf16.mxu0 %v17127_v19 }
 0x166   :  { %523 = vmatpush1.bf16.msra.mxu1 %v14506_v58  ;;  %773 = vmatpush1.bf16.msra.mxu0 %v14506_v58 }
 0x167   :  { %524 = vmatprep.subr.bf16.mxu1 %v17127_v19  ;;  %774 = vmatprep.subr.bf16.mxu0 %v17127_v19 }
 0x16a   :  { %525 = vmatpush1.bf16.msra.mxu1 %v14492_v40  ;;  %775 = vmatpush1.bf16.msra.mxu0 %v14492_v40 }
 0x16b   :  { %532 = vmatprep.subr.bf16.mxu1 %v17127_v19  ;;  %782 = vmatprep.subr.bf16.mxu0 %v17127_v19 }
 0x16e   :  { %533 = vmatpush2.bf16.msra.mxu1 %v14575_v21  ;;  %783 = vmatpush2.bf16.msra.mxu0 %v14575_v21 }
 0x16f   :  { %534 = vmatprep.subr.bf16.mxu1 %v17127_v19  ;;  %784 = vmatprep.subr.bf16.mxu0 %v17127_v19 }
 0x172   :  { %535 = vmatpush2.bf16.msra.mxu1 %v14581_v22  ;;  %785 = vmatpush2.bf16.msra.mxu0 %v14581_v22 }
 0x173   :  { %536 = vmatprep.subr.bf16.mxu1 %v17127_v19  ;;  %786 = vmatprep.subr.bf16.mxu0 %v17127_v19 }
 0x176   :  { %537 = vmatpush2.bf16.msra.mxu1 %v14587_v10  ;;  %787 = vmatpush2.bf16.msra.mxu0 %v14587_v10 }
 0x177   :  { %538 = vmatprep.subr.bf16.mxu1 %v17127_v19  ;;  %788 = vmatprep.subr.bf16.mxu0 %v17127_v19 }
 0x17a   :  { %539 = vmatpush2.bf16.msra.mxu1 %v14514_v12  ;;  %789 = vmatpush2.bf16.msra.mxu0 %v14514_v12 }
 0x17b   :  { %540 = vmatprep.subr.bf16.mxu1 %v17127_v19  ;;  %790 = vmatprep.subr.bf16.mxu0 %v17127_v19 }
 0x17e   :  { %541 = vmatpush2.bf16.msra.mxu1 %v14508_v61  ;;  %791 = vmatpush2.bf16.msra.mxu0 %v14508_v61 }
 0x17f   :  { %635 = vmatprep.subr.bf16.mxu1 %v17127_v19  ;;  %1010 = vmatprep.subr.bf16.mxu0 %v17127_v19 }
 0x181   :  { %543 = vmatmul.mubr.bf16.vlgmr.msra.gmra.mxu1 %v13375_v15  ;;  %793 = vmatmul.mubr.bf16.vlgmr.msra.gmra.mxu0 %v13378_v25  ;;  %v13438_v15 = vld [vmem:[#allocation5 + $0x140] ss:$8 sps:$4 sm:$0xff]  }
 0x182   :  { %636 = vmatpush1.bf16.msra.mxu1 %v14495_v44  ;;  %1011 = vmatpush1.bf16.msra.mxu0 %v14495_v44  ;;  %v13459_v25 = vld [vmem:[#allocation5 + $0x200] ss:$8 sps:$4 sm:$0xff]  }
 0x183   :  { %637 = vmatprep.subr.bf16.mxu1 %v17127_v19  ;;  %1012 = vmatprep.subr.bf16.mxu0 %v17127_v19 }
 0x184   :  { %10826 = vmatprep.mubr.msk.bf16.mxu1 %vm497_vm4, %v13381_v26  ;;  %10850 = vmatprep.mubr.msk.bf16.mxu0 %vm497_vm4, %v13384_v27  ;;  %v13499_v26 = vld [vmem:[#allocation7 + $0xf8] sm:$0xff]  }
 0x185   :  { %v13441_v27 = vld [vmem:[#allocation5 + $0x154] ss:$8 sps:$4 sm:$0xff]  }
 0x186   :  { %638 = vmatpush1.bf16.msra.mxu1 %v14524_v51  ;;  %1013 = vmatpush1.bf16.msra.mxu0 %v14524_v51 }
 0x187   :  { %639 = vmatprep.subr.bf16.mxu1 %v17127_v19  ;;  %1014 = vmatprep.subr.bf16.mxu0 %v17127_v19 }
 0x189   :  { %551 = vmatmul.mubr.bf16.gmra.mxu1 %v13383_v28  ;;  %801 = vmatmul.mubr.bf16.gmra.mxu0 %v13386_v29  ;;  %v13465_v28 = vld [vmem:[#allocation5 + $0x214] ss:$8 sps:$4 sm:$0xff]  }
 0x18a   :  { %640 = vmatpush1.bf16.msra.mxu1 %v14532_v59  ;;  %1015 = vmatpush1.bf16.msra.mxu0 %v14532_v59  ;;  %v13500_v29 = vld [vmem:[#allocation7 + $0xb8] sm:$0xff]  }
 0x18b   :  { %641 = vmatprep.subr.bf16.mxu1 %v17127_v19  ;;  %1016 = vmatprep.subr.bf16.mxu0 %v17127_v19 }
 0x18c   :  { %10827 = vmatprep.mubr.msk.bf16.mxu1 %vm497_vm4, %v13387_v30  ;;  %10851 = vmatprep.mubr.msk.bf16.mxu0 %vm497_vm4, %v13390_v31  ;;  %v13501_v30 = vld [vmem:[#allocation7 + $0xf0] sm:$0xff]  }
 0x18d   :  { %v13502_v31 = vld [vmem:[#allocation7 + $0xb0] sm:$0xff]  }
 0x18e   :  { %642 = vmatpush1.bf16.msra.mxu1 %v14539_v2  ;;  %1017 = vmatpush1.bf16.msra.mxu0 %v14539_v2 }
 0x18f   :  { %643 = vmatprep.subr.bf16.mxu1 %v17127_v19  ;;  %1018 = vmatprep.subr.bf16.mxu0 %v17127_v19 }
 0x191   :  { %559 = vmatmul.mubr.bf16.gmra.mxu1 %v13389_v32  ;;  %809 = vmatmul.mubr.bf16.gmra.mxu0 %v13392_v33  ;;  %v13443_v32 = vld [vmem:[#allocation5 + $0x150] ss:$8 sps:$4 sm:$0xff]  }
 0x192   :  { %644 = vmatpush1.bf16.msra.mxu1 %v14547_v6  ;;  %1019 = vmatpush1.bf16.msra.mxu0 %v14547_v6  ;;  %v13467_v33 = vld [vmem:[#allocation5 + $0x210] ss:$8 sps:$4 sm:$0xff]  }
 0x193   :  { %645 = vmatprep.subr.bf16.mxu1 %v17127_v19  ;;  %1020 = vmatprep.subr.bf16.mxu0 %v17127_v19 }
 0x194   :  { %10828 = vmatprep.mubr.msk.bf16.mxu1 %vm497_vm4, %v13393_v34  ;;  %10852 = vmatprep.mubr.msk.bf16.mxu0 %vm497_vm4, %v13396_v35  ;;  %v13444_v34 = vld [vmem:[#allocation5 + $0x164] ss:$8 sps:$4 sm:$0xff]  }
 0x195   :  { %v13471_v35 = vld [vmem:[#allocation5 + $0x224] ss:$8 sps:$4 sm:$0xff]  }
 0x196   :  { %646 = vmatpush1.bf16.msra.mxu1 %v14553_v56  ;;  %1021 = vmatpush1.bf16.msra.mxu0 %v14553_v56 }
 0x197   :  { %647 = vmatprep.subr.bf16.mxu1 %v17127_v19  ;;  %1022 = vmatprep.subr.bf16.mxu0 %v17127_v19 }
 0x199   :  { %567 = vmatmul.mubr.bf16.gmra.mxu1 %v13395_v36  ;;  %817 = vmatmul.mubr.bf16.gmra.mxu0 %v13398_v37  ;;  %v13503_v36 = vld [vmem:[#allocation7 + $0xe8] sm:$0xff]   ;;  %v13505_v37 = vld [vmem:[#allocation7 + $0xe0] sm:$0xff]  }
 0x19a   :  { %648 = vmatpush1.bf16.msra.mxu1 %v14506_v58  ;;  %1023 = vmatpush1.bf16.msra.mxu0 %v14506_v58 }
 0x19b   :  { %649 = vmatprep.subr.bf16.mxu1 %v17127_v19  ;;  %1024 = vmatprep.subr.bf16.mxu0 %v17127_v19 }
 0x19c   :  { %10837 = vmatprep.mubr.msk.bf16.mxu1 %vm497_vm4, %v13401_v38  ;;  %10873 = vmatprep.mubr.msk.bf16.mxu0 %vm497_vm4, %v13404_v39  ;;  %v13474_v38 = vld [vmem:[#allocation5 + $0x220] ss:$8 sps:$4 sm:$0xff]   ;;  %v13447_v39 = vld [vmem:[#allocation5 + $0x174] ss:$8 sps:$4 sm:$0xff]  }
 0x19e   :  { %650 = vmatpush1.bf16.msra.mxu1 %v14492_v40  ;;  %1025 = vmatpush1.bf16.msra.mxu0 %v14492_v40 }
 0x19f   :  { %657 = vmatprep.subr.bf16.mxu1 %v17127_v19  ;;  %1032 = vmatprep.subr.bf16.mxu0 %v17127_v19 }
 0x1a2   :  { %658 = vmatpush2.bf16.msra.mxu1 %v14575_v21  ;;  %1033 = vmatpush2.bf16.msra.mxu0 %v14575_v21 }
 0x1a3   :  { %659 = vmatprep.subr.bf16.mxu1 %v17127_v19  ;;  %1034 = vmatprep.subr.bf16.mxu0 %v17127_v19 }
 0x1a6   :  { %660 = vmatpush2.bf16.msra.mxu1 %v14581_v22  ;;  %1035 = vmatpush2.bf16.msra.mxu0 %v14581_v22 }
 0x1a7   :  { %661 = vmatprep.subr.bf16.mxu1 %v17127_v19  ;;  %1036 = vmatprep.subr.bf16.mxu0 %v17127_v19 }
 0x1aa   :  { %662 = vmatpush2.bf16.msra.mxu1 %v14587_v10  ;;  %1037 = vmatpush2.bf16.msra.mxu0 %v14587_v10 }
 0x1ab   :  { %663 = vmatprep.subr.bf16.mxu1 %v17127_v19  ;;  %1038 = vmatprep.subr.bf16.mxu0 %v17127_v19 }
 0x1ae   :  { %664 = vmatpush2.bf16.msra.mxu1 %v14514_v12  ;;  %1039 = vmatpush2.bf16.msra.mxu0 %v14514_v12 }
 0x1af   :  { %665 = vmatprep.subr.bf16.mxu1 %v17127_v19  ;;  %1040 = vmatprep.subr.bf16.mxu0 %v17127_v19 }
 0x1b2   :  { %666 = vmatpush2.bf16.msra.mxu1 %v14508_v61  ;;  %1041 = vmatpush2.bf16.msra.mxu0 %v14508_v61 }
 0x1b3   :  { %885 = vmatprep.subr.bf16.mxu1 %v17127_v19  ;;  %1260 = vmatprep.subr.bf16.mxu0 %v17127_v19 }
 0x1b5   :  { %668 = vmatmul.mubr.bf16.vlgmr.msra.gmra.mxu1 %v13399_v41  ;;  %1043 = vmatmul.mubr.bf16.vlgmr.msra.gmra.mxu0 %v13402_v42  ;;  %v13481_v41 = vld [vmem:[#allocation5 + $0x234] ss:$8 sps:$4 sm:$0xff]   ;;  %v13506_v42 = vld [vmem:[#allocation7 + $0xa0] sm:$0xff]  }
 0x1b6   :  { %886 = vmatpush1.bf16.msra.mxu1 %v14495_v44  ;;  %1261 = vmatpush1.bf16.msra.mxu0 %v14495_v44 }
 0x1b7   :  { %887 = vmatprep.subr.bf16.mxu1 %v17127_v19  ;;  %1262 = vmatprep.subr.bf16.mxu0 %v17127_v19 }
 0x1b8   :  { %10838 = vmatprep.mubr.msk.bf16.mxu1 %vm497_vm4, %v13405_v43  ;;  %10874 = vmatprep.mubr.msk.bf16.mxu0 %vm497_vm4, %v13414_v45  ;;  %v13508_v43 = vld [vmem:[#allocation7 + $0x98] sm:$0xff]  }
 0x1b9   :  { %v13484_v45 = vld [vmem:[#allocation5 + $0x230] ss:$8 sps:$4 sm:$0xff]  }
 0x1ba   :  { %888 = vmatpush1.bf16.msra.mxu1 %v14524_v51  ;;  %1263 = vmatpush1.bf16.msra.mxu0 %v14524_v51 }
 0x1bb   :  { %889 = vmatprep.subr.bf16.mxu1 %v17127_v19  ;;  %1264 = vmatprep.subr.bf16.mxu0 %v17127_v19 }
 0x1bd   :  { %676 = vmatmul.mubr.bf16.gmra.mxu1 %v13407_v46  ;;  %1051 = vmatmul.mubr.bf16.gmra.mxu0 %v13416_v47  ;;  %v13464_v46 = vld [vmem:[#allocation5 + $0x1c4] ss:$8 sps:$4 sm:$0xff]   ;;  %v13509_v47 = vld [vmem:[#allocation7 + $0xd0] sm:$0xff]  }
 0x1be   :  { %890 = vmatpush1.bf16.msra.mxu1 %v14532_v59  ;;  %1265 = vmatpush1.bf16.msra.mxu0 %v14532_v59 }
 0x1bf   :  { %891 = vmatprep.subr.bf16.mxu1 %v17127_v19  ;;  %1266 = vmatprep.subr.bf16.mxu0 %v17127_v19 }
 0x1c0   :  { %10839 = vmatprep.mubr.msk.bf16.mxu1 %vm497_vm4, %v13408_v48  ;;  %10875 = vmatprep.mubr.msk.bf16.mxu0 %vm497_vm4, %v13417_v49  ;;  %v13510_v48 = vld [vmem:[#allocation7 + $0x90] sm:$0xff]   ;;  %v13512_v49 = vld [vmem:[#allocation7 + $0x88] sm:$0xff]  }
 0x1c2   :  { %892 = vmatpush1.bf16.msra.mxu1 %v14539_v2  ;;  %1267 = vmatpush1.bf16.msra.mxu0 %v14539_v2 }
 0x1c3   :  { %893 = vmatprep.subr.bf16.mxu1 %v17127_v19  ;;  %1268 = vmatprep.subr.bf16.mxu0 %v17127_v19 }
 0x1c5   :  { %684 = vmatmul.mubr.bf16.gmra.mxu1 %v13410_v50  ;;  %1059 = vmatmul.mubr.bf16.gmra.mxu0 %v13419_v52  ;;  %v13514_v50 = vld [vmem:[#allocation7 + $0x80] sm:$0xff]  }
 0x1c6   :  { %894 = vmatpush1.bf16.msra.mxu1 %v14547_v6  ;;  %1269 = vmatpush1.bf16.msra.mxu0 %v14547_v6 }
 0x1c7   :  { %895 = vmatprep.subr.bf16.mxu1 %v17127_v19  ;;  %1270 = vmatprep.subr.bf16.mxu0 %v17127_v19 }
 0x1c8   :  { %10840 = vmatprep.mubr.msk.bf16.mxu1 %vm497_vm4, %v13411_v53  ;;  %10876 = vmatprep.mubr.msk.bf16.mxu0 %vm497_vm4, %v13420_v54 }
 0x1ca   :  { %896 = vmatpush1.bf16.msra.mxu1 %v14553_v56  ;;  %1271 = vmatpush1.bf16.msra.mxu0 %v14553_v56 }
 0x1cb   :  { %897 = vmatprep.subr.bf16.mxu1 %v17127_v19  ;;  %1272 = vmatprep.subr.bf16.mxu0 %v17127_v19 }
 0x1cd   :  { %692 = vmatmul.mubr.bf16.gmra.mxu1 %v13413_v55  ;;  %1067 = vmatmul.mubr.bf16.gmra.mxu0 %v13422_v57 }
 0x1ce   :  { %898 = vmatpush1.bf16.msra.mxu1 %v14506_v58  ;;  %1273 = vmatpush1.bf16.msra.mxu0 %v14506_v58 }
 0x1cf   :  { %899 = vmatprep.subr.bf16.mxu1 %v17127_v19  ;;  %1274 = vmatprep.subr.bf16.mxu0 %v17127_v19 }
 0x1d0   :  { %10861 = vmatprep.mubr.msk.bf16.mxu1 %vm497_vm4, %v13425_v60  ;;  %10897 = vmatprep.mubr.msk.bf16.mxu0 %vm497_vm4, %v13428_v62 }
 0x1d2   :  { %900 = vmatpush1.bf16.msra.mxu1 %v14492_v40  ;;  %1275 = vmatpush1.bf16.msra.mxu0 %v14492_v40 }
 0x1d3   :  { %907 = vmatprep.subr.bf16.mxu1 %v17127_v19  ;;  %1282 = vmatprep.subr.bf16.mxu0 %v17127_v19 }
 0x1d6   :  { %908 = vmatpush2.bf16.msra.mxu1 %v14575_v21  ;;  %1283 = vmatpush2.bf16.msra.mxu0 %v14575_v21 }
 0x1d7   :  { %909 = vmatprep.subr.bf16.mxu1 %v17127_v19  ;;  %1284 = vmatprep.subr.bf16.mxu0 %v17127_v19 }
 0x1da   :  { %910 = vmatpush2.bf16.msra.mxu1 %v14581_v22  ;;  %1285 = vmatpush2.bf16.msra.mxu0 %v14581_v22 }
 0x1db   :  { %911 = vmatprep.subr.bf16.mxu1 %v17127_v19  ;;  %1286 = vmatprep.subr.bf16.mxu0 %v17127_v19 }
 0x1de   :  { %912 = vmatpush2.bf16.msra.mxu1 %v14587_v10  ;;  %1287 = vmatpush2.bf16.msra.mxu0 %v14587_v10 }
 0x1df   :  { %913 = vmatprep.subr.bf16.mxu1 %v17127_v19  ;;  %1288 = vmatprep.subr.bf16.mxu0 %v17127_v19 }
 0x1e2   :  { %914 = vmatpush2.bf16.msra.mxu1 %v14514_v12  ;;  %1289 = vmatpush2.bf16.msra.mxu0 %v14514_v12 }
 0x1e3   :  { %915 = vmatprep.subr.bf16.mxu1 %v17127_v19  ;;  %1290 = vmatprep.subr.bf16.mxu0 %v17127_v19 }
 0x1e6   :  { %916 = vmatpush2.bf16.msra.mxu1 %v14508_v61  ;;  %1291 = vmatpush2.bf16.msra.mxu0 %v14508_v61 }
 0x1e7   :  { %1135 = vmatprep.subr.bf16.mxu1 %v17127_v19  ;;  %1510 = vmatprep.subr.bf16.mxu0 %v17127_v19 }
 0x1e9   :  { %918 = vmatmul.mubr.bf16.vlgmr.msra.gmra.mxu1 %v13423_v63  ;;  %1293 = vmatmul.mubr.bf16.vlgmr.msra.gmra.mxu0 %v13426_v4  ;;  %v13473_v4 = vld [vmem:[#allocation7 + $0x78] sm:$0xff]  }
 0x1ea   :  { %1136 = vmatpush1.bf16.msra.mxu1 %v14495_v44  ;;  %1511 = vmatpush1.bf16.msra.mxu0 %v14495_v44 }
 0x1eb   :  { %1137 = vmatprep.subr.bf16.mxu1 %v17127_v19  ;;  %1512 = vmatprep.subr.bf16.mxu0 %v17127_v19 }
 0x1ec   :  { %10862 = vmatprep.mubr.msk.bf16.mxu1 %vm497_vm4, %v13429_v5  ;;  %10898 = vmatprep.mubr.msk.bf16.mxu0 %vm497_vm4, %v13450_v7  ;;  %v13462_v7 = vld [vmem:[#allocation5 + $0x1c0] ss:$8 sps:$4 sm:$0xff]  }
 0x1ee   :  { %1138 = vmatpush1.bf16.msra.mxu1 %v14524_v51  ;;  %1513 = vmatpush1.bf16.msra.mxu0 %v14524_v51 }
 0x1ef   :  { %1139 = vmatprep.subr.bf16.mxu1 %v17127_v19  ;;  %1514 = vmatprep.subr.bf16.mxu0 %v17127_v19 }
 0x1f1   :  { %926 = vmatmul.mubr.bf16.gmra.mxu1 %v13431_v1  ;;  %1301 = vmatmul.mubr.bf16.gmra.mxu0 %v13452_v8  ;;  %v13468_v8 = vld [vmem:[#allocation5 + $0x1d4] ss:$8 sps:$4 sm:$0xff]  }
 0x1f2   :  { %1140 = vmatpush1.bf16.msra.mxu1 %v14532_v59  ;;  %1515 = vmatpush1.bf16.msra.mxu0 %v14532_v59 }
 0x1f3   :  { %1141 = vmatprep.subr.bf16.mxu1 %v17127_v19  ;;  %1516 = vmatprep.subr.bf16.mxu0 %v17127_v19 }
 0x1f4   :  { %10863 = vmatprep.mubr.msk.bf16.mxu1 %vm497_vm4, %v13432_v9  ;;  %10899 = vmatprep.mubr.msk.bf16.mxu0 %vm497_vm4, %v13453_v11  ;;  %v13475_v9 = vld [vmem:[#allocation7 + $0x38] sm:$0xff]  }
 0x1f6   :  { %1142 = vmatpush1.bf16.msra.mxu1 %v14539_v2  ;;  %1517 = vmatpush1.bf16.msra.mxu0 %v14539_v2 }
 0x1f7   :  { %1143 = vmatprep.subr.bf16.mxu1 %v17127_v19  ;;  %1518 = vmatprep.subr.bf16.mxu0 %v17127_v19 }
 0x1f9   :  { %934 = vmatmul.mubr.bf16.gmra.mxu1 %v13434_v13  ;;  %1309 = vmatmul.mubr.bf16.gmra.mxu0 %v13455_v14 }
 0x1fa   :  { %1144 = vmatpush1.bf16.msra.mxu1 %v14547_v6  ;;  %1519 = vmatpush1.bf16.msra.mxu0 %v14547_v6 }
 0x1fb   :  { %1145 = vmatprep.subr.bf16.mxu1 %v17127_v19  ;;  %1520 = vmatprep.subr.bf16.mxu0 %v17127_v19 }
 0x1fc   :  { %10864 = vmatprep.mubr.msk.bf16.mxu1 %vm497_vm4, %v13435_v16  ;;  %10900 = vmatprep.mubr.msk.bf16.mxu0 %vm497_vm4, %v13456_v17 }
 0x1fe   :  { %1146 = vmatpush1.bf16.msra.mxu1 %v14553_v56  ;;  %1521 = vmatpush1.bf16.msra.mxu0 %v14553_v56 }
 0x1ff   :  { %1147 = vmatprep.subr.bf16.mxu1 %v17127_v19  ;;  %1522 = vmatprep.subr.bf16.mxu0 %v17127_v19 }
 0x201   :  { %942 = vmatmul.mubr.bf16.gmra.mxu1 %v13437_v18  ;;  %1317 = vmatmul.mubr.bf16.gmra.mxu0 %v13458_v20  ;;  %v13480_v18 = vld [vmem:[#allocation7 + $0x30] sm:$0xff]   ;;  %v13483_v20 = vld [vmem:[#allocation7 + $0x68] sm:$0xff]  }
 0x202   :  { %1148 = vmatpush1.bf16.msra.mxu1 %v14506_v58  ;;  %1523 = vmatpush1.bf16.msra.mxu0 %v14506_v58 }
 0x203   :  { %1149 = vmatprep.subr.bf16.mxu1 %v17127_v19  ;;  %1524 = vmatprep.subr.bf16.mxu0 %v17127_v19 }
 0x204   :  { %10885 = vmatprep.mubr.msk.bf16.mxu1 %vm497_vm4, %v13440_v23  ;;  %10921 = vmatprep.mubr.msk.bf16.mxu0 %vm497_vm4, %v13461_v24  ;;  %v13470_v24 = vld [vmem:[#allocation5 + $0x1d0] ss:$8 sps:$4 sm:$0xff]  }
 0x206   :  { %1150 = vmatpush1.bf16.msra.mxu1 %v14492_v40  ;;  %1525 = vmatpush1.bf16.msra.mxu0 %v14492_v40 }
 0x207   :  { %1157 = vmatprep.subr.bf16.mxu1 %v17127_v19  ;;  %1532 = vmatprep.subr.bf16.mxu0 %v17127_v19 }
 0x20a   :  { %1158 = vmatpush2.bf16.msra.mxu1 %v14575_v21  ;;  %1533 = vmatpush2.bf16.msra.mxu0 %v14575_v21 }
 0x20b   :  { %1159 = vmatprep.subr.bf16.mxu1 %v17127_v19  ;;  %1534 = vmatprep.subr.bf16.mxu0 %v17127_v19 }
 0x20e   :  { %1160 = vmatpush2.bf16.msra.mxu1 %v14581_v22  ;;  %1535 = vmatpush2.bf16.msra.mxu0 %v14581_v22 }
 0x20f   :  { %1161 = vmatprep.subr.bf16.mxu1 %v17127_v19  ;;  %1536 = vmatprep.subr.bf16.mxu0 %v17127_v19 }
 0x212   :  { %1162 = vmatpush2.bf16.msra.mxu1 %v14587_v10  ;;  %1537 = vmatpush2.bf16.msra.mxu0 %v14587_v10 }
 0x213   :  { %1163 = vmatprep.subr.bf16.mxu1 %v17127_v19  ;;  %1538 = vmatprep.subr.bf16.mxu0 %v17127_v19 }
 0x216   :  { %1164 = vmatpush2.bf16.msra.mxu1 %v14514_v12  ;;  %1539 = vmatpush2.bf16.msra.mxu0 %v14514_v12 }
 0x217   :  { %1165 = vmatprep.subr.bf16.mxu1 %v17127_v19  ;;  %1540 = vmatprep.subr.bf16.mxu0 %v17127_v19 }
 0x21a   :  { %1166 = vmatpush2.bf16.msra.mxu1 %v14508_v61  ;;  %1541 = vmatpush2.bf16.msra.mxu0 %v14508_v61 }
 0x21b   :  { %1385 = vmatprep.subr.bf16.mxu1 %v17127_v19  ;;  %11715 = vmatprep.subr.bf16.mxu0 %v13499_v26  ;;  %v13476_v26 = vld [vmem:[#allocation5 + $0x1e4] ss:$8 sps:$4 sm:$0xff]  }
 0x21d   :  { %1168 = vmatmul.mubr.bf16.vlgmr.msra.gmra.mxu1 %v13438_v15  ;;  %1543 = vmatmul.mubr.bf16.vlgmr.msra.gmra.mxu0 %v13459_v25 }
 0x21e   :  { %1386 = vmatpush1.bf16.msra.mxu1 %v14495_v44  ;;  %10886 = vmatprep.mubr.msk.bf16.mxu1 %vm497_vm4, %v13441_v27  ;;  %v13504_v44 = vld [vmem:[#allocation7 + $0xa8] sm:$0xff]  }
 0x21f   :  { %1387 = vmatprep.subr.bf16.mxu1 %v17127_v19  ;;  %10922 = vmatprep.mubr.msk.bf16.mxu0 %vm497_vm4, %v13465_v28  ;;  %v13485_v27 = vld [vmem:[#allocation7 + $0x28] sm:$0xff]  }
 0x220   :  { %11716 = vmatpush3.bf16.msra.mxu0 %v13500_v29 }
 0x221   :  { %11717 = vmatprep.subr.bf16.mxu0 %v13501_v30  ;;  %v13489_v30 = vld [vmem:[#allocation7 + $0x60] sm:$0xff]  }
 0x222   :  { %1388 = vmatpush1.bf16.msra.mxu1 %v14524_v51  ;;  %v13446_v51 = vld [vmem:[#allocation5 + $0x160] ss:$8 sps:$4 sm:$0xff]  }
 0x223   :  { %1389 = vmatprep.subr.bf16.mxu1 %v17127_v19 }
 0x224   :  { %11718 = vmatpush3.bf16.msra.mxu0 %v13502_v31 }
 0x225   :  { %1176 = vmatmul.mubr.bf16.gmra.mxu1 %v13443_v32  ;;  %1551 = vmatmul.mubr.bf16.gmra.mxu0 %v13467_v33 }
 0x226   :  { %1390 = vmatpush1.bf16.msra.mxu1 %v14532_v59  ;;  %10887 = vmatprep.mubr.msk.bf16.mxu1 %vm497_vm4, %v13444_v34  ;;  %v13507_v59 = vld [vmem:[#allocation7 + $0xd8] sm:$0xff]   ;;  %v13490_v34 = vld [vmem:[#allocation7 + $0x20] sm:$0xff]  }
 0x227   :  { %1391 = vmatprep.subr.bf16.mxu1 %v17127_v19  ;;  %10923 = vmatprep.mubr.msk.bf16.mxu0 %vm497_vm4, %v13471_v35 }
 0x228   :  { %11719 = vmatprep.subr.bf16.mxu0 %v13503_v36  ;;  %v13491_v36 = vld [vmem:[#allocation7 + $0x58] sm:$0xff]  }
 0x229   :  { %11720 = vmatpush3.bf16.msra.mxu0 %v13504_v44 }
 0x22a   :  { %1392 = vmatpush1.bf16.msra.mxu1 %v14539_v2  ;;  %11721 = vmatprep.subr.bf16.mxu0 %v13505_v37  ;;  %v13449_v2 = vld [vmem:[#allocation5 + $0x170] ss:$8 sps:$4 sm:$0xff]   ;;  %v13478_v37 = vld [vmem:[#allocation5 + $0x1e0] ss:$8 sps:$4 sm:$0xff]  }
 0x22b   :  { %1393 = vmatprep.subr.bf16.mxu1 %v17127_v19 }
 0x22d   :  { %1184 = vmatmul.mubr.bf16.gmra.mxu1 %v13446_v51  ;;  %1559 = vmatmul.mubr.bf16.gmra.mxu0 %v13474_v38 }
 0x22e   :  { %1394 = vmatpush1.bf16.msra.mxu1 %v14547_v6  ;;  %10888 = vmatprep.mubr.msk.bf16.mxu1 %vm497_vm4, %v13447_v39  ;;  %v13511_v6 = vld [vmem:[#allocation7 + $0xc8] sm:$0xff]   ;;  %v13486_v39 = vld [vmem:[#allocation5 + $0x1f4] ss:$8 sps:$4 sm:$0xff]  }
 0x22f   :  { %1395 = vmatprep.subr.bf16.mxu1 %v17127_v19  ;;  %10924 = vmatprep.mubr.msk.bf16.mxu0 %vm497_vm4, %v13481_v41  ;;  %v13492_v41 = vld [vmem:[#allocation7 + $0x18] sm:$0xff]  }
 0x230   :  { %11722 = vmatpush3.bf16.msra.mxu0 %v13506_v42 }
 0x231   :  { %11723 = vmatprep.subr.bf16.mxu0 %v13507_v59 }
 0x232   :  { %1396 = vmatpush1.bf16.msra.mxu1 %v14553_v56  ;;  %v13513_v56 = vld [vmem:[#allocation7 + $0xc0] sm:$0xff]  }
 0x233   :  { %1397 = vmatprep.subr.bf16.mxu1 %v17127_v19 }
 0x234   :  { %11724 = vmatpush3.bf16.msra.mxu0 %v13508_v43  ;;  %v13493_v43 = vld [vmem:[#allocation7 + $0x50] sm:$0xff]  }
 0x235   :  { %1192 = vmatmul.mubr.bf16.gmra.mxu1 %v13449_v2  ;;  %1567 = vmatmul.mubr.bf16.gmra.mxu0 %v13484_v45  ;;  %v13494_v45 = vld [vmem:[#allocation7 + $0x10] sm:$0xff]  }
 0x236   :  { %1398 = vmatpush1.bf16.msra.mxu1 %v14506_v58  ;;  %10909 = vmatprep.mubr.msk.bf16.mxu1 %vm497_vm4, %v13464_v46  ;;  %v13495_v46 = vld [vmem:[#allocation7 + $0x48] sm:$0xff]  }
 0x237   :  { %1399 = vmatprep.subr.bf16.mxu1 %v17127_v19  ;;  %11725 = vmatprep.subr.bf16.mxu0 %v13509_v47  ;;  %v13488_v47 = vld [vmem:[#allocation5 + $0x1f0] ss:$8 sps:$4 sm:$0xff]  }
 0x238   :  { %11726 = vmatpush3.bf16.msra.mxu0 %v13510_v48  ;;  %v13496_v48 = vld [vmem:[#allocation7 + $0x8] sm:$0xff]  }
 0x239   :  { %11727 = vmatprep.subr.bf16.mxu0 %v13511_v6  ;;  %v13497_v6 = vld [vmem:[#allocation7 + $0x40] sm:$0xff]  }
 0x23a   :  { %1400 = vmatpush1.bf16.msra.mxu1 %v14492_v40 }
 0x23b   :  { %1407 = vmatprep.subr.bf16.mxu1 %v17127_v19 }
 0x23c   :  { %11728 = vmatpush3.bf16.msra.mxu0 %v13512_v49  ;;  %v13498_v49 = vld [vmem:[#allocation7] sm:$0xff]  }
 0x23d   :  { %11729 = vmatprep.subr.bf16.mxu0 %v13513_v56  ;;  %v13515_v56 = vld [vmem:[#allocation7 + $0x178] sm:$0xff]  }
 0x23e   :  { %1408 = vmatpush2.bf16.msra.mxu1 %v14575_v21 }
 0x23f   :  { %1409 = vmatprep.subr.bf16.mxu1 %v17127_v19 }
 0x240   :  { %11730 = vmatpush3.bf16.msra.mxu0 %v13514_v50 }
 0x241   :  { %v14805_v58 = vpop.f32.mrf.mxu1  ;;  %v14807_v52 = vpop.f32.mrf.mxu0 }
 0x242   :  { %1410 = vmatpush2.bf16.msra.mxu1 %v14581_v22 }
 0x243   :  { %v546_v53 = vpop.f32.mrf.mxu1  ;;  %1411 = vmatprep.subr.bf16.mxu1 %v17127_v19  ;;  %v796_v40 = vpop.f32.mrf.mxu0 }
 0x245   :  { %v14811_v54 = vpop.f32.mrf.mxu1  ;;  %v14813_v55 = vpop.f32.mrf.mxu0 }
 0x246   :  { %1412 = vmatpush2.bf16.msra.mxu1 %v14587_v10  ;;  %v825_v21 = vpack.c.bf16 %v14813_v55, %v14807_v52  ;;  %v13539_v55 = vld [vmem:[#allocation7 + $0x1e0] sm:$0xff]  }
 0x247   :  { %v549_v57 = vpop.f32.mrf.mxu1  ;;  %1413 = vmatprep.subr.bf16.mxu1 %v17127_v19  ;;  %v799_v60 = vpop.f32.mrf.mxu0 }
 0x248   :  { %v13531_v60 = vld [vmem:[#allocation7 + $0x1f8] sm:$0xff]  }
 0x249   :  { %v14819_v62 = vpop.f32.mrf.mxu1  ;;  %v14821_v22 = vpop.f32.mrf.mxu0  ;;  %11795 = vmatprep.subr.bf16.mxu0 %v13531_v60 }
 0x24a   :  { %1414 = vmatpush2.bf16.msra.mxu1 %v14514_v12  ;;  %v13479_v12 = vld [vmem:[#allocation7 + $0x70] sm:$0xff]  }
 0x24b   :  { %1415 = vmatprep.subr.bf16.mxu1 %v17127_v19  ;;  %v554_v63 = vpop.f32.mrf.mxu1  ;;  %v804_v5 = vpop.f32.mrf.mxu0 }
 0x24d   :  { %v14825_v10 = vpop.f32.mrf.mxu1  ;;  %v14827_v1 = vpop.f32.mrf.mxu0 }
 0x24e   :  { %1416 = vmatpush2.bf16.msra.mxu1 %v14508_v61  ;;  %v826_v11 = vpack.c.bf16 %v14827_v1, %v14821_v22  ;;  %v13545_v1 = vld [vmem:[#allocation7 + $0x1d0] sm:$0xff]  }
 0x24f   :  { %11675 = vmatprep.subr.bf16.mxu1 %v13473_v4  ;;  %v557_v13 = vpop.f32.mrf.mxu1  ;;  %v807_v14 = vpop.f32.mrf.mxu0 }
 0x250   :  { %v13517_v14 = vld [vmem:[#allocation7 + $0x170] sm:$0xff]  }
 0x251   :  { %1418 = vmatmul.mubr.bf16.vlgmr.msra.gmra.mxu1 %v13462_v7  ;;  %v14832_v16 = vpop.f32.mrf.mxu1  ;;  %v14834_v17 = vpop.f32.mrf.mxu0 }
 0x252   :  { %10910 = vmatprep.mubr.msk.bf16.mxu1 %vm497_vm4, %v13468_v8  ;;  %11676 = vmatpush3.bf16.msra.mxu1 %v13475_v9  ;;  %v13516_v8 = vld [vmem:[#allocation7 + $0x138] sm:$0xff]   ;;  %v575_v9 = vpack.c.bf16 %v14811_v54, %v14805_v58  ;;  %v13520_v54 = vld [vmem:[#allocation7 + $0x128] sm:$0xff]  }
 0x253   :  { %11677 = vmatprep.subr.bf16.mxu1 %v13479_v12  ;;  %v562_v61 = vpop.f32.mrf.mxu1  ;;  %v812_v23 = vpop.f32.mrf.mxu0 }
 0x255   :  { %v14837_v15 = vpop.f32.mrf.mxu1  ;;  %v14839_v25 = vpop.f32.mrf.mxu0 }
 0x256   :  { %11678 = vmatpush3.bf16.msra.mxu1 %v13480_v18  ;;  %v827_v28 = vpack.c.bf16 %v14839_v25, %v14834_v17  ;;  %v13551_v25 = vld [vmem:[#allocation7 + $0x1c0] sm:$0xff]  }
 0x257   :  { %11679 = vmatprep.subr.bf16.mxu1 %v13483_v20  ;;  %v565_v29 = vpop.f32.mrf.mxu1  ;;  %v815_v31 = vpop.f32.mrf.mxu0  ;;  %v13518_v20 = vld [vmem:[#allocation7 + $0x130] sm:$0xff]  }
 0x258   :  { %v576_v31 = vpack.c.bf16 %v14825_v10, %v14819_v62  ;;  %v13524_v10 = vld [vmem:[#allocation7 + $0x118] sm:$0xff]  }
 0x259   :  { %1426 = vmatmul.mubr.bf16.gmra.mxu1 %v13470_v24  ;;  %v14843_v32 = vpop.f32.mrf.mxu1  ;;  %v14845_v33 = vpop.f32.mrf.mxu0 }
 0x25a   :  { %10911 = vmatprep.mubr.msk.bf16.mxu1 %vm497_vm4, %v13476_v26  ;;  %11680 = vmatpush3.bf16.msra.mxu1 %v13485_v27  ;;  %v13519_v26 = vld [vmem:[#allocation7 + $0x168] sm:$0xff]  }
 0x25b   :  { %11681 = vmatprep.subr.bf16.mxu1 %v13489_v30  ;;  %v570_v35 = vpop.f32.mrf.mxu1  ;;  %v820_v44 = vpop.f32.mrf.mxu0 }
 0x25d   :  { %v14848_v51 = vpop.f32.mrf.mxu1  ;;  %v14850_v38 = vpop.f32.mrf.mxu0 }
 0x25e   :  { %11682 = vmatpush3.bf16.msra.mxu1 %v13490_v34  ;;  %v828_v42 = vpack.c.bf16 %v14850_v38, %v14845_v33 }
 0x25f   :  { %11683 = vmatprep.subr.bf16.mxu1 %v13491_v36  ;;  %v573_v59 = vpop.f32.mrf.mxu1  ;;  %v823_v2 = vpop.f32.mrf.mxu0  ;;  %v13521_v36 = vld [vmem:[#allocation7 + $0x160] sm:$0xff]  }
 0x261   :  { %1434 = vmatmul.mubr.bf16.gmra.mxu1 %v13478_v37 }
 0x262   :  { %10912 = vmatprep.mubr.msk.bf16.mxu1 %vm497_vm4, %v13486_v39  ;;  %11684 = vmatpush3.bf16.msra.mxu1 %v13492_v41  ;;  %v13522_v39 = vld [vmem:[#allocation7 + $0x120] sm:$0xff]  }
 0x263   :  { %11685 = vmatprep.subr.bf16.mxu1 %v13493_v43  ;;  %v13523_v43 = vld [vmem:[#allocation7 + $0x158] sm:$0xff]  }
 0x266   :  { %11686 = vmatpush3.bf16.msra.mxu1 %v13494_v45 }
 0x267   :  { %11687 = vmatprep.subr.bf16.mxu1 %v13495_v46 }
 0x269   :  { %1442 = vmatmul.mubr.bf16.gmra.mxu1 %v13488_v47  ;;  %v577_v47 = vpack.c.bf16 %v14837_v15, %v14832_v16  ;;  %v13528_v15 = vld [vmem:[#allocation7 + $0x108] sm:$0xff]  }
 0x26a   :  { %11688 = vmatpush3.bf16.msra.mxu1 %v13496_v48 }
 0x26b   :  { %11689 = vmatprep.subr.bf16.mxu1 %v13497_v6 }
 0x26e   :  { %11690 = vmatpush3.bf16.msra.mxu1 %v13498_v49  ;;  %v13525_v49 = vld [vmem:[#allocation7 + $0x150] sm:$0xff]  }
 0x26f   :  { %11755 = vmatprep.subr.bf16.mxu1 %v13515_v56 }
 0x275   :  { %v669_v50 = vpop.f32.mrf.mxu1  ;;  %v14855_v53 = vpop.f32.mrf.mxu0 }
 0x277   :  { %v671_v40 = vpop.f32.mrf.mxu1  ;;  %v1046_v57 = vpop.f32.mrf.mxu0 }
 0x278   :  { %v13526_v40 = vld [vmem:[#allocation7 + $0x110] sm:$0xff]  }
 0x279   :  { %v672_v63 = vpop.f32.mrf.mxu1  ;;  %v14857_v4 = vpop.f32.mrf.mxu0 }
 0x27a   :  { %v700_v5 = vpack.c.bf16 %v672_v63, %v669_v50  ;;  %v1075_v7 = vpack.c.bf16 %v14857_v4, %v14855_v53  ;;  %v13527_v63 = vld [vmem:[#allocation7 + $0x148] sm:$0xff]  }
 0x27b   :  { %v674_v13 = vpop.f32.mrf.mxu1  ;;  %v1049_v12 = vpop.f32.mrf.mxu0 }
 0x27c   :  { %2194 = vmatprep.mubr.bf16.mxu1 %v700_v5  ;;  %v578_v13 = vpack.c.bf16 %v14848_v51, %v14843_v32 }
 0x27d   :  { %v677_v18 = vpop.f32.mrf.mxu1  ;;  %2195 = vmatmul.mubr.bf16.vlgmr.msra.gmra.mxu1 %v575_v9  ;;  %v14863_v61 = vpop.f32.mrf.mxu0 }
 0x27e   :  { %11756 = vmatpush3.bf16.msra.mxu1 %v13516_v8 }
 0x27f   :  { %v679_v23 = vpop.f32.mrf.mxu1  ;;  %v1054_v24 = vpop.f32.mrf.mxu0  ;;  %11757 = vmatprep.subr.bf16.mxu1 %v13517_v14 }
 0x280   :  { %v14887_v23 = vld [vmem:[#allocation7 + $0x238] sm:$0xff]  }
 0x281   :  { %v680_v27 = vpop.f32.mrf.mxu1  ;;  %v14865_v29 = vpop.f32.mrf.mxu0 }
 0x282   :  { %v701_v30 = vpack.c.bf16 %v680_v27, %v677_v18  ;;  %11758 = vmatpush3.bf16.msra.mxu1 %v13518_v20  ;;  %v1076_v58 = vpack.c.bf16 %v14865_v29, %v14863_v61  ;;  %v13529_v18 = vld [vmem:[#allocation7 + $0x140] sm:$0xff]  }
 0x283   :  { %v682_v34 = vpop.f32.mrf.mxu1  ;;  %v1057_v35 = vpop.f32.mrf.mxu0  ;;  %11759 = vmatprep.subr.bf16.mxu1 %v13519_v26  ;;  %v13530_v20 = vld [vmem:[#allocation7 + $0x100] sm:$0xff]  }
 0x284   :  { %2202 = vmatprep.mubr.bf16.mxu1 %v701_v30  ;;  %v13532_v34 = vld [vmem:[#allocation7 + $0x1b8] sm:$0xff]  }
 0x285   :  { %v685_v44 = vpop.f32.mrf.mxu1  ;;  %2203 = vmatmul.mubr.bf16.gmra.mxu1 %v576_v31  ;;  %v14871_v37 = vpop.f32.mrf.mxu0 }
 0x286   :  { %11760 = vmatpush3.bf16.msra.mxu1 %v13520_v54 }
 0x287   :  { %v687_v41 = vpop.f32.mrf.mxu1  ;;  %v1062_v59 = vpop.f32.mrf.mxu0  ;;  %11761 = vmatprep.subr.bf16.mxu1 %v13521_v36 }
 0x288   :  { %v13535_v59 = vld [vmem:[#allocation7 + $0x1b0] sm:$0xff]  }
 0x289   :  { %v688_v2 = vpop.f32.mrf.mxu1  ;;  %v14873_v45 = vpop.f32.mrf.mxu0 }
 0x28a   :  { %v702_v46 = vpack.c.bf16 %v688_v2, %v685_v44  ;;  %11762 = vmatpush3.bf16.msra.mxu1 %v13522_v39  ;;  %v1077_v62 = vpack.c.bf16 %v14873_v45, %v14871_v37  ;;  %v13533_v44 = vld [vmem:[#allocation7 + $0x1f0] sm:$0xff]  }
 0x28b   :  { %v690_v48 = vpop.f32.mrf.mxu1  ;;  %v1065_v6 = vpop.f32.mrf.mxu0  ;;  %11763 = vmatprep.subr.bf16.mxu1 %v13523_v43 }
 0x28c   :  { %2210 = vmatprep.mubr.bf16.mxu1 %v702_v46  ;;  %v13536_v46 = vld [vmem:[#allocation7 + $0x1e8] sm:$0xff]  }
 0x28d   :  { %v693_v56 = vpop.f32.mrf.mxu1  ;;  %2211 = vmatmul.mubr.bf16.gmra.mxu1 %v577_v47  ;;  %v14879_v50 = vpop.f32.mrf.mxu0 }
 0x28e   :  { %11764 = vmatpush3.bf16.msra.mxu1 %v13524_v10 }
 0x28f   :  { %v695_v57 = vpop.f32.mrf.mxu1  ;;  %v1070_v60 = vpop.f32.mrf.mxu0  ;;  %11765 = vmatprep.subr.bf16.mxu1 %v13525_v49  ;;  %v13538_v49 = vld [vmem:[#allocation7 + $0x1a8] sm:$0xff]  }
 0x290   :  { %v13541_v57 = vld [vmem:[#allocation7 + $0x1a0] sm:$0xff]  }
 0x291   :  { %v696_v5 = vpop.f32.mrf.mxu1  ;;  %v14881_v8 = vpop.f32.mrf.mxu0 }
 0x292   :  { %v703_v9 = vpack.c.bf16 %v696_v5, %v693_v56  ;;  %11766 = vmatpush3.bf16.msra.mxu1 %v13526_v40  ;;  %v1078_v16 = vpack.c.bf16 %v14881_v8, %v14879_v50  ;;  %v13542_v5 = vld [vmem:[#allocation7 + $0x1d8] sm:$0xff]  }
 0x293   :  { %v698_v12 = vpop.f32.mrf.mxu1  ;;  %v1073_v14 = vpop.f32.mrf.mxu0  ;;  %11767 = vmatprep.subr.bf16.mxu1 %v13527_v63 }
 0x294   :  { %2218 = vmatprep.mubr.bf16.mxu1 %v703_v9  ;;  %v13544_v14 = vld [vmem:[#allocation7 + $0x198] sm:$0xff]  }
 0x295   :  { %2219 = vmatmul.mubr.bf16.gmra.mxu1 %v578_v13 }
 0x296   :  { %11768 = vmatpush3.bf16.msra.mxu1 %v13528_v15 }
 0x297   :  { %11769 = vmatprep.subr.bf16.mxu1 %v13529_v18 }
 0x29a   :  { %11770 = vmatpush3.bf16.msra.mxu1 %v13530_v20 }
 0x29b   :  { %12673 = vmatprep.subr.bf16.mxu1 %v14887_v23 }
 0x2a9   :  { %v919_v24 = vpop.f32.mrf.mxu1  ;;  %v14890_v26 = vpop.f32.mrf.mxu0 }
 0x2ab   :  { %v921_v27 = vpop.f32.mrf.mxu1  ;;  %v1296_v30 = vpop.f32.mrf.mxu0 }
 0x2ad   :  { %v922_v32 = vpop.f32.mrf.mxu1  ;;  %v14892_v51 = vpop.f32.mrf.mxu0 }
 0x2ae   :  { %v950_v54 = vpack.c.bf16 %v922_v32, %v919_v24  ;;  %v1325_v31 = vpack.c.bf16 %v14892_v51, %v14890_v26  ;;  %v13547_v24 = vld [vmem:[#allocation7 + $0x190] sm:$0xff]   ;;  %v13548_v32 = vld [vmem:[#allocation7 + $0x1c8] sm:$0xff]  }
 0x2af   :  { %v924_v35 = vpop.f32.mrf.mxu1  ;;  %v1299_v36 = vpop.f32.mrf.mxu0 }
 0x2b0   :  { %2259 = vmatprep.mubr.bf16.mxu0 %v950_v54 }
 0x2b1   :  { %v927_v39 = vpop.f32.mrf.mxu1  ;;  %2260 = vmatmul.mubr.bf16.vlgmr.msra.gmra.mxu0 %v825_v21  ;;  %v14899_v41 = vpop.f32.mrf.mxu0 }
 0x2b2   :  { %11796 = vmatpush3.bf16.msra.mxu0 %v13532_v34 }
 0x2b3   :  { %v929_v43 = vpop.f32.mrf.mxu1  ;;  %v1304_v2 = vpop.f32.mrf.mxu0  ;;  %11797 = vmatprep.subr.bf16.mxu0 %v13533_v44  ;;  %v13550_v44 = vld [vmem:[#allocation7 + $0x188] sm:$0xff]  }
 0x2b5   :  { %v930_v10 = vpop.f32.mrf.mxu1  ;;  %v14901_v47 = vpop.f32.mrf.mxu0 }
 0x2b6   :  { %v951_v48 = vpack.c.bf16 %v930_v10, %v927_v39  ;;  %v1326_v6 = vpack.c.bf16 %v14901_v47, %v14899_v41  ;;  %11798 = vmatpush3.bf16.msra.mxu0 %v13535_v59 }
 0x2b7   :  { %v932_v56 = vpop.f32.mrf.mxu1  ;;  %v1307_v52 = vpop.f32.mrf.mxu0  ;;  %11799 = vmatprep.subr.bf16.mxu0 %v13536_v46 }
 0x2b8   :  { %2267 = vmatprep.mubr.bf16.mxu0 %v951_v48  ;;  %v13537_v52 = vld [vmem:[#allocation7 + $0x230] sm:$0xff]  }
 0x2b9   :  { %v935_v21 = vpop.f32.mrf.mxu1  ;;  %2268 = vmatmul.mubr.bf16.gmra.mxu0 %v826_v11  ;;  %v14908_v40 = vpop.f32.mrf.mxu0 }
 0x2ba   :  { %11800 = vmatpush3.bf16.msra.mxu0 %v13538_v49 }
 0x2bb   :  { %v937_v60 = vpop.f32.mrf.mxu1  ;;  %v1312_v63 = vpop.f32.mrf.mxu0  ;;  %11801 = vmatprep.subr.bf16.mxu0 %v13539_v55 }
 0x2bd   :  { %v938_v9 = vpop.f32.mrf.mxu1  ;;  %v14910_v15 = vpop.f32.mrf.mxu0 }
 0x2be   :  { %v952_v13 = vpack.c.bf16 %v938_v9, %v935_v21  ;;  %v1327_v12 = vpack.c.bf16 %v14910_v15, %v14908_v40  ;;  %11802 = vmatpush3.bf16.msra.mxu0 %v13541_v57  ;;  %v13540_v21 = vld [vmem:[#allocation7 + $0x228] sm:$0xff]  }
 0x2bf   :  { %v940_v18 = vpop.f32.mrf.mxu1  ;;  %v1315_v22 = vpop.f32.mrf.mxu0  ;;  %11803 = vmatprep.subr.bf16.mxu0 %v13542_v5 }
 0x2c0   :  { %2275 = vmatprep.mubr.bf16.mxu0 %v952_v13  ;;  %v13543_v13 = vld [vmem:[#allocation7 + $0x220] sm:$0xff]  }
 0x2c1   :  { %v943_v11 = vpop.f32.mrf.mxu1  ;;  %2276 = vmatmul.mubr.bf16.gmra.mxu0 %v827_v28  ;;  %v14917_v20 = vpop.f32.mrf.mxu0  ;;  %v13553_v28 = vld [vmem:[#allocation7 + $0x180] sm:$0xff]  }
 0x2c2   :  { %11804 = vmatpush3.bf16.msra.mxu0 %v13544_v14 }
 0x2c3   :  { %v945_v27 = vpop.f32.mrf.mxu1  ;;  %v1320_v30 = vpop.f32.mrf.mxu0  ;;  %11805 = vmatprep.subr.bf16.mxu0 %v13545_v1 }
 0x2c4   :  { %v13549_v27 = vld [vmem:[#allocation7 + $0x210] sm:$0xff]  }
 0x2c5   :  { %v946_v54 = vpop.f32.mrf.mxu1  ;;  %v14919_v34 = vpop.f32.mrf.mxu0 }
 0x2c6   :  { %v953_v35 = vpack.c.bf16 %v946_v54, %v943_v11  ;;  %v1328_v36 = vpack.c.bf16 %v14919_v34, %v14917_v20  ;;  %11806 = vmatpush3.bf16.msra.mxu0 %v13547_v24 }
 0x2c7   :  { %v948_v39 = vpop.f32.mrf.mxu1  ;;  %v1323_v17 = vpop.f32.mrf.mxu0  ;;  %11807 = vmatprep.subr.bf16.mxu0 %v13548_v32 }
 0x2c8   :  { %2283 = vmatprep.mubr.bf16.mxu0 %v953_v35 }
 0x2c9   :  { %2284 = vmatmul.mubr.bf16.gmra.mxu0 %v828_v42 }
 0x2ca   :  { %11808 = vmatpush3.bf16.msra.mxu0 %v13550_v44 }
 0x2cb   :  { %11809 = vmatprep.subr.bf16.mxu0 %v13551_v25 }
 0x2ce   :  { %11810 = vmatpush3.bf16.msra.mxu0 %v13553_v28  ;;  %v13554_v28 = vld [vmem:[#allocation7 + $0x200] sm:$0xff]  }
 0x2cf   :  { %12721 = vmatprep.subr.bf16.mxu0 %v17129_v0 }
 0x2dd   :  { %v1169_v59 = vpop.f32.mrf.mxu1  ;;  %v14927_v43 = vpop.f32.mrf.mxu0 }
 0x2df   :  { %v1171_v2 = vpop.f32.mrf.mxu1  ;;  %v1546_v46 = vpop.f32.mrf.mxu0 }
 0x2e1   :  { %v1172_v10 = vpop.f32.mrf.mxu1  ;;  %v1547_v48 = vpop.f32.mrf.mxu0 }
 0x2e2   :  { %v1200_v49 = vpack.c.bf16 %v1172_v10, %v1169_v59  ;;  %v1575_v17 = vpack.c.bf16 %v1547_v48, %v14927_v43 }
 0x2e3   :  { %v1174_v56 = vpop.f32.mrf.mxu1  ;;  %v1549_v55 = vpop.f32.mrf.mxu0 }
 0x2e4   :  { %2324 = vmatprep.mubr.bf16.mxu1 %v1200_v49 }
 0x2e5   :  { %v1177_v33 = vpop.f32.mrf.mxu1  ;;  %2325 = vmatmul.mubr.bf16.vlgmr.msra.gmra.mxu1 %v1075_v7  ;;  %v1552_v38 = vpop.f32.mrf.mxu0  ;;  %v13546_v7 = vld [vmem:[#allocation7 + $0x218] sm:$0xff]  }
 0x2e6   :  { %12674 = vmatpush3.bf16.msra.mxu1 %v14887_v23 }
 0x2e7   :  { %v1179_v42 = vpop.f32.mrf.mxu1  ;;  %12675 = vmatprep.subr.bf16.mxu1 %v13537_v52  ;;  %v1554_v57 = vpop.f32.mrf.mxu0 }
 0x2e9   :  { %v1180_v60 = vpop.f32.mrf.mxu1  ;;  %v1555_v63 = vpop.f32.mrf.mxu0 }
 0x2ea   :  { %v1201_v5 = vpack.c.bf16 %v1180_v60, %v1177_v33  ;;  %12676 = vmatpush3.bf16.msra.mxu1 %v13537_v52  ;;  %v1576_v37 = vpack.c.bf16 %v1555_v63, %v1552_v38 }
 0x2eb   :  { %v1182_v9 = vpop.f32.mrf.mxu1  ;;  %12677 = vmatprep.subr.bf16.mxu1 %v13540_v21  ;;  %v1557_v14 = vpop.f32.mrf.mxu0 }
 0x2ec   :  { %2332 = vmatprep.mubr.bf16.mxu1 %v1201_v5 }
 0x2ed   :  { %v1185_v18 = vpop.f32.mrf.mxu1  ;;  %2333 = vmatmul.mubr.bf16.gmra.mxu1 %v1076_v58  ;;  %v1560_v53 = vpop.f32.mrf.mxu0  ;;  %v13552_v58 = vld [vmem:[#allocation7 + $0x208] sm:$0xff]  }
 0x2ee   :  { %12678 = vmatpush3.bf16.msra.mxu1 %v13540_v21 }
 0x2ef   :  { %v1187_v4 = vpop.f32.mrf.mxu1  ;;  %12679 = vmatprep.subr.bf16.mxu1 %v13543_v13  ;;  %v1562_v23 = vpop.f32.mrf.mxu0 }
 0x2f1   :  { %v1188_v22 = vpop.f32.mrf.mxu1  ;;  %v1563_v1 = vpop.f32.mrf.mxu0 }
 0x2f2   :  { %v1202_v11 = vpack.c.bf16 %v1188_v22, %v1185_v18  ;;  %12680 = vmatpush3.bf16.msra.mxu1 %v13543_v13  ;;  %v1577_v45 = vpack.c.bf16 %v1563_v1, %v1560_v53 }
 0x2f3   :  { %v1190_v24 = vpop.f32.mrf.mxu1  ;;  %12681 = vmatprep.subr.bf16.mxu1 %v13546_v7  ;;  %v1565_v30 = vpop.f32.mrf.mxu0 }
 0x2f4   :  { %2340 = vmatprep.mubr.bf16.mxu1 %v1202_v11 }
 0x2f5   :  { %v1193_v32 = vpop.f32.mrf.mxu1  ;;  %2341 = vmatmul.mubr.bf16.gmra.mxu1 %v1077_v62  ;;  %v1568_v61 = vpop.f32.mrf.mxu0 }
 0x2f6   :  { %12682 = vmatpush3.bf16.msra.mxu1 %v13546_v7 }
 0x2f7   :  { %v1195_v29 = vpop.f32.mrf.mxu1  ;;  %12683 = vmatprep.subr.bf16.mxu1 %v13549_v27  ;;  %v1570_v54 = vpop.f32.mrf.mxu0 }
 0x2f9   :  { %v1196_v35 = vpop.f32.mrf.mxu1  ;;  %v1571_v44 = vpop.f32.mrf.mxu0 }
 0x2fa   :  { %v1203_v39 = vpack.c.bf16 %v1196_v35, %v1193_v32  ;;  %12684 = vmatpush3.bf16.msra.mxu1 %v13549_v27  ;;  %v1578_v62 = vpack.c.bf16 %v1571_v44, %v1568_v61 }
 0x2fb   :  { %v1198_v25 = vpop.f32.mrf.mxu1  ;;  %12685 = vmatprep.subr.bf16.mxu1 %v13552_v58  ;;  %v1573_v59 = vpop.f32.mrf.mxu0 }
 0x2fc   :  { %2348 = vmatprep.mubr.bf16.mxu1 %v1203_v39 }
 0x2fd   :  { %2349 = vmatmul.mubr.bf16.gmra.mxu1 %v1078_v16 }
 0x2fe   :  { %12686 = vmatpush3.bf16.msra.mxu1 %v13552_v58  ;;  %12689 = vmatprep.mubr.bf16.mxu1 %v1575_v17 }
 0x2ff   :  { %12687 = vmatprep.subr.bf16.mxu1 %v13554_v28 }
 0x302   :  { %12688 = vmatpush3.bf16.msra.mxu1 %v13554_v28 }
 0x303   :  { %12697 = vmatprep.subr.bf16.mxu1 %v17129_v0 }
 0x305   :  { %12690 = vmatmul.mubr.bf16.vlgmr.msra.gmra.mxu1 %v1576_v37 }
 0x306   :  { %12693 = vmatprep.mubr.bf16.mxu1 %v1577_v45 }
 0x30d   :  { %12694 = vmatmul.mubr.bf16.gmra.mxu1 %v1578_v62 }
 0x30e   :  { %12705 = vmatprep.mubr.msk.bf16.mxu1 %vm14297_vm1, %v17129_v0 }
 0x311   :  { %v1419_v43 = vpop.f32.mrf.mxu1 }
 0x313   :  { %v1421_v2 = vpop.f32.mrf.mxu1 }
 0x315   :  { %v1422_v46 = vpop.f32.mrf.mxu1 }
 0x316   :  { %v1450_v50 = vpack.c.bf16 %v1422_v46, %v1419_v43 }
 0x317   :  { %v1424_v8 = vpop.f32.mrf.mxu1 }
 0x318   :  { %2389 = vmatprep.mubr.bf16.mxu0 %v1450_v50 }
 0x319   :  { %v1427_v16 = vpop.f32.mrf.mxu1  ;;  %2390 = vmatmul.mubr.bf16.vlgmr.msra.gmra.mxu0 %v1325_v31 }
 0x31b   :  { %v1429_v10 = vpop.f32.mrf.mxu1 }
 0x31d   :  { %v1430_v48 = vpop.f32.mrf.mxu1 }
 0x31e   :  { %v1451_v49 = vpack.c.bf16 %v1430_v48, %v1427_v16 }
 0x31f   :  { %v1432_v56 = vpop.f32.mrf.mxu1 }
 0x320   :  { %2397 = vmatprep.mubr.bf16.mxu0 %v1451_v49 }
 0x321   :  { %v1435_v52 = vpop.f32.mrf.mxu1  ;;  %2398 = vmatmul.mubr.bf16.gmra.mxu0 %v1326_v6 }
 0x323   :  { %v1437_v55 = vpop.f32.mrf.mxu1 }
 0x325   :  { %v1438_v33 = vpop.f32.mrf.mxu1 }
 0x326   :  { %v1452_v38 = vpack.c.bf16 %v1438_v33, %v1435_v52 }
 0x327   :  { %v1440_v42 = vpop.f32.mrf.mxu1 }
 0x328   :  { %2405 = vmatprep.mubr.bf16.mxu0 %v1452_v38 }
 0x329   :  { %v1443_v21 = vpop.f32.mrf.mxu1  ;;  %2406 = vmatmul.mubr.bf16.gmra.mxu0 %v1327_v12  ;;  %v14962_v12 = vld [vmem:[#allocation8] ss:$0 sm:$0xff] }
 0x32b   :  { %v1445_v26 = vpop.f32.mrf.mxu1 }
 0x32d   :  { %v1446_v51 = vpop.f32.mrf.mxu1 }
 0x32e   :  { %v1453_v31 = vpack.c.bf16 %v1446_v51, %v1443_v21 }
 0x32f   :  { %v1448_v57 = vpop.f32.mrf.mxu1 }
 0x330   :  { %2413 = vmatprep.mubr.bf16.mxu0 %v1453_v31 }
 0x331   :  { %2414 = vmatmul.mubr.bf16.gmra.mxu0 %v1328_v36 }
 0x332   :  { %12729 = vmatprep.mubr.msk.bf16.mxu0 %vm14297_vm1, %v17129_v0 }
 0x33d   :  { %v11691_v41 = vpop.f32.mrf.mxu1 }
 0x33f   :  { %v11692_v47 = vpop.f32.mrf.mxu1 }
 0x340   :  { %v11693_v6 = vadd.f32 %v11692_v47, %v11691_v41 }
 0x341   :  { %v11694_v60 = vpop.f32.mrf.mxu1 }
 0x342   :  { %v2197_v14 = vadd.f32 %v11693_v6, %v14962_v12 }
 0x343   :  { %v11695_v63 = vpop.f32.mrf.mxu1 }
 0x344   :  { %v11696_v20 = vadd.f32 %v11695_v63, %v11694_v60 }
 0x345   :  { %v11697_v5 = vpop.f32.mrf.mxu1 }
 0x346   :  { %v2200_v4 = vadd.f32 %v11696_v20, %v14962_v12 }
 0x347   :  { %v11698_v40 = vpop.f32.mrf.mxu1 }
 0x348   :  { %v14960_v15 = vadd.f32 %v11698_v40, %v11697_v5 }
 0x349   :  { %v14966_v22 = vpop.f32.mrf.mxu1 }
 0x34b   :  { %v14968_v1 = vpop.f32.mrf.mxu1 }
 0x34d   :  { %v14970_v11 = vpop.f32.mrf.mxu1 }
 0x34f   :  { %v14972_v24 = vpop.f32.mrf.mxu1 }
 0x351   :  { %v11706_v27 = vpop.f32.mrf.mxu1 }
 0x353   :  { %v11707_v30 = vpop.f32.mrf.mxu1 }
 0x355   :  { %v11709_v32 = vpop.f32.mrf.mxu1 }
 0x357   :  { %v11710_v61 = vpop.f32.mrf.mxu1 }
 0x359   :  { %v14974_v29 = vpop.f32.mrf.mxu1 }
 0x35b   :  { %v11713_v58 = vpop.f32.mrf.mxu1 }
 0x371   :  { %v11731_v9 = vpop.f32.mrf.mxu0 }
 0x373   :  { %v11732_v13 = vpop.f32.mrf.mxu0 }
 0x374   :  { %v11733_v34 = vadd.f32 %v11732_v13, %v11731_v9 }
 0x375   :  { %v11734_v36 = vpop.f32.mrf.mxu0 }
 0x376   :  { %v2262_v18 = vadd.f32 %v11733_v34, %v2197_v14 }
 0x377   :  { %v11735_v53 = vpop.f32.mrf.mxu0 }
 0x378   :  { %v11736_v7 = vadd.f32 %v11735_v53, %v11734_v36 }
 0x379   :  { %v14976_v39 = vpop.f32.mrf.mxu0 }
 0x37a   :  { %v2265_v23 = vadd.f32 %v11736_v7, %v2200_v4 }
 0x37b   :  { %v14980_v28 = vpop.f32.mrf.mxu0 }
 0x37d   :  { %v14986_v45 = vpop.f32.mrf.mxu0 }
 0x37f   :  { %v14990_v43 = vpop.f32.mrf.mxu0 }
 0x381   :  { %v11743_v46 = vpop.f32.mrf.mxu0 }
 0x383   :  { %v11744_v8 = vpop.f32.mrf.mxu0 }
 0x385   :  { %v11746_v10 = vpop.f32.mrf.mxu0 }
 0x387   :  { %v11747_v49 = vpop.f32.mrf.mxu0 }
 0x389   :  { %v11749_v52 = vpop.f32.mrf.mxu0 }
 0x38b   :  { %v11750_v33 = vpop.f32.mrf.mxu0 }
 0x38d   :  { %v11752_v42 = vpop.f32.mrf.mxu0 }
 0x38f   :  { %v11753_v51 = vpop.f32.mrf.mxu0 }
 0x3a5   :  { %v11771_v54 = vpop.f32.mrf.mxu1 }
 0x3a7   :  { %v11772_v35 = vpop.f32.mrf.mxu1 }
 0x3a8   :  { %v11773_v31 = vadd.f32 %v11772_v35, %v11771_v54 }
 0x3a9   :  { %v11774_v44 = vpop.f32.mrf.mxu1 }
 0x3aa   :  { %v2327_v6 = vadd.f32 %v11773_v31, %v2262_v18 }
 0x3ab   :  { %v11775_v17 = vpop.f32.mrf.mxu1 }
 0x3ac   :  { %v11776_v60 = vadd.f32 %v11775_v17, %v11774_v44 }
 0x3ad   :  { %v14978_v25 = vpop.f32.mrf.mxu1 }
 0x3ae   :  { %v2330_v14 = vadd.f32 %v11776_v60, %v2265_v23  ;;  %v11705_v60 = vadd.f32 %v14972_v24, %v14970_v11  ;;  %v11754_v11 = vadd.f32 %v11753_v51, %v11752_v42 }
 0x3af   :  { %v14982_v59 = vpop.f32.mrf.mxu1 }
 0x3b1   :  { %v14984_v37 = vpop.f32.mrf.mxu1 }
 0x3b3   :  { %v14988_v62 = vpop.f32.mrf.mxu1 }
 0x3b5   :  { %v14992_v2 = vpop.f32.mrf.mxu1 }
 0x3b7   :  { %v14994_v50 = vpop.f32.mrf.mxu1 }
 0x3b9   :  { %v11786_v16 = vpop.f32.mrf.mxu1 }
 0x3bb   :  { %v11787_v48 = vpop.f32.mrf.mxu1 }
 0x3bc   :  { %v11788_v24 = vadd.f32 %v11787_v48, %v11786_v16  ;;  %v11782_v48 = vadd.f32 %v14988_v62, %v14984_v37 }
 0x3bd   :  { %v11789_v56 = vpop.f32.mrf.mxu1 }
 0x3bf   :  { %v11790_v55 = vpop.f32.mrf.mxu1 }
 0x3c1   :  { %v11792_v38 = vpop.f32.mrf.mxu1 }
 0x3c3   :  { %v11793_v21 = vpop.f32.mrf.mxu1 }
 0x3c5   :  { %v14996_v26 = vpop.f32.mrf.mxu1 }
 0x3c7   :  { %v2456_v41 = vpop.f32.mrf.mxu1 }
 0x3c9   :  { %v14998_v40 = vpop.f32.mrf.mxu1 }
 0x3cb   :  { %v2459_v36 = vpop.f32.mrf.mxu1 }
 0x3cd   :  { %v12695_v23 = vpop.f32.mrf.mxu1 }
 0x3d9   :  { %v11811_v57 = vpop.f32.mrf.mxu0 }
 0x3db   :  { %v11812_v47 = vpop.f32.mrf.mxu0 }
 0x3dc   :  { %v11813_v63 = vadd.f32 %v11812_v47, %v11811_v57  ;;  %v11711_v57 = vadd.f32 %v11710_v61, %v11709_v32  ;;  %v11708_v47 = vadd.f32 %v11707_v30, %v11706_v27  ;;  %v11745_v32 = vadd.f32 %v11744_v8, %v11743_v46  ;;  %v2472_v27 = vpop.f32.mrf.mxu1 }
 0x3dd   :  { %v11814_v5 = vpop.f32.mrf.mxu0  ;;  %v2213_v61 = vadd.f32 %v11705_v60, %v14962_v12 }
 0x3de   :  { %v2392_v9 = vadd.f32 %v11813_v63, %v2327_v6  ;;  %v11751_v63 = vadd.f32 %v11750_v33, %v11749_v52  ;;  %v12696_v33 = vpop.f32.mrf.mxu1 }
 0x3df   :  { %v11815_v13 = vpop.f32.mrf.mxu0  ;;  %v2278_v16 = vadd.f32 %v11745_v32, %v2213_v61  ;;  %v13557_v32 = vld [vmem:[#allocation10 + $0x8] sm:$0xff]   ;;  %v13560_v61 = vld [vmem:[#allocation10 + $0x30] sm:$0xff]  }
 0x3e0   :  { %v11816_v20 = vadd.f32 %v11815_v13, %v11814_v5  ;;  %v2457_v53 = vadd.f32 %v2456_v41, %v2392_v9  ;;  %v11714_v41 = vadd.f32 %v11713_v58, %v14974_v29  ;;  %v11748_v5 = vadd.f32 %v11747_v49, %v11746_v10 }
 0x3e1   :  { %v15000_v34 = vpop.f32.mrf.mxu0  ;;  %v2221_v13 = vadd.f32 %v11711_v57, %v14962_v12  ;;  %v11742_v58 = vadd.f32 %v14990_v43, %v14986_v45  ;;  %v11785_v49 = vadd.f32 %v14994_v50, %v14992_v2  ;;  %v2205_v50 = vadd.f32 %v14960_v15, %v14962_v12  ;;  %v2475_v57 = vpop.f32.mrf.mxu1 }
 0x3e2   :  { %v2395_v4 = vadd.f32 %v11816_v20, %v2330_v14  ;;  %v2487_v19 = vmax.f32 %v2457_v53, 0.0  ;;  %v11791_v14 = vadd.f32 %v11790_v55, %v11789_v56  ;;  %v2224_v29 = vadd.f32 %v11714_v41, %v14962_v12 }
 0x3e3   :  { %v11818_v7 = vpop.f32.mrf.mxu0  ;;  %v2286_v20 = vadd.f32 %v11751_v63, %v2221_v13  ;;  %v11794_v56 = vadd.f32 %v11793_v21, %v11792_v38  ;;  %v11739_v55 = vadd.f32 %v14980_v28, %v14976_v39  ;;  %v11779_v21 = vadd.f32 %v14982_v59, %v14978_v25 }
 0x3e4   :  { %v2460_v54 = vadd.f32 %v2459_v36, %v2395_v4  ;;  %v2289_v43 = vadd.f32 %v11754_v11, %v2224_v29  ;;  %v2343_v36 = vadd.f32 %v11785_v49, %v2278_v16  ;;  %v13563_v11 = vld [vmem:[#allocation10 + $0x40] sm:$0xff]   ;;  %v13562_v29 = vld [vmem:[#allocation10 + $0x38] sm:$0xff]   ;;  %v13567_v49 = vld [vmem:[%s17119_s7 + $0x30] sm:$0xff]  }
 0x3e5   :  { %v11820_v35 = vpop.f32.mrf.mxu0  ;;  %v2270_v37 = vadd.f32 %v11739_v55, %v2205_v50  ;;  %v13579_v55 = vld [vmem:[%s17119_s7 + $0xb0] sm:$0xff]   ;;  %v13572_v16 = vld [vmem:[%s17119_s7 + $0x58] sm:$0xff]   ;;  %v13587_v50 = vld [vmem:[%s17119_s7 + $0xa0] sm:$0xff]  }
 0x3e6   :  { %v2488_v0 = vmax.f32 %v2460_v54, 0.0  ;;  %v2354_v39 = vadd.f32 %v11794_v56, %v2289_v43  ;;  %v13574_v56 = vld [vmem:[%s17119_s7 + $0xf8] sm:$0xff]   ;;  %v13583_v43 = vld [vmem:[%s17119_s7 + $0xa8] sm:$0xff]  }
 0x3e7   :  { %v11821_v18 = vpop.f32.mrf.mxu0  ;;  %v2335_v60 = vadd.f32 %v11779_v21, %v2270_v37  ;;  %v13584_v21 = vld [vmem:[%s17119_s7 + $0x40] sm:$0xff]   ;;  %v13597_v37 = vld [vmem:[%s17119_s7 + $0xc8] sm:$0xff]  }
 0x3e8   :  { %v15002_v44 = vpack.c.bf16 %v2488_v0, %v2487_v19  ;;  %v11702_v0 = vadd.f32 %v14968_v1, %v14966_v22  ;;  %v2216_v19 = vadd.f32 %v11708_v47, %v14962_v12  ;;  %v2351_v1 = vadd.f32 %v11791_v14, %v2286_v20  ;;  %v13561_v20 = vld [vmem:[#allocation10 + $0x28] sm:$0xff]  }
 0x3e9   :  { %v11823_v17 = vpop.f32.mrf.mxu0  ;;  %v11822_v28 = vadd.f32 %v11821_v18, %v11820_v35  ;;  %v11819_v47 = vadd.f32 %v11818_v7, %v15000_v34  ;;  %v17132_v34 = vmov 0.0  }
 0x3ea   :  { %v2281_v10 = vadd.f32 %v11748_v5, %v2216_v19  ;;  %v2208_v52 = vadd.f32 %v11702_v0, %v14962_v12  ;;  %v13556_v19 = vld [vmem:[#allocation10 + $0x10] sm:$0xff]  }
 0x3eb   :  { %v11824_v31 = vpop.f32.mrf.mxu0  ;;  %v2400_v41 = vadd.f32 %v11819_v47, %v2335_v60  ;;  %v13603_v47 = vld [vmem:[%s17119_s7 + $0x80] sm:$0xff]  }
 0x3ec   :  { %v2346_v42 = vadd.f32 %v11788_v24, %v2281_v10  ;;  %v11825_v51 = vadd.f32 %v11824_v31, %v11823_v17  ;;  %v2273_v38 = vadd.f32 %v11742_v58, %v2208_v52  ;;  %v13564_v24 = vld [vmem:[%s17119_s7 + $0x78] sm:$0xff]   ;;  %v13566_v10 = vld [vmem:[%s17119_s7 + $0x70] sm:$0xff]   ;;  %v13571_v52 = vld [vmem:[%s17119_s7 + $0x20] sm:$0xff]  }
 0x3ed   :  { %v11826_v6 = vpop.f32.mrf.mxu0  ;;  %v2465_v13 = vadd.f32 %v14996_v26, %v2400_v41  ;;  %v13565_v58 = vld [vmem:[%s17119_s7 + $0x38] sm:$0xff]  }
 0x3ee   :  { %v2338_v62 = vadd.f32 %v11782_v48, %v2273_v38  ;;  %v2408_v17 = vadd.f32 %v11825_v51, %v2343_v36  ;;  %v13573_v48 = vld [vmem:[%s17119_s7 + $0x18] sm:$0xff]   ;;  %v13580_v51 = vld [vmem:[%s17119_s7 + $0x48] sm:$0xff]  }
 0x3ef   :  { %v11827_v9 = vpop.f32.mrf.mxu0  ;;  %v2489_v0 = vmax.f32 %v2465_v13, 0.0  ;;  %v13581_v38 = vld [vmem:[%s17119_s7 + $0x8] sm:$0xff]   ;;  %v13589_v36 = vld [vmem:[%s17119_s7 + $0xd8] sm:$0xff]  }
 0x3f0   :  { %v11828_v46 = vadd.f32 %v11827_v9, %v11826_v6  ;;  %v2403_v15 = vadd.f32 %v11822_v28, %v2338_v62  ;;  %v2473_v25 = vadd.f32 %v2472_v27, %v2408_v17  ;;  %v13558_v27 = vld [vmem:[#allocation10 + $0x20] sm:$0xff]   ;;  %v13588_v28 = vld [vmem:[%s17119_s7 + $0x178] sm:$0xff]  }
 0x3f1   :  { %v11829_v30 = vpop.f32.mrf.mxu0  ;;  %v13599_v62 = vld [vmem:[%s17119_s7 + $0x88] sm:$0xff]   ;;  %v13606_v17 = vld [vmem:[%s17119_s7 + $0x1f8] sm:$0xff]  }
 0x3f2   :  { %v2411_v4 = vadd.f32 %v11828_v46, %v2346_v42  ;;  %v2468_v35 = vadd.f32 %v14998_v40, %v2403_v15  ;;  %v2491_v14 = vmax.f32 %v2473_v25, 0.0  ;;  %v13555_v40 = vld [vmem:[#allocation10] sm:$0xff]   ;;  %v13575_v46 = vld [vmem:[%s17119_s7 + $0xb8] sm:$0xff]   ;;  %v13577_v42 = vld [vmem:[%s17119_s7 + $0x10] sm:$0xff]  }
 0x3f3   :  { %v11830_v22 = vpop.f32.mrf.mxu0 }
 0x3f4   :  { %v11831_v8 = vadd.f32 %v11830_v22, %v11829_v30  ;;  %v2476_v12 = vadd.f32 %v2475_v57, %v2411_v4  ;;  %v2490_v7 = vmax.f32 %v2468_v35, 0.0  ;;  %v13559_v30 = vld [vmem:[#allocation10 + $0x18] sm:$0xff]   ;;  %v13569_v22 = vld [vmem:[%s17119_s7 + $0x28] sm:$0xff]   ;;  %v13593_v4 = vld [vmem:[%s17119_s7 + $0xd0] sm:$0xff]  }
 0x3f5   :  { %v11832_v45 = vpop.f32.mrf.mxu0  ;;  %v13601_v57 = vld [vmem:[%s17119_s7 + $0xc0] sm:$0xff]  }
 0x3f6   :  { %v2416_v2 = vadd.f32 %v11831_v8, %v2351_v1  ;;  %v2492_v18 = vmax.f32 %v2476_v12, 0.0  ;;  %v15041_v26 = vpack.c.bf16 %v2490_v7, %v2489_v0  ;;  %v13570_v1 = vld [vmem:[%s17119_s7 + $0x60] sm:$0xff]   ;;  %v13578_v8 = vld [vmem:[%s17119_s7 + $0xf0] sm:$0xff]   ;;  %v13590_v7 = vld [vmem:[%s17119_s7 + $0x138] sm:$0xff]  }
 0x3f7   :  { %v11833_v53 = vpop.f32.mrf.mxu0 }
 0x3f8   :  { %v11834_v54 = vadd.f32 %v11833_v53, %v11832_v45  ;;  %v2481_v31 = vadd.f32 %v12695_v23, %v2416_v2  ;;  %v15035_v23 = vpack.c.bf16 %v2492_v18, %v2491_v14  ;;  %v13582_v45 = vld [vmem:[%s17119_s7 + $0xe8] sm:$0xff]   ;;  %v13586_v2 = vld [vmem:[%s17119_s7 + $0xe0] sm:$0xff]   ;;  %v13591_v53 = vld [vmem:[%s17119_s7 + $0x98] sm:$0xff]  }
 0x3fa   :  { %v2419_v6 = vadd.f32 %v11834_v54, %v2354_v39  ;;  %v2493_v59 = vmax.f32 %v2481_v31, 0.0  ;;  %v13585_v39 = vld [vmem:[%s17119_s7] sm:$0xff]   ;;  %v13595_v54 = vld [vmem:[%s17119_s7 + $0x90] sm:$0xff]  }
 0x3fc   :  { %v2484_v63 = vadd.f32 %v12696_v33, %v2419_v6  ;;  %v13576_v33 = vld [vmem:[%s17119_s7 + $0x50] sm:$0xff]  }
 0x3fe   :  { %v2494_v5 = vmax.f32 %v2484_v63, 0.0 }
 0x400   :  { %v15028_v9 = vpack.c.bf16 %v2494_v5, %v2493_v59 }
 0x402   :  { %12698 = vmatpush3.bf16.msra.mxu1 %v15028_v9  ;;  %12722 = vmatpush3.bf16.msra.mxu0 %v15028_v9 }
 0x403   :  { %12699 = vmatprep.subr.bf16.mxu1 %v17132_v34  ;;  %12723 = vmatprep.subr.bf16.mxu0 %v17132_v34 }
 0x406   :  { %12700 = vmatpush3.bf16.msra.mxu1 %v15035_v23  ;;  %12724 = vmatpush3.bf16.msra.mxu0 %v15035_v23 }
 0x407   :  { %12701 = vmatprep.subr.bf16.mxu1 %v17132_v34  ;;  %12725 = vmatprep.subr.bf16.mxu0 %v17132_v34 }
 0x40a   :  { %12702 = vmatpush3.bf16.msra.mxu1 %v15041_v26  ;;  %12726 = vmatpush3.bf16.msra.mxu0 %v15041_v26 }
 0x40b   :  { %12703 = vmatprep.subr.bf16.mxu1 %v17132_v34  ;;  %12727 = vmatprep.subr.bf16.mxu0 %v17132_v34 }
 0x40e   :  { %12704 = vmatpush3.bf16.msra.mxu1 %v15002_v44  ;;  %12728 = vmatpush3.bf16.msra.mxu0 %v15002_v44 }
 0x40f   :  { %12709 = vmatprep.subr.bf16.mxu1 %v17132_v34  ;;  %12745 = vmatprep.subr.bf16.mxu0 %v17132_v34 }
 0x411   :  { %12706 = vmatmul.mubr.msk.bf16.vlgmr.msra.gmra.mxu1 %vm2506_vm5, %v13555_v40  ;;  %12730 = vmatmul.mubr.msk.bf16.vlgmr.msra.gmra.mxu0 %vm2506_vm5, %v13556_v19  ;;  %v13594_v19 = vld [vmem:[%s17119_s7 + $0x130] sm:$0xff]  }
 0x412   :  { %12710 = vmatpush3.bf16.msra.mxu1 %v15028_v9  ;;  %12746 = vmatpush3.bf16.msra.mxu0 %v15028_v9 }
 0x413   :  { %12711 = vmatprep.subr.bf16.mxu1 %v17132_v34  ;;  %12747 = vmatprep.subr.bf16.mxu0 %v17132_v34 }
 0x414   :  { %12717 = vmatprep.mubr.msk.bf16.mxu1 %vm14297_vm1, %v17132_v34  ;;  %12753 = vmatprep.mubr.msk.bf16.mxu0 %vm14297_vm1, %v17132_v34 }
 0x416   :  { %12712 = vmatpush3.bf16.msra.mxu1 %v15035_v23  ;;  %12748 = vmatpush3.bf16.msra.mxu0 %v15035_v23 }
 0x417   :  { %12713 = vmatprep.subr.bf16.mxu1 %v17132_v34  ;;  %12749 = vmatprep.subr.bf16.mxu0 %v17132_v34 }
 0x41a   :  { %12714 = vmatpush3.bf16.msra.mxu1 %v15041_v26  ;;  %12750 = vmatpush3.bf16.msra.mxu0 %v15041_v26 }
 0x41b   :  { %12715 = vmatprep.subr.bf16.mxu1 %v17132_v34  ;;  %12751 = vmatprep.subr.bf16.mxu0 %v17132_v34 }
 0x41e   :  { %12716 = vmatpush3.bf16.msra.mxu1 %v15002_v44  ;;  %12752 = vmatpush3.bf16.msra.mxu0 %v15002_v44 }
 0x41f   :  { %12733 = vmatprep.subr.bf16.mxu1 %v17132_v34  ;;  %12769 = vmatprep.subr.bf16.mxu0 %v17132_v34 }
 0x421   :  { %12718 = vmatmul.mubr.msk.bf16.vlgmr.msra.gmra.mxu1 %vm2506_vm5, %v13557_v32  ;;  %12754 = vmatmul.mubr.msk.bf16.vlgmr.msra.gmra.mxu0 %vm2506_vm5, %v13558_v27  ;;  %v13596_v32 = vld [vmem:[%s17119_s7 + $0x168] sm:$0xff]  }
 0x422   :  { %12734 = vmatpush3.bf16.msra.mxu1 %v15028_v9  ;;  %12770 = vmatpush3.bf16.msra.mxu0 %v15028_v9  ;;  %v13598_v27 = vld [vmem:[%s17119_s7 + $0x128] sm:$0xff]  }
 0x423   :  { %12735 = vmatprep.subr.bf16.mxu1 %v17132_v34  ;;  %12771 = vmatprep.subr.bf16.mxu0 %v17132_v34 }
 0x424   :  { %12741 = vmatprep.mubr.msk.bf16.mxu1 %vm14297_vm1, %v17132_v34  ;;  %12777 = vmatprep.mubr.msk.bf16.mxu0 %vm14297_vm1, %v17132_v34 }
 0x426   :  { %12736 = vmatpush3.bf16.msra.mxu1 %v15035_v23  ;;  %12772 = vmatpush3.bf16.msra.mxu0 %v15035_v23 }
 0x427   :  { %12737 = vmatprep.subr.bf16.mxu1 %v17132_v34  ;;  %12773 = vmatprep.subr.bf16.mxu0 %v17132_v34 }
 0x42a   :  { %12738 = vmatpush3.bf16.msra.mxu1 %v15041_v26  ;;  %12774 = vmatpush3.bf16.msra.mxu0 %v15041_v26 }
 0x42b   :  { %12739 = vmatprep.subr.bf16.mxu1 %v17132_v34  ;;  %12775 = vmatprep.subr.bf16.mxu0 %v17132_v34 }
 0x42e   :  { %12740 = vmatpush3.bf16.msra.mxu1 %v15002_v44  ;;  %12776 = vmatpush3.bf16.msra.mxu0 %v15002_v44 }
 0x42f   :  { %12757 = vmatprep.subr.bf16.mxu1 %v17132_v34  ;;  %12793 = vmatprep.subr.bf16.mxu0 %v17132_v34 }
 0x431   :  { %12742 = vmatmul.mubr.msk.bf16.vlgmr.msra.gmra.mxu1 %vm2506_vm5, %v13559_v30  ;;  %12778 = vmatmul.mubr.msk.bf16.vlgmr.msra.gmra.mxu0 %vm2506_vm5, %v13560_v61  ;;  %v13600_v30 = vld [vmem:[%s17119_s7 + $0x160] sm:$0xff]  }
 0x432   :  { %12758 = vmatpush3.bf16.msra.mxu1 %v15028_v9  ;;  %12794 = vmatpush3.bf16.msra.mxu0 %v15028_v9 }
 0x433   :  { %12759 = vmatprep.subr.bf16.mxu1 %v17132_v34  ;;  %12795 = vmatprep.subr.bf16.mxu0 %v17132_v34 }
 0x434   :  { %12765 = vmatprep.mubr.msk.bf16.mxu1 %vm14297_vm1, %v17132_v34  ;;  %12801 = vmatprep.mubr.msk.bf16.mxu0 %vm14297_vm1, %v17132_v34 }
 0x436   :  { %12760 = vmatpush3.bf16.msra.mxu1 %v15035_v23  ;;  %12796 = vmatpush3.bf16.msra.mxu0 %v15035_v23 }
 0x437   :  { %12761 = vmatprep.subr.bf16.mxu1 %v17132_v34  ;;  %12797 = vmatprep.subr.bf16.mxu0 %v17132_v34 }
 0x43a   :  { %12762 = vmatpush3.bf16.msra.mxu1 %v15041_v26  ;;  %12798 = vmatpush3.bf16.msra.mxu0 %v15041_v26 }
 0x43b   :  { %12763 = vmatprep.subr.bf16.mxu1 %v17132_v34  ;;  %12799 = vmatprep.subr.bf16.mxu0 %v17132_v34 }
 0x43e   :  { %12764 = vmatpush3.bf16.msra.mxu1 %v15002_v44  ;;  %12800 = vmatpush3.bf16.msra.mxu0 %v15002_v44 }
 0x43f   :  { %12781 = vmatprep.subr.bf16.mxu1 %v17132_v34  ;;  %11914 = vmatprep.subr.bf16.mxu0 %v13574_v56 }
 0x441   :  { %12766 = vmatmul.mubr.msk.bf16.vlgmr.msra.gmra.mxu1 %vm2506_vm5, %v13561_v20  ;;  %12802 = vmatmul.mubr.msk.bf16.vlgmr.msra.gmra.mxu0 %vm2506_vm5, %v13563_v11  ;;  %v13602_v11 = vld [vmem:[%s17119_s7 + $0x120] sm:$0xff]  }
 0x442   :  { %12782 = vmatpush3.bf16.msra.mxu1 %v15028_v9  ;;  %12789 = vmatprep.mubr.msk.bf16.mxu1 %vm14297_vm1, %v17132_v34 }
 0x443   :  { %12783 = vmatprep.subr.bf16.mxu1 %v17132_v34  ;;  %11915 = vmatpush3.bf16.msra.mxu0 %v13575_v46 }
 0x444   :  { %11916 = vmatprep.subr.bf16.mxu0 %v13578_v8  ;;  %v13608_v8 = vld [vmem:[%s17119_s7 + $0x150] sm:$0xff]  }
 0x446   :  { %12784 = vmatpush3.bf16.msra.mxu1 %v15035_v23 }
 0x447   :  { %12785 = vmatprep.subr.bf16.mxu1 %v17132_v34  ;;  %11917 = vmatpush3.bf16.msra.mxu0 %v13579_v55 }
 0x448   :  { %11918 = vmatprep.subr.bf16.mxu0 %v13582_v45  ;;  %v13614_v45 = vld [vmem:[%s17119_s7 + $0x1e8] sm:$0xff]  }
 0x44a   :  { %12786 = vmatpush3.bf16.msra.mxu1 %v15041_v26  ;;  %v13592_v26 = vld [vmem:[%s17119_s7 + $0x170] sm:$0xff]  }
 0x44b   :  { %12787 = vmatprep.subr.bf16.mxu1 %v17132_v34  ;;  %11919 = vmatpush3.bf16.msra.mxu0 %v13583_v43  ;;  %v13613_v43 = vld [vmem:[%s17119_s7 + $0x108] sm:$0xff]  }
 0x44c   :  { %11920 = vmatprep.subr.bf16.mxu0 %v13586_v2  ;;  %v13618_v2 = vld [vmem:[%s17119_s7 + $0x1e0] sm:$0xff]  }
 0x44e   :  { %12788 = vmatpush3.bf16.msra.mxu1 %v15002_v44  ;;  %v13568_v44 = vld [vmem:[%s17119_s7 + $0x68] sm:$0xff]  }
 0x44f   :  { %11892 = vmatprep.subr.bf16.mxu1 %v13564_v24  ;;  %11921 = vmatpush3.bf16.msra.mxu0 %v13587_v50 }
 0x450   :  { %11922 = vmatprep.subr.bf16.mxu0 %v13589_v36  ;;  %v13619_v36 = vld [vmem:[%s17119_s7 + $0x1a0] sm:$0xff]  }
 0x451   :  { %12790 = vmatmul.mubr.msk.bf16.vlgmr.msra.gmra.mxu1 %vm2506_vm5, %v13562_v29  ;;  %v13604_v29 = vld [vmem:[%s17119_s7 + $0x158] sm:$0xff]  }
 0x452   :  { %11893 = vmatpush3.bf16.msra.mxu1 %v13565_v58 }
 0x453   :  { %11894 = vmatprep.subr.bf16.mxu1 %v13566_v10  ;;  %11923 = vmatpush3.bf16.msra.mxu0 %v13591_v53 }
 0x454   :  { %11924 = vmatprep.subr.bf16.mxu0 %v13593_v4 }
 0x456   :  { %11895 = vmatpush3.bf16.msra.mxu1 %v13567_v49 }
 0x457   :  { %11896 = vmatprep.subr.bf16.mxu1 %v13568_v44  ;;  %11925 = vmatpush3.bf16.msra.mxu0 %v13595_v54 }
 0x458   :  { %11926 = vmatprep.subr.bf16.mxu0 %v13597_v37 }
 0x45a   :  { %11897 = vmatpush3.bf16.msra.mxu1 %v13569_v22  ;;  %v13605_v22 = vld [vmem:[%s17119_s7 + $0x118] sm:$0xff]  }
 0x45b   :  { %11898 = vmatprep.subr.bf16.mxu1 %v13570_v1  ;;  %11927 = vmatpush3.bf16.msra.mxu0 %v13599_v62  ;;  %v13607_v1 = vld [vmem:[%s17119_s7 + $0x1b8] sm:$0xff]  }
 0x45c   :  { %11928 = vmatprep.subr.bf16.mxu0 %v13601_v57  ;;  %v13621_v62 = vld [vmem:[%s17119_s7 + $0x238] sm:$0xff]  }
 0x45d   :  { %v13622_v57 = vld [vmem:[%s17119_s7 + $0x198] sm:$0xff]  }
 0x45e   :  { %11899 = vmatpush3.bf16.msra.mxu1 %v13571_v52  ;;  %v13610_v52 = vld [vmem:[%s17119_s7 + $0x1f0] sm:$0xff]  }
 0x45f   :  { %11900 = vmatprep.subr.bf16.mxu1 %v13572_v16  ;;  %11929 = vmatpush3.bf16.msra.mxu0 %v13603_v47  ;;  %v13609_v16 = vld [vmem:[%s17119_s7 + $0x110] sm:$0xff]  }
 0x460   :  { %11958 = vmatprep.subr.bf16.mxu0 %v13606_v17 }
 0x462   :  { %11901 = vmatpush3.bf16.msra.mxu1 %v13573_v48  ;;  %v13611_v48 = vld [vmem:[%s17119_s7 + $0x1b0] sm:$0xff]  }
 0x463   :  { %11902 = vmatprep.subr.bf16.mxu1 %v13576_v33  ;;  %v13612_v33 = vld [vmem:[%s17119_s7 + $0x148] sm:$0xff]  }
 0x466   :  { %11903 = vmatpush3.bf16.msra.mxu1 %v13577_v42  ;;  %v13615_v42 = vld [vmem:[%s17119_s7 + $0x1a8] sm:$0xff]  }
 0x467   :  { %11904 = vmatprep.subr.bf16.mxu1 %v13580_v51  ;;  %v13616_v51 = vld [vmem:[%s17119_s7 + $0x140] sm:$0xff]  }
 0x46a   :  { %11905 = vmatpush3.bf16.msra.mxu1 %v13581_v38 }
 0x46b   :  { %11906 = vmatprep.subr.bf16.mxu1 %v13584_v21  ;;  %v13617_v21 = vld [vmem:[%s17119_s7 + $0x100] sm:$0xff]  }
 0x46e   :  { %11907 = vmatpush3.bf16.msra.mxu1 %v13585_v39  ;;  %v13620_v39 = vld [vmem:[%s17119_s7 + $0x1d8] sm:$0xff]  }
 0x46f   :  { %11936 = vmatprep.subr.bf16.mxu1 %v13588_v28 }
 0x4d1   :  { %v2544_v31 = vpop.f32.mrf.mxu1  ;;  %v2648_v6 = vpop.f32.mrf.mxu0 }
 0x4d3   :  { %v12707_v60 = vpop.f32.mrf.mxu1  ;;  %v12731_v15 = vpop.f32.mrf.mxu0 }
 0x4d4   :  { %v13624_v60 = vld [vmem:[%s17119_s7 + $0x230] sm:$0xff]  }
 0x4d5   :  { %v2547_v12 = vpop.f32.mrf.mxu1  ;;  %v2651_v63 = vpop.f32.mrf.mxu0  ;;  %v13625_v15 = vld [vmem:[%s17119_s7 + $0x190] sm:$0xff]  }
 0x4d6   :  { %v2551_v23 = vpack.c.bf16 %v2547_v12, %v2544_v31  ;;  %v2655_v56 = vpack.c.bf16 %v2651_v63, %v2648_v6  ;;  %v13623_v31 = vld [vmem:[%s17119_s7 + $0x1d0] sm:$0xff]   ;;  %v13626_v12 = vld [vmem:[%s17119_s7 + $0x1c8] sm:$0xff]  }
 0x4d7   :  { %v12708_v41 = vpop.f32.mrf.mxu1  ;;  %v12732_v25 = vpop.f32.mrf.mxu0  ;;  %v13627_v63 = vld [vmem:[%s17119_s7 + $0x228] sm:$0xff]  }
 0x4d8   :  { %v13628_v41 = vld [vmem:[%s17119_s7 + $0x188] sm:$0xff]   ;;  %v13629_v25 = vld [vmem:[%s17119_s7 + $0x1c0] sm:$0xff]  }
 0x4e1   :  { %v2596_v59 = vpop.f32.mrf.mxu1  ;;  %v15230_v5 = vpop.f32.mrf.mxu0 }
 0x4e3   :  { %v12719_v35 = vpop.f32.mrf.mxu1  ;;  %v12755_v18 = vpop.f32.mrf.mxu0 }
 0x4e4   :  { %v13631_v35 = vld [vmem:[%s17119_s7 + $0x180] sm:$0xff]  }
 0x4e5   :  { %v2599_v9 = vpop.f32.mrf.mxu1  ;;  %v15232_v13 = vpop.f32.mrf.mxu0 }
 0x4e6   :  { %v2603_v14 = vpack.c.bf16 %v2599_v9, %v2596_v59  ;;  %v2759_v47 = vpack.c.bf16 %v15232_v13, %v15230_v5  ;;  %v13630_v5 = vld [vmem:[%s17119_s7 + $0x220] sm:$0xff]  }
 0x4e7   :  { %v12720_v0 = vpop.f32.mrf.mxu1  ;;  %v12756_v40 = vpop.f32.mrf.mxu0 }
 0x4e8   :  { %3583 = vmatprep.mubr.bf16.mxu1 %v2603_v14  ;;  %v13632_v14 = vld [vmem:[%s17119_s7 + $0x218] sm:$0xff]   ;;  %v13633_v0 = vld [vmem:[%s17119_s7 + $0x210] sm:$0xff]   ;;  %v13635_v40 = vld [vmem:[%s17119_s7 + $0x200] sm:$0xff]  }
 0x4e9   :  { %3584 = vmatmul.mubr.bf16.vlgmr.msra.gmra.mxu1 %v2551_v23 }
 0x4ea   :  { %11937 = vmatpush3.bf16.msra.mxu1 %v13590_v7 }
 0x4eb   :  { %11938 = vmatprep.subr.bf16.mxu1 %v13592_v26  ;;  %v13634_v26 = vld [vmem:[%s17119_s7 + $0x208] sm:$0xff]  }
 0x4ee   :  { %11939 = vmatpush3.bf16.msra.mxu1 %v13594_v19 }
 0x4ef   :  { %11940 = vmatprep.subr.bf16.mxu1 %v13596_v32 }
 0x4f1   :  { %v2700_v61 = vpop.f32.mrf.mxu1  ;;  %v15252_v20 = vpop.f32.mrf.mxu0 }
 0x4f2   :  { %11941 = vmatpush3.bf16.msra.mxu1 %v13598_v27 }
 0x4f3   :  { %v12743_v24 = vpop.f32.mrf.mxu1  ;;  %11942 = vmatprep.subr.bf16.mxu1 %v13600_v30  ;;  %v12779_v58 = vpop.f32.mrf.mxu0 }
 0x4f5   :  { %v2703_v10 = vpop.f32.mrf.mxu1  ;;  %v15260_v49 = vpop.f32.mrf.mxu0 }
 0x4f6   :  { %v2707_v44 = vpack.c.bf16 %v2703_v10, %v2700_v61  ;;  %11943 = vmatpush3.bf16.msra.mxu1 %v13602_v11  ;;  %v2863_v7 = vpack.c.bf16 %v15260_v49, %v15252_v20 }
 0x4f7   :  { %v12744_v46 = vpop.f32.mrf.mxu1  ;;  %11944 = vmatprep.subr.bf16.mxu1 %v13604_v29  ;;  %v12780_v55 = vpop.f32.mrf.mxu0 }
 0x4f8   :  { %3624 = vmatprep.mubr.bf16.mxu0 %v2707_v44 }
 0x4f9   :  { %3625 = vmatmul.mubr.bf16.vlgmr.msra.gmra.mxu0 %v2655_v56  ;;  %v11016_v56 = vld [vmem:[#allocation11] ss:$0 sm:$0xff] }
 0x4fa   :  { %11945 = vmatpush3.bf16.msra.mxu1 %v13605_v22  ;;  %11959 = vmatpush3.bf16.msra.mxu0 %v13607_v1 }
 0x4fb   :  { %11946 = vmatprep.subr.bf16.mxu1 %v13608_v8  ;;  %11960 = vmatprep.subr.bf16.mxu0 %v13610_v52 }
 0x4fe   :  { %11947 = vmatpush3.bf16.msra.mxu1 %v13609_v16  ;;  %11961 = vmatpush3.bf16.msra.mxu0 %v13611_v48 }
 0x4ff   :  { %11948 = vmatprep.subr.bf16.mxu1 %v13612_v33  ;;  %11962 = vmatprep.subr.bf16.mxu0 %v13614_v45 }
 0x501   :  { %v2804_v50 = vpop.f32.mrf.mxu1  ;;  %v15298_v38 = vpop.f32.mrf.mxu0 }
 0x502   :  { %11949 = vmatpush3.bf16.msra.mxu1 %v13613_v43  ;;  %11963 = vmatpush3.bf16.msra.mxu0 %v13615_v42 }
 0x503   :  { %v12767_v53 = vpop.f32.mrf.mxu1  ;;  %11950 = vmatprep.subr.bf16.mxu1 %v13616_v51  ;;  %11964 = vmatprep.subr.bf16.mxu0 %v13618_v2  ;;  %v12803_v28 = vpop.f32.mrf.mxu0 }
 0x505   :  { %v2807_v4 = vpop.f32.mrf.mxu1  ;;  %v2963_v54 = vpop.f32.mrf.mxu0 }
 0x506   :  { %v2811_v37 = vpack.c.bf16 %v2807_v4, %v2804_v50  ;;  %11951 = vmatpush3.bf16.msra.mxu1 %v13617_v21  ;;  %11965 = vmatpush3.bf16.msra.mxu0 %v13619_v36  ;;  %v2967_v19 = vpack.c.bf16 %v2963_v54, %v15298_v38 }
 0x507   :  { %v12768_v17 = vpop.f32.mrf.mxu1  ;;  %12805 = vmatprep.subr.bf16.mxu1 %v17132_v34  ;;  %11966 = vmatprep.subr.bf16.mxu0 %v13620_v39  ;;  %v12804_v6 = vpop.f32.mrf.mxu0 }
 0x508   :  { %3665 = vmatprep.mubr.bf16.mxu1 %v2811_v37  ;;  %v13636_v6 = vld [vmem:[%s17121_s9] sm:$0xff]  }
 0x509   :  { %3666 = vmatmul.mubr.bf16.vlgmr.msra.gmra.mxu1 %v2759_v47 }
 0x50a   :  { %12806 = vmatpush3.bf16.msra.mxu1 %v13621_v62  ;;  %11967 = vmatpush3.bf16.msra.mxu0 %v13622_v57 }
 0x50b   :  { %12807 = vmatprep.subr.bf16.mxu1 %v17132_v34  ;;  %11968 = vmatprep.subr.bf16.mxu0 %v13623_v31 }
 0x50c   :  { %12821 = vmatprep.mubr.msk.bf16.mxu1 %vm14297_vm1, %v17132_v34 }
 0x50e   :  { %12808 = vmatpush3.bf16.msra.mxu1 %v13624_v60  ;;  %11969 = vmatpush3.bf16.msra.mxu0 %v13625_v15  ;;  %v13637_v60 = vld [vmem:[%s17121_s9 + $0x20] sm:$0xff]   ;;  %v13638_v15 = vld [vmem:[%s17121_s9 + $0x8] sm:$0xff]  }
 0x50f   :  { %12809 = vmatprep.subr.bf16.mxu1 %v17132_v34  ;;  %11970 = vmatprep.subr.bf16.mxu0 %v13626_v12  ;;  %v13639_v12 = vld [vmem:[%s17121_s9 + $0x30] sm:$0xff]  }
 0x511   :  { %v2908_v59 = vpop.f32.mrf.mxu1 }
 0x512   :  { %12810 = vmatpush3.bf16.msra.mxu1 %v13627_v63  ;;  %11971 = vmatpush3.bf16.msra.mxu0 %v13628_v41  ;;  %v13654_v63 = vld [vmem:[%s17122_s10 + $0xf8] sm:$0xff]   ;;  %v13640_v41 = vld [vmem:[%s17121_s9 + $0x10] sm:$0xff]  }
 0x513   :  { %v12791_v18 = vpop.f32.mrf.mxu1  ;;  %12811 = vmatprep.subr.bf16.mxu1 %v17132_v34  ;;  %11972 = vmatprep.subr.bf16.mxu0 %v13629_v25  ;;  %v13644_v25 = vld [vmem:[%s17121_s9 + $0x40] sm:$0xff]  }
 0x514   :  { %v13643_v18 = vld [vmem:[%s17121_s9 + $0x38] sm:$0xff]  }
 0x515   :  { %v2911_v9 = vpop.f32.mrf.mxu1 }
 0x516   :  { %v2915_v13 = vpack.c.bf16 %v2911_v9, %v2908_v59  ;;  %12812 = vmatpush3.bf16.msra.mxu1 %v13630_v5  ;;  %11973 = vmatpush3.bf16.msra.mxu0 %v13631_v35  ;;  %v13641_v59 = vld [vmem:[%s17121_s9 + $0x18] sm:$0xff]   ;;  %v13642_v5 = vld [vmem:[%s17121_s9 + $0x28] sm:$0xff]  }
 0x517   :  { %12813 = vmatprep.subr.bf16.mxu1 %v17132_v34  ;;  %v12792_v23 = vpop.f32.mrf.mxu1  ;;  %12825 = vmatprep.subr.bf16.mxu0 %v17132_v34  ;;  %v13645_v35 = vld [vmem:[%s17122_s10 + $0x78] sm:$0xff]  }
 0x518   :  { %3706 = vmatprep.mubr.bf16.mxu0 %v2915_v13  ;;  %v13646_v9 = vld [vmem:[%s17122_s10 + $0x38] sm:$0xff]   ;;  %v13647_v13 = vld [vmem:[%s17122_s10 + $0x70] sm:$0xff]   ;;  %v13650_v23 = vld [vmem:[%s17122_s10 + $0x28] sm:$0xff]  }
 0x519   :  { %3707 = vmatmul.mubr.bf16.vlgmr.msra.gmra.mxu0 %v2863_v7  ;;  %v13649_v7 = vld [vmem:[%s17122_s10 + $0x68] sm:$0xff]  }
 0x51a   :  { %12814 = vmatpush3.bf16.msra.mxu1 %v13632_v14  ;;  %12827 = vmatprep.mubr.msk.bf16.mxu0 %vm14297_vm1, %v17132_v34  ;;  %v13648_v14 = vld [vmem:[%s17122_s10 + $0x30] sm:$0xff]  }
 0x51b   :  { %12815 = vmatprep.subr.bf16.mxu1 %v17132_v34 }
 0x51e   :  { %12816 = vmatpush3.bf16.msra.mxu1 %v13633_v0  ;;  %v13651_v0 = vld [vmem:[%s17122_s10 + $0x60] sm:$0xff]  }
 0x51f   :  { %12817 = vmatprep.subr.bf16.mxu1 %v17132_v34 }
 0x522   :  { %12818 = vmatpush3.bf16.msra.mxu1 %v13634_v26  ;;  %v13652_v26 = vld [vmem:[%s17122_s10 + $0x20] sm:$0xff]  }
 0x523   :  { %12819 = vmatprep.subr.bf16.mxu1 %v17132_v34 }
 0x526   :  { %12820 = vmatpush3.bf16.msra.mxu1 %v13635_v40  ;;  %v13653_v40 = vld [vmem:[%s17122_s10 + $0x58] sm:$0xff]  }
 0x527   :  { %12849 = vmatprep.subr.bf16.mxu1 %v17132_v34 }
 0x529   :  { %12822 = vmatmul.mubr.bf16.vlgmr.msra.gmra.mxu1 %v2967_v19  ;;  %v13655_v19 = vld [vmem:[%s17122_s10 + $0x18] sm:$0xff]  }
 0x52a   :  { %12851 = vmatprep.mubr.msk.bf16.mxu1 %vm14297_vm1, %v17132_v34 }
 0x5a9   :  { %v11908_v32 = vpop.f32.mrf.mxu1 }
 0x5ab   :  { %v11909_v30 = vpop.f32.mrf.mxu1 }
 0x5ac   :  { %v11910_v1 = vadd.f32 %v11909_v30, %v11908_v32  ;;  %v13656_v32 = vld [vmem:[%s17122_s10 + $0xb8] sm:$0xff]   ;;  %v13658_v30 = vld [vmem:[%s17122_s10 + $0xf0] sm:$0xff]  }
 0x5ad   :  { %v11911_v20 = vpop.f32.mrf.mxu1 }
 0x5ae   :  { %v3586_v16 = vadd.f32 %v11910_v1, %v11016_v56  ;;  %v13669_v1 = vld [vmem:[%s17122_s10 + $0xd8] sm:$0xff]  }
 0x5af   :  { %v11912_v24 = vpop.f32.mrf.mxu1 }
 0x5b0   :  { %v11913_v8 = vadd.f32 %v11912_v24, %v11911_v20  ;;  %v13660_v20 = vld [vmem:[%s17122_s10 + $0xb0] sm:$0xff]   ;;  %v13662_v24 = vld [vmem:[%s17122_s10 + $0xe8] sm:$0xff]  }
 0x5b2   :  { %v3589_v43 = vadd.f32 %v11913_v8, %v11016_v56  ;;  %v13670_v56 = vld [vmem:[%s17122_s10 + $0x178] sm:$0xff]   ;;  %v13673_v8 = vld [vmem:[%s17122_s10 + $0xd0] sm:$0xff]  }
 0x5b9   :  { %v11930_v27 = vpop.f32.mrf.mxu0 }
 0x5bb   :  { %v11931_v61 = vpop.f32.mrf.mxu0 }
 0x5bc   :  { %v11932_v52 = vadd.f32 %v11931_v61, %v11930_v27  ;;  %v13657_v27 = vld [vmem:[%s17122_s10 + $0x50] sm:$0xff]  }
 0x5bd   :  { %v11933_v11 = vpop.f32.mrf.mxu0  ;;  %v13659_v61 = vld [vmem:[%s17122_s10 + $0x10] sm:$0xff]  }
 0x5be   :  { %v3627_v42 = vadd.f32 %v11932_v52, %v3586_v16  ;;  %v13675_v52 = vld [vmem:[%s17122_s10 + $0x90] sm:$0xff]   ;;  %v13679_v16 = vld [vmem:[%s17122_s10 + $0x88] sm:$0xff]  }
 0x5bf   :  { %v11934_v29 = vpop.f32.mrf.mxu0 }
 0x5c0   :  { %v11935_v48 = vadd.f32 %v11934_v29, %v11933_v11  ;;  %v13661_v11 = vld [vmem:[%s17122_s10 + $0x48] sm:$0xff]  }
 0x5c1   :  { %v13663_v29 = vld [vmem:[%s17122_s10 + $0x8] sm:$0xff]  }
 0x5c2   :  { %v3630_v50 = vadd.f32 %v11935_v48, %v3589_v43  ;;  %v13681_v48 = vld [vmem:[%s17122_s10 + $0xc0] sm:$0xff]  }
 0x5c9   :  { %v11952_v58 = vpop.f32.mrf.mxu1 }
 0x5cb   :  { %v11953_v49 = vpop.f32.mrf.mxu1 }
 0x5cc   :  { %v11954_v33 = vadd.f32 %v11953_v49, %v11952_v58  ;;  %v13664_v58 = vld [vmem:[%s17122_s10 + $0xa8] sm:$0xff]   ;;  %v13666_v49 = vld [vmem:[%s17122_s10 + $0xe0] sm:$0xff]  }
 0x5cd   :  { %v11955_v22 = vpop.f32.mrf.mxu1 }
 0x5ce   :  { %v3668_v38 = vadd.f32 %v11954_v33, %v3627_v42  ;;  %v13683_v33 = vld [vmem:[%s17122_s10 + $0x80] sm:$0xff]  }
 0x5cf   :  { %v11956_v55 = vpop.f32.mrf.mxu1 }
 0x5d0   :  { %v11957_v51 = vadd.f32 %v11956_v55, %v11955_v22  ;;  %v13668_v22 = vld [vmem:[%s17122_s10 + $0xa0] sm:$0xff]   ;;  %v13677_v55 = vld [vmem:[%s17122_s10 + $0xc8] sm:$0xff]  }
 0x5d2   :  { %v3671_v53 = vadd.f32 %v11957_v51, %v3630_v50 }
 0x5d9   :  { %v11974_v10 = vpop.f32.mrf.mxu0 }
 0x5db   :  { %v11975_v44 = vpop.f32.mrf.mxu0 }
 0x5dc   :  { %v11976_v2 = vadd.f32 %v11975_v44, %v11974_v10  ;;  %v13665_v10 = vld [vmem:[%s17122_s10 + $0x40] sm:$0xff]  }
 0x5dd   :  { %v11977_v46 = vpop.f32.mrf.mxu0  ;;  %v13667_v44 = vld [vmem:[%s17122_s10] sm:$0xff]  }
 0x5de   :  { %v3709_v39 = vadd.f32 %v11976_v2, %v3668_v38 }
 0x5df   :  { %v11978_v45 = vpop.f32.mrf.mxu0 }
 0x5e0   :  { %v11979_v21 = vadd.f32 %v11978_v45, %v11977_v46  ;;  %v13671_v46 = vld [vmem:[%s17122_s10 + $0x98] sm:$0xff]  }
 0x5e1   :  { %v13686_v45 = vld [vmem:[%s17122_s10 + $0x1f8] sm:$0xff]  }
 0x5e2   :  { %v3712_v54 = vadd.f32 %v11979_v21, %v3671_v53 }
 0x5e9   :  { %v3749_v36 = vpop.f32.mrf.mxu1 }
 0x5ea   :  { %v3750_v4 = vadd.f32 %v3749_v36, %v3709_v39 }
 0x5eb   :  { %v12823_v28 = vpop.f32.mrf.mxu1 }
 0x5ec   :  { %v3756_v47 = vmax.f32 %v3750_v4, 0.0 }
 0x5ed   :  { %v3752_v37 = vpop.f32.mrf.mxu1 }
 0x5ee   :  { %v3753_v62 = vadd.f32 %v3752_v37, %v3712_v54 }
 0x5ef   :  { %v12824_v57 = vpop.f32.mrf.mxu1 }
 0x5f0   :  { %v3757_v17 = vmax.f32 %v3753_v62, 0.0  ;;  %v13672_v57 = vld [vmem:[%s17122_s10 + $0x138] sm:$0xff]  }
 0x5f2   :  { %v3758_v31 = vpack.c.bf16 %v3757_v17, %v3756_v47 }
 0x5f4   :  { %12826 = vmatpush3.bf16.msra.mxu0 %v3758_v31  ;;  %12850 = vmatpush3.bf16.msra.mxu1 %v3758_v31 }
 0x5f5   :  { %12831 = vmatprep.subr.bf16.mxu0 %v17132_v34  ;;  %12861 = vmatprep.subr.bf16.mxu1 %v17132_v34 }
 0x5f7   :  { %12828 = vmatmul.mubr.msk.bf16.vlgmr.msra.gmra.mxu0 %vm3766_vm6, %v13636_v6  ;;  %12852 = vmatmul.mubr.msk.bf16.vlgmr.msra.gmra.mxu1 %vm3766_vm6, %v13637_v60 }
 0x5f8   :  { %12832 = vmatpush3.bf16.msra.mxu0 %v3758_v31  ;;  %12862 = vmatpush3.bf16.msra.mxu1 %v3758_v31 }
 0x5f9   :  { %12833 = vmatprep.mubr.msk.bf16.mxu0 %vm14297_vm1, %v17132_v34  ;;  %12837 = vmatprep.subr.bf16.mxu0 %v17132_v34 }
 0x5fa   :  { %12863 = vmatprep.mubr.msk.bf16.mxu1 %vm14297_vm1, %v17132_v34  ;;  %12873 = vmatprep.subr.bf16.mxu1 %v17132_v34 }
 0x5ff   :  { %12834 = vmatmul.mubr.msk.bf16.vlgmr.msra.gmra.mxu0 %vm3766_vm6, %v13638_v15  ;;  %12864 = vmatmul.mubr.msk.bf16.vlgmr.msra.gmra.mxu1 %vm3766_vm6, %v13639_v12  ;;  %v13676_v12 = vld [vmem:[%s17122_s10 + $0x130] sm:$0xff]  }
 0x600   :  { %12838 = vmatpush3.bf16.msra.mxu0 %v3758_v31  ;;  %12874 = vmatpush3.bf16.msra.mxu1 %v3758_v31 }
 0x601   :  { %12839 = vmatprep.mubr.msk.bf16.mxu0 %vm14297_vm1, %v17132_v34  ;;  %12843 = vmatprep.subr.bf16.mxu0 %v17132_v34 }
 0x602   :  { %12875 = vmatprep.mubr.msk.bf16.mxu1 %vm14297_vm1, %v17132_v34  ;;  %12029 = vmatprep.subr.bf16.mxu1 %v13654_v63 }
 0x607   :  { %12840 = vmatmul.mubr.msk.bf16.vlgmr.msra.gmra.mxu0 %vm3766_vm6, %v13640_v41  ;;  %12876 = vmatmul.mubr.msk.bf16.vlgmr.msra.gmra.mxu1 %vm3766_vm6, %v13644_v25  ;;  %v13678_v41 = vld [vmem:[%s17122_s10 + $0x168] sm:$0xff]  }
 0x608   :  { %12844 = vmatpush3.bf16.msra.mxu0 %v3758_v31  ;;  %12845 = vmatprep.mubr.msk.bf16.mxu0 %vm14297_vm1, %v17132_v34 }
 0x609   :  { %12855 = vmatprep.subr.bf16.mxu0 %v17132_v34  ;;  %12030 = vmatpush3.bf16.msra.mxu1 %v13656_v32  ;;  %v13688_v32 = vld [vmem:[%s17122_s10 + $0x1b8] sm:$0xff]  }
 0x60a   :  { %12031 = vmatprep.subr.bf16.mxu1 %v13658_v30 }
 0x60d   :  { %12032 = vmatpush3.bf16.msra.mxu1 %v13660_v20  ;;  %v13690_v20 = vld [vmem:[%s17122_s10 + $0x1f0] sm:$0xff]  }
 0x60e   :  { %12033 = vmatprep.subr.bf16.mxu1 %v13662_v24  ;;  %v13691_v24 = vld [vmem:[%s17122_s10 + $0x110] sm:$0xff]  }
 0x60f   :  { %12846 = vmatmul.mubr.msk.bf16.vlgmr.msra.gmra.mxu0 %vm3766_vm6, %v13641_v59 }
 0x610   :  { %12856 = vmatpush3.bf16.msra.mxu0 %v3758_v31  ;;  %12857 = vmatprep.mubr.msk.bf16.mxu0 %vm14297_vm1, %v17132_v34 }
 0x611   :  { %12867 = vmatprep.subr.bf16.mxu0 %v17132_v34  ;;  %12034 = vmatpush3.bf16.msra.mxu1 %v13664_v58 }
 0x612   :  { %12035 = vmatprep.subr.bf16.mxu1 %v13666_v49  ;;  %v13694_v49 = vld [vmem:[%s17122_s10 + $0x1e8] sm:$0xff]  }
 0x615   :  { %12036 = vmatpush3.bf16.msra.mxu1 %v13668_v22 }
 0x616   :  { %12037 = vmatprep.subr.bf16.mxu1 %v13669_v1  ;;  %v13695_v1 = vld [vmem:[%s17122_s10 + $0x108] sm:$0xff]  }
 0x617   :  { %12858 = vmatmul.mubr.msk.bf16.vlgmr.msra.gmra.mxu0 %vm3766_vm6, %v13642_v5 }
 0x618   :  { %12868 = vmatpush3.bf16.msra.mxu0 %v3758_v31  ;;  %12869 = vmatprep.mubr.msk.bf16.mxu0 %vm14297_vm1, %v17132_v34  ;;  %v13674_v31 = vld [vmem:[%s17122_s10 + $0x170] sm:$0xff]  }
 0x619   :  { %12007 = vmatprep.subr.bf16.mxu0 %v13645_v35  ;;  %12038 = vmatpush3.bf16.msra.mxu1 %v13671_v46  ;;  %v13680_v35 = vld [vmem:[%s17122_s10 + $0x128] sm:$0xff]  }
 0x61a   :  { %12039 = vmatprep.subr.bf16.mxu1 %v13673_v8  ;;  %v13697_v8 = vld [vmem:[%s17122_s10 + $0x140] sm:$0xff]  }
 0x61d   :  { %12040 = vmatpush3.bf16.msra.mxu1 %v13675_v52  ;;  %v13698_v52 = vld [vmem:[%s17122_s10 + $0x1e0] sm:$0xff]  }
 0x61e   :  { %12041 = vmatprep.subr.bf16.mxu1 %v13677_v55 }
 0x61f   :  { %12870 = vmatmul.mubr.msk.bf16.vlgmr.msra.gmra.mxu0 %vm3766_vm6, %v13643_v18 }
 0x620   :  { %12008 = vmatpush3.bf16.msra.mxu0 %v13646_v9  ;;  %v13682_v9 = vld [vmem:[%s17122_s10 + $0x160] sm:$0xff]  }
 0x621   :  { %12009 = vmatprep.subr.bf16.mxu0 %v13647_v13  ;;  %12042 = vmatpush3.bf16.msra.mxu1 %v13679_v16  ;;  %v13699_v16 = vld [vmem:[%s17122_s10 + $0x100] sm:$0xff]  }
 0x622   :  { %12043 = vmatprep.subr.bf16.mxu1 %v13681_v48  ;;  %v13700_v48 = vld [vmem:[%s17122_s10 + $0x1a0] sm:$0xff]  }
 0x624   :  { %12010 = vmatpush3.bf16.msra.mxu0 %v13648_v14 }
 0x625   :  { %12011 = vmatprep.subr.bf16.mxu0 %v13649_v7  ;;  %12044 = vmatpush3.bf16.msra.mxu1 %v13683_v33  ;;  %v13684_v7 = vld [vmem:[%s17122_s10 + $0x120] sm:$0xff]   ;;  %v13701_v33 = vld [vmem:[%s17122_s10 + $0x1d8] sm:$0xff]  }
 0x626   :  { %12073 = vmatprep.subr.bf16.mxu1 %v13686_v45 }
 0x628   :  { %12012 = vmatpush3.bf16.msra.mxu0 %v13650_v23 }
 0x629   :  { %12013 = vmatprep.subr.bf16.mxu0 %v13651_v0  ;;  %v13685_v0 = vld [vmem:[%s17122_s10 + $0x158] sm:$0xff]  }
 0x62c   :  { %12014 = vmatpush3.bf16.msra.mxu0 %v13652_v26 }
 0x62d   :  { %12015 = vmatprep.subr.bf16.mxu0 %v13653_v40 }
 0x630   :  { %12016 = vmatpush3.bf16.msra.mxu0 %v13655_v19  ;;  %v13687_v19 = vld [vmem:[%s17122_s10 + $0x118] sm:$0xff]  }
 0x631   :  { %12017 = vmatprep.subr.bf16.mxu0 %v13657_v27 }
 0x634   :  { %12018 = vmatpush3.bf16.msra.mxu0 %v13659_v61  ;;  %v13689_v61 = vld [vmem:[%s17122_s10 + $0x150] sm:$0xff]  }
 0x635   :  { %12019 = vmatprep.subr.bf16.mxu0 %v13661_v11 }
 0x638   :  { %12020 = vmatpush3.bf16.msra.mxu0 %v13663_v29  ;;  %v13692_v29 = vld [vmem:[%s17122_s10 + $0x1b0] sm:$0xff]  }
 0x639   :  { %12021 = vmatprep.subr.bf16.mxu0 %v13665_v10  ;;  %v13693_v10 = vld [vmem:[%s17122_s10 + $0x148] sm:$0xff]  }
 0x63c   :  { %12022 = vmatpush3.bf16.msra.mxu0 %v13667_v44 }
 0x63d   :  { %12051 = vmatprep.subr.bf16.mxu0 %v13670_v56  ;;  %v13696_v56 = vld [vmem:[%s17122_s10 + $0x1a8] sm:$0xff]  }
 0x6b7   :  { %v3804_v43 = vpop.f32.mrf.mxu0  ;;  %v15534_v42 = vpop.f32.mrf.mxu1 }
 0x6b9   :  { %v12829_v51 = vpop.f32.mrf.mxu0  ;;  %v12853_v2 = vpop.f32.mrf.mxu1 }
 0x6ba   :  { %v13702_v51 = vld [vmem:[%s17122_s10 + $0x198] sm:$0xff]  }
 0x6bb   :  { %v3807_v50 = vpop.f32.mrf.mxu0  ;;  %v15536_v38 = vpop.f32.mrf.mxu1  ;;  %v13703_v2 = vld [vmem:[%s17122_s10 + $0x238] sm:$0xff]  }
 0x6bc   :  { %v3811_v47 = vpack.c.bf16 %v3807_v50, %v3804_v43 }
 0x6bd   :  { %v12830_v21 = vpop.f32.mrf.mxu0  ;;  %v12854_v36 = vpop.f32.mrf.mxu1 }
 0x6be   :  { %v4019_v21 = vpack.c.bf16 %v15536_v38, %v15534_v42  ;;  %v13704_v36 = vld [vmem:[%s17122_s10 + $0x1d0] sm:$0xff]   ;;  %v13707_v38 = vld [vmem:[%s17122_s10 + $0x1c8] sm:$0xff]  }
 0x6bf   :  { %v3856_v53 = vpop.f32.mrf.mxu0  ;;  %v15538_v39 = vpop.f32.mrf.mxu1  ;;  %v13706_v42 = vld [vmem:[%s17122_s10 + $0x230] sm:$0xff]  }
 0x6c1   :  { %v12835_v28 = vpop.f32.mrf.mxu0  ;;  %v12865_v4 = vpop.f32.mrf.mxu1 }
 0x6c2   :  { %v13705_v28 = vld [vmem:[%s17122_s10 + $0x190] sm:$0xff]   ;;  %v13708_v4 = vld [vmem:[%s17122_s10 + $0x188] sm:$0xff]  }
 0x6c3   :  { %v3859_v54 = vpop.f32.mrf.mxu0  ;;  %v15540_v37 = vpop.f32.mrf.mxu1 }
 0x6c4   :  { %v3863_v62 = vpack.c.bf16 %v3859_v54, %v3856_v53  ;;  %v13709_v54 = vld [vmem:[%s17122_s10 + $0x228] sm:$0xff]  }
 0x6c5   :  { %v12836_v17 = vpop.f32.mrf.mxu0  ;;  %v12866_v6 = vpop.f32.mrf.mxu1 }
 0x6c6   :  { %4843 = vmatprep.mubr.bf16.mxu0 %v3863_v62  ;;  %v13710_v62 = vld [vmem:[%s17122_s10 + $0x1c0] sm:$0xff]   ;;  %v4123_v17 = vpack.c.bf16 %v15540_v37, %v15538_v39  ;;  %v13714_v6 = vld [vmem:[%s17122_s10 + $0x210] sm:$0xff]   ;;  %v13715_v39 = vld [vmem:[%s17122_s10 + $0x208] sm:$0xff]  }
 0x6c7   :  { %v3908_v60 = vpop.f32.mrf.mxu0  ;;  %4844 = vmatmul.mubr.bf16.vlgmr.msra.gmra.mxu0 %v3811_v47  ;;  %v15548_v15 = vpop.f32.mrf.mxu1  ;;  %v13712_v47 = vld [vmem:[%s17122_s10 + $0x220] sm:$0xff]  }
 0x6c8   :  { %12052 = vmatpush3.bf16.msra.mxu0 %v13672_v57  ;;  %v13711_v57 = vld [vmem:[%s17122_s10 + $0x180] sm:$0xff]  }
 0x6c9   :  { %v12841_v63 = vpop.f32.mrf.mxu0  ;;  %12053 = vmatprep.subr.bf16.mxu0 %v13674_v31  ;;  %v12877_v25 = vpop.f32.mrf.mxu1  ;;  %v13713_v31 = vld [vmem:[%s17122_s10 + $0x218] sm:$0xff]   ;;  %v13716_v37 = vld [vmem:[%s17122_s10 + $0x200] sm:$0xff]  }
 0x6ca   :  { %v13718_v63 = vld [vmem:[%s17124_s12 + $0x78] sm:$0xff]   ;;  %v13721_v25 = vld [vmem:[%s17124_s12 + $0x28] sm:$0xff]  }
 0x6cb   :  { %v3911_v59 = vpop.f32.mrf.mxu0  ;;  %v15556_v5 = vpop.f32.mrf.mxu1 }
 0x6cc   :  { %12054 = vmatpush3.bf16.msra.mxu0 %v13676_v12  ;;  %v3915_v27 = vpack.c.bf16 %v3911_v59, %v3908_v60  ;;  %v4227_v60 = vpack.c.bf16 %v15556_v5, %v15548_v15  ;;  %v13717_v12 = vld [vmem:[%s17124_s12 + $0x38] sm:$0xff]   ;;  %v13719_v15 = vld [vmem:[%s17124_s12 + $0x30] sm:$0xff]   ;;  %v13722_v59 = vld [vmem:[%s17124_s12 + $0x68] sm:$0xff]  }
 0x6cd   :  { %v12842_v18 = vpop.f32.mrf.mxu0  ;;  %12055 = vmatprep.subr.bf16.mxu0 %v13678_v41  ;;  %v12878_v13 = vpop.f32.mrf.mxu1  ;;  %v13720_v41 = vld [vmem:[%s17124_s12 + $0x70] sm:$0xff]   ;;  %v13723_v5 = vld [vmem:[%s17124_s12 + $0x20] sm:$0xff]  }
 0x6ce   :  { %v13725_v18 = vld [vmem:[%s17124_s12 + $0x18] sm:$0xff]   ;;  %v13727_v13 = vld [vmem:[%s17124_s12 + $0x10] sm:$0xff]  }
 0x6cf   :  { %v3960_v14 = vpop.f32.mrf.mxu0 }
 0x6d0   :  { %12056 = vmatpush3.bf16.msra.mxu0 %v13680_v35  ;;  %v13724_v35 = vld [vmem:[%s17124_s12 + $0x60] sm:$0xff]  }
 0x6d1   :  { %v12847_v23 = vpop.f32.mrf.mxu0  ;;  %12057 = vmatprep.subr.bf16.mxu0 %v13682_v9  ;;  %v13726_v9 = vld [vmem:[%s17124_s12 + $0x58] sm:$0xff]  }
 0x6d2   :  { %v13730_v23 = vld [vmem:[%s17124_s12 + $0x48] sm:$0xff]  }
 0x6d3   :  { %v3963_v26 = vpop.f32.mrf.mxu0 }
 0x6d4   :  { %v3967_v40 = vpack.c.bf16 %v3963_v26, %v3960_v14  ;;  %12058 = vmatpush3.bf16.msra.mxu0 %v13684_v7  ;;  %v13728_v14 = vld [vmem:[%s17124_s12 + $0x50] sm:$0xff]   ;;  %v13729_v7 = vld [vmem:[%s17124_s12 + $0x8] sm:$0xff]   ;;  %v13732_v26 = vld [vmem:[%s17124_s12 + $0x40] sm:$0xff]  }
 0x6d5   :  { %12059 = vmatprep.subr.bf16.mxu0 %v13685_v0  ;;  %v12848_v30 = vpop.f32.mrf.mxu0  ;;  %v13731_v0 = vld [vmem:[%s17124_s12] sm:$0xff]  }
 0x6d6   :  { %4884 = vmatprep.mubr.bf16.mxu1 %v3967_v40 }
 0x6d7   :  { %4885 = vmatmul.mubr.bf16.vlgmr.msra.gmra.mxu1 %v3915_v27  ;;  %v4064_v11 = vpop.f32.mrf.mxu0 }
 0x6d8   :  { %12060 = vmatpush3.bf16.msra.mxu0 %v13687_v19  ;;  %12074 = vmatpush3.bf16.msra.mxu1 %v13688_v32 }
 0x6d9   :  { %12061 = vmatprep.subr.bf16.mxu0 %v13689_v61  ;;  %12075 = vmatprep.subr.bf16.mxu1 %v13690_v20  ;;  %v12859_v58 = vpop.f32.mrf.mxu0 }
 0x6db   :  { %v4067_v44 = vpop.f32.mrf.mxu0 }
 0x6dc   :  { %12062 = vmatpush3.bf16.msra.mxu0 %v13691_v24  ;;  %12076 = vmatpush3.bf16.msra.mxu1 %v13692_v29  ;;  %v4071_v22 = vpack.c.bf16 %v4067_v44, %v4064_v11 }
 0x6dd   :  { %12063 = vmatprep.subr.bf16.mxu0 %v13693_v10  ;;  %12077 = vmatprep.subr.bf16.mxu1 %v13694_v49  ;;  %v12860_v46 = vpop.f32.mrf.mxu0 }
 0x6de   :  { %4925 = vmatprep.mubr.bf16.mxu0 %v4071_v22  ;;  %v11107_v22 = vld [vmem:[%s17123_s11] ss:$0 sm:$0xff] }
 0x6df   :  { %v4168_v55 = vpop.f32.mrf.mxu0 }
 0x6e0   :  { %12064 = vmatpush3.bf16.msra.mxu0 %v13695_v1  ;;  %12078 = vmatpush3.bf16.msra.mxu1 %v13696_v56 }
 0x6e1   :  { %12065 = vmatprep.subr.bf16.mxu0 %v13697_v8  ;;  %12079 = vmatprep.subr.bf16.mxu1 %v13698_v52  ;;  %v12871_v45 = vpop.f32.mrf.mxu0 }
 0x6e3   :  { %v4171_v43 = vpop.f32.mrf.mxu0 }
 0x6e4   :  { %12066 = vmatpush3.bf16.msra.mxu0 %v13699_v16  ;;  %12080 = vmatpush3.bf16.msra.mxu1 %v13700_v48  ;;  %v4175_v50 = vpack.c.bf16 %v4171_v43, %v4168_v55 }
 0x6e5   :  { %12081 = vmatprep.subr.bf16.mxu1 %v13701_v33  ;;  %12879 = vmatprep.subr.bf16.mxu0 %v17132_v34  ;;  %v12872_v53 = vpop.f32.mrf.mxu0 }
 0x6e6   :  { %4966 = vmatprep.mubr.bf16.mxu1 %v4175_v50 }
 0x6e7   :  { %4926 = vmatmul.mubr.bf16.vlgmr.msra.gmra.mxu0 %v4019_v21 }
 0x6e8   :  { %12082 = vmatpush3.bf16.msra.mxu1 %v13702_v51  ;;  %12880 = vmatpush3.bf16.msra.mxu0 %v13703_v2 }
 0x6e9   :  { %12083 = vmatprep.subr.bf16.mxu1 %v13704_v36  ;;  %12881 = vmatprep.subr.bf16.mxu0 %v17132_v34 }
 0x6ea   :  { %12895 = vmatprep.mubr.msk.bf16.mxu0 %vm14297_vm1, %v17132_v34 }
 0x6ec   :  { %12084 = vmatpush3.bf16.msra.mxu1 %v13705_v28  ;;  %12882 = vmatpush3.bf16.msra.mxu0 %v13706_v42 }
 0x6ed   :  { %12085 = vmatprep.subr.bf16.mxu1 %v13707_v38  ;;  %12883 = vmatprep.subr.bf16.mxu0 %v17132_v34 }
 0x6f0   :  { %12086 = vmatpush3.bf16.msra.mxu1 %v13708_v4  ;;  %12884 = vmatpush3.bf16.msra.mxu0 %v13709_v54 }
 0x6f1   :  { %12087 = vmatprep.subr.bf16.mxu1 %v13710_v62  ;;  %12885 = vmatprep.subr.bf16.mxu0 %v17132_v34 }
 0x6f4   :  { %12088 = vmatpush3.bf16.msra.mxu1 %v13711_v57  ;;  %12886 = vmatpush3.bf16.msra.mxu0 %v13712_v47 }
 0x6f5   :  { %12887 = vmatprep.subr.bf16.mxu0 %v17132_v34  ;;  %12899 = vmatprep.subr.bf16.mxu1 %v17132_v34 }
 0x6f7   :  { %4967 = vmatmul.mubr.bf16.vlgmr.msra.gmra.mxu1 %v4123_v17 }
 0x6f8   :  { %12888 = vmatpush3.bf16.msra.mxu0 %v13713_v31  ;;  %12915 = vmatprep.mubr.msk.bf16.mxu1 %vm14297_vm1, %v17132_v34  ;;  %v13733_v31 = vld [vmem:[%s17124_s12 + $0xb8] sm:$0xff]  }
 0x6f9   :  { %12889 = vmatprep.subr.bf16.mxu0 %v17132_v34  ;;  %12900 = vmatpush3.bf16.msra.mxu1 %v13717_v12  ;;  %v13736_v12 = vld [vmem:[%s17124_s12 + $0xf0] sm:$0xff]  }
 0x6fa   :  { %12901 = vmatprep.subr.bf16.mxu1 %v17132_v34 }
 0x6fc   :  { %12890 = vmatpush3.bf16.msra.mxu0 %v13714_v6 }
 0x6fd   :  { %12891 = vmatprep.subr.bf16.mxu0 %v17132_v34  ;;  %12902 = vmatpush3.bf16.msra.mxu1 %v13719_v15  ;;  %v13738_v15 = vld [vmem:[%s17124_s12 + $0xe8] sm:$0xff]  }
 0x6fe   :  { %12903 = vmatprep.subr.bf16.mxu1 %v17132_v34 }
 0x700   :  { %12892 = vmatpush3.bf16.msra.mxu0 %v13715_v39  ;;  %v13734_v39 = vld [vmem:[%s17124_s12 + $0xf8] sm:$0xff]  }
 0x701   :  { %12893 = vmatprep.subr.bf16.mxu0 %v17132_v34  ;;  %12904 = vmatpush3.bf16.msra.mxu1 %v13721_v25  ;;  %v13740_v25 = vld [vmem:[%s17124_s12 + $0xe0] sm:$0xff]  }
 0x702   :  { %12905 = vmatprep.subr.bf16.mxu1 %v17132_v34 }
 0x704   :  { %12894 = vmatpush3.bf16.msra.mxu0 %v13716_v37 }
 0x705   :  { %12919 = vmatprep.subr.bf16.mxu0 %v17132_v34  ;;  %12906 = vmatpush3.bf16.msra.mxu1 %v13723_v5  ;;  %v13742_v5 = vld [vmem:[%s17124_s12 + $0xd8] sm:$0xff]  }
 0x706   :  { %12907 = vmatprep.subr.bf16.mxu1 %v17132_v34 }
 0x707   :  { %12896 = vmatmul.mubr.bf16.vlgmr.msra.gmra.mxu0 %v4227_v60  ;;  %v13735_v60 = vld [vmem:[%s17124_s12 + $0xb0] sm:$0xff]  }
 0x708   :  { %12935 = vmatprep.mubr.msk.bf16.mxu0 %vm14297_vm1, %v17132_v34  ;;  %12920 = vmatpush3.bf16.msra.mxu0 %v13718_v63  ;;  %v13737_v63 = vld [vmem:[%s17124_s12 + $0xa8] sm:$0xff]  }
 0x709   :  { %12921 = vmatprep.subr.bf16.mxu0 %v17132_v34  ;;  %12908 = vmatpush3.bf16.msra.mxu1 %v13725_v18  ;;  %v13744_v18 = vld [vmem:[%s17124_s12 + $0xd0] sm:$0xff]  }
 0x70a   :  { %12909 = vmatprep.subr.bf16.mxu1 %v17132_v34 }
 0x70c   :  { %12922 = vmatpush3.bf16.msra.mxu0 %v13720_v41  ;;  %v13739_v41 = vld [vmem:[%s17124_s12 + $0xa0] sm:$0xff]  }
 0x70d   :  { %12923 = vmatprep.subr.bf16.mxu0 %v17132_v34  ;;  %12910 = vmatpush3.bf16.msra.mxu1 %v13727_v13  ;;  %v13746_v13 = vld [vmem:[%s17124_s12 + $0xc8] sm:$0xff]  }
 0x70e   :  { %12911 = vmatprep.subr.bf16.mxu1 %v17132_v34 }
 0x710   :  { %12924 = vmatpush3.bf16.msra.mxu0 %v13722_v59  ;;  %v13741_v59 = vld [vmem:[%s17124_s12 + $0x98] sm:$0xff]  }
 0x711   :  { %12925 = vmatprep.subr.bf16.mxu0 %v17132_v34  ;;  %12912 = vmatpush3.bf16.msra.mxu1 %v13729_v7  ;;  %v13747_v7 = vld [vmem:[%s17124_s12 + $0x80] sm:$0xff]  }
 0x712   :  { %12913 = vmatprep.subr.bf16.mxu1 %v17132_v34 }
 0x714   :  { %12926 = vmatpush3.bf16.msra.mxu0 %v13724_v35  ;;  %v13743_v35 = vld [vmem:[%s17124_s12 + $0x90] sm:$0xff]  }
 0x715   :  { %12927 = vmatprep.subr.bf16.mxu0 %v17132_v34  ;;  %12914 = vmatpush3.bf16.msra.mxu1 %v13731_v0 }
 0x716   :  { %12939 = vmatprep.subr.bf16.mxu1 %v17132_v34 }
 0x718   :  { %12928 = vmatpush3.bf16.msra.mxu0 %v13726_v9  ;;  %v13745_v9 = vld [vmem:[%s17124_s12 + $0x88] sm:$0xff]  }
 0x719   :  { %12929 = vmatprep.subr.bf16.mxu0 %v17132_v34 }
 0x71c   :  { %12930 = vmatpush3.bf16.msra.mxu0 %v13728_v14  ;;  %v13361_v14 = vld [vmem:[%s17113_s1] sm:$0x1f]  }
 0x71d   :  { %12931 = vmatprep.subr.bf16.mxu0 %v17132_v34  ;;  %v5596_v0 = vand.u32 %v13361_v14, %v14402_v3  ;;  %v13750_v3 = vld [vmem:[%s17112_s0 + $0x98] sm:$0xff]  }
 0x720   :  { %12932 = vmatpush3.bf16.msra.mxu0 %v13730_v23  ;;  %v13748_v23 = vld [vmem:[%s17124_s12 + $0xc0] sm:$0xff]  }
 0x721   :  { %12933 = vmatprep.subr.bf16.mxu0 %v17132_v34 }
 0x724   :  { %12934 = vmatpush3.bf16.msra.mxu0 %v13732_v26 }
 0x725   :  { %12959 = vmatprep.subr.bf16.mxu0 %v17132_v34 }
 0x787   :  { %v12023_v40 = vpop.f32.mrf.mxu0 }
 0x789   :  { %v12024_v32 = vpop.f32.mrf.mxu0 }
 0x78a   :  { %v12025_v44 = vadd.f32 %v12024_v32, %v12023_v40  ;;  %v13749_v32 = vld [vmem:[%s17112_s0 + $0x68] sm:$0xff]  }
 0x78b   :  { %v12026_v30 = vpop.f32.mrf.mxu0 }
 0x78c   :  { %v4846_v52 = vadd.f32 %v12025_v44, %v11107_v22  ;;  %v13761_v44 = vld [vmem:[%s17112_s0 + $0xc8] sm:$0xff]  }
 0x78d   :  { %v12027_v20 = vpop.f32.mrf.mxu0 }
 0x78e   :  { %v12028_v56 = vadd.f32 %v12027_v20, %v12026_v30  ;;  %v13751_v30 = vld [vmem:[%s17112_s0 + $0x70] sm:$0xff]   ;;  %v13753_v20 = vld [vmem:[%s17112_s0 + $0x78] sm:$0xff]  }
 0x790   :  { %v4849_v33 = vadd.f32 %v12028_v56, %v11107_v22 }
 0x797   :  { %v12045_v19 = vpop.f32.mrf.mxu1 }
 0x799   :  { %v12046_v27 = vpop.f32.mrf.mxu1 }
 0x79a   :  { %v12047_v46 = vadd.f32 %v12046_v27, %v12045_v19  ;;  %v17133_v19 = vmov 0   ;;  %v13752_v27 = vld [vmem:[%s17112_s0 + $0xa0] sm:$0xff]  }
 0x79b   :  { %v12048_v61 = vpop.f32.mrf.mxu1 }
 0x79c   :  { %v4887_v45 = vadd.f32 %v12047_v46, %v4846_v52  ;;  %v13764_v52 = vld [vmem:[#allocation5 + $0x4] ss:$8 sps:$4 sm:$0xff]  }
 0x79d   :  { %v12049_v11 = vpop.f32.mrf.mxu1 }
 0x79e   :  { %v12050_v55 = vadd.f32 %v12049_v11, %v12048_v61  ;;  %v13755_v61 = vld [vmem:[%s17112_s0 + $0xa8] sm:$0xff]   ;;  %v13757_v11 = vld [vmem:[%s17112_s0 + $0xb0] sm:$0xff]  }
 0x7a0   :  { %v4890_v2 = vadd.f32 %v12050_v55, %v4849_v33 }
 0x7a7   :  { %v12067_v24 = vpop.f32.mrf.mxu0 }
 0x7a9   :  { %v12068_v58 = vpop.f32.mrf.mxu0 }
 0x7aa   :  { %v12069_v16 = vadd.f32 %v12068_v58, %v12067_v24  ;;  %v13754_v24 = vld [vmem:[%s17112_s0 + $0x80] sm:$0xff]   ;;  %v13756_v58 = vld [vmem:[%s17112_s0 + $0x88] sm:$0xff]  }
 0x7ab   :  { %v12070_v49 = vpop.f32.mrf.mxu0 }
 0x7ac   :  { %v4928_v50 = vadd.f32 %v12069_v16, %v4887_v45  ;;  %v5019_v45 = vld [vmem:[%s17125_s13] sm:$0x1] }
 0x7ad   :  { %v12071_v8 = vpop.f32.mrf.mxu0 }
 0x7ae   :  { %v12072_v43 = vadd.f32 %v12071_v8, %v12070_v49  ;;  %v13758_v49 = vld [vmem:[%s17112_s0 + $0x90] sm:$0xff]  }
 0x7b0   :  { %v4931_v53 = vadd.f32 %v12072_v43, %v4890_v2 }
 0x7b7   :  { %v12089_v29 = vpop.f32.mrf.mxu1 }
 0x7b9   :  { %v12090_v10 = vpop.f32.mrf.mxu1 }
 0x7ba   :  { %v12091_v51 = vadd.f32 %v12090_v10, %v12089_v29  ;;  %v13759_v29 = vld [vmem:[%s17112_s0 + $0xb8] sm:$0xff]   ;;  %v13760_v10 = vld [vmem:[%s17112_s0 + $0xc0] sm:$0xff]  }
 0x7bb   :  { %v12092_v1 = vpop.f32.mrf.mxu1 }
 0x7bc   :  { %v4969_v28 = vadd.f32 %v12091_v51, %v4928_v50 }
 0x7bd   :  { %v12093_v48 = vpop.f32.mrf.mxu1 }
 0x7be   :  { %v12094_v21 = vadd.f32 %v12093_v48, %v12092_v1  ;;  %v13767_v48 = vld [vmem:[#allocation5 + $0x44] ss:$8 sps:$4 sm:$0xff]  }
 0x7c0   :  { %v4972_v4 = vadd.f32 %v12094_v21, %v4931_v53 }
 0x7c7   :  { %v5009_v36 = vpop.f32.mrf.mxu0 }
 0x7c8   :  { %v5010_v38 = vadd.f32 %v5009_v36, %v4969_v28 }
 0x7c9   :  { %v12897_v42 = vpop.f32.mrf.mxu0 }
 0x7ca   :  { %v5016_v47 = vmax.f32 %v5010_v38, 0.0 }
 0x7cb   :  { %v5012_v54 = vpop.f32.mrf.mxu0 }
 0x7cc   :  { %v5013_v62 = vadd.f32 %v5012_v54, %v4972_v4 }
 0x7cd   :  { %v12898_v57 = vpop.f32.mrf.mxu0 }
 0x7ce   :  { %v5017_v17 = vmax.f32 %v5013_v62, 0.0 }
 0x7d0   :  { %v5018_v6 = vpack.c.bf16 %v5017_v17, %v5016_v47 }
 0x7d2   :  { %v5142_v37 = vshrl.u32 %v5018_v6, 16  ;;  %12916 = vmatmul.mubr.bf16.vlgmr.msra.gmra.mxu1 %v5018_v6  ;;  %v5251_v26 = vrot.slane %v5018_v6, 1 }
 0x7d3   :  { %12940 = vmatpush3.bf16.msra.mxu1 %v13733_v31  ;;  %12955 = vmatprep.mubr.msk.bf16.mxu1 %vm14297_vm1, %v17132_v34 }
 0x7d4   :  { %12936 = vmatmul.mubr.bf16.vlgmr.msra.gmra.mxu0 %v5142_v37  ;;  %12941 = vmatprep.subr.bf16.mxu1 %v17132_v34  ;;  %v5358_v40 = vrot.slane %v5142_v37, 1  ;;  %v15910_v37 = vld [vmem:[#allocation2] ss:$0 sm:$0xff] }
 0x7d5   :  { %12960 = vmatpush3.bf16.msra.mxu0 %v13734_v39  ;;  %12975 = vmatprep.mubr.msk.bf16.mxu0 %vm14297_vm1, %v17132_v34 }
 0x7d6   :  { %12961 = vmatprep.subr.bf16.mxu0 %v17132_v34 }
 0x7d7   :  { %12942 = vmatpush3.bf16.msra.mxu1 %v13735_v60 }
 0x7d8   :  { %12943 = vmatprep.subr.bf16.mxu1 %v17132_v34 }
 0x7d9   :  { %12962 = vmatpush3.bf16.msra.mxu0 %v13736_v12 }
 0x7da   :  { %12963 = vmatprep.subr.bf16.mxu0 %v17132_v34 }
 0x7db   :  { %12944 = vmatpush3.bf16.msra.mxu1 %v13737_v63 }
 0x7dc   :  { %12945 = vmatprep.subr.bf16.mxu1 %v17132_v34 }
 0x7dd   :  { %12964 = vmatpush3.bf16.msra.mxu0 %v13738_v15 }
 0x7de   :  { %12965 = vmatprep.subr.bf16.mxu0 %v17132_v34 }
 0x7df   :  { %12946 = vmatpush3.bf16.msra.mxu1 %v13739_v41 }
 0x7e0   :  { %12947 = vmatprep.subr.bf16.mxu1 %v17132_v34 }
 0x7e1   :  { %12966 = vmatpush3.bf16.msra.mxu0 %v13740_v25 }
 0x7e2   :  { %12967 = vmatprep.subr.bf16.mxu0 %v17132_v34 }
 0x7e3   :  { %12948 = vmatpush3.bf16.msra.mxu1 %v13741_v59 }
 0x7e4   :  { %12949 = vmatprep.subr.bf16.mxu1 %v17132_v34 }
 0x7e5   :  { %12968 = vmatpush3.bf16.msra.mxu0 %v13742_v5 }
 0x7e6   :  { %12969 = vmatprep.subr.bf16.mxu0 %v17132_v34 }
 0x7e7   :  { %12950 = vmatpush3.bf16.msra.mxu1 %v13743_v35 }
 0x7e8   :  { %12951 = vmatprep.subr.bf16.mxu1 %v17132_v34 }
 0x7e9   :  { %12970 = vmatpush3.bf16.msra.mxu0 %v13744_v18 }
 0x7ea   :  { %12971 = vmatprep.subr.bf16.mxu0 %v17132_v34 }
 0x7eb   :  { %12952 = vmatpush3.bf16.msra.mxu1 %v13745_v9 }
 0x7ec   :  { %12953 = vmatprep.subr.bf16.mxu1 %v17132_v34 }
 0x7ed   :  { %12972 = vmatpush3.bf16.msra.mxu0 %v13746_v13 }
 0x7ee   :  { %12973 = vmatprep.subr.bf16.mxu0 %v17132_v34 }
 0x7ef   :  { %12954 = vmatpush3.bf16.msra.mxu1 %v13747_v7 }
 0x7f0   :  { %13341 = vmatprep.subr.bf16.mxu1 %v17132_v34 }
 0x7f1   :  { %12974 = vmatpush3.bf16.msra.mxu0 %v13748_v23 }
 0x7f2   :  { %12956 = vmatmul.mubr.bf16.vlgmr.msra.gmra.mxu1 %v5251_v26  ;;  %12979 = vmatprep.subr.bf16.mxu0 %v17132_v34 }
 0x7f3   :  { %13342 = vmatpush3.bf16.msra.mxu1 %v5596_v0  ;;  %13005 = vmatprep.mubr.msk.bf16.mxu1 %vm14297_vm1, %v17132_v34 }
 0x7f4   :  { %12976 = vmatmul.mubr.bf16.vlgmr.msra.gmra.mxu0 %v5358_v40  ;;  %5955 = vmatprep.subr.bf16.mxu1 %v17133_v19 }
 0x7f5   :  { %12980 = vmatpush3.bf16.msra.mxu0 %v5596_v0  ;;  %12981 = vmatprep.mubr.msk.bf16.mxu0 %vm14297_vm1, %v17132_v34 }
 0x7f6   :  { %5830 = vmatprep.subr.bf16.mxu0 %v17133_v19 }
 0x7fa   :  { %13006 = vmatmul.mubr.msk.bf16.vlgmr.msra.gmra.mxu1 %vm230_vm3, %v13750_v3 }
 0x7fb   :  { %13009 = vmatprep.mubr.msk.bf16.mxu1 %vm14297_vm1, %v17132_v34 }
 0x7fc   :  { %12982 = vmatmul.mubr.msk.bf16.vlgmr.msra.gmra.mxu0 %vm230_vm3, %v13749_v32 }
 0x7fd   :  { %12985 = vmatprep.mubr.msk.bf16.mxu0 %vm14297_vm1, %v17132_v34 }
 0x802   :  { %13010 = vmatmul.mubr.msk.bf16.gmra.mxu1 %vm230_vm3, %v13752_v27 }
 0x803   :  { %13013 = vmatprep.mubr.msk.bf16.mxu1 %vm14297_vm1, %v17132_v34 }
 0x804   :  { %12986 = vmatmul.mubr.msk.bf16.gmra.mxu0 %vm230_vm3, %v13751_v30 }
 0x805   :  { %12989 = vmatprep.mubr.msk.bf16.mxu0 %vm14297_vm1, %v17132_v34 }
 0x80a   :  { %13014 = vmatmul.mubr.msk.bf16.gmra.mxu1 %vm230_vm3, %v13755_v61 }
 0x80b   :  { %13017 = vmatprep.mubr.msk.bf16.mxu1 %vm14297_vm1, %v17132_v34 }
 0x80c   :  { %12990 = vmatmul.mubr.msk.bf16.gmra.mxu0 %vm230_vm3, %v13753_v20 }
 0x80d   :  { %12993 = vmatprep.mubr.msk.bf16.mxu0 %vm14297_vm1, %v17132_v34 }
 0x812   :  { %13018 = vmatmul.mubr.msk.bf16.gmra.mxu1 %vm230_vm3, %v13757_v11 }
 0x813   :  { %13021 = vmatprep.mubr.msk.bf16.mxu1 %vm14297_vm1, %v17132_v34 }
 0x814   :  { %12994 = vmatmul.mubr.msk.bf16.gmra.mxu0 %vm230_vm3, %v13754_v24 }
 0x815   :  { %12997 = vmatprep.mubr.msk.bf16.mxu0 %vm14297_vm1, %v17132_v34 }
 0x81a   :  { %13022 = vmatmul.mubr.msk.bf16.gmra.mxu1 %vm230_vm3, %v13759_v29 }
 0x81b   :  { %13025 = vmatprep.mubr.msk.bf16.mxu1 %vm14297_vm1, %v17132_v34 }
 0x81c   :  { %12998 = vmatmul.mubr.msk.bf16.gmra.mxu0 %vm230_vm3, %v13756_v58 }
 0x81d   :  { %13001 = vmatprep.mubr.msk.bf16.mxu0 %vm14297_vm1, %v17132_v34 }
 0x822   :  { %13026 = vmatmul.mubr.msk.bf16.gmra.mxu1 %vm230_vm3, %v13760_v10 }
 0x823   :  { %13029 = vmatprep.mubr.msk.bf16.mxu1 %vm14297_vm1, %v17132_v34 }
 0x824   :  { %13002 = vmatmul.mubr.msk.bf16.gmra.mxu0 %vm230_vm3, %v13758_v49 }
 0x825   :  { %11274 = vmatprep.mubr.msk.bf16.mxu0 %vm497_vm4, %v13764_v52 }
 0x82a   :  { %13030 = vmatmul.mubr.msk.bf16.gmra.mxu1 %vm230_vm3, %v13761_v44 }
 0x82b   :  { %11286 = vmatprep.mubr.msk.bf16.mxu1 %vm497_vm4, %v13767_v48 }
 0x892   :  { %v5118_v22 = vpop.f32.mrf.mxu1 }
 0x893   :  { %v5124_v43 = vadd.f32 %v5118_v22, %v5019_v45 }
 0x894   :  { %v12917_v1 = vpop.f32.mrf.mxu1  ;;  %v5227_v56 = vpop.f32.mrf.mxu0 }
 0x895   :  { %v5233_v51 = vadd.f32 %v5227_v56, %v5124_v43 }
 0x896   :  { %v5121_v46 = vpop.f32.mrf.mxu1  ;;  %v12937_v8 = vpop.f32.mrf.mxu0 }
 0x898   :  { %v12918_v55 = vpop.f32.mrf.mxu1  ;;  %v5230_v16 = vpop.f32.mrf.mxu0 }
 0x89a   :  { %v12938_v33 = vpop.f32.mrf.mxu0 }
 0x8b2   :  { %v5335_v2 = vpop.f32.mrf.mxu1 }
 0x8b3   :  { %v5341_v50 = vadd.f32 %v5335_v2, %v5233_v51 }
 0x8b4   :  { %v12957_v21 = vpop.f32.mrf.mxu1  ;;  %v5442_v36 = vpop.f32.mrf.mxu0 }
 0x8b5   :  { %v5448_v53 = vadd.f32 %v5442_v36, %v5341_v50 }
 0x8b6   :  { %v5338_v28 = vpop.f32.mrf.mxu1  ;;  %v12977_v42 = vpop.f32.mrf.mxu0 }
 0x8b7   :  { %5449 = vst [vmem:[#allocation13] sm:$0x1] %v5448_v53 }
 0x8b8   :  { %v12958_v38 = vpop.f32.mrf.mxu1  ;;  %v5445_v4 = vpop.f32.mrf.mxu0 }
 0x8ba   :  { %v12978_v54 = vpop.f32.mrf.mxu0  ;;  %v5680_v62 = vpop.f32.mrf.mxu1 }
 0x8bb   :  { %v5681_v25 = vadd.f32 %v15910_v37, %v5680_v62 }
 0x8bc   :  { %v15906_v57 = vpop.f32.mrf.mxu0  ;;  %v13007_v47 = vpop.f32.mrf.mxu1 }
 0x8bd   :  { %v5747_v7 = vmax.f32 %v5681_v25, 0.0 }
 0x8be   :  { %v12983_v17 = vpop.f32.mrf.mxu0  ;;  %v5683_v31 = vpop.f32.mrf.mxu1 }
 0x8bf   :  { %v5684_v59 = vadd.f32 %v15910_v37, %v5683_v31 }
 0x8c0   :  { %v15908_v6 = vpop.f32.mrf.mxu0  ;;  %v13008_v39 = vpop.f32.mrf.mxu1 }
 0x8c1   :  { %v5748_v23 = vmax.f32 %v5684_v59, 0.0 }
 0x8c2   :  { %v12984_v60 = vpop.f32.mrf.mxu0  ;;  %v5688_v12 = vpop.f32.mrf.mxu1 }
 0x8c3   :  { %v5689_v63 = vadd.f32 %v15910_v37, %v5688_v12  ;;  %v15925_v61 = vpack.c.bf16 %v5748_v23, %v5747_v7 }
 0x8c4   :  { %v15913_v15 = vpop.f32.mrf.mxu0  ;;  %v13011_v41 = vpop.f32.mrf.mxu1 }
 0x8c5   :  { %v5749_v18 = vmax.f32 %v5689_v63, 0.0 }
 0x8c6   :  { %v12987_v5 = vpop.f32.mrf.mxu0  ;;  %v5691_v35 = vpop.f32.mrf.mxu1 }
 0x8c7   :  { %v5692_v9 = vadd.f32 %v15910_v37, %v5691_v35 }
 0x8c8   :  { %v15918_v13 = vpop.f32.mrf.mxu0  ;;  %v13012_v14 = vpop.f32.mrf.mxu1 }
 0x8c9   :  { %v5750_v0 = vmax.f32 %v5692_v9, 0.0 }
 0x8ca   :  { %v12988_v26 = vpop.f32.mrf.mxu0  ;;  %v5696_v40 = vpop.f32.mrf.mxu1 }
 0x8cb   :  { %v15920_v3 = vpack.c.bf16 %v5750_v0, %v5749_v18  ;;  %v5697_v32 = vadd.f32 %v15910_v37, %v5696_v40 }
 0x8cc   :  { %v15923_v27 = vpop.f32.mrf.mxu0  ;;  %v13015_v30 = vpop.f32.mrf.mxu1 }
 0x8cd   :  { %5831 = vmatpush1.bf16.msra.mxu0 %v15920_v3  ;;  %5956 = vmatpush1.bf16.msra.mxu1 %v15920_v3  ;;  %v5751_v24 = vmax.f32 %v5697_v32, 0.0  ;;  %v5649_v40 = vadd.f32 %v15910_v37, %v15923_v27  ;;  %v5644_v30 = vadd.f32 %v15910_v37, %v15918_v13  ;;  %v5636_v27 = vadd.f32 %v15910_v37, %v15908_v6 }
 0x8ce   :  { %v12991_v20 = vpop.f32.mrf.mxu0  ;;  %5832 = vmatprep.subr.bf16.mxu0 %v17133_v19  ;;  %5957 = vmatprep.subr.bf16.mxu1 %v17133_v19  ;;  %v5699_v11 = vpop.f32.mrf.mxu1 }
 0x8cf   :  { %v5700_v29 = vadd.f32 %v15910_v37, %v5699_v11 }
 0x8d0   :  { %v5651_v58 = vpop.f32.mrf.mxu0  ;;  %v13016_v10 = vpop.f32.mrf.mxu1 }
 0x8d1   :  { %5833 = vmatpush1.bf16.msra.mxu0 %v15925_v61  ;;  %5958 = vmatpush1.bf16.msra.mxu1 %v15925_v61  ;;  %v5752_v49 = vmax.f32 %v5700_v29, 0.0  ;;  %v5652_v23 = vadd.f32 %v15910_v37, %v5651_v58  ;;  %v5739_v29 = vmax.f32 %v5649_v40, 0.0  ;;  %v5738_v58 = vmax.f32 %v5644_v30, 0.0  ;;  %v13797_v40 = vld [vmem:[#allocation5 + $0x90] ss:$8 sps:$4 sm:$0xff]  }
 0x8d2   :  { %v12992_v44 = vpop.f32.mrf.mxu0  ;;  %v15934_v22 = vpop.f32.mrf.mxu1  ;;  %5834 = vmatprep.subr.bf16.mxu0 %v17133_v19  ;;  %5959 = vmatprep.subr.bf16.mxu1 %v17133_v19  ;;  %v5633_v10 = vadd.f32 %v15910_v37, %v15906_v57  ;;  %v13800_v30 = vld [vmem:[#allocation5 + $0xa4] ss:$8 sps:$4 sm:$0xff]  }
 0x8d3   :  { %v15938_v1 = vpack.c.bf16 %v5752_v49, %v5751_v24  ;;  %v5740_v20 = vmax.f32 %v5652_v23, 0.0  ;;  %v5641_v24 = vadd.f32 %v15910_v37, %v15913_v15  ;;  %v5736_v15 = vmax.f32 %v5636_v27, 0.0  ;;  %v13794_v23 = vld [vmem:[#allocation5 + $0x94] ss:$8 sps:$4 sm:$0xff]  }
 0x8d4   :  { %v5656_v56 = vpop.f32.mrf.mxu0  ;;  %v13019_v46 = vpop.f32.mrf.mxu1  ;;  %v13806_v27 = vld [vmem:[#allocation5 + $0xb4] ss:$8 sps:$4 sm:$0xff]  }
 0x8d5   :  { %v5657_v9 = vadd.f32 %v15910_v37, %v5656_v56  ;;  %v15981_v13 = vpack.c.bf16 %v5740_v20, %v5739_v29  ;;  %v5737_v49 = vmax.f32 %v5641_v24, 0.0  ;;  %v5735_v46 = vmax.f32 %v5633_v10, 0.0  ;;  %v13802_v20 = vld [vmem:[#allocation5 + $0xe0] ss:$8 sps:$4 sm:$0xff]   ;;  %v13804_v29 = vld [vmem:[#allocation5 + $0xf4] ss:$8 sps:$4 sm:$0xff]  }
 0x8d6   :  { %v12995_v8 = vpop.f32.mrf.mxu0  ;;  %v15940_v52 = vpop.f32.mrf.mxu1  ;;  %v13803_v24 = vld [vmem:[#allocation5 + $0xa0] ss:$8 sps:$4 sm:$0xff]   ;;  %v13809_v10 = vld [vmem:[#allocation5 + $0xb0] ss:$8 sps:$4 sm:$0xff]  }
 0x8d7   :  { %v5741_v32 = vmax.f32 %v5657_v9, 0.0  ;;  %v15989_v6 = vpack.c.bf16 %v5738_v58, %v5737_v49  ;;  %v15995_v57 = vpack.c.bf16 %v5736_v15, %v5735_v46  ;;  %v13786_v9 = vld [vmem:[#allocation5 + $0x80] ss:$8 sps:$4 sm:$0xff]   ;;  %v13808_v58 = vld [vmem:[#allocation5 + $0xf0] ss:$8 sps:$4 sm:$0xff]  }
 0x8d8   :  { %v5659_v55 = vpop.f32.mrf.mxu0  ;;  %v13020_v16 = vpop.f32.mrf.mxu1  ;;  %v13812_v49 = vld [vmem:[#allocation5 + $0x104] ss:$8 sps:$4 sm:$0xff]   ;;  %v13816_v46 = vld [vmem:[#allocation5 + $0x154] ss:$8 sps:$4 sm:$0xff]  }
 0x8d9   :  { %v5660_v59 = vadd.f32 %v15910_v37, %v5659_v55  ;;  %v13815_v15 = vld [vmem:[#allocation5 + $0x144] ss:$8 sps:$4 sm:$0xff]  }
 0x8da   :  { %v12996_v48 = vpop.f32.mrf.mxu0  ;;  %v15942_v33 = vpop.f32.mrf.mxu1 }
 0x8db   :  { %v5742_v0 = vmax.f32 %v5660_v59, 0.0  ;;  %v13785_v59 = vld [vmem:[#allocation5 + $0x30] ss:$8 sps:$4 sm:$0xff]  }
 0x8dc   :  { %v5664_v45 = vpop.f32.mrf.mxu0  ;;  %v13023_v43 = vpop.f32.mrf.mxu1 }
 0x8dd   :  { %v5665_v12 = vadd.f32 %v15910_v37, %v5664_v45  ;;  %v15971_v11 = vpack.c.bf16 %v5742_v0, %v5741_v32  ;;  %v5713_v45 = vadd.f32 %v15910_v37, %v15942_v33  ;;  %v5708_v33 = vadd.f32 %v15910_v37, %v15940_v52  ;;  %v13762_v52 = vld [vmem:[#allocation5] ss:$8 sps:$4 sm:$0xff]   ;;  %v13796_v0 = vld [vmem:[#allocation5 + $0xd0] ss:$8 sps:$4 sm:$0xff]   ;;  %v13798_v32 = vld [vmem:[#allocation5 + $0xe4] ss:$8 sps:$4 sm:$0xff]  }
 0x8de   :  { %v12999_v51 = vpop.f32.mrf.mxu0  ;;  %v15944_v2 = vpop.f32.mrf.mxu1 }
 0x8df   :  { %v5743_v14 = vmax.f32 %v5665_v12, 0.0  ;;  %v5716_v43 = vadd.f32 %v15910_v37, %v15944_v2  ;;  %v13779_v12 = vld [vmem:[#allocation5 + $0x20] ss:$8 sps:$4 sm:$0xff]  }
 0x8e0   :  { %v5667_v50 = vpop.f32.mrf.mxu0  ;;  %v13024_v21 = vpop.f32.mrf.mxu1 }
 0x8e1   :  { %v5668_v17 = vadd.f32 %v15910_v37, %v5667_v50  ;;  %v5756_v2 = vmax.f32 %v5716_v43, 0.0  ;;  %v13826_v43 = vld [vmem:[#allocation5 + $0x160] ss:$8 sps:$4 sm:$0xff]  }
 0x8e2   :  { %v13000_v36 = vpop.f32.mrf.mxu0  ;;  %v15946_v53 = vpop.f32.mrf.mxu1 }
 0x8e3   :  { %v5744_v5 = vmax.f32 %v5668_v17, 0.0  ;;  %v5721_v8 = vadd.f32 %v15910_v37, %v15946_v53  ;;  %v5705_v36 = vadd.f32 %v15910_v37, %v15934_v22  ;;  %v5755_v53 = vmax.f32 %v5713_v45, 0.0  ;;  %v13773_v17 = vld [vmem:[#allocation5 + $0x10] ss:$8 sps:$4 sm:$0xff]   ;;  %v13824_v45 = vld [vmem:[#allocation5 + $0x124] ss:$8 sps:$4 sm:$0xff]  }
 0x8e4   :  { %v5672_v28 = vpop.f32.mrf.mxu0  ;;  %v13027_v42 = vpop.f32.mrf.mxu1 }
 0x8e5   :  { %v5673_v54 = vadd.f32 %v15910_v37, %v5672_v28  ;;  %v15961_v26 = vpack.c.bf16 %v5744_v5, %v5743_v14  ;;  %v5757_v51 = vmax.f32 %v5721_v8, 0.0  ;;  %v5753_v22 = vmax.f32 %v5705_v36, 0.0  ;;  %v13788_v5 = vld [vmem:[#allocation5 + $0x84] ss:$8 sps:$4 sm:$0xff]   ;;  %v13789_v14 = vld [vmem:[#allocation5 + $0xc0] ss:$8 sps:$4 sm:$0xff]  }
 0x8e6   :  { %v13003_v38 = vpop.f32.mrf.mxu0  ;;  %v5723_v4 = vpop.f32.mrf.mxu1  ;;  %v5754_v42 = vmax.f32 %v5708_v33, 0.0  ;;  %v13818_v8 = vld [vmem:[#allocation5 + $0x114] ss:$8 sps:$4 sm:$0xff]   ;;  %v13832_v33 = vld [vmem:[#allocation5 + $0x170] ss:$8 sps:$4 sm:$0xff]  }
 0x8e7   :  { %v5745_v63 = vmax.f32 %v5673_v54, 0.0  ;;  %v5724_v55 = vadd.f32 %v15910_v37, %v5723_v4  ;;  %v16026_v38 = vpack.c.bf16 %v5756_v2, %v5755_v53  ;;  %v13765_v4 = vld [vmem:[#allocation5 + $0x40] ss:$8 sps:$4 sm:$0xff]   ;;  %v13768_v54 = vld [vmem:[#allocation5 + $0x54] ss:$8 sps:$4 sm:$0xff]  }
 0x8e8   :  { %v5675_v62 = vpop.f32.mrf.mxu0  ;;  %v13028_v47 = vpop.f32.mrf.mxu1  ;;  %v13830_v36 = vld [vmem:[#allocation5 + $0x134] ss:$8 sps:$4 sm:$0xff]   ;;  %v13833_v53 = vld [vmem:[#allocation5 + $0x130] ss:$8 sps:$4 sm:$0xff]   ;;  %v13836_v2 = vld [vmem:[#allocation5 + $0x184] ss:$8 sps:$4 sm:$0xff]  }
 0x8e9   :  { %v5676_v31 = vadd.f32 %v15910_v37, %v5675_v62  ;;  %v5758_v50 = vmax.f32 %v5724_v55, 0.0  ;;  %v13770_v62 = vld [vmem:[#allocation5 + $0x14] ss:$8 sps:$4 sm:$0xff]   ;;  %v13772_v47 = vld [vmem:[#allocation5 + $0x50] ss:$8 sps:$4 sm:$0xff]  }
 0x8ea   :  { %v13004_v39 = vpop.f32.mrf.mxu0  ;;  %v5728_v60 = vpop.f32.mrf.mxu1  ;;  %v13820_v55 = vld [vmem:[#allocation5 + $0x150] ss:$8 sps:$4 sm:$0xff]  }
 0x8eb   :  { %v5746_v41 = vmax.f32 %v5676_v31, 0.0  ;;  %v5729_v44 = vadd.f32 %v15910_v37, %v5728_v60  ;;  %v16020_v28 = vpack.c.bf16 %v5758_v50, %v5757_v51  ;;  %v13774_v31 = vld [vmem:[#allocation5 + $0x64] ss:$8 sps:$4 sm:$0xff]   ;;  %v13778_v60 = vld [vmem:[#allocation5 + $0x60] ss:$8 sps:$4 sm:$0xff]  }
 0x8ec   :  { %v13031_v25 = vpop.f32.mrf.mxu1  ;;  %v13776_v39 = vld [vmem:[#allocation5 + $0x24] ss:$8 sps:$4 sm:$0xff]   ;;  %v13827_v51 = vld [vmem:[#allocation5 + $0x120] ss:$8 sps:$4 sm:$0xff]   ;;  %v13828_v50 = vld [vmem:[#allocation5 + $0x174] ss:$8 sps:$4 sm:$0xff]  }
 0x8ed   :  { %v15953_v35 = vpack.c.bf16 %v5746_v41, %v5745_v63  ;;  %v5759_v16 = vmax.f32 %v5729_v44, 0.0  ;;  %v13780_v63 = vld [vmem:[#allocation5 + $0x74] ss:$8 sps:$4 sm:$0xff]   ;;  %v13784_v25 = vld [vmem:[#allocation5 + $0x70] ss:$8 sps:$4 sm:$0xff]  }
 0x8ee   :  { %v5731_v18 = vpop.f32.mrf.mxu1  ;;  %v13782_v41 = vld [vmem:[#allocation5 + $0x34] ss:$8 sps:$4 sm:$0xff]   ;;  %v13810_v44 = vld [vmem:[#allocation5 + $0x100] ss:$8 sps:$4 sm:$0xff]  }
 0x8ef   :  { %5835 = vmatpush1.bf16.msra.mxu0 %v15953_v35  ;;  %5960 = vmatpush1.bf16.msra.mxu1 %v15953_v35  ;;  %v5732_v56 = vadd.f32 %v15910_v37, %v5731_v18  ;;  %v16032_v37 = vpack.c.bf16 %v5754_v42, %v5753_v22  ;;  %v13791_v18 = vld [vmem:[#allocation5 + $0xc4] ss:$8 sps:$4 sm:$0xff]   ;;  %v13846_v42 = vld [vmem:[#allocation7 + $0x78] sm:$0xff]  }
 0x8f0   :  { %5836 = vmatprep.subr.bf16.mxu0 %v17133_v19  ;;  %5961 = vmatprep.subr.bf16.mxu1 %v17133_v19  ;;  %v13032_v7 = vpop.f32.mrf.mxu1  ;;  %v13839_v22 = vld [vmem:[#allocation5 + $0x1c4] ss:$8 sps:$4 sm:$0xff]  }
 0x8f1   :  { %v5760_v48 = vmax.f32 %v5732_v56, 0.0  ;;  %v13792_v7 = vld [vmem:[#allocation5 + $0xd4] ss:$8 sps:$4 sm:$0xff]   ;;  %v13813_v56 = vld [vmem:[#allocation5 + $0x140] ss:$8 sps:$4 sm:$0xff]  }
 0x8f3   :  { %5837 = vmatpush1.bf16.msra.mxu0 %v15961_v26  ;;  %5962 = vmatpush1.bf16.msra.mxu1 %v15961_v26  ;;  %v16010_v21 = vpack.c.bf16 %v5760_v48, %v5759_v16  ;;  %v13821_v16 = vld [vmem:[#allocation5 + $0x110] ss:$8 sps:$4 sm:$0xff]   ;;  %v13822_v48 = vld [vmem:[#allocation5 + $0x164] ss:$8 sps:$4 sm:$0xff]  }
 0x8f4   :  { %5838 = vmatprep.subr.bf16.mxu0 %v17133_v19  ;;  %5963 = vmatprep.subr.bf16.mxu1 %v17133_v19 }
 0x8f7   :  { %5839 = vmatpush1.bf16.msra.mxu0 %v15971_v11  ;;  %5964 = vmatpush1.bf16.msra.mxu1 %v15971_v11 }
 0x8f8   :  { %5840 = vmatprep.subr.bf16.mxu0 %v17133_v19  ;;  %5965 = vmatprep.subr.bf16.mxu1 %v17133_v19 }
 0x8fb   :  { %5841 = vmatpush1.bf16.msra.mxu0 %v15981_v13  ;;  %5966 = vmatpush1.bf16.msra.mxu1 %v15981_v13 }
 0x8fc   :  { %5842 = vmatprep.subr.bf16.mxu0 %v17133_v19  ;;  %5967 = vmatprep.subr.bf16.mxu1 %v17133_v19 }
 0x8ff   :  { %5843 = vmatpush1.bf16.msra.mxu0 %v15989_v6  ;;  %5968 = vmatpush1.bf16.msra.mxu1 %v15989_v6 }
 0x900   :  { %5844 = vmatprep.subr.bf16.mxu0 %v17133_v19  ;;  %5969 = vmatprep.subr.bf16.mxu1 %v17133_v19 }
 0x903   :  { %5845 = vmatpush1.bf16.msra.mxu0 %v15995_v57  ;;  %5970 = vmatpush1.bf16.msra.mxu1 %v15995_v57 }
 0x904   :  { %5852 = vmatprep.subr.bf16.mxu0 %v17133_v19  ;;  %5977 = vmatprep.subr.bf16.mxu1 %v17133_v19 }
 0x907   :  { %5853 = vmatpush2.bf16.msra.mxu0 %v16010_v21  ;;  %5978 = vmatpush2.bf16.msra.mxu1 %v16010_v21 }
 0x908   :  { %5854 = vmatprep.subr.bf16.mxu0 %v17133_v19  ;;  %5979 = vmatprep.subr.bf16.mxu1 %v17133_v19 }
 0x90b   :  { %5855 = vmatpush2.bf16.msra.mxu0 %v16020_v28  ;;  %5980 = vmatpush2.bf16.msra.mxu1 %v16020_v28 }
 0x90c   :  { %5856 = vmatprep.subr.bf16.mxu0 %v17133_v19  ;;  %5981 = vmatprep.subr.bf16.mxu1 %v17133_v19 }
 0x90f   :  { %5857 = vmatpush2.bf16.msra.mxu0 %v16026_v38  ;;  %5982 = vmatpush2.bf16.msra.mxu1 %v16026_v38 }
 0x910   :  { %5858 = vmatprep.subr.bf16.mxu0 %v17133_v19  ;;  %5983 = vmatprep.subr.bf16.mxu1 %v17133_v19 }
 0x913   :  { %5859 = vmatpush2.bf16.msra.mxu0 %v16032_v37  ;;  %5984 = vmatpush2.bf16.msra.mxu1 %v16032_v37 }
 0x914   :  { %5860 = vmatprep.subr.bf16.mxu0 %v17133_v19  ;;  %5985 = vmatprep.subr.bf16.mxu1 %v17133_v19 }
 0x917   :  { %5861 = vmatpush2.bf16.msra.mxu0 %v15938_v1  ;;  %5986 = vmatpush2.bf16.msra.mxu1 %v15938_v1 }
 0x918   :  { %6080 = vmatprep.subr.bf16.mxu0 %v17133_v19  ;;  %6205 = vmatprep.subr.bf16.mxu1 %v17133_v19 }
 0x91a   :  { %5863 = vmatmul.mubr.bf16.vlgmr.msra.gmra.mxu0 %v13762_v52  ;;  %5988 = vmatmul.mubr.bf16.vlgmr.msra.gmra.mxu1 %v13765_v4  ;;  %v13834_v52 = vld [vmem:[#allocation5 + $0x180] ss:$8 sps:$4 sm:$0xff]  }
 0x91b   :  { %6081 = vmatpush1.bf16.msra.mxu0 %v15920_v3  ;;  %6206 = vmatpush1.bf16.msra.mxu1 %v15920_v3  ;;  %v13837_v4 = vld [vmem:[#allocation5 + $0x1c0] ss:$8 sps:$4 sm:$0xff]  }
 0x91c   :  { %6082 = vmatprep.subr.bf16.mxu0 %v17133_v19  ;;  %6207 = vmatprep.subr.bf16.mxu1 %v17133_v19 }
 0x91d   :  { %11287 = vmatprep.mubr.msk.bf16.mxu1 %vm497_vm4, %v13768_v54  ;;  %11275 = vmatprep.mubr.msk.bf16.mxu0 %vm497_vm4, %v13770_v62  ;;  %v13840_v54 = vld [vmem:[#allocation5 + $0x1d4] ss:$8 sps:$4 sm:$0xff]  }
 0x91e   :  { %v13842_v62 = vld [vmem:[#allocation5 + $0x194] ss:$8 sps:$4 sm:$0xff]  }
 0x91f   :  { %6083 = vmatpush1.bf16.msra.mxu0 %v15925_v61  ;;  %6208 = vmatpush1.bf16.msra.mxu1 %v15925_v61 }
 0x920   :  { %6084 = vmatprep.subr.bf16.mxu0 %v17133_v19  ;;  %6209 = vmatprep.subr.bf16.mxu1 %v17133_v19 }
 0x922   :  { %5996 = vmatmul.mubr.bf16.gmra.mxu1 %v13772_v47  ;;  %5871 = vmatmul.mubr.bf16.gmra.mxu0 %v13773_v17  ;;  %v13847_v47 = vld [vmem:[#allocation7 + $0x38] sm:$0xff]   ;;  %v13853_v17 = vld [vmem:[#allocation7 + $0x70] sm:$0xff]  }
 0x923   :  { %6085 = vmatpush1.bf16.msra.mxu0 %v15953_v35  ;;  %6210 = vmatpush1.bf16.msra.mxu1 %v15953_v35 }
 0x924   :  { %6086 = vmatprep.subr.bf16.mxu0 %v17133_v19  ;;  %6211 = vmatprep.subr.bf16.mxu1 %v17133_v19 }
 0x925   :  { %11288 = vmatprep.mubr.msk.bf16.mxu1 %vm497_vm4, %v13774_v31  ;;  %11276 = vmatprep.mubr.msk.bf16.mxu0 %vm497_vm4, %v13776_v39  ;;  %v13855_v31 = vld [vmem:[#allocation7 + $0x30] sm:$0xff]  }
 0x926   :  { %v13844_v39 = vld [vmem:[#allocation5 + $0x1d0] ss:$8 sps:$4 sm:$0xff]  }
 0x927   :  { %6087 = vmatpush1.bf16.msra.mxu0 %v15961_v26  ;;  %6212 = vmatpush1.bf16.msra.mxu1 %v15961_v26 }
 0x928   :  { %6088 = vmatprep.subr.bf16.mxu0 %v17133_v19  ;;  %6213 = vmatprep.subr.bf16.mxu1 %v17133_v19 }
 0x92a   :  { %6004 = vmatmul.mubr.bf16.gmra.mxu1 %v13778_v60  ;;  %5879 = vmatmul.mubr.bf16.gmra.mxu0 %v13779_v12  ;;  %v13845_v60 = vld [vmem:[#allocation5 + $0x190] ss:$8 sps:$4 sm:$0xff]   ;;  %v13848_v12 = vld [vmem:[#allocation5 + $0x1e4] ss:$8 sps:$4 sm:$0xff]  }
 0x92b   :  { %6089 = vmatpush1.bf16.msra.mxu0 %v15971_v11  ;;  %6214 = vmatpush1.bf16.msra.mxu1 %v15971_v11 }
 0x92c   :  { %6090 = vmatprep.subr.bf16.mxu0 %v17133_v19  ;;  %6215 = vmatprep.subr.bf16.mxu1 %v17133_v19 }
 0x92d   :  { %11289 = vmatprep.mubr.msk.bf16.mxu1 %vm497_vm4, %v13780_v63  ;;  %11277 = vmatprep.mubr.msk.bf16.mxu0 %vm497_vm4, %v13782_v41  ;;  %v13850_v63 = vld [vmem:[#allocation5 + $0x1a4] ss:$8 sps:$4 sm:$0xff]  }
 0x92e   :  { %v13856_v41 = vld [vmem:[#allocation7 + $0x68] sm:$0xff]  }
 0x92f   :  { %6091 = vmatpush1.bf16.msra.mxu0 %v15981_v13  ;;  %6216 = vmatpush1.bf16.msra.mxu1 %v15981_v13 }
 0x930   :  { %6092 = vmatprep.subr.bf16.mxu0 %v17133_v19  ;;  %6217 = vmatprep.subr.bf16.mxu1 %v17133_v19 }
 0x932   :  { %6012 = vmatmul.mubr.bf16.gmra.mxu1 %v13784_v25  ;;  %5887 = vmatmul.mubr.bf16.gmra.mxu0 %v13785_v59  ;;  %v13863_v25 = vld [vmem:[#allocation7 + $0x60] sm:$0xff]  }
 0x933   :  { %6093 = vmatpush1.bf16.msra.mxu0 %v15989_v6  ;;  %6218 = vmatpush1.bf16.msra.mxu1 %v15989_v6  ;;  %v13854_v59 = vld [vmem:[#allocation5 + $0x1a0] ss:$8 sps:$4 sm:$0xff]  }
 0x934   :  { %6094 = vmatprep.subr.bf16.mxu0 %v17133_v19  ;;  %6219 = vmatprep.subr.bf16.mxu1 %v17133_v19 }
 0x935   :  { %11298 = vmatprep.mubr.msk.bf16.mxu0 %vm497_vm4, %v13788_v5  ;;  %11310 = vmatprep.mubr.msk.bf16.mxu1 %vm497_vm4, %v13791_v18  ;;  %v13858_v5 = vld [vmem:[#allocation5 + $0x1f4] ss:$8 sps:$4 sm:$0xff]  }
 0x936   :  { %v13860_v18 = vld [vmem:[#allocation5 + $0x1b4] ss:$8 sps:$4 sm:$0xff]  }
 0x937   :  { %6095 = vmatpush1.bf16.msra.mxu0 %v15995_v57  ;;  %6220 = vmatpush1.bf16.msra.mxu1 %v15995_v57 }
 0x938   :  { %6102 = vmatprep.subr.bf16.mxu0 %v17133_v19  ;;  %6227 = vmatprep.subr.bf16.mxu1 %v17133_v19 }
 0x93b   :  { %6103 = vmatpush2.bf16.msra.mxu0 %v16010_v21  ;;  %6228 = vmatpush2.bf16.msra.mxu1 %v16010_v21 }
 0x93c   :  { %6104 = vmatprep.subr.bf16.mxu0 %v17133_v19  ;;  %6229 = vmatprep.subr.bf16.mxu1 %v17133_v19 }
 0x93f   :  { %6105 = vmatpush2.bf16.msra.mxu0 %v16020_v28  ;;  %6230 = vmatpush2.bf16.msra.mxu1 %v16020_v28 }
 0x940   :  { %6106 = vmatprep.subr.bf16.mxu0 %v17133_v19  ;;  %6231 = vmatprep.subr.bf16.mxu1 %v17133_v19 }
 0x943   :  { %6107 = vmatpush2.bf16.msra.mxu0 %v16026_v38  ;;  %6232 = vmatpush2.bf16.msra.mxu1 %v16026_v38 }
 0x944   :  { %6108 = vmatprep.subr.bf16.mxu0 %v17133_v19  ;;  %6233 = vmatprep.subr.bf16.mxu1 %v17133_v19 }
 0x947   :  { %6109 = vmatpush2.bf16.msra.mxu0 %v16032_v37  ;;  %6234 = vmatpush2.bf16.msra.mxu1 %v16032_v37 }
 0x948   :  { %6110 = vmatprep.subr.bf16.mxu0 %v17133_v19  ;;  %6235 = vmatprep.subr.bf16.mxu1 %v17133_v19 }
 0x94b   :  { %6111 = vmatpush2.bf16.msra.mxu0 %v15938_v1  ;;  %6236 = vmatpush2.bf16.msra.mxu1 %v15938_v1 }
 0x94c   :  { %6330 = vmatprep.subr.bf16.mxu0 %v17133_v19  ;;  %6455 = vmatprep.subr.bf16.mxu1 %v17133_v19 }
 0x94e   :  { %6113 = vmatmul.mubr.bf16.vlgmr.msra.gmra.mxu0 %v13786_v9  ;;  %6238 = vmatmul.mubr.bf16.vlgmr.msra.gmra.mxu1 %v13789_v14  ;;  %v13865_v9 = vld [vmem:[#allocation7 + $0x20] sm:$0xff]   ;;  %v13867_v14 = vld [vmem:[#allocation7 + $0x18] sm:$0xff]  }
 0x94f   :  { %6331 = vmatpush1.bf16.msra.mxu0 %v15920_v3  ;;  %6456 = vmatpush1.bf16.msra.mxu1 %v15920_v3 }
 0x950   :  { %6332 = vmatprep.subr.bf16.mxu0 %v17133_v19  ;;  %6457 = vmatprep.subr.bf16.mxu1 %v17133_v19 }
 0x951   :  { %11311 = vmatprep.mubr.msk.bf16.mxu1 %vm497_vm4, %v13792_v7  ;;  %11299 = vmatprep.mubr.msk.bf16.mxu0 %vm497_vm4, %v13794_v23  ;;  %v13864_v7 = vld [vmem:[#allocation5 + $0x1b0] ss:$8 sps:$4 sm:$0xff]  }
 0x952   :  { %v13868_v23 = vld [vmem:[#allocation7 + $0x50] sm:$0xff]  }
 0x953   :  { %6333 = vmatpush1.bf16.msra.mxu0 %v15925_v61  ;;  %6458 = vmatpush1.bf16.msra.mxu1 %v15925_v61 }
 0x954   :  { %6334 = vmatprep.subr.bf16.mxu0 %v17133_v19  ;;  %6459 = vmatprep.subr.bf16.mxu1 %v17133_v19 }
 0x956   :  { %6246 = vmatmul.mubr.bf16.gmra.mxu1 %v13796_v0  ;;  %6121 = vmatmul.mubr.bf16.gmra.mxu0 %v13797_v40  ;;  %v13876_v0 = vld [vmem:[#allocation5 + $0x204] ss:$8 sps:$4 sm:$0xff]   ;;  %v13869_v40 = vld [vmem:[#allocation7 + $0x10] sm:$0xff]  }
 0x957   :  { %6335 = vmatpush1.bf16.msra.mxu0 %v15953_v35  ;;  %6460 = vmatpush1.bf16.msra.mxu1 %v15953_v35 }
 0x958   :  { %6336 = vmatprep.subr.bf16.mxu0 %v17133_v19  ;;  %6461 = vmatprep.subr.bf16.mxu1 %v17133_v19 }
 0x959   :  { %11312 = vmatprep.mubr.msk.bf16.mxu1 %vm497_vm4, %v13798_v32  ;;  %11300 = vmatprep.mubr.msk.bf16.mxu0 %vm497_vm4, %v13800_v30  ;;  %v13871_v32 = vld [vmem:[#allocation7 + $0x8] sm:$0xff]   ;;  %v13873_v30 = vld [vmem:[#allocation7] sm:$0xff]  }
 0x95b   :  { %6337 = vmatpush1.bf16.msra.mxu0 %v15961_v26  ;;  %6462 = vmatpush1.bf16.msra.mxu1 %v15961_v26 }
 0x95c   :  { %6338 = vmatprep.subr.bf16.mxu0 %v17133_v19  ;;  %6463 = vmatprep.subr.bf16.mxu1 %v17133_v19 }
 0x95e   :  { %6254 = vmatmul.mubr.bf16.gmra.mxu1 %v13802_v20  ;;  %6129 = vmatmul.mubr.bf16.gmra.mxu0 %v13803_v24  ;;  %v13902_v20 = vld [vmem:[#allocation7 + $0x178] sm:$0xff]  }
 0x95f   :  { %6339 = vmatpush1.bf16.msra.mxu0 %v15971_v11  ;;  %6464 = vmatpush1.bf16.msra.mxu1 %v15971_v11 }
 0x960   :  { %6340 = vmatprep.subr.bf16.mxu0 %v17133_v19  ;;  %6465 = vmatprep.subr.bf16.mxu1 %v17133_v19 }
 0x961   :  { %11313 = vmatprep.mubr.msk.bf16.mxu1 %vm497_vm4, %v13804_v29  ;;  %11301 = vmatprep.mubr.msk.bf16.mxu0 %vm497_vm4, %v13806_v27 }
 0x963   :  { %6341 = vmatpush1.bf16.msra.mxu0 %v15981_v13  ;;  %6466 = vmatpush1.bf16.msra.mxu1 %v15981_v13 }
 0x964   :  { %6342 = vmatprep.subr.bf16.mxu0 %v17133_v19  ;;  %6467 = vmatprep.subr.bf16.mxu1 %v17133_v19 }
 0x966   :  { %6262 = vmatmul.mubr.bf16.gmra.mxu1 %v13808_v58  ;;  %6137 = vmatmul.mubr.bf16.gmra.mxu0 %v13809_v10 }
 0x967   :  { %6343 = vmatpush1.bf16.msra.mxu0 %v15989_v6  ;;  %6468 = vmatpush1.bf16.msra.mxu1 %v15989_v6 }
 0x968   :  { %6344 = vmatprep.subr.bf16.mxu0 %v17133_v19  ;;  %6469 = vmatprep.subr.bf16.mxu1 %v17133_v19 }
 0x969   :  { %11322 = vmatprep.mubr.msk.bf16.mxu0 %vm497_vm4, %v13812_v49  ;;  %11334 = vmatprep.mubr.msk.bf16.mxu1 %vm497_vm4, %v13815_v15  ;;  %v13903_v15 = vld [vmem:[#allocation7 + $0x138] sm:$0xff]  }
 0x96b   :  { %6345 = vmatpush1.bf16.msra.mxu0 %v15995_v57  ;;  %6470 = vmatpush1.bf16.msra.mxu1 %v15995_v57 }
 0x96c   :  { %6352 = vmatprep.subr.bf16.mxu0 %v17133_v19  ;;  %6477 = vmatprep.subr.bf16.mxu1 %v17133_v19 }
 0x96f   :  { %6353 = vmatpush2.bf16.msra.mxu0 %v16010_v21  ;;  %6478 = vmatpush2.bf16.msra.mxu1 %v16010_v21 }
 0x970   :  { %6354 = vmatprep.subr.bf16.mxu0 %v17133_v19  ;;  %6479 = vmatprep.subr.bf16.mxu1 %v17133_v19 }
 0x973   :  { %6355 = vmatpush2.bf16.msra.mxu0 %v16020_v28  ;;  %6480 = vmatpush2.bf16.msra.mxu1 %v16020_v28 }
 0x974   :  { %6356 = vmatprep.subr.bf16.mxu0 %v17133_v19  ;;  %6481 = vmatprep.subr.bf16.mxu1 %v17133_v19 }
 0x977   :  { %6357 = vmatpush2.bf16.msra.mxu0 %v16026_v38  ;;  %6482 = vmatpush2.bf16.msra.mxu1 %v16026_v38 }
 0x978   :  { %6358 = vmatprep.subr.bf16.mxu0 %v17133_v19  ;;  %6483 = vmatprep.subr.bf16.mxu1 %v17133_v19 }
 0x97b   :  { %6359 = vmatpush2.bf16.msra.mxu0 %v16032_v37  ;;  %6484 = vmatpush2.bf16.msra.mxu1 %v16032_v37 }
 0x97c   :  { %6360 = vmatprep.subr.bf16.mxu0 %v17133_v19  ;;  %6485 = vmatprep.subr.bf16.mxu1 %v17133_v19 }
 0x97f   :  { %6361 = vmatpush2.bf16.msra.mxu0 %v15938_v1  ;;  %6486 = vmatpush2.bf16.msra.mxu1 %v15938_v1 }
 0x980   :  { %6580 = vmatprep.subr.bf16.mxu0 %v17133_v19  ;;  %6705 = vmatprep.subr.bf16.mxu1 %v17133_v19 }
 0x982   :  { %6363 = vmatmul.mubr.bf16.vlgmr.msra.gmra.mxu0 %v13810_v44  ;;  %6488 = vmatmul.mubr.bf16.vlgmr.msra.gmra.mxu1 %v13813_v56  ;;  %v13904_v56 = vld [vmem:[#allocation7 + $0x170] sm:$0xff]  }
 0x983   :  { %6581 = vmatpush1.bf16.msra.mxu0 %v15920_v3  ;;  %6706 = vmatpush1.bf16.msra.mxu1 %v15920_v3 }
 0x984   :  { %6582 = vmatprep.subr.bf16.mxu0 %v17133_v19  ;;  %6707 = vmatprep.subr.bf16.mxu1 %v17133_v19 }
 0x985   :  { %11335 = vmatprep.mubr.msk.bf16.mxu1 %vm497_vm4, %v13816_v46  ;;  %11323 = vmatprep.mubr.msk.bf16.mxu0 %vm497_vm4, %v13818_v8  ;;  %v13905_v8 = vld [vmem:[#allocation7 + $0x130] sm:$0xff]  }
 0x987   :  { %6583 = vmatpush1.bf16.msra.mxu0 %v15925_v61  ;;  %6708 = vmatpush1.bf16.msra.mxu1 %v15925_v61 }
 0x988   :  { %6584 = vmatprep.subr.bf16.mxu0 %v17133_v19  ;;  %6709 = vmatprep.subr.bf16.mxu1 %v17133_v19 }
 0x98a   :  { %6496 = vmatmul.mubr.bf16.gmra.mxu1 %v13820_v55  ;;  %6371 = vmatmul.mubr.bf16.gmra.mxu0 %v13821_v16 }
 0x98b   :  { %6585 = vmatpush1.bf16.msra.mxu0 %v15953_v35  ;;  %6710 = vmatpush1.bf16.msra.mxu1 %v15953_v35 }
 0x98c   :  { %6586 = vmatprep.subr.bf16.mxu0 %v17133_v19  ;;  %6711 = vmatprep.subr.bf16.mxu1 %v17133_v19 }
 0x98d   :  { %11336 = vmatprep.mubr.msk.bf16.mxu1 %vm497_vm4, %v13822_v48  ;;  %11324 = vmatprep.mubr.msk.bf16.mxu0 %vm497_vm4, %v13824_v45  ;;  %v13880_v48 = vld [vmem:[#allocation7 + $0xf8] sm:$0xff]   ;;  %v13874_v45 = vld [vmem:[#allocation5 + $0x200] ss:$8 sps:$4 sm:$0xff]  }
 0x98f   :  { %6587 = vmatpush1.bf16.msra.mxu0 %v15961_v26  ;;  %6712 = vmatpush1.bf16.msra.mxu1 %v15961_v26 }
 0x990   :  { %6588 = vmatprep.subr.bf16.mxu0 %v17133_v19  ;;  %6713 = vmatprep.subr.bf16.mxu1 %v17133_v19 }
 0x992   :  { %6504 = vmatmul.mubr.bf16.gmra.mxu1 %v13826_v43  ;;  %6379 = vmatmul.mubr.bf16.gmra.mxu0 %v13827_v51 }
 0x993   :  { %6589 = vmatpush1.bf16.msra.mxu0 %v15971_v11  ;;  %6714 = vmatpush1.bf16.msra.mxu1 %v15971_v11 }
 0x994   :  { %6590 = vmatprep.subr.bf16.mxu0 %v17133_v19  ;;  %6715 = vmatprep.subr.bf16.mxu1 %v17133_v19 }
 0x995   :  { %11337 = vmatprep.mubr.msk.bf16.mxu1 %vm497_vm4, %v13828_v50  ;;  %11325 = vmatprep.mubr.msk.bf16.mxu0 %vm497_vm4, %v13830_v36 }
 0x997   :  { %6591 = vmatpush1.bf16.msra.mxu0 %v15981_v13  ;;  %6716 = vmatpush1.bf16.msra.mxu1 %v15981_v13 }
 0x998   :  { %6592 = vmatprep.subr.bf16.mxu0 %v17133_v19  ;;  %6717 = vmatprep.subr.bf16.mxu1 %v17133_v19 }
 0x99a   :  { %6512 = vmatmul.mubr.bf16.gmra.mxu1 %v13832_v33  ;;  %6387 = vmatmul.mubr.bf16.gmra.mxu0 %v13833_v53  ;;  %v13877_v33 = vld [vmem:[#allocation5 + $0x214] ss:$8 sps:$4 sm:$0xff]  }
 0x99b   :  { %6593 = vmatpush1.bf16.msra.mxu0 %v15989_v6  ;;  %6718 = vmatpush1.bf16.msra.mxu1 %v15989_v6  ;;  %v13881_v53 = vld [vmem:[#allocation7 + $0xb8] sm:$0xff]  }
 0x99c   :  { %6594 = vmatprep.subr.bf16.mxu0 %v17133_v19  ;;  %6719 = vmatprep.subr.bf16.mxu1 %v17133_v19 }
 0x99d   :  { %11346 = vmatprep.mubr.msk.bf16.mxu0 %vm497_vm4, %v13836_v2  ;;  %11358 = vmatprep.mubr.msk.bf16.mxu1 %vm497_vm4, %v13839_v22  ;;  %v13885_v22 = vld [vmem:[#allocation7 + $0xf0] sm:$0xff]  }
 0x99f   :  { %6595 = vmatpush1.bf16.msra.mxu0 %v15995_v57  ;;  %6720 = vmatpush1.bf16.msra.mxu1 %v15995_v57 }
 0x9a0   :  { %6602 = vmatprep.subr.bf16.mxu0 %v17133_v19  ;;  %6727 = vmatprep.subr.bf16.mxu1 %v17133_v19 }
 0x9a3   :  { %6603 = vmatpush2.bf16.msra.mxu0 %v16010_v21  ;;  %6728 = vmatpush2.bf16.msra.mxu1 %v16010_v21 }
 0x9a4   :  { %6604 = vmatprep.subr.bf16.mxu0 %v17133_v19  ;;  %6729 = vmatprep.subr.bf16.mxu1 %v17133_v19 }
 0x9a7   :  { %6605 = vmatpush2.bf16.msra.mxu0 %v16020_v28  ;;  %6730 = vmatpush2.bf16.msra.mxu1 %v16020_v28 }
 0x9a8   :  { %6606 = vmatprep.subr.bf16.mxu0 %v17133_v19  ;;  %6731 = vmatprep.subr.bf16.mxu1 %v17133_v19 }
 0x9ab   :  { %6607 = vmatpush2.bf16.msra.mxu0 %v16026_v38  ;;  %6732 = vmatpush2.bf16.msra.mxu1 %v16026_v38 }
 0x9ac   :  { %6608 = vmatprep.subr.bf16.mxu0 %v17133_v19  ;;  %6733 = vmatprep.subr.bf16.mxu1 %v17133_v19 }
 0x9af   :  { %6609 = vmatpush2.bf16.msra.mxu0 %v16032_v37  ;;  %6734 = vmatpush2.bf16.msra.mxu1 %v16032_v37 }
 0x9b0   :  { %6610 = vmatprep.subr.bf16.mxu0 %v17133_v19  ;;  %6735 = vmatprep.subr.bf16.mxu1 %v17133_v19 }
 0x9b3   :  { %6611 = vmatpush2.bf16.msra.mxu0 %v15938_v1  ;;  %6736 = vmatpush2.bf16.msra.mxu1 %v15938_v1 }
 0x9b4   :  { %6830 = vmatprep.subr.bf16.mxu0 %v17133_v19  ;;  %12154 = vmatprep.subr.bf16.mxu1 %v13846_v42  ;;  %v13908_v42 = vld [vmem:[#allocation7 + $0x160] sm:$0xff]  }
 0x9b6   :  { %6613 = vmatmul.mubr.bf16.vlgmr.msra.gmra.mxu0 %v13834_v52  ;;  %6738 = vmatmul.mubr.bf16.vlgmr.msra.gmra.mxu1 %v13837_v4 }
 0x9b7   :  { %6831 = vmatpush1.bf16.msra.mxu0 %v15920_v3  ;;  %11359 = vmatprep.mubr.msk.bf16.mxu1 %vm497_vm4, %v13840_v54  ;;  %v13857_v3 = vld [vmem:[#allocation7 + $0x28] sm:$0xff]  }
 0x9b8   :  { %6832 = vmatprep.subr.bf16.mxu0 %v17133_v19  ;;  %11347 = vmatprep.mubr.msk.bf16.mxu0 %vm497_vm4, %v13842_v62 }
 0x9b9   :  { %12155 = vmatpush3.bf16.msra.mxu1 %v13847_v47  ;;  %v13887_v47 = vld [vmem:[#allocation7 + $0xe8] sm:$0xff]  }
 0x9ba   :  { %12156 = vmatprep.subr.bf16.mxu1 %v13853_v17  ;;  %v13909_v17 = vld [vmem:[#allocation7 + $0x120] sm:$0xff]  }
 0x9bb   :  { %6833 = vmatpush1.bf16.msra.mxu0 %v15925_v61  ;;  %v13852_v61 = vld [vmem:[#allocation5 + $0x1e0] ss:$8 sps:$4 sm:$0xff]  }
 0x9bc   :  { %6834 = vmatprep.subr.bf16.mxu0 %v17133_v19 }
 0x9bd   :  { %12157 = vmatpush3.bf16.msra.mxu1 %v13855_v31  ;;  %v13910_v31 = vld [vmem:[#allocation7 + $0x158] sm:$0xff]  }
 0x9be   :  { %6746 = vmatmul.mubr.bf16.gmra.mxu1 %v13844_v39  ;;  %6621 = vmatmul.mubr.bf16.gmra.mxu0 %v13845_v60  ;;  %v13879_v39 = vld [vmem:[#allocation5 + $0x210] ss:$8 sps:$4 sm:$0xff]  }
 0x9bf   :  { %6835 = vmatpush1.bf16.msra.mxu0 %v15953_v35  ;;  %11360 = vmatprep.mubr.msk.bf16.mxu1 %vm497_vm4, %v13848_v12  ;;  %v13866_v35 = vld [vmem:[#allocation7 + $0x58] sm:$0xff]  }
 0x9c0   :  { %6836 = vmatprep.subr.bf16.mxu0 %v17133_v19  ;;  %11348 = vmatprep.mubr.msk.bf16.mxu0 %vm497_vm4, %v13850_v63 }
 0x9c1   :  { %12158 = vmatprep.subr.bf16.mxu1 %v13856_v41 }
 0x9c2   :  { %12159 = vmatpush3.bf16.msra.mxu1 %v13857_v3  ;;  %v13882_v3 = vld [vmem:[#allocation5 + $0x224] ss:$8 sps:$4 sm:$0xff]  }
 0x9c3   :  { %6837 = vmatpush1.bf16.msra.mxu0 %v15961_v26  ;;  %12160 = vmatprep.subr.bf16.mxu1 %v13863_v25  ;;  %v13862_v26 = vld [vmem:[#allocation5 + $0x1f0] ss:$8 sps:$4 sm:$0xff]   ;;  %v13888_v25 = vld [vmem:[#allocation7 + $0xa8] sm:$0xff]  }
 0x9c4   :  { %6838 = vmatprep.subr.bf16.mxu0 %v17133_v19 }
 0x9c6   :  { %6754 = vmatmul.mubr.bf16.gmra.mxu1 %v13852_v61  ;;  %6629 = vmatmul.mubr.bf16.gmra.mxu0 %v13854_v59 }
 0x9c7   :  { %6839 = vmatpush1.bf16.msra.mxu0 %v15971_v11  ;;  %11361 = vmatprep.mubr.msk.bf16.mxu1 %vm497_vm4, %v13858_v5  ;;  %v13870_v11 = vld [vmem:[#allocation7 + $0x48] sm:$0xff]   ;;  %v13892_v5 = vld [vmem:[#allocation7 + $0xe0] sm:$0xff]  }
 0x9c8   :  { %6840 = vmatprep.subr.bf16.mxu0 %v17133_v19  ;;  %11349 = vmatprep.mubr.msk.bf16.mxu0 %vm497_vm4, %v13860_v18  ;;  %v13911_v18 = vld [vmem:[#allocation7 + $0x118] sm:$0xff]  }
 0x9c9   :  { %12161 = vmatpush3.bf16.msra.mxu1 %v13865_v9  ;;  %v13912_v9 = vld [vmem:[#allocation7 + $0x150] sm:$0xff]  }
 0x9ca   :  { %12162 = vmatprep.subr.bf16.mxu1 %v13866_v35 }
 0x9cb   :  { %6841 = vmatpush1.bf16.msra.mxu0 %v15981_v13  ;;  %v13872_v13 = vld [vmem:[#allocation7 + $0x40] sm:$0xff]  }
 0x9cc   :  { %6842 = vmatprep.subr.bf16.mxu0 %v17133_v19 }
 0x9cd   :  { %12163 = vmatpush3.bf16.msra.mxu1 %v13867_v14 }
 0x9ce   :  { %6762 = vmatmul.mubr.bf16.gmra.mxu1 %v13862_v26  ;;  %6637 = vmatmul.mubr.bf16.gmra.mxu0 %v13864_v7  ;;  %v13893_v26 = vld [vmem:[#allocation7 + $0xa0] sm:$0xff]  }
 0x9cf   :  { %6843 = vmatpush1.bf16.msra.mxu0 %v15989_v6  ;;  %12164 = vmatprep.subr.bf16.mxu1 %v13868_v23 }
 0x9d0   :  { %6844 = vmatprep.subr.bf16.mxu0 %v17133_v19  ;;  %11370 = vmatprep.mubr.msk.bf16.mxu0 %vm497_vm4, %v13876_v0  ;;  %v13894_v0 = vld [vmem:[#allocation7 + $0xd8] sm:$0xff]  }
 0x9d1   :  { %12165 = vmatpush3.bf16.msra.mxu1 %v13869_v40  ;;  %v13913_v40 = vld [vmem:[#allocation7 + $0x110] sm:$0xff]  }
 0x9d2   :  { %12166 = vmatprep.subr.bf16.mxu1 %v13870_v11  ;;  %v13914_v11 = vld [vmem:[#allocation7 + $0x148] sm:$0xff]  }
 0x9d3   :  { %6845 = vmatpush1.bf16.msra.mxu0 %v15995_v57 }
 0x9d4   :  { %6852 = vmatprep.subr.bf16.mxu0 %v17133_v19 }
 0x9d5   :  { %12167 = vmatpush3.bf16.msra.mxu1 %v13871_v32  ;;  %v13884_v32 = vld [vmem:[#allocation5 + $0x220] ss:$8 sps:$4 sm:$0xff]  }
 0x9d6   :  { %12168 = vmatprep.subr.bf16.mxu1 %v13872_v13 }
 0x9d7   :  { %6853 = vmatpush2.bf16.msra.mxu0 %v16010_v21 }
 0x9d8   :  { %6854 = vmatprep.subr.bf16.mxu0 %v17133_v19 }
 0x9d9   :  { %12169 = vmatpush3.bf16.msra.mxu1 %v13873_v30 }
 0x9da   :  { %v5864_v6 = vpop.f32.mrf.mxu0  ;;  %v5989_v24 = vpop.f32.mrf.mxu1  ;;  %12234 = vmatprep.subr.bf16.mxu1 %v13902_v20 }
 0x9db   :  { %6855 = vmatpush2.bf16.msra.mxu0 %v16020_v28 }
 0x9dc   :  { %v5866_v29 = vpop.f32.mrf.mxu0  ;;  %v5991_v27 = vpop.f32.mrf.mxu1  ;;  %6856 = vmatprep.subr.bf16.mxu0 %v17133_v19 }
 0x9dd   :  { %v13895_v29 = vld [vmem:[#allocation7 + $0x98] sm:$0xff]  }
 0x9de   :  { %v5867_v57 = vpop.f32.mrf.mxu0  ;;  %v5992_v58 = vpop.f32.mrf.mxu1 }
 0x9df   :  { %v5895_v10 = vpack.c.bf16 %v5867_v57, %v5864_v6  ;;  %v6020_v49 = vpack.c.bf16 %v5992_v58, %v5989_v24  ;;  %6857 = vmatpush2.bf16.msra.mxu0 %v16026_v38  ;;  %v13906_v38 = vld [vmem:[#allocation7 + $0x168] sm:$0xff]   ;;  %v13889_v24 = vld [vmem:[#allocation5 + $0x234] ss:$8 sps:$4 sm:$0xff]  }
 0x9e0   :  { %v5869_v21 = vpop.f32.mrf.mxu0  ;;  %6858 = vmatprep.subr.bf16.mxu0 %v17133_v19  ;;  %v5994_v44 = vpop.f32.mrf.mxu1  ;;  %v13896_v57 = vld [vmem:[#allocation7 + $0xd0] sm:$0xff]  }
 0x9e1   :  { %7514 = vmatprep.mubr.bf16.mxu1 %v6020_v49  ;;  %v13916_v49 = vld [vmem:[#allocation7 + $0x140] sm:$0xff]   ;;  %v13898_v21 = vld [vmem:[#allocation7 + $0xc8] sm:$0xff]  }
 0x9e2   :  { %7515 = vmatmul.mubr.bf16.vlgmr.msra.gmra.mxu1 %v5895_v10  ;;  %v5997_v46 = vpop.f32.mrf.mxu1  ;;  %v5872_v28 = vpop.f32.mrf.mxu0  ;;  %v13915_v10 = vld [vmem:[#allocation7 + $0x108] sm:$0xff]   ;;  %v13917_v44 = vld [vmem:[#allocation7 + $0x100] sm:$0xff]  }
 0x9e3   :  { %6859 = vmatpush2.bf16.msra.mxu0 %v16032_v37  ;;  %12235 = vmatpush3.bf16.msra.mxu1 %v13903_v15  ;;  %v13897_v15 = vld [vmem:[#allocation7 + $0x90] sm:$0xff]  }
 0x9e4   :  { %6860 = vmatprep.subr.bf16.mxu0 %v17133_v19  ;;  %v5999_v55 = vpop.f32.mrf.mxu1  ;;  %v5874_v16 = vpop.f32.mrf.mxu0  ;;  %12236 = vmatprep.subr.bf16.mxu1 %v13904_v56  ;;  %v13907_v19 = vld [vmem:[#allocation7 + $0x128] sm:$0xff]   ;;  %v13891_v56 = vld [vmem:[#allocation5 + $0x230] ss:$8 sps:$4 sm:$0xff]  }
 0x9e5   :  { %v13918_v55 = vld [vmem:[#allocation7 + $0x1f8] sm:$0xff]  }
 0x9e6   :  { %v6000_v43 = vpop.f32.mrf.mxu1  ;;  %v5875_v51 = vpop.f32.mrf.mxu0 }
 0x9e7   :  { %6861 = vmatpush2.bf16.msra.mxu0 %v15938_v1  ;;  %v6021_v50 = vpack.c.bf16 %v6000_v43, %v5997_v46  ;;  %v5896_v36 = vpack.c.bf16 %v5875_v51, %v5872_v28  ;;  %12237 = vmatpush3.bf16.msra.mxu1 %v13905_v8  ;;  %v13886_v1 = vld [vmem:[#allocation7 + $0xb0] sm:$0xff]   ;;  %v13899_v46 = vld [vmem:[#allocation7 + $0x88] sm:$0xff]   ;;  %v13900_v28 = vld [vmem:[#allocation7 + $0xc0] sm:$0xff]  }
 0x9e8   :  { %v6002_v37 = vpop.f32.mrf.mxu1  ;;  %v5877_v2 = vpop.f32.mrf.mxu0  ;;  %12194 = vmatprep.subr.bf16.mxu0 %v13880_v48  ;;  %12238 = vmatprep.subr.bf16.mxu1 %v13906_v38  ;;  %v13901_v8 = vld [vmem:[#allocation7 + $0x80] sm:$0xff]  }
 0x9e9   :  { %7522 = vmatprep.mubr.bf16.mxu1 %v6021_v50  ;;  %v13920_v2 = vld [vmem:[#allocation7 + $0x1f0] sm:$0xff]  }
 0x9ea   :  { %6863 = vmatmul.mubr.bf16.vlgmr.msra.gmra.mxu0 %v13874_v45  ;;  %v6005_v52 = vpop.f32.mrf.mxu1  ;;  %7523 = vmatmul.mubr.bf16.gmra.mxu1 %v5896_v36  ;;  %v5880_v4 = vpop.f32.mrf.mxu0 }
 0x9eb   :  { %11371 = vmatprep.mubr.msk.bf16.mxu0 %vm497_vm4, %v13877_v33  ;;  %12195 = vmatpush3.bf16.msra.mxu0 %v13881_v53  ;;  %v13919_v33 = vld [vmem:[#allocation7 + $0x1b8] sm:$0xff]  }
 0x9ec   :  { %v6007_v54 = vpop.f32.mrf.mxu1  ;;  %v5882_v62 = vpop.f32.mrf.mxu0  ;;  %12196 = vmatprep.subr.bf16.mxu0 %v13885_v22  ;;  %12239 = vmatpush3.bf16.msra.mxu1 %v13907_v19 }
 0x9ed   :  { %12240 = vmatprep.subr.bf16.mxu1 %v13908_v42  ;;  %v16256_v42 = vld [vmem:[#allocation7 + $0x238] sm:$0xff]   ;;  %v13922_v54 = vld [vmem:[#allocation7 + $0x1e8] sm:$0xff]  }
 0x9ee   :  { %v6008_v60 = vpop.f32.mrf.mxu1  ;;  %v5883_v12 = vpop.f32.mrf.mxu0 }
 0x9ef   :  { %v6022_v63 = vpack.c.bf16 %v6008_v60, %v6005_v52  ;;  %v5897_v41 = vpack.c.bf16 %v5883_v12, %v5880_v4  ;;  %12197 = vmatpush3.bf16.msra.mxu0 %v13886_v1  ;;  %v13921_v52 = vld [vmem:[#allocation7 + $0x1b0] sm:$0xff]  }
 0x9f0   :  { %v6010_v61 = vpop.f32.mrf.mxu1  ;;  %v5885_v59 = vpop.f32.mrf.mxu0  ;;  %12198 = vmatprep.subr.bf16.mxu0 %v13887_v47  ;;  %12241 = vmatpush3.bf16.msra.mxu1 %v13909_v17 }
 0x9f1   :  { %7530 = vmatprep.mubr.bf16.mxu1 %v6022_v63  ;;  %12242 = vmatprep.subr.bf16.mxu1 %v13910_v31  ;;  %v13924_v63 = vld [vmem:[#allocation7 + $0x1e0] sm:$0xff]  }
 0x9f2   :  { %6871 = vmatmul.mubr.bf16.gmra.mxu0 %v13879_v39  ;;  %v6013_v35 = vpop.f32.mrf.mxu1  ;;  %7531 = vmatmul.mubr.bf16.gmra.mxu1 %v5897_v41  ;;  %v5888_v14 = vpop.f32.mrf.mxu0  ;;  %v13923_v39 = vld [vmem:[#allocation7 + $0x1a8] sm:$0xff]  }
 0x9f3   :  { %11372 = vmatprep.mubr.msk.bf16.mxu0 %vm497_vm4, %v13882_v3  ;;  %12199 = vmatpush3.bf16.msra.mxu0 %v13888_v25  ;;  %v13925_v25 = vld [vmem:[#allocation7 + $0x1a0] sm:$0xff]  }
 0x9f4   :  { %v6015_v7 = vpop.f32.mrf.mxu1  ;;  %v5890_v23 = vpop.f32.mrf.mxu0  ;;  %12200 = vmatprep.subr.bf16.mxu0 %v13892_v5  ;;  %12243 = vmatpush3.bf16.msra.mxu1 %v13911_v18  ;;  %v13926_v5 = vld [vmem:[#allocation7 + $0x1d8] sm:$0xff]  }
 0x9f5   :  { %12244 = vmatprep.subr.bf16.mxu1 %v13912_v9 }
 0x9f6   :  { %v6016_v13 = vpop.f32.mrf.mxu1  ;;  %v5891_v30 = vpop.f32.mrf.mxu0 }
 0x9f7   :  { %v6023_v20 = vpack.c.bf16 %v6016_v13, %v6013_v35  ;;  %v5898_v6 = vpack.c.bf16 %v5891_v30, %v5888_v14  ;;  %12201 = vmatpush3.bf16.msra.mxu0 %v13893_v26  ;;  %v13927_v26 = vld [vmem:[#allocation7 + $0x198] sm:$0xff]  }
 0x9f8   :  { %12202 = vmatprep.subr.bf16.mxu0 %v13894_v0  ;;  %v5893_v27 = vpop.f32.mrf.mxu0  ;;  %v6018_v58 = vpop.f32.mrf.mxu1  ;;  %12245 = vmatpush3.bf16.msra.mxu1 %v13913_v40  ;;  %v13928_v0 = vld [vmem:[#allocation7 + $0x1d0] sm:$0xff]  }
 0x9f9   :  { %7538 = vmatprep.mubr.bf16.mxu1 %v6023_v20  ;;  %12246 = vmatprep.subr.bf16.mxu1 %v13914_v11  ;;  %v13930_v20 = vld [vmem:[#allocation7 + $0x1c8] sm:$0xff]  }
 0x9fa   :  { %6879 = vmatmul.mubr.bf16.gmra.mxu0 %v13884_v32  ;;  %7539 = vmatmul.mubr.bf16.gmra.mxu1 %v5898_v6  ;;  %v13929_v32 = vld [vmem:[#allocation7 + $0x190] sm:$0xff]  }
 0x9fb   :  { %11373 = vmatprep.mubr.msk.bf16.mxu0 %vm497_vm4, %v13889_v24  ;;  %12203 = vmatpush3.bf16.msra.mxu0 %v13895_v29 }
 0x9fc   :  { %12204 = vmatprep.subr.bf16.mxu0 %v13896_v57  ;;  %12247 = vmatpush3.bf16.msra.mxu1 %v13915_v10  ;;  %v13931_v57 = vld [vmem:[#allocation7 + $0x188] sm:$0xff]  }
 0x9fd   :  { %12248 = vmatprep.subr.bf16.mxu1 %v13916_v49  ;;  %v13932_v49 = vld [vmem:[#allocation7 + $0x1c0] sm:$0xff]  }
 0x9ff   :  { %12205 = vmatpush3.bf16.msra.mxu0 %v13897_v15  ;;  %v13933_v15 = vld [vmem:[#allocation7 + $0x180] sm:$0xff]  }
 0xa00   :  { %12206 = vmatprep.subr.bf16.mxu0 %v13898_v21  ;;  %12249 = vmatpush3.bf16.msra.mxu1 %v13917_v44 }
 0xa01   :  { %13033 = vmatprep.subr.bf16.mxu1 %v16256_v42 }
 0xa02   :  { %6887 = vmatmul.mubr.bf16.gmra.mxu0 %v13891_v56 }
 0xa03   :  { %12207 = vmatpush3.bf16.msra.mxu0 %v13899_v46 }
 0xa04   :  { %12208 = vmatprep.subr.bf16.mxu0 %v13900_v28 }
 0xa07   :  { %12209 = vmatpush3.bf16.msra.mxu0 %v13901_v8 }
 0xa08   :  { %12274 = vmatprep.subr.bf16.mxu0 %v13918_v55 }
 0xa0e   :  { %v6114_v16 = vpop.f32.mrf.mxu0  ;;  %v6239_v48 = vpop.f32.mrf.mxu1 }
 0xa10   :  { %v6116_v38 = vpop.f32.mrf.mxu0  ;;  %v6241_v45 = vpop.f32.mrf.mxu1 }
 0xa11   :  { %v13935_v45 = vld [vmem:[#allocation7 + $0x230] sm:$0xff]  }
 0xa12   :  { %v6117_v43 = vpop.f32.mrf.mxu0  ;;  %v6242_v51 = vpop.f32.mrf.mxu1 }
 0xa13   :  { %v6145_v50 = vpack.c.bf16 %v6117_v43, %v6114_v16  ;;  %v6270_v36 = vpack.c.bf16 %v6242_v51, %v6239_v48 }
 0xa14   :  { %v6119_v53 = vpop.f32.mrf.mxu0  ;;  %v6244_v37 = vpop.f32.mrf.mxu1 }
 0xa15   :  { %7579 = vmatprep.mubr.bf16.mxu0 %v6270_v36 }
 0xa16   :  { %v6247_v22 = vpop.f32.mrf.mxu1  ;;  %7580 = vmatmul.mubr.bf16.vlgmr.msra.gmra.mxu0 %v6145_v50  ;;  %v6122_v19 = vpop.f32.mrf.mxu0 }
 0xa17   :  { %12275 = vmatpush3.bf16.msra.mxu0 %v13919_v33  ;;  %v13936_v33 = vld [vmem:[#allocation7 + $0x228] sm:$0xff]  }
 0xa18   :  { %v6249_v4 = vpop.f32.mrf.mxu1  ;;  %v6124_v1 = vpop.f32.mrf.mxu0  ;;  %12276 = vmatprep.subr.bf16.mxu0 %v13920_v2 }
 0xa19   :  { %v13937_v4 = vld [vmem:[#allocation7 + $0x220] sm:$0xff]  }
 0xa1a   :  { %v6250_v62 = vpop.f32.mrf.mxu1  ;;  %v6125_v47 = vpop.f32.mrf.mxu0 }
 0xa1b   :  { %v6271_v17 = vpack.c.bf16 %v6250_v62, %v6247_v22  ;;  %v6146_v31 = vpack.c.bf16 %v6125_v47, %v6122_v19  ;;  %12277 = vmatpush3.bf16.msra.mxu0 %v13921_v52  ;;  %v13938_v47 = vld [vmem:[#allocation7 + $0x218] sm:$0xff]  }
 0xa1c   :  { %v6252_v60 = vpop.f32.mrf.mxu1  ;;  %v6127_v12 = vpop.f32.mrf.mxu0  ;;  %12278 = vmatprep.subr.bf16.mxu0 %v13922_v54 }
 0xa1d   :  { %7587 = vmatprep.mubr.bf16.mxu0 %v6271_v17 }
 0xa1e   :  { %v6255_v41 = vpop.f32.mrf.mxu1  ;;  %7588 = vmatmul.mubr.bf16.gmra.mxu0 %v6146_v31  ;;  %v6130_v3 = vpop.f32.mrf.mxu0 }
 0xa1f   :  { %12279 = vmatpush3.bf16.msra.mxu0 %v13923_v39 }
 0xa20   :  { %v6257_v61 = vpop.f32.mrf.mxu1  ;;  %v6132_v59 = vpop.f32.mrf.mxu0  ;;  %12280 = vmatprep.subr.bf16.mxu0 %v13924_v63 }
 0xa22   :  { %v6258_v18 = vpop.f32.mrf.mxu1  ;;  %v6133_v9 = vpop.f32.mrf.mxu0 }
 0xa23   :  { %v6272_v35 = vpack.c.bf16 %v6258_v18, %v6255_v41  ;;  %v6147_v14 = vpack.c.bf16 %v6133_v9, %v6130_v3  ;;  %12281 = vmatpush3.bf16.msra.mxu0 %v13925_v25  ;;  %v13939_v41 = vld [vmem:[#allocation7 + $0x210] sm:$0xff]  }
 0xa24   :  { %v6260_v7 = vpop.f32.mrf.mxu1  ;;  %v6135_v23 = vpop.f32.mrf.mxu0  ;;  %12282 = vmatprep.subr.bf16.mxu0 %v13926_v5  ;;  %v13940_v5 = vld [vmem:[#allocation7 + $0x208] sm:$0xff]  }
 0xa25   :  { %7595 = vmatprep.mubr.bf16.mxu0 %v6272_v35  ;;  %v13941_v23 = vld [vmem:[#allocation7 + $0x200] sm:$0xff]  }
 0xa26   :  { %v6263_v40 = vpop.f32.mrf.mxu1  ;;  %7596 = vmatmul.mubr.bf16.gmra.mxu0 %v6147_v14  ;;  %v6138_v11 = vpop.f32.mrf.mxu0 }
 0xa27   :  { %12283 = vmatpush3.bf16.msra.mxu0 %v13927_v26 }
 0xa28   :  { %v6265_v13 = vpop.f32.mrf.mxu1  ;;  %v6140_v30 = vpop.f32.mrf.mxu0  ;;  %12284 = vmatprep.subr.bf16.mxu0 %v13928_v0 }
 0xa2a   :  { %v6266_v6 = vpop.f32.mrf.mxu1  ;;  %v6141_v24 = vpop.f32.mrf.mxu0 }
 0xa2b   :  { %v6273_v29 = vpack.c.bf16 %v6266_v6, %v6263_v40  ;;  %v6148_v27 = vpack.c.bf16 %v6141_v24, %v6138_v11  ;;  %12285 = vmatpush3.bf16.msra.mxu0 %v13929_v32 }
 0xa2c   :  { %v6143_v58 = vpop.f32.mrf.mxu0  ;;  %v6268_v10 = vpop.f32.mrf.mxu1  ;;  %12286 = vmatprep.subr.bf16.mxu0 %v13930_v20 }
 0xa2d   :  { %7603 = vmatprep.mubr.bf16.mxu0 %v6273_v29 }
 0xa2e   :  { %7604 = vmatmul.mubr.bf16.gmra.mxu0 %v6148_v27 }
 0xa2f   :  { %12287 = vmatpush3.bf16.msra.mxu0 %v13931_v57 }
 0xa30   :  { %12288 = vmatprep.subr.bf16.mxu0 %v13932_v49 }
 0xa33   :  { %12289 = vmatpush3.bf16.msra.mxu0 %v13933_v15 }
 0xa34   :  { %13069 = vmatprep.subr.bf16.mxu0 %v17132_v34 }
 0xa42   :  { %v6364_v21 = vpop.f32.mrf.mxu0  ;;  %v6489_v44 = vpop.f32.mrf.mxu1 }
 0xa44   :  { %v6366_v56 = vpop.f32.mrf.mxu0  ;;  %v6491_v46 = vpop.f32.mrf.mxu1 }
 0xa46   :  { %v6367_v28 = vpop.f32.mrf.mxu0  ;;  %v6492_v8 = vpop.f32.mrf.mxu1 }
 0xa47   :  { %v6395_v55 = vpack.c.bf16 %v6367_v28, %v6364_v21  ;;  %v6520_v16 = vpack.c.bf16 %v6492_v8, %v6489_v44 }
 0xa48   :  { %v6369_v48 = vpop.f32.mrf.mxu0  ;;  %v6494_v38 = vpop.f32.mrf.mxu1 }
 0xa49   :  { %7644 = vmatprep.mubr.bf16.mxu1 %v6520_v16 }
 0xa4a   :  { %v6497_v43 = vpop.f32.mrf.mxu1  ;;  %7645 = vmatmul.mubr.bf16.vlgmr.msra.gmra.mxu1 %v6395_v55  ;;  %v6372_v51 = vpop.f32.mrf.mxu0 }
 0xa4b   :  { %13034 = vmatpush3.bf16.msra.mxu1 %v16256_v42 }
 0xa4c   :  { %v6499_v50 = vpop.f32.mrf.mxu1  ;;  %v6374_v36 = vpop.f32.mrf.mxu0  ;;  %13035 = vmatprep.subr.bf16.mxu1 %v13935_v45 }
 0xa4e   :  { %v6500_v53 = vpop.f32.mrf.mxu1  ;;  %v6375_v37 = vpop.f32.mrf.mxu0 }
 0xa4f   :  { %v6521_v2 = vpack.c.bf16 %v6500_v53, %v6497_v43  ;;  %v6396_v22 = vpack.c.bf16 %v6375_v37, %v6372_v51  ;;  %13036 = vmatpush3.bf16.msra.mxu1 %v13935_v45 }
 0xa50   :  { %v6502_v19 = vpop.f32.mrf.mxu1  ;;  %v6377_v52 = vpop.f32.mrf.mxu0  ;;  %13037 = vmatprep.subr.bf16.mxu1 %v13936_v33 }
 0xa51   :  { %7652 = vmatprep.mubr.bf16.mxu1 %v6521_v2 }
 0xa52   :  { %v6505_v1 = vpop.f32.mrf.mxu1  ;;  %7653 = vmatmul.mubr.bf16.gmra.mxu1 %v6396_v22  ;;  %v6380_v54 = vpop.f32.mrf.mxu0 }
 0xa53   :  { %13038 = vmatpush3.bf16.msra.mxu1 %v13936_v33 }
 0xa54   :  { %v6507_v62 = vpop.f32.mrf.mxu1  ;;  %v6382_v42 = vpop.f32.mrf.mxu0  ;;  %13039 = vmatprep.subr.bf16.mxu1 %v13937_v4 }
 0xa56   :  { %v6508_v17 = vpop.f32.mrf.mxu1  ;;  %v6383_v31 = vpop.f32.mrf.mxu0 }
 0xa57   :  { %v6522_v39 = vpack.c.bf16 %v6508_v17, %v6505_v1  ;;  %v6397_v60 = vpack.c.bf16 %v6383_v31, %v6380_v54  ;;  %13040 = vmatpush3.bf16.msra.mxu1 %v13937_v4 }
 0xa58   :  { %v6510_v12 = vpop.f32.mrf.mxu1  ;;  %v6385_v63 = vpop.f32.mrf.mxu0  ;;  %13041 = vmatprep.subr.bf16.mxu1 %v13938_v47 }
 0xa59   :  { %7660 = vmatprep.mubr.bf16.mxu1 %v6522_v39 }
 0xa5a   :  { %v6513_v3 = vpop.f32.mrf.mxu1  ;;  %7661 = vmatmul.mubr.bf16.gmra.mxu1 %v6397_v60  ;;  %v6388_v25 = vpop.f32.mrf.mxu0 }
 0xa5b   :  { %13042 = vmatpush3.bf16.msra.mxu1 %v13938_v47 }
 0xa5c   :  { %v6515_v61 = vpop.f32.mrf.mxu1  ;;  %v6390_v59 = vpop.f32.mrf.mxu0  ;;  %13043 = vmatprep.subr.bf16.mxu1 %v13939_v41 }
 0xa5e   :  { %v6516_v18 = vpop.f32.mrf.mxu1  ;;  %v6391_v9 = vpop.f32.mrf.mxu0 }
 0xa5f   :  { %v6523_v35 = vpack.c.bf16 %v6516_v18, %v6513_v3  ;;  %v6398_v14 = vpack.c.bf16 %v6391_v9, %v6388_v25  ;;  %13044 = vmatpush3.bf16.msra.mxu1 %v13939_v41 }
 0xa60   :  { %v6393_v26 = vpop.f32.mrf.mxu0  ;;  %v6518_v7 = vpop.f32.mrf.mxu1  ;;  %13045 = vmatprep.subr.bf16.mxu1 %v13940_v5 }
 0xa61   :  { %7668 = vmatprep.mubr.bf16.mxu1 %v6523_v35 }
 0xa62   :  { %7669 = vmatmul.mubr.bf16.gmra.mxu1 %v6398_v14 }
 0xa63   :  { %13046 = vmatpush3.bf16.msra.mxu1 %v13940_v5 }
 0xa64   :  { %13047 = vmatprep.subr.bf16.mxu1 %v13941_v23 }
 0xa67   :  { %13048 = vmatpush3.bf16.msra.mxu1 %v13941_v23 }
 0xa68   :  { %13057 = vmatprep.subr.bf16.mxu1 %v17132_v34 }
 0xa76   :  { %v6614_v0 = vpop.f32.mrf.mxu0  ;;  %v6739_v40 = vpop.f32.mrf.mxu1 }
 0xa78   :  { %v6616_v11 = vpop.f32.mrf.mxu0  ;;  %v6741_v32 = vpop.f32.mrf.mxu1 }
 0xa7a   :  { %v6617_v13 = vpop.f32.mrf.mxu0  ;;  %v6742_v30 = vpop.f32.mrf.mxu1 }
 0xa7b   :  { %v6645_v20 = vpack.c.bf16 %v6617_v13, %v6614_v0  ;;  %v6770_v6 = vpack.c.bf16 %v6742_v30, %v6739_v40 }
 0xa7c   :  { %v6619_v24 = vpop.f32.mrf.mxu0  ;;  %v6744_v29 = vpop.f32.mrf.mxu1 }
 0xa7d   :  { %7709 = vmatprep.mubr.bf16.mxu0 %v6770_v6 }
 0xa7e   :  { %v6747_v27 = vpop.f32.mrf.mxu1  ;;  %7710 = vmatmul.mubr.bf16.vlgmr.msra.gmra.mxu0 %v6645_v20  ;;  %v6622_v57 = vpop.f32.mrf.mxu0  ;;  %v16268_v20 = vld [vmem:[#allocation8] ss:$0 sm:$0xff] }
 0xa80   :  { %v6749_v58 = vpop.f32.mrf.mxu1  ;;  %v6624_v10 = vpop.f32.mrf.mxu0 }
 0xa82   :  { %v6750_v49 = vpop.f32.mrf.mxu1  ;;  %v6625_v15 = vpop.f32.mrf.mxu0 }
 0xa83   :  { %v6771_v21 = vpack.c.bf16 %v6750_v49, %v6747_v27  ;;  %v6646_v44 = vpack.c.bf16 %v6625_v15, %v6622_v57 }
 0xa84   :  { %v6752_v56 = vpop.f32.mrf.mxu1  ;;  %v6627_v46 = vpop.f32.mrf.mxu0 }
 0xa85   :  { %7717 = vmatprep.mubr.bf16.mxu0 %v6771_v21 }
 0xa86   :  { %v6755_v28 = vpop.f32.mrf.mxu1  ;;  %7718 = vmatmul.mubr.bf16.gmra.mxu0 %v6646_v44  ;;  %v6630_v8 = vpop.f32.mrf.mxu0 }
 0xa88   :  { %v6757_v55 = vpop.f32.mrf.mxu1  ;;  %v6632_v16 = vpop.f32.mrf.mxu0 }
 0xa8a   :  { %v6758_v48 = vpop.f32.mrf.mxu1  ;;  %v6633_v38 = vpop.f32.mrf.mxu0 }
 0xa8b   :  { %v6772_v45 = vpack.c.bf16 %v6758_v48, %v6755_v28  ;;  %v6647_v43 = vpack.c.bf16 %v6633_v38, %v6630_v8 }
 0xa8c   :  { %v6760_v51 = vpop.f32.mrf.mxu1  ;;  %v6635_v50 = vpop.f32.mrf.mxu0 }
 0xa8d   :  { %7725 = vmatprep.mubr.bf16.mxu0 %v6772_v45 }
 0xa8e   :  { %v6763_v36 = vpop.f32.mrf.mxu1  ;;  %7726 = vmatmul.mubr.bf16.gmra.mxu0 %v6647_v43  ;;  %v6638_v33 = vpop.f32.mrf.mxu0 }
 0xa90   :  { %v6765_v53 = vpop.f32.mrf.mxu1  ;;  %v6640_v37 = vpop.f32.mrf.mxu0 }
 0xa92   :  { %v6766_v2 = vpop.f32.mrf.mxu1  ;;  %v6641_v22 = vpop.f32.mrf.mxu0 }
 0xa93   :  { %v6773_v19 = vpack.c.bf16 %v6766_v2, %v6763_v36  ;;  %v6648_v52 = vpack.c.bf16 %v6641_v22, %v6638_v33 }
 0xa94   :  { %v6768_v4 = vpop.f32.mrf.mxu1  ;;  %v6643_v1 = vpop.f32.mrf.mxu0 }
 0xa95   :  { %7733 = vmatprep.mubr.bf16.mxu0 %v6773_v19 }
 0xa96   :  { %7734 = vmatmul.mubr.bf16.gmra.mxu0 %v6648_v52 }
 0xa97   :  { %13077 = vmatprep.mubr.msk.bf16.mxu0 %vm14297_vm1, %v17132_v34 }
 0xaa2   :  { %v12170_v54 = vpop.f32.mrf.mxu1 }
 0xaa4   :  { %v12171_v62 = vpop.f32.mrf.mxu1 }
 0xaa5   :  { %v12172_v42 = vadd.f32 %v12171_v62, %v12170_v54 }
 0xaa6   :  { %v12173_v47 = vpop.f32.mrf.mxu1 }
 0xaa7   :  { %v7517_v29 = vadd.f32 %v12172_v42, %v16268_v20 }
 0xaa8   :  { %v12174_v17 = vpop.f32.mrf.mxu1 }
 0xaa9   :  { %v12175_v31 = vadd.f32 %v12174_v17, %v12173_v47 }
 0xaaa   :  { %v6864_v39 = vpop.f32.mrf.mxu0  ;;  %v12176_v60 = vpop.f32.mrf.mxu1 }
 0xaab   :  { %v7520_v49 = vadd.f32 %v12175_v31, %v16268_v20 }
 0xaac   :  { %v6866_v12 = vpop.f32.mrf.mxu0  ;;  %v12177_v63 = vpop.f32.mrf.mxu1 }
 0xaad   :  { %v16264_v41 = vadd.f32 %v12177_v63, %v12176_v60 }
 0xaae   :  { %v6867_v3 = vpop.f32.mrf.mxu0  ;;  %v16272_v44 = vpop.f32.mrf.mxu1 }
 0xaaf   :  { %17134 = vst [vmem:[#allocation19_spill] sm:$0xff] %v16264_v41  ;;  %v6895_v25 = vpack.c.bf16 %v6867_v3, %v6864_v39 }
 0xab0   :  { %v6869_v61 = vpop.f32.mrf.mxu0  ;;  %v16274_v56 = vpop.f32.mrf.mxu1 }
 0xab1   :  { %13049 = vmatprep.mubr.bf16.mxu1 %v6895_v25 }
 0xab2   :  { %v6872_v59 = vpop.f32.mrf.mxu0  ;;  %v16278_v28 = vpop.f32.mrf.mxu1 }
 0xab4   :  { %v6874_v5 = vpop.f32.mrf.mxu0  ;;  %v16282_v55 = vpop.f32.mrf.mxu1 }
 0xab6   :  { %v6875_v18 = vpop.f32.mrf.mxu0  ;;  %v16286_v48 = vpop.f32.mrf.mxu1 }
 0xab7   :  { %v6896_v9 = vpack.c.bf16 %v6875_v18, %v6872_v59 }
 0xab8   :  { %v6877_v35 = vpop.f32.mrf.mxu0  ;;  %v16290_v45 = vpop.f32.mrf.mxu1 }
 0xab9   :  { %13050 = vmatmul.mubr.bf16.vlgmr.msra.gmra.mxu1 %v6896_v9 }
 0xaba   :  { %v6880_v14 = vpop.f32.mrf.mxu0  ;;  %v12188_v51 = vpop.f32.mrf.mxu1 }
 0xabc   :  { %v6882_v26 = vpop.f32.mrf.mxu0  ;;  %v12189_v36 = vpop.f32.mrf.mxu1 }
 0xabe   :  { %v6883_v7 = vpop.f32.mrf.mxu0  ;;  %v12191_v53 = vpop.f32.mrf.mxu1 }
 0xabf   :  { %v6897_v23 = vpack.c.bf16 %v6883_v7, %v6880_v14 }
 0xac0   :  { %v6885_v0 = vpop.f32.mrf.mxu0  ;;  %v12192_v2 = vpop.f32.mrf.mxu1 }
 0xac1   :  { %13053 = vmatprep.mubr.bf16.mxu1 %v6897_v23 }
 0xac2   :  { %v6888_v40 = vpop.f32.mrf.mxu0 }
 0xac4   :  { %v6890_v11 = vpop.f32.mrf.mxu0 }
 0xac6   :  { %v6891_v32 = vpop.f32.mrf.mxu0 }
 0xac7   :  { %v6898_v13 = vpack.c.bf16 %v6891_v32, %v6888_v40 }
 0xac8   :  { %v6893_v30 = vpop.f32.mrf.mxu0 }
 0xac9   :  { %13054 = vmatmul.mubr.bf16.gmra.mxu1 %v6898_v13 }
 0xaca   :  { %13065 = vmatprep.mubr.msk.bf16.mxu1 %vm14297_vm1, %v17132_v34 }
 0xad6   :  { %v12210_v6 = vpop.f32.mrf.mxu0 }
 0xad8   :  { %v12211_v24 = vpop.f32.mrf.mxu0 }
 0xad9   :  { %v12212_v27 = vadd.f32 %v12211_v24, %v12210_v6 }
 0xada   :  { %v12213_v57 = vpop.f32.mrf.mxu0 }
 0xadb   :  { %v7582_v58 = vadd.f32 %v12212_v27, %v7517_v29 }
 0xadc   :  { %v12214_v10 = vpop.f32.mrf.mxu0 }
 0xadd   :  { %v12215_v15 = vadd.f32 %v12214_v10, %v12213_v57 }
 0xade   :  { %v16276_v46 = vpop.f32.mrf.mxu0 }
 0xadf   :  { %v7585_v21 = vadd.f32 %v12215_v15, %v7520_v49 }
 0xae0   :  { %v16280_v8 = vpop.f32.mrf.mxu0 }
 0xae2   :  { %v16284_v16 = vpop.f32.mrf.mxu0 }
 0xae4   :  { %v16288_v38 = vpop.f32.mrf.mxu0 }
 0xae6   :  { %v16292_v43 = vpop.f32.mrf.mxu0 }
 0xae8   :  { %v16294_v50 = vpop.f32.mrf.mxu0 }
 0xaea   :  { %v16296_v33 = vpop.f32.mrf.mxu0 }
 0xaec   :  { %v16298_v37 = vpop.f32.mrf.mxu0 }
 0xaee   :  { %v12228_v22 = vpop.f32.mrf.mxu0 }
 0xaf0   :  { %v12229_v52 = vpop.f32.mrf.mxu0 }
 0xaf2   :  { %v12231_v1 = vpop.f32.mrf.mxu0 }
 0xaf4   :  { %v12232_v62 = vpop.f32.mrf.mxu0 }
 0xb0a   :  { %v12250_v19 = vpop.f32.mrf.mxu1 }
 0xb0c   :  { %v12251_v4 = vpop.f32.mrf.mxu1 }
 0xb0d   :  { %v12252_v13 = vadd.f32 %v12251_v4, %v12250_v19  ;;  %v12193_v19 = vadd.f32 %v12192_v2, %v12191_v53 }
 0xb0e   :  { %v12253_v54 = vpop.f32.mrf.mxu1 }
 0xb0f   :  { %v7647_v57 = vadd.f32 %v12252_v13, %v7582_v58 }
 0xb10   :  { %v12254_v42 = vpop.f32.mrf.mxu1 }
 0xb11   :  { %v12255_v6 = vadd.f32 %v12254_v42, %v12253_v54  ;;  %v12181_v54 = vadd.f32 %v16274_v56, %v16272_v44  ;;  %v12230_v42 = vadd.f32 %v12229_v52, %v12228_v22  ;;  %v12224_v44 = vadd.f32 %v16294_v50, %v16292_v43 }
 0xb12   :  { %v16300_v17 = vpop.f32.mrf.mxu1  ;;  %v12221_v22 = vadd.f32 %v16288_v38, %v16284_v16  ;;  %v17141_v16 = vld [vmem:[#allocation19_spill] sm:$0xff] }
 0xb13   :  { %17135 = vst [vmem:[#allocation20_spill] sm:$0xff] %v16300_v17  ;;  %v7650_v15 = vadd.f32 %v12255_v6, %v7585_v21  ;;  %v12190_v17 = vadd.f32 %v12189_v36, %v12188_v51  ;;  %v12184_v21 = vadd.f32 %v16282_v55, %v16278_v28  ;;  %v7544_v36 = vadd.f32 %v12193_v19, %v16268_v20 }
 0xb14   :  { %v16302_v39 = vpop.f32.mrf.mxu1  ;;  %v7528_v28 = vadd.f32 %v12181_v54, %v16268_v20  ;;  %v7525_v38 = vadd.f32 %v17141_v16, %v16268_v20  ;;  %v13963_v16 = vld [vmem:[%s17119_s7 + $0x50] sm:$0xff]  }
 0xb15   :  { %17136 = vst [vmem:[#allocation21_spill] sm:$0xff] %v16302_v39 }
 0xb16   :  { %v16304_v12 = vpop.f32.mrf.mxu1 }
 0xb18   :  { %v16306_v3 = vpop.f32.mrf.mxu1 }
 0xb1a   :  { %v12262_v61 = vpop.f32.mrf.mxu1 }
 0xb1c   :  { %v12263_v5 = vpop.f32.mrf.mxu1 }
 0xb1e   :  { %v12265_v9 = vpop.f32.mrf.mxu1 }
 0xb20   :  { %v12266_v14 = vpop.f32.mrf.mxu1 }
 0xb22   :  { %v12268_v7 = vpop.f32.mrf.mxu1 }
 0xb24   :  { %v12269_v0 = vpop.f32.mrf.mxu1 }
 0xb26   :  { %v12271_v11 = vpop.f32.mrf.mxu1 }
 0xb28   :  { %v12272_v30 = vpop.f32.mrf.mxu1 }
 0xb29   :  { %v12273_v53 = vadd.f32 %v12272_v30, %v12271_v11 }
 0xb3e   :  { %v12290_v47 = vpop.f32.mrf.mxu0 }
 0xb40   :  { %v12291_v31 = vpop.f32.mrf.mxu0 }
 0xb41   :  { %v12292_v24 = vadd.f32 %v12291_v31, %v12290_v47  ;;  %v12187_v31 = vadd.f32 %v16290_v45, %v16286_v48  ;;  %v7533_v45 = vadd.f32 %v12184_v21, %v16268_v20 }
 0xb42   :  { %v12293_v60 = vpop.f32.mrf.mxu0 }
 0xb43   :  { %v7712_v34 = vadd.f32 %v12292_v24, %v7647_v57  ;;  %v7536_v2 = vadd.f32 %v12187_v31, %v16268_v20 }
 0xb44   :  { %v12294_v63 = vpop.f32.mrf.mxu0 }
 0xb45   :  { %v12295_v10 = vadd.f32 %v12294_v63, %v12293_v60  ;;  %v12233_v60 = vadd.f32 %v12232_v62, %v12231_v1  ;;  %v12270_v63 = vadd.f32 %v12269_v0, %v12268_v7  ;;  %v12264_v1 = vadd.f32 %v12263_v5, %v12262_v61  ;;  %v17142_v5 = vld [vmem:[#allocation20_spill] sm:$0xff] }
 0xb46   :  { %v16308_v25 = vpop.f32.mrf.mxu0  ;;  %v12267_v62 = vadd.f32 %v12266_v14, %v12265_v9  ;;  %v7593_v61 = vadd.f32 %v12221_v22, %v7528_v28  ;;  %v17143_v9 = vld [vmem:[#allocation21_spill] sm:$0xff] }
 0xb47   :  { %17137 = vst [vmem:[#allocation22_spill] sm:$0xff] %v16308_v25  ;;  %v7609_v52 = vadd.f32 %v12233_v60, %v7544_v36  ;;  %v12258_v14 = vadd.f32 %v17143_v9, %v17142_v5  ;;  %v17148_v36 = vmov 0.0   ;;  %v13943_v28 = vld [vmem:[#allocation10] sm:$0xff]   ;;  %v13948_v22 = vld [vmem:[#allocation10 + $0x38] sm:$0xff]  }
 0xb48   :  { %v16310_v59 = vpop.f32.mrf.mxu0  ;;  %v13967_v5 = vld [vmem:[%s17119_s7 + $0x48] sm:$0xff]  }
 0xb49   :  { %17138 = vst [vmem:[#allocation23_spill] sm:$0xff] %v16310_v59  ;;  %v13970_v9 = vld [vmem:[%s17119_s7 + $0xa8] sm:$0xff]  }
 0xb4a   :  { %v16312_v18 = vpop.f32.mrf.mxu0 }
 0xb4b   :  { %17139 = vst [vmem:[#allocation24_spill] sm:$0xff] %v16312_v18  ;;  %v7715_v18 = vadd.f32 %v12295_v10, %v7650_v15 }
 0xb4c   :  { %v16314_v35 = vpop.f32.mrf.mxu0 }
 0xb4d   :  { %17140 = vst [vmem:[#allocation25_spill] sm:$0xff] %v16314_v35 }
 0xb4e   :  { %v12302_v26 = vpop.f32.mrf.mxu0 }
 0xb50   :  { %v12303_v23 = vpop.f32.mrf.mxu0 }
 0xb52   :  { %v12305_v40 = vpop.f32.mrf.mxu0  ;;  %v17144_v11 = vld [vmem:[#allocation24_spill] sm:$0xff] }
 0xb54   :  { %v12306_v32 = vpop.f32.mrf.mxu0  ;;  %v17145_v13 = vld [vmem:[#allocation25_spill] sm:$0xff] }
 0xb55   :  { %v12307_v7 = vadd.f32 %v12306_v32, %v12305_v40  ;;  %v17147_v40 = vld [vmem:[#allocation23_spill] sm:$0xff] }
 0xb56   :  { %v12308_v29 = vpop.f32.mrf.mxu0 }
 0xb58   :  { %v12309_v59 = vpop.f32.mrf.mxu0 }
 0xb59   :  { %v12310_v48 = vadd.f32 %v12309_v59, %v12308_v29 }
 0xb5a   :  { %v12311_v4 = vpop.f32.mrf.mxu0 }
 0xb5c   :  { %v12312_v56 = vpop.f32.mrf.mxu0 }
 0xb5d   :  { %v12313_v50 = vadd.f32 %v12312_v56, %v12311_v4 }
 0xb79   :  { %v16316_v27 = vpop.f32.mrf.mxu1 }
 0xb7b   :  { %v7776_v49 = vpop.f32.mrf.mxu1 }
 0xb7c   :  { %v7777_v35 = vadd.f32 %v7776_v49, %v7712_v34  ;;  %v7541_v34 = vadd.f32 %v12190_v17, %v16268_v20 }
 0xb7d   :  { %v16318_v25 = vpop.f32.mrf.mxu1 }
 0xb7e   :  { %v7807_v47 = vmax.f32 %v7777_v35, 0.0  ;;  %v7606_v55 = vadd.f32 %v12230_v42, %v7541_v34  ;;  %v12304_v35 = vadd.f32 %v12303_v23, %v12302_v26  ;;  %v17146_v23 = vld [vmem:[#allocation22_spill] sm:$0xff] }
 0xb7f   :  { %v7779_v39 = vpop.f32.mrf.mxu1  ;;  %v12298_v32 = vadd.f32 %v17147_v40, %v17146_v23  ;;  %v13988_v23 = vld [vmem:[%s17119_s7 + $0xc0] sm:$0xff]  }
 0xb80   :  { %v7780_v41 = vadd.f32 %v7779_v39, %v7715_v18  ;;  %v7671_v43 = vadd.f32 %v12270_v63, %v7606_v55  ;;  %v12261_v39 = vadd.f32 %v16306_v3, %v16304_v12  ;;  %v7674_v18 = vadd.f32 %v12273_v53, %v7609_v52  ;;  %v13944_v55 = vld [vmem:[#allocation10 + $0x18] sm:$0xff]   ;;  %v13945_v53 = vld [vmem:[#allocation10 + $0x10] sm:$0xff]  }
 0xb81   :  { %v13949_v52 = vld [vmem:[#allocation10 + $0x30] sm:$0xff]   ;;  %v13990_v40 = vld [vmem:[%s17119_s7 + $0x80] sm:$0xff]  }
 0xb82   :  { %v7808_v58 = vmax.f32 %v7780_v41, 0.0  ;;  %v12227_v41 = vadd.f32 %v16298_v37, %v16296_v33  ;;  %v12218_v33 = vadd.f32 %v16280_v8, %v16276_v46  ;;  %v7598_v37 = vadd.f32 %v12224_v44, %v7533_v45  ;;  %v13947_v45 = vld [vmem:[#allocation10 + $0x20] sm:$0xff]  }
 0xb83   :  { %v7736_v0 = vadd.f32 %v12310_v48, %v7671_v43  ;;  %v12301_v46 = vadd.f32 %v17145_v13, %v17144_v11  ;;  %v7739_v12 = vadd.f32 %v12313_v50, %v7674_v18  ;;  %v7658_v29 = vadd.f32 %v12261_v39, %v7593_v61  ;;  %v13946_v48 = vld [vmem:[#allocation10 + $0x28] sm:$0xff]   ;;  %v13961_v39 = vld [vmem:[%s17119_s7 + $0xf8] sm:$0xff]   ;;  %v13950_v18 = vld [vmem:[#allocation10 + $0x40] sm:$0xff]  }
 0xb84   :  { %v16327_v51 = vpack.c.bf16 %v7808_v58, %v7807_v47  ;;  %v7601_v17 = vadd.f32 %v12227_v41, %v7536_v2  ;;  %v7663_v30 = vadd.f32 %v12264_v1, %v7598_v37  ;;  %v7590_v3 = vadd.f32 %v12218_v33, %v7525_v38  ;;  %v13951_v2 = vld [vmem:[%s17119_s7 + $0x78] sm:$0xff]   ;;  %v13954_v43 = vld [vmem:[%s17119_s7 + $0x30] sm:$0xff]   ;;  %v13955_v50 = vld [vmem:[%s17119_s7 + $0x68] sm:$0xff]  }
 0xb85   :  { %v7723_v15 = vadd.f32 %v12301_v46, %v7658_v29  ;;  %v13952_v1 = vld [vmem:[%s17119_s7 + $0x38] sm:$0xff]   ;;  %v13956_v33 = vld [vmem:[%s17119_s7 + $0x28] sm:$0xff]   ;;  %v13957_v37 = vld [vmem:[%s17119_s7 + $0x60] sm:$0xff]  }
 0xb86   :  { %v7666_v6 = vadd.f32 %v12267_v62, %v7601_v17  ;;  %v7728_v57 = vadd.f32 %v12304_v35, %v7663_v30  ;;  %v7655_v49 = vadd.f32 %v12258_v14, %v7590_v3  ;;  %v13953_v62 = vld [vmem:[%s17119_s7 + $0x70] sm:$0xff]   ;;  %v13958_v17 = vld [vmem:[%s17119_s7 + $0x20] sm:$0xff]   ;;  %v13962_v35 = vld [vmem:[%s17119_s7 + $0xb8] sm:$0xff]  }
 0xb87   :  { %v7788_v21 = vadd.f32 %v16318_v25, %v7723_v15  ;;  %v13964_v38 = vld [vmem:[%s17119_s7 + $0x10] sm:$0xff]   ;;  %v13969_v61 = vld [vmem:[%s17119_s7 + $0xe8] sm:$0xff]   ;;  %v13973_v11 = vld [vmem:[%s17119_s7 + $0xe0] sm:$0xff]  }
 0xb88   :  { %v7731_v10 = vadd.f32 %v12307_v7, %v7666_v6  ;;  %v7720_v58 = vadd.f32 %v12298_v32, %v7655_v49  ;;  %v13960_v7 = vld [vmem:[%s17119_s7 + $0x18] sm:$0xff]   ;;  %v13968_v14 = vld [vmem:[%s17119_s7 + $0x8] sm:$0xff]   ;;  %v13971_v13 = vld [vmem:[%s17119_s7 + $0x40] sm:$0xff]  }
 0xb89   :  { %v13055_v59 = vpop.f32.mrf.mxu1  ;;  %v7810_v44 = vmax.f32 %v7788_v21, 0.0  ;;  %v13974_v46 = vld [vmem:[%s17119_s7 + $0xa0] sm:$0xff]   ;;  %v13976_v30 = vld [vmem:[%s17119_s7 + $0xd8] sm:$0xff]   ;;  %v13982_v3 = vld [vmem:[%s17119_s7 + $0x90] sm:$0xff]  }
 0xb8a   :  { %v7801_v24 = vadd.f32 %v13055_v59, %v7736_v0  ;;  %v7785_v34 = vadd.f32 %v16316_v27, %v7720_v58  ;;  %v13942_v27 = vld [vmem:[#allocation10 + $0x8] sm:$0xff]   ;;  %v13959_v59 = vld [vmem:[%s17119_s7 + $0x58] sm:$0xff]  }
 0xb8b   :  { %v7792_v8 = vpop.f32.mrf.mxu1  ;;  %v13965_v0 = vld [vmem:[%s17119_s7 + $0xf0] sm:$0xff]   ;;  %v13975_v6 = vld [vmem:[%s17119_s7 + $0x178] sm:$0xff]   ;;  %v13984_v29 = vld [vmem:[%s17119_s7 + $0xc8] sm:$0xff]  }
 0xb8c   :  { %v7813_v4 = vmax.f32 %v7801_v24, 0.0  ;;  %v7793_v54 = vadd.f32 %v7792_v8, %v7728_v57  ;;  %v7809_v56 = vmax.f32 %v7785_v34, 0.0  ;;  %v13972_v8 = vld [vmem:[%s17119_s7] sm:$0xff]   ;;  %v13978_v24 = vld [vmem:[%s17119_s7 + $0x98] sm:$0xff]   ;;  %v13985_v34 = vld [vmem:[%s17119_s7 + $0x128] sm:$0xff]  }
 0xb8d   :  { %v13056_v26 = vpop.f32.mrf.mxu1  ;;  %v13993_v32 = vld [vmem:[%s17119_s7 + $0x1f8] sm:$0xff]  }
 0xb8e   :  { %v7804_v20 = vadd.f32 %v13056_v26, %v7739_v12  ;;  %v7811_v63 = vmax.f32 %v7793_v54, 0.0  ;;  %v16365_v25 = vpack.c.bf16 %v7810_v44, %v7809_v56  ;;  %v13980_v12 = vld [vmem:[%s17119_s7 + $0xd0] sm:$0xff]   ;;  %v13986_v26 = vld [vmem:[%s17119_s7 + $0x88] sm:$0xff]   ;;  %v13989_v56 = vld [vmem:[%s17119_s7 + $0x120] sm:$0xff]  }
 0xb8f   :  { %v7795_v19 = vpop.f32.mrf.mxu1 }
 0xb90   :  { %v7814_v42 = vmax.f32 %v7804_v20, 0.0  ;;  %v7796_v47 = vadd.f32 %v7795_v19, %v7731_v10 }
 0xb92   :  { %v16352_v31 = vpack.c.bf16 %v7814_v42, %v7813_v4  ;;  %v7812_v60 = vmax.f32 %v7796_v47, 0.0  ;;  %v13977_v42 = vld [vmem:[%s17119_s7 + $0x138] sm:$0xff]   ;;  %v13979_v47 = vld [vmem:[%s17119_s7 + $0x170] sm:$0xff]  }
 0xb94   :  { %13058 = vmatpush3.bf16.msra.mxu1 %v16352_v31  ;;  %13070 = vmatpush3.bf16.msra.mxu0 %v16352_v31  ;;  %v16359_v41 = vpack.c.bf16 %v7812_v60, %v7811_v63  ;;  %v13983_v60 = vld [vmem:[%s17119_s7 + $0x168] sm:$0xff]   ;;  %v13987_v63 = vld [vmem:[%s17119_s7 + $0x160] sm:$0xff]  }
 0xb95   :  { %13059 = vmatprep.subr.bf16.mxu1 %v17148_v36  ;;  %13071 = vmatprep.subr.bf16.mxu0 %v17148_v36 }
 0xb98   :  { %13060 = vmatpush3.bf16.msra.mxu1 %v16359_v41  ;;  %13072 = vmatpush3.bf16.msra.mxu0 %v16359_v41 }
 0xb99   :  { %13061 = vmatprep.subr.bf16.mxu1 %v17148_v36  ;;  %13073 = vmatprep.subr.bf16.mxu0 %v17148_v36 }
 0xb9c   :  { %13062 = vmatpush3.bf16.msra.mxu1 %v16365_v25  ;;  %13074 = vmatpush3.bf16.msra.mxu0 %v16365_v25 }
 0xb9d   :  { %13063 = vmatprep.subr.bf16.mxu1 %v17148_v36  ;;  %13075 = vmatprep.subr.bf16.mxu0 %v17148_v36 }
 0xba0   :  { %13064 = vmatpush3.bf16.msra.mxu1 %v16327_v51  ;;  %13076 = vmatpush3.bf16.msra.mxu0 %v16327_v51 }
 0xba1   :  { %13081 = vmatprep.subr.bf16.mxu1 %v17148_v36  ;;  %13093 = vmatprep.subr.bf16.mxu0 %v17148_v36 }
 0xba3   :  { %13078 = vmatmul.mubr.msk.bf16.vlgmr.msra.gmra.mxu0 %vm2506_vm5, %v13942_v27  ;;  %13066 = vmatmul.mubr.msk.bf16.vlgmr.msra.gmra.mxu1 %vm2506_vm5, %v13943_v28  ;;  %v13991_v28 = vld [vmem:[%s17119_s7 + $0x158] sm:$0xff]  }
 0xba4   :  { %13082 = vmatpush3.bf16.msra.mxu1 %v16352_v31  ;;  %13094 = vmatpush3.bf16.msra.mxu0 %v16352_v31 }
 0xba5   :  { %13083 = vmatprep.subr.bf16.mxu1 %v17148_v36  ;;  %13095 = vmatprep.subr.bf16.mxu0 %v17148_v36 }
 0xba6   :  { %13101 = vmatprep.mubr.msk.bf16.mxu0 %vm14297_vm1, %v17148_v36  ;;  %13089 = vmatprep.mubr.msk.bf16.mxu1 %vm14297_vm1, %v17148_v36 }
 0xba8   :  { %13084 = vmatpush3.bf16.msra.mxu1 %v16359_v41  ;;  %13096 = vmatpush3.bf16.msra.mxu0 %v16359_v41 }
 0xba9   :  { %13085 = vmatprep.subr.bf16.mxu1 %v17148_v36  ;;  %13097 = vmatprep.subr.bf16.mxu0 %v17148_v36 }
 0xbac   :  { %13086 = vmatpush3.bf16.msra.mxu1 %v16365_v25  ;;  %13098 = vmatpush3.bf16.msra.mxu0 %v16365_v25 }
 0xbad   :  { %13087 = vmatprep.subr.bf16.mxu1 %v17148_v36  ;;  %13099 = vmatprep.subr.bf16.mxu0 %v17148_v36 }
 0xbb0   :  { %13088 = vmatpush3.bf16.msra.mxu1 %v16327_v51  ;;  %13100 = vmatpush3.bf16.msra.mxu0 %v16327_v51 }
 0xbb1   :  { %13105 = vmatprep.subr.bf16.mxu1 %v17148_v36  ;;  %13117 = vmatprep.subr.bf16.mxu0 %v17148_v36 }
 0xbb3   :  { %13102 = vmatmul.mubr.msk.bf16.vlgmr.msra.gmra.mxu0 %vm2506_vm5, %v13944_v55  ;;  %13090 = vmatmul.mubr.msk.bf16.vlgmr.msra.gmra.mxu1 %vm2506_vm5, %v13945_v53 }
 0xbb4   :  { %13106 = vmatpush3.bf16.msra.mxu1 %v16352_v31  ;;  %13118 = vmatpush3.bf16.msra.mxu0 %v16352_v31 }
 0xbb5   :  { %13107 = vmatprep.subr.bf16.mxu1 %v17148_v36  ;;  %13119 = vmatprep.subr.bf16.mxu0 %v17148_v36 }
 0xbb6   :  { %13125 = vmatprep.mubr.msk.bf16.mxu0 %vm14297_vm1, %v17148_v36  ;;  %13113 = vmatprep.mubr.msk.bf16.mxu1 %vm14297_vm1, %v17148_v36 }
 0xbb8   :  { %13108 = vmatpush3.bf16.msra.mxu1 %v16359_v41  ;;  %13120 = vmatpush3.bf16.msra.mxu0 %v16359_v41 }
 0xbb9   :  { %13109 = vmatprep.subr.bf16.mxu1 %v17148_v36  ;;  %13121 = vmatprep.subr.bf16.mxu0 %v17148_v36 }
 0xbbc   :  { %13110 = vmatpush3.bf16.msra.mxu1 %v16365_v25  ;;  %13122 = vmatpush3.bf16.msra.mxu0 %v16365_v25 }
 0xbbd   :  { %13111 = vmatprep.subr.bf16.mxu1 %v17148_v36  ;;  %13123 = vmatprep.subr.bf16.mxu0 %v17148_v36 }
 0xbc0   :  { %13112 = vmatpush3.bf16.msra.mxu1 %v16327_v51  ;;  %13124 = vmatpush3.bf16.msra.mxu0 %v16327_v51 }
 0xbc1   :  { %13129 = vmatprep.subr.bf16.mxu1 %v17148_v36  ;;  %13141 = vmatprep.subr.bf16.mxu0 %v17148_v36 }
 0xbc3   :  { %13126 = vmatmul.mubr.msk.bf16.vlgmr.msra.gmra.mxu0 %vm2506_vm5, %v13946_v48  ;;  %13114 = vmatmul.mubr.msk.bf16.vlgmr.msra.gmra.mxu1 %vm2506_vm5, %v13947_v45 }
 0xbc4   :  { %13130 = vmatpush3.bf16.msra.mxu1 %v16352_v31  ;;  %13142 = vmatpush3.bf16.msra.mxu0 %v16352_v31 }
 0xbc5   :  { %13131 = vmatprep.subr.bf16.mxu1 %v17148_v36  ;;  %13143 = vmatprep.subr.bf16.mxu0 %v17148_v36 }
 0xbc6   :  { %13149 = vmatprep.mubr.msk.bf16.mxu0 %vm14297_vm1, %v17148_v36  ;;  %13137 = vmatprep.mubr.msk.bf16.mxu1 %vm14297_vm1, %v17148_v36 }
 0xbc8   :  { %13132 = vmatpush3.bf16.msra.mxu1 %v16359_v41  ;;  %13144 = vmatpush3.bf16.msra.mxu0 %v16359_v41 }
 0xbc9   :  { %13133 = vmatprep.subr.bf16.mxu1 %v17148_v36  ;;  %13145 = vmatprep.subr.bf16.mxu0 %v17148_v36 }
 0xbcc   :  { %13134 = vmatpush3.bf16.msra.mxu1 %v16365_v25  ;;  %13146 = vmatpush3.bf16.msra.mxu0 %v16365_v25 }
 0xbcd   :  { %13135 = vmatprep.subr.bf16.mxu1 %v17148_v36  ;;  %13147 = vmatprep.subr.bf16.mxu0 %v17148_v36 }
 0xbd0   :  { %13136 = vmatpush3.bf16.msra.mxu1 %v16327_v51  ;;  %13148 = vmatpush3.bf16.msra.mxu0 %v16327_v51 }
 0xbd1   :  { %13153 = vmatprep.subr.bf16.mxu1 %v17148_v36  ;;  %12371 = vmatprep.subr.bf16.mxu0 %v13951_v2  ;;  %v13992_v2 = vld [vmem:[%s17119_s7 + $0x118] sm:$0xff]  }
 0xbd3   :  { %13150 = vmatmul.mubr.msk.bf16.vlgmr.msra.gmra.mxu0 %vm2506_vm5, %v13948_v22  ;;  %13138 = vmatmul.mubr.msk.bf16.vlgmr.msra.gmra.mxu1 %vm2506_vm5, %v13949_v52  ;;  %v13994_v22 = vld [vmem:[%s17119_s7 + $0x1b8] sm:$0xff]   ;;  %v13995_v52 = vld [vmem:[%s17119_s7 + $0x150] sm:$0xff]  }
 0xbd4   :  { %13154 = vmatpush3.bf16.msra.mxu1 %v16352_v31  ;;  %13161 = vmatprep.mubr.msk.bf16.mxu1 %vm14297_vm1, %v17148_v36  ;;  %v13981_v31 = vld [vmem:[%s17119_s7 + $0x130] sm:$0xff]  }
 0xbd5   :  { %13155 = vmatprep.subr.bf16.mxu1 %v17148_v36  ;;  %12372 = vmatpush3.bf16.msra.mxu0 %v13952_v1  ;;  %v13997_v1 = vld [vmem:[%s17119_s7 + $0x1f0] sm:$0xff]  }
 0xbd6   :  { %12373 = vmatprep.subr.bf16.mxu0 %v13953_v62 }
 0xbd8   :  { %13156 = vmatpush3.bf16.msra.mxu1 %v16359_v41 }
 0xbd9   :  { %13157 = vmatprep.subr.bf16.mxu1 %v17148_v36  ;;  %12374 = vmatpush3.bf16.msra.mxu0 %v13954_v43 }
 0xbda   :  { %12375 = vmatprep.subr.bf16.mxu0 %v13955_v50  ;;  %v13996_v50 = vld [vmem:[%s17119_s7 + $0x110] sm:$0xff]  }
 0xbdc   :  { %13158 = vmatpush3.bf16.msra.mxu1 %v16365_v25 }
 0xbdd   :  { %13159 = vmatprep.subr.bf16.mxu1 %v17148_v36  ;;  %12376 = vmatpush3.bf16.msra.mxu0 %v13956_v33  ;;  %v13998_v33 = vld [vmem:[%s17119_s7 + $0x1b0] sm:$0xff]  }
 0xbde   :  { %12377 = vmatprep.subr.bf16.mxu0 %v13957_v37  ;;  %v13999_v37 = vld [vmem:[%s17119_s7 + $0x148] sm:$0xff]  }
 0xbe0   :  { %13160 = vmatpush3.bf16.msra.mxu1 %v16327_v51  ;;  %v13966_v51 = vld [vmem:[%s17119_s7 + $0xb0] sm:$0xff]  }
 0xbe1   :  { %12378 = vmatpush3.bf16.msra.mxu0 %v13958_v17  ;;  %12393 = vmatprep.subr.bf16.mxu1 %v13961_v39  ;;  %v14001_v17 = vld [vmem:[%s17119_s7 + $0x1e8] sm:$0xff]  }
 0xbe2   :  { %12379 = vmatprep.subr.bf16.mxu0 %v13959_v59  ;;  %v14000_v39 = vld [vmem:[%s17119_s7 + $0x108] sm:$0xff]  }
 0xbe3   :  { %13162 = vmatmul.mubr.msk.bf16.vlgmr.msra.gmra.mxu1 %vm2506_vm5, %v13950_v18  ;;  %v14002_v59 = vld [vmem:[%s17119_s7 + $0x1a8] sm:$0xff]   ;;  %v14003_v18 = vld [vmem:[%s17119_s7 + $0x140] sm:$0xff]  }
 0xbe4   :  { %12394 = vmatpush3.bf16.msra.mxu1 %v13962_v35  ;;  %v14005_v35 = vld [vmem:[%s17119_s7 + $0x1e0] sm:$0xff]  }
 0xbe5   :  { %12380 = vmatpush3.bf16.msra.mxu0 %v13960_v7  ;;  %12395 = vmatprep.subr.bf16.mxu1 %v13965_v0 }
 0xbe6   :  { %12381 = vmatprep.subr.bf16.mxu0 %v13963_v16  ;;  %v14004_v16 = vld [vmem:[%s17119_s7 + $0x100] sm:$0xff]  }
 0xbe8   :  { %12396 = vmatpush3.bf16.msra.mxu1 %v13966_v51  ;;  %v14006_v51 = vld [vmem:[%s17119_s7 + $0x1a0] sm:$0xff]  }
 0xbe9   :  { %12382 = vmatpush3.bf16.msra.mxu0 %v13964_v38  ;;  %12397 = vmatprep.subr.bf16.mxu1 %v13969_v61 }
 0xbea   :  { %12383 = vmatprep.subr.bf16.mxu0 %v13967_v5  ;;  %v14007_v5 = vld [vmem:[%s17119_s7 + $0x1d8] sm:$0xff]  }
 0xbec   :  { %12398 = vmatpush3.bf16.msra.mxu1 %v13970_v9 }
 0xbed   :  { %12384 = vmatpush3.bf16.msra.mxu0 %v13968_v14  ;;  %12399 = vmatprep.subr.bf16.mxu1 %v13973_v11 }
 0xbee   :  { %12385 = vmatprep.subr.bf16.mxu0 %v13971_v13 }
 0xbf0   :  { %12400 = vmatpush3.bf16.msra.mxu1 %v13974_v46  ;;  %v14008_v46 = vld [vmem:[%s17119_s7 + $0x238] sm:$0xff]  }
 0xbf1   :  { %12386 = vmatpush3.bf16.msra.mxu0 %v13972_v8  ;;  %12401 = vmatprep.subr.bf16.mxu1 %v13976_v30  ;;  %v14009_v8 = vld [vmem:[%s17119_s7 + $0x198] sm:$0xff]  }
 0xbf2   :  { %12415 = vmatprep.subr.bf16.mxu0 %v13975_v6  ;;  %v14010_v6 = vld [vmem:[%s17119_s7 + $0x1d0] sm:$0xff]  }
 0xbf4   :  { %12402 = vmatpush3.bf16.msra.mxu1 %v13978_v24 }
 0xbf5   :  { %12403 = vmatprep.subr.bf16.mxu1 %v13980_v12  ;;  %v14011_v12 = vld [vmem:[%s17119_s7 + $0x230] sm:$0xff]  }
 0xbf8   :  { %12404 = vmatpush3.bf16.msra.mxu1 %v13982_v3  ;;  %v14012_v3 = vld [vmem:[%s17119_s7 + $0x190] sm:$0xff]  }
 0xbf9   :  { %12405 = vmatprep.subr.bf16.mxu1 %v13984_v29  ;;  %v14013_v29 = vld [vmem:[%s17119_s7 + $0x1c8] sm:$0xff]  }
 0xbfc   :  { %12406 = vmatpush3.bf16.msra.mxu1 %v13986_v26  ;;  %v14014_v26 = vld [vmem:[%s17119_s7 + $0x228] sm:$0xff]  }
 0xbfd   :  { %12407 = vmatprep.subr.bf16.mxu1 %v13988_v23  ;;  %v14015_v23 = vld [vmem:[%s17119_s7 + $0x188] sm:$0xff]  }
 0xc00   :  { %12408 = vmatpush3.bf16.msra.mxu1 %v13990_v40  ;;  %v14016_v40 = vld [vmem:[%s17119_s7 + $0x1c0] sm:$0xff]  }
 0xc01   :  { %12437 = vmatprep.subr.bf16.mxu1 %v13993_v32 }
 0xc63   :  { %v7915_v57 = vpop.f32.mrf.mxu0  ;;  %v7863_v20 = vpop.f32.mrf.mxu1 }
 0xc65   :  { %v13079_v10 = vpop.f32.mrf.mxu0  ;;  %v13067_v49 = vpop.f32.mrf.mxu1 }
 0xc66   :  { %v14018_v10 = vld [vmem:[%s17119_s7 + $0x180] sm:$0xff]  }
 0xc67   :  { %v7918_v15 = vpop.f32.mrf.mxu0  ;;  %v7866_v19 = vpop.f32.mrf.mxu1 }
 0xc68   :  { %v7922_v4 = vpack.c.bf16 %v7918_v15, %v7915_v57  ;;  %v7870_v54 = vpack.c.bf16 %v7866_v19, %v7863_v20  ;;  %v14017_v20 = vld [vmem:[%s17119_s7 + $0x220] sm:$0xff]  }
 0xc69   :  { %v13080_v58 = vpop.f32.mrf.mxu0  ;;  %v13068_v21 = vpop.f32.mrf.mxu1 }
 0xc6a   :  { %8902 = vmatprep.mubr.bf16.mxu0 %v7922_v4 }
 0xc6b   :  { %8903 = vmatmul.mubr.bf16.vlgmr.msra.gmra.mxu0 %v7870_v54 }
 0xc6c   :  { %12416 = vmatpush3.bf16.msra.mxu0 %v13977_v42 }
 0xc6d   :  { %12417 = vmatprep.subr.bf16.mxu0 %v13979_v47  ;;  %v14019_v47 = vld [vmem:[%s17119_s7 + $0x218] sm:$0xff]  }
 0xc70   :  { %12418 = vmatpush3.bf16.msra.mxu0 %v13981_v31  ;;  %v14020_v31 = vld [vmem:[%s17119_s7 + $0x210] sm:$0xff]  }
 0xc71   :  { %12419 = vmatprep.subr.bf16.mxu0 %v13983_v60  ;;  %v14021_v60 = vld [vmem:[%s17119_s7 + $0x208] sm:$0xff]  }
 0xc73   :  { %v8019_v44 = vpop.f32.mrf.mxu0  ;;  %v7967_v41 = vpop.f32.mrf.mxu1 }
 0xc74   :  { %12420 = vmatpush3.bf16.msra.mxu0 %v13985_v34 }
 0xc75   :  { %v13103_v25 = vpop.f32.mrf.mxu0  ;;  %v13091_v27 = vpop.f32.mrf.mxu1  ;;  %12421 = vmatprep.subr.bf16.mxu0 %v13987_v63  ;;  %v14022_v63 = vld [vmem:[%s17119_s7 + $0x200] sm:$0xff]  }
 0xc77   :  { %v8022_v55 = vpop.f32.mrf.mxu0  ;;  %v7970_v53 = vpop.f32.mrf.mxu1 }
 0xc78   :  { %v8026_v48 = vpack.c.bf16 %v8022_v55, %v8019_v44  ;;  %12422 = vmatpush3.bf16.msra.mxu0 %v13989_v56  ;;  %v7974_v45 = vpack.c.bf16 %v7970_v53, %v7967_v41 }
 0xc79   :  { %12423 = vmatprep.subr.bf16.mxu0 %v13991_v28  ;;  %v13092_v62 = vpop.f32.mrf.mxu1  ;;  %v13104_v43 = vpop.f32.mrf.mxu0 }
 0xc7a   :  { %8943 = vmatprep.mubr.bf16.mxu1 %v8026_v48 }
 0xc7b   :  { %8944 = vmatmul.mubr.bf16.vlgmr.msra.gmra.mxu1 %v7974_v45 }
 0xc7c   :  { %12424 = vmatpush3.bf16.msra.mxu0 %v13992_v2  ;;  %12438 = vmatpush3.bf16.msra.mxu1 %v13994_v22 }
 0xc7d   :  { %12425 = vmatprep.subr.bf16.mxu0 %v13995_v52  ;;  %12439 = vmatprep.subr.bf16.mxu1 %v13997_v1 }
 0xc80   :  { %12426 = vmatpush3.bf16.msra.mxu0 %v13996_v50  ;;  %12440 = vmatpush3.bf16.msra.mxu1 %v13998_v33 }
 0xc81   :  { %12427 = vmatprep.subr.bf16.mxu0 %v13999_v37  ;;  %12441 = vmatprep.subr.bf16.mxu1 %v14001_v17  ;;  %v11465_v37 = vld [vmem:[#allocation11] ss:$0 sm:$0xff] }
 0xc83   :  { %v8123_v7 = vpop.f32.mrf.mxu0  ;;  %v8071_v0 = vpop.f32.mrf.mxu1 }
 0xc84   :  { %12428 = vmatpush3.bf16.msra.mxu0 %v14000_v39  ;;  %12442 = vmatpush3.bf16.msra.mxu1 %v14002_v59 }
 0xc85   :  { %v13127_v38 = vpop.f32.mrf.mxu0  ;;  %v13115_v61 = vpop.f32.mrf.mxu1  ;;  %12429 = vmatprep.subr.bf16.mxu0 %v14003_v18  ;;  %12443 = vmatprep.subr.bf16.mxu1 %v14005_v35 }
 0xc87   :  { %v8126_v9 = vpop.f32.mrf.mxu0  ;;  %v8074_v14 = vpop.f32.mrf.mxu1 }
 0xc88   :  { %v8130_v11 = vpack.c.bf16 %v8126_v9, %v8123_v7  ;;  %12430 = vmatpush3.bf16.msra.mxu0 %v14004_v16  ;;  %v8078_v13 = vpack.c.bf16 %v8074_v14, %v8071_v0  ;;  %12444 = vmatpush3.bf16.msra.mxu1 %v14006_v51 }
 0xc89   :  { %13165 = vmatprep.subr.bf16.mxu0 %v17148_v36  ;;  %12445 = vmatprep.subr.bf16.mxu1 %v14007_v5  ;;  %v13128_v30 = vpop.f32.mrf.mxu0  ;;  %v13116_v24 = vpop.f32.mrf.mxu1 }
 0xc8a   :  { %8984 = vmatprep.mubr.bf16.mxu0 %v8130_v11 }
 0xc8b   :  { %8985 = vmatmul.mubr.bf16.vlgmr.msra.gmra.mxu0 %v8078_v13 }
 0xc8c   :  { %13166 = vmatpush3.bf16.msra.mxu0 %v14008_v46  ;;  %12446 = vmatpush3.bf16.msra.mxu1 %v14009_v8 }
 0xc8d   :  { %13167 = vmatprep.subr.bf16.mxu0 %v17148_v36  ;;  %12447 = vmatprep.subr.bf16.mxu1 %v14010_v6 }
 0xc8e   :  { %13181 = vmatprep.mubr.msk.bf16.mxu0 %vm14297_vm1, %v17148_v36 }
 0xc90   :  { %13168 = vmatpush3.bf16.msra.mxu0 %v14011_v12  ;;  %12448 = vmatpush3.bf16.msra.mxu1 %v14012_v3 }
 0xc91   :  { %13169 = vmatprep.subr.bf16.mxu0 %v17148_v36  ;;  %12449 = vmatprep.subr.bf16.mxu1 %v14013_v29 }
 0xc93   :  { %v8227_v32 = vpop.f32.mrf.mxu0  ;;  %v8175_v57 = vpop.f32.mrf.mxu1 }
 0xc94   :  { %13170 = vmatpush3.bf16.msra.mxu0 %v14014_v26  ;;  %12450 = vmatpush3.bf16.msra.mxu1 %v14015_v23 }
 0xc95   :  { %v13151_v49 = vpop.f32.mrf.mxu0  ;;  %v13139_v15 = vpop.f32.mrf.mxu1  ;;  %13171 = vmatprep.subr.bf16.mxu0 %v17148_v36  ;;  %12451 = vmatprep.subr.bf16.mxu1 %v14016_v40 }
 0xc96   :  { %v14032_v49 = vld [vmem:[%s17122_s10 + $0x78] sm:$0xff]   ;;  %v14027_v15 = vld [vmem:[%s17121_s9 + $0x10] sm:$0xff]  }
 0xc97   :  { %v8230_v19 = vpop.f32.mrf.mxu0  ;;  %v8178_v4 = vpop.f32.mrf.mxu1 }
 0xc98   :  { %v8234_v54 = vpack.c.bf16 %v8230_v19, %v8227_v32  ;;  %13172 = vmatpush3.bf16.msra.mxu0 %v14017_v20  ;;  %v8182_v42 = vpack.c.bf16 %v8178_v4, %v8175_v57  ;;  %12452 = vmatpush3.bf16.msra.mxu1 %v14018_v10  ;;  %v14023_v32 = vld [vmem:[%s17121_s9] sm:$0xff]   ;;  %v14024_v57 = vld [vmem:[%s17121_s9 + $0x18] sm:$0xff]   ;;  %v14025_v20 = vld [vmem:[%s17121_s9 + $0x8] sm:$0xff]  }
 0xc99   :  { %13173 = vmatprep.subr.bf16.mxu0 %v17148_v36  ;;  %v13140_v58 = vpop.f32.mrf.mxu1  ;;  %v13152_v21 = vpop.f32.mrf.mxu0  ;;  %13185 = vmatprep.subr.bf16.mxu1 %v17148_v36  ;;  %v14026_v10 = vld [vmem:[%s17121_s9 + $0x28] sm:$0xff]   ;;  %v14030_v19 = vld [vmem:[%s17121_s9 + $0x38] sm:$0xff]  }
 0xc9a   :  { %9025 = vmatprep.mubr.bf16.mxu1 %v8234_v54  ;;  %v14033_v4 = vld [vmem:[%s17122_s10 + $0x38] sm:$0xff]   ;;  %v14034_v54 = vld [vmem:[%s17122_s10 + $0x70] sm:$0xff]   ;;  %v14028_v58 = vld [vmem:[%s17121_s9 + $0x20] sm:$0xff]  }
 0xc9b   :  { %9026 = vmatmul.mubr.bf16.vlgmr.msra.gmra.mxu1 %v8182_v42  ;;  %v14035_v42 = vld [vmem:[%s17122_s10 + $0x30] sm:$0xff]   ;;  %v14039_v21 = vld [vmem:[%s17122_s10 + $0x28] sm:$0xff]  }
 0xc9c   :  { %13174 = vmatpush3.bf16.msra.mxu0 %v14019_v47  ;;  %13187 = vmatprep.mubr.msk.bf16.mxu1 %vm14297_vm1, %v17148_v36  ;;  %v14037_v47 = vld [vmem:[%s17122_s10 + $0x68] sm:$0xff]  }
 0xc9d   :  { %13175 = vmatprep.subr.bf16.mxu0 %v17148_v36 }
 0xca0   :  { %13176 = vmatpush3.bf16.msra.mxu0 %v14020_v31  ;;  %v14041_v31 = vld [vmem:[%s17122_s10 + $0x60] sm:$0xff]  }
 0xca1   :  { %13177 = vmatprep.subr.bf16.mxu0 %v17148_v36 }
 0xca3   :  { %v8279_v34 = vpop.f32.mrf.mxu1 }
 0xca4   :  { %13178 = vmatpush3.bf16.msra.mxu0 %v14021_v60  ;;  %v14043_v60 = vld [vmem:[%s17122_s10 + $0x20] sm:$0xff]  }
 0xca5   :  { %v13163_v44 = vpop.f32.mrf.mxu1  ;;  %13179 = vmatprep.subr.bf16.mxu0 %v17148_v36 }
 0xca6   :  { %v14036_v44 = vld [vmem:[%s17122_s10 + $0xf8] sm:$0xff]  }
 0xca7   :  { %v8282_v41 = vpop.f32.mrf.mxu1 }
 0xca8   :  { %v8286_v56 = vpack.c.bf16 %v8282_v41, %v8279_v34  ;;  %13180 = vmatpush3.bf16.msra.mxu0 %v14022_v63  ;;  %v14045_v34 = vld [vmem:[%s17122_s10 + $0x58] sm:$0xff]   ;;  %v14029_v63 = vld [vmem:[%s17121_s9 + $0x30] sm:$0xff]   ;;  %v14031_v41 = vld [vmem:[%s17121_s9 + $0x40] sm:$0xff]  }
 0xca9   :  { %v13164_v25 = vpop.f32.mrf.mxu1  ;;  %13203 = vmatprep.subr.bf16.mxu0 %v17148_v36 }
 0xcaa   :  { %v14040_v25 = vld [vmem:[%s17122_s10 + $0xf0] sm:$0xff]  }
 0xcab   :  { %13182 = vmatmul.mubr.bf16.vlgmr.msra.gmra.mxu0 %v8286_v56  ;;  %v14038_v56 = vld [vmem:[%s17122_s10 + $0xb8] sm:$0xff]  }
 0xcac   :  { %13205 = vmatprep.mubr.msk.bf16.mxu0 %vm14297_vm1, %v17148_v36 }
 0xd2b   :  { %v12387_v27 = vpop.f32.mrf.mxu0 }
 0xd2d   :  { %v12388_v55 = vpop.f32.mrf.mxu0 }
 0xd2e   :  { %v12389_v33 = vadd.f32 %v12388_v55, %v12387_v27  ;;  %v14042_v27 = vld [vmem:[%s17122_s10 + $0xb0] sm:$0xff]   ;;  %v14046_v55 = vld [vmem:[%s17122_s10 + $0xa8] sm:$0xff]  }
 0xd2f   :  { %v12390_v48 = vpop.f32.mrf.mxu0 }
 0xd30   :  { %v8905_v35 = vadd.f32 %v12389_v33, %v11465_v37  ;;  %v14057_v33 = vld [vmem:[%s17122_s10 + $0x40] sm:$0xff]  }
 0xd31   :  { %v12391_v2 = vpop.f32.mrf.mxu0 }
 0xd32   :  { %v12392_v39 = vadd.f32 %v12391_v2, %v12390_v48  ;;  %v14048_v48 = vld [vmem:[%s17122_s10 + $0xe0] sm:$0xff]  }
 0xd33   :  { %v14050_v2 = vld [vmem:[%s17122_s10 + $0xa0] sm:$0xff]  }
 0xd34   :  { %v8908_v51 = vadd.f32 %v12392_v39, %v11465_v37  ;;  %v14058_v37 = vld [vmem:[%s17122_s10 + $0x90] sm:$0xff]   ;;  %v14060_v39 = vld [vmem:[%s17122_s10 + $0xc8] sm:$0xff]  }
 0xd3b   :  { %v12409_v28 = vpop.f32.mrf.mxu1 }
 0xd3d   :  { %v12410_v53 = vpop.f32.mrf.mxu1 }
 0xd3e   :  { %v12411_v59 = vadd.f32 %v12410_v53, %v12409_v28  ;;  %v14044_v28 = vld [vmem:[%s17122_s10 + $0xe8] sm:$0xff]   ;;  %v14047_v53 = vld [vmem:[%s17122_s10 + $0x18] sm:$0xff]  }
 0xd3f   :  { %v12412_v45 = vpop.f32.mrf.mxu1 }
 0xd40   :  { %v8946_v38 = vadd.f32 %v12411_v59, %v8905_v35  ;;  %v14061_v59 = vld [vmem:[%s17122_s10 + $0x88] sm:$0xff]   ;;  %v14064_v35 = vld [vmem:[%s17122_s10 + $0xc0] sm:$0xff]  }
 0xd41   :  { %v12413_v22 = vpop.f32.mrf.mxu1 }
 0xd42   :  { %v12414_v7 = vadd.f32 %v12413_v22, %v12412_v45  ;;  %v14049_v45 = vld [vmem:[%s17122_s10 + $0x50] sm:$0xff]  }
 0xd43   :  { %v14051_v22 = vld [vmem:[%s17122_s10 + $0x10] sm:$0xff]  }
 0xd44   :  { %v8949_v9 = vadd.f32 %v12414_v7, %v8908_v51  ;;  %v14065_v7 = vld [vmem:[%s17122_s10 + $0x80] sm:$0xff]  }
 0xd4b   :  { %v12431_v52 = vpop.f32.mrf.mxu0 }
 0xd4d   :  { %v12432_v62 = vpop.f32.mrf.mxu0 }
 0xd4e   :  { %v12433_v0 = vadd.f32 %v12432_v62, %v12431_v52  ;;  %v14052_v52 = vld [vmem:[%s17122_s10 + $0xd8] sm:$0xff]  }
 0xd4f   :  { %v12434_v50 = vpop.f32.mrf.mxu0  ;;  %v14054_v62 = vld [vmem:[%s17122_s10 + $0x98] sm:$0xff]  }
 0xd50   :  { %v8987_v14 = vadd.f32 %v12433_v0, %v8946_v38  ;;  %v14068_v0 = vld [vmem:[%s17122_s10 + $0x1f8] sm:$0xff]  }
 0xd51   :  { %v12435_v18 = vpop.f32.mrf.mxu0 }
 0xd52   :  { %v12436_v61 = vadd.f32 %v12435_v18, %v12434_v50  ;;  %v14056_v50 = vld [vmem:[%s17122_s10 + $0xd0] sm:$0xff]   ;;  %v14062_v18 = vld [vmem:[%s17122_s10 + $0x178] sm:$0xff]  }
 0xd54   :  { %v8990_v46 = vadd.f32 %v12436_v61, %v8949_v9 }
 0xd5b   :  { %v12453_v1 = vpop.f32.mrf.mxu1 }
 0xd5d   :  { %v12454_v43 = vpop.f32.mrf.mxu1 }
 0xd5e   :  { %v12455_v5 = vadd.f32 %v12454_v43, %v12453_v1  ;;  %v14053_v1 = vld [vmem:[%s17122_s10 + $0x48] sm:$0xff]  }
 0xd5f   :  { %v12456_v17 = vpop.f32.mrf.mxu1  ;;  %v14055_v43 = vld [vmem:[%s17122_s10 + $0x8] sm:$0xff]  }
 0xd60   :  { %v9028_v8 = vadd.f32 %v12455_v5, %v8987_v14 }
 0xd61   :  { %v12457_v16 = vpop.f32.mrf.mxu1 }
 0xd62   :  { %v12458_v11 = vadd.f32 %v12457_v16, %v12456_v17  ;;  %v14059_v17 = vld [vmem:[%s17122_s10] sm:$0xff]  }
 0xd64   :  { %v9031_v24 = vadd.f32 %v12458_v11, %v8990_v46 }
 0xd6b   :  { %v9068_v13 = vpop.f32.mrf.mxu0 }
 0xd6c   :  { %v9069_v6 = vadd.f32 %v9068_v13, %v9028_v8 }
 0xd6d   :  { %v13183_v30 = vpop.f32.mrf.mxu0 }
 0xd6e   :  { %v9075_v26 = vmax.f32 %v9069_v6, 0.0 }
 0xd6f   :  { %v9071_v12 = vpop.f32.mrf.mxu0 }
 0xd70   :  { %v9072_v3 = vadd.f32 %v9071_v12, %v9031_v24 }
 0xd71   :  { %v13184_v29 = vpop.f32.mrf.mxu0 }
 0xd72   :  { %v9076_v23 = vmax.f32 %v9072_v3, 0.0  ;;  %v14063_v29 = vld [vmem:[%s17122_s10 + $0x138] sm:$0xff]  }
 0xd74   :  { %v9077_v40 = vpack.c.bf16 %v9076_v23, %v9075_v26 }
 0xd76   :  { %13186 = vmatpush3.bf16.msra.mxu1 %v9077_v40  ;;  %13204 = vmatpush3.bf16.msra.mxu0 %v9077_v40 }
 0xd77   :  { %13191 = vmatprep.subr.bf16.mxu1 %v17148_v36  ;;  %13215 = vmatprep.subr.bf16.mxu0 %v17148_v36 }
 0xd79   :  { %13188 = vmatmul.mubr.msk.bf16.vlgmr.msra.gmra.mxu1 %vm3766_vm6, %v14023_v32  ;;  %13206 = vmatmul.mubr.msk.bf16.vlgmr.msra.gmra.mxu0 %vm3766_vm6, %v14024_v57  ;;  %v14066_v32 = vld [vmem:[%s17122_s10 + $0x170] sm:$0xff]  }
 0xd7a   :  { %13192 = vmatpush3.bf16.msra.mxu1 %v9077_v40  ;;  %13216 = vmatpush3.bf16.msra.mxu0 %v9077_v40 }
 0xd7b   :  { %13193 = vmatprep.mubr.msk.bf16.mxu1 %vm14297_vm1, %v17148_v36  ;;  %13197 = vmatprep.subr.bf16.mxu1 %v17148_v36 }
 0xd7c   :  { %13217 = vmatprep.mubr.msk.bf16.mxu0 %vm14297_vm1, %v17148_v36  ;;  %13227 = vmatprep.subr.bf16.mxu0 %v17148_v36 }
 0xd81   :  { %13194 = vmatmul.mubr.msk.bf16.vlgmr.msra.gmra.mxu1 %vm3766_vm6, %v14025_v20  ;;  %13218 = vmatmul.mubr.msk.bf16.vlgmr.msra.gmra.mxu0 %vm3766_vm6, %v14026_v10 }
 0xd82   :  { %13198 = vmatpush3.bf16.msra.mxu1 %v9077_v40  ;;  %13228 = vmatpush3.bf16.msra.mxu0 %v9077_v40 }
 0xd83   :  { %13199 = vmatprep.mubr.msk.bf16.mxu1 %vm14297_vm1, %v17148_v36  ;;  %13209 = vmatprep.subr.bf16.mxu1 %v17148_v36 }
 0xd84   :  { %13229 = vmatprep.mubr.msk.bf16.mxu0 %vm14297_vm1, %v17148_v36  ;;  %12486 = vmatprep.subr.bf16.mxu0 %v14032_v49  ;;  %v14067_v49 = vld [vmem:[%s17122_s10 + $0x130] sm:$0xff]  }
 0xd89   :  { %13200 = vmatmul.mubr.msk.bf16.vlgmr.msra.gmra.mxu1 %vm3766_vm6, %v14027_v15  ;;  %13230 = vmatmul.mubr.msk.bf16.vlgmr.msra.gmra.mxu0 %vm3766_vm6, %v14030_v19  ;;  %v14069_v19 = vld [vmem:[%s17122_s10 + $0x168] sm:$0xff]  }
 0xd8a   :  { %13210 = vmatpush3.bf16.msra.mxu1 %v9077_v40  ;;  %13211 = vmatprep.mubr.msk.bf16.mxu1 %vm14297_vm1, %v17148_v36 }
 0xd8b   :  { %13221 = vmatprep.subr.bf16.mxu1 %v17148_v36  ;;  %12487 = vmatpush3.bf16.msra.mxu0 %v14033_v4 }
 0xd8c   :  { %12488 = vmatprep.subr.bf16.mxu0 %v14034_v54 }
 0xd8f   :  { %12489 = vmatpush3.bf16.msra.mxu0 %v14035_v42  ;;  %v14070_v42 = vld [vmem:[%s17122_s10 + $0x1b8] sm:$0xff]  }
 0xd90   :  { %12490 = vmatprep.subr.bf16.mxu0 %v14037_v47 }
 0xd91   :  { %13212 = vmatmul.mubr.msk.bf16.vlgmr.msra.gmra.mxu1 %vm3766_vm6, %v14028_v58 }
 0xd92   :  { %13222 = vmatpush3.bf16.msra.mxu1 %v9077_v40  ;;  %13223 = vmatprep.mubr.msk.bf16.mxu1 %vm14297_vm1, %v17148_v36 }
 0xd93   :  { %13233 = vmatprep.subr.bf16.mxu1 %v17148_v36  ;;  %12491 = vmatpush3.bf16.msra.mxu0 %v14039_v21  ;;  %v14071_v21 = vld [vmem:[%s17122_s10 + $0x128] sm:$0xff]  }
 0xd94   :  { %12492 = vmatprep.subr.bf16.mxu0 %v14041_v31  ;;  %v14072_v31 = vld [vmem:[%s17122_s10 + $0x1f0] sm:$0xff]  }
 0xd97   :  { %12493 = vmatpush3.bf16.msra.mxu0 %v14043_v60 }
 0xd98   :  { %12494 = vmatprep.subr.bf16.mxu0 %v14045_v34  ;;  %v14073_v34 = vld [vmem:[%s17122_s10 + $0x160] sm:$0xff]  }
 0xd99   :  { %13224 = vmatmul.mubr.msk.bf16.vlgmr.msra.gmra.mxu1 %vm3766_vm6, %v14029_v63 }
 0xd9a   :  { %13234 = vmatpush3.bf16.msra.mxu1 %v9077_v40  ;;  %13235 = vmatprep.mubr.msk.bf16.mxu1 %vm14297_vm1, %v17148_v36 }
 0xd9b   :  { %12508 = vmatprep.subr.bf16.mxu1 %v14036_v44  ;;  %12495 = vmatpush3.bf16.msra.mxu0 %v14047_v53  ;;  %v14078_v53 = vld [vmem:[%s17122_s10 + $0x1a8] sm:$0xff]  }
 0xd9c   :  { %12496 = vmatprep.subr.bf16.mxu0 %v14049_v45  ;;  %v14079_v45 = vld [vmem:[%s17122_s10 + $0x118] sm:$0xff]  }
 0xd9f   :  { %12497 = vmatpush3.bf16.msra.mxu0 %v14051_v22  ;;  %v14081_v22 = vld [vmem:[%s17122_s10 + $0x150] sm:$0xff]  }
 0xda0   :  { %12498 = vmatprep.subr.bf16.mxu0 %v14053_v1  ;;  %v14082_v1 = vld [vmem:[%s17122_s10 + $0x1a0] sm:$0xff]  }
 0xda1   :  { %13236 = vmatmul.mubr.msk.bf16.vlgmr.msra.gmra.mxu1 %vm3766_vm6, %v14031_v41  ;;  %v14074_v41 = vld [vmem:[%s17122_s10 + $0x1b0] sm:$0xff]  }
 0xda2   :  { %12509 = vmatpush3.bf16.msra.mxu1 %v14038_v56 }
 0xda3   :  { %12510 = vmatprep.subr.bf16.mxu1 %v14040_v25  ;;  %12499 = vmatpush3.bf16.msra.mxu0 %v14055_v43  ;;  %v14075_v25 = vld [vmem:[%s17122_s10 + $0x120] sm:$0xff]   ;;  %v14083_v43 = vld [vmem:[%s17122_s10 + $0x110] sm:$0xff]  }
 0xda4   :  { %12500 = vmatprep.subr.bf16.mxu0 %v14057_v33  ;;  %v14085_v33 = vld [vmem:[%s17122_s10 + $0x148] sm:$0xff]  }
 0xda6   :  { %12511 = vmatpush3.bf16.msra.mxu1 %v14042_v27  ;;  %v14076_v27 = vld [vmem:[%s17122_s10 + $0x1e8] sm:$0xff]  }
 0xda7   :  { %12512 = vmatprep.subr.bf16.mxu1 %v14044_v28  ;;  %12501 = vmatpush3.bf16.msra.mxu0 %v14059_v17  ;;  %v14077_v28 = vld [vmem:[%s17122_s10 + $0x158] sm:$0xff]  }
 0xda8   :  { %12530 = vmatprep.subr.bf16.mxu0 %v14062_v18  ;;  %v14086_v17 = vld [vmem:[%s17122_s10 + $0x198] sm:$0xff]   ;;  %v14088_v18 = vld [vmem:[%s17122_s10 + $0x1d0] sm:$0xff]  }
 0xdaa   :  { %12513 = vmatpush3.bf16.msra.mxu1 %v14046_v55 }
 0xdab   :  { %12514 = vmatprep.subr.bf16.mxu1 %v14048_v48 }
 0xdae   :  { %12515 = vmatpush3.bf16.msra.mxu1 %v14050_v2  ;;  %v14080_v2 = vld [vmem:[%s17122_s10 + $0x1e0] sm:$0xff]  }
 0xdaf   :  { %12516 = vmatprep.subr.bf16.mxu1 %v14052_v52 }
 0xdb2   :  { %12517 = vmatpush3.bf16.msra.mxu1 %v14054_v62 }
 0xdb3   :  { %12518 = vmatprep.subr.bf16.mxu1 %v14056_v50  ;;  %v14084_v50 = vld [vmem:[%s17122_s10 + $0x1d8] sm:$0xff]  }
 0xdb6   :  { %12519 = vmatpush3.bf16.msra.mxu1 %v14058_v37 }
 0xdb7   :  { %12520 = vmatprep.subr.bf16.mxu1 %v14060_v39 }
 0xdba   :  { %12521 = vmatpush3.bf16.msra.mxu1 %v14061_v59  ;;  %v14087_v59 = vld [vmem:[%s17122_s10 + $0x108] sm:$0xff]  }
 0xdbb   :  { %12522 = vmatprep.subr.bf16.mxu1 %v14064_v35  ;;  %v14089_v35 = vld [vmem:[%s17122_s10 + $0x140] sm:$0xff]  }
 0xdbe   :  { %12523 = vmatpush3.bf16.msra.mxu1 %v14065_v7 }
 0xdbf   :  { %12552 = vmatprep.subr.bf16.mxu1 %v14068_v0  ;;  %v14090_v0 = vld [vmem:[%s17122_s10 + $0x190] sm:$0xff]  }
 0xe39   :  { %v9122_v16 = vpop.f32.mrf.mxu1  ;;  %v9278_v51 = vpop.f32.mrf.mxu0 }
 0xe3b   :  { %v13189_v38 = vpop.f32.mrf.mxu1  ;;  %v13207_v61 = vpop.f32.mrf.mxu0 }
 0xe3c   :  { %v14092_v38 = vld [vmem:[%s17122_s10 + $0x1c8] sm:$0xff]  }
 0xe3d   :  { %v9125_v5 = vpop.f32.mrf.mxu1  ;;  %v9281_v9 = vpop.f32.mrf.mxu0 }
 0xe3e   :  { %v9285_v14 = vpack.c.bf16 %v9281_v9, %v9278_v51  ;;  %v9129_v23 = vpack.c.bf16 %v9125_v5, %v9122_v16  ;;  %v14091_v51 = vld [vmem:[%s17122_s10 + $0x100] sm:$0xff]   ;;  %v14093_v5 = vld [vmem:[%s17122_s10 + $0x188] sm:$0xff]  }
 0xe3f   :  { %v13190_v11 = vpop.f32.mrf.mxu1  ;;  %v13208_v13 = vpop.f32.mrf.mxu0 }
 0xe40   :  { %10202 = vmatprep.mubr.bf16.mxu1 %v9285_v14  ;;  %v14094_v14 = vld [vmem:[%s17122_s10 + $0x238] sm:$0xff]   ;;  %v14095_v11 = vld [vmem:[%s17122_s10 + $0x1c0] sm:$0xff]  }
 0xe41   :  { %v9174_v46 = vpop.f32.mrf.mxu1  ;;  %v9382_v8 = vpop.f32.mrf.mxu0 }
 0xe43   :  { %v13195_v30 = vpop.f32.mrf.mxu1  ;;  %v13219_v6 = vpop.f32.mrf.mxu0 }
 0xe44   :  { %v14097_v30 = vld [vmem:[%s17122_s10 + $0x230] sm:$0xff]  }
 0xe45   :  { %v9177_v24 = vpop.f32.mrf.mxu1  ;;  %v9385_v12 = vpop.f32.mrf.mxu0 }
 0xe46   :  { %v9181_v3 = vpack.c.bf16 %v9177_v24, %v9174_v46  ;;  %v9389_v26 = vpack.c.bf16 %v9385_v12, %v9382_v8  ;;  %v14096_v8 = vld [vmem:[%s17122_s10 + $0x180] sm:$0xff]   ;;  %v14098_v24 = vld [vmem:[%s17122_s10 + $0x228] sm:$0xff]  }
 0xe47   :  { %v13196_v40 = vpop.f32.mrf.mxu1  ;;  %v13220_v57 = vpop.f32.mrf.mxu0  ;;  %v14099_v12 = vld [vmem:[%s17122_s10 + $0x220] sm:$0xff]  }
 0xe48   :  { %10161 = vmatprep.mubr.bf16.mxu0 %v9181_v3  ;;  %v14100_v3 = vld [vmem:[%s17122_s10 + $0x218] sm:$0xff]  }
 0xe49   :  { %v9226_v20 = vpop.f32.mrf.mxu1  ;;  %10162 = vmatmul.mubr.bf16.vlgmr.msra.gmra.mxu0 %v9129_v23  ;;  %v9486_v10 = vpop.f32.mrf.mxu0  ;;  %v14103_v23 = vld [vmem:[%s17122_s10 + $0x200] sm:$0xff]   ;;  %v14105_v57 = vld [vmem:[%s17124_s12 + $0x78] sm:$0xff]  }
 0xe4a   :  { %12531 = vmatpush3.bf16.msra.mxu0 %v14063_v29  ;;  %10243 = vmatprep.mubr.bf16.mxu0 %v9389_v26  ;;  %v14101_v29 = vld [vmem:[%s17122_s10 + $0x210] sm:$0xff]   ;;  %v14102_v26 = vld [vmem:[%s17122_s10 + $0x208] sm:$0xff]  }
 0xe4b   :  { %v13201_v15 = vpop.f32.mrf.mxu1  ;;  %12532 = vmatprep.subr.bf16.mxu0 %v14066_v32  ;;  %v13231_v4 = vpop.f32.mrf.mxu0  ;;  %v14104_v32 = vld [vmem:[%s17124_s12 + $0x38] sm:$0xff]  }
 0xe4c   :  { %v14109_v15 = vld [vmem:[%s17124_s12 + $0x68] sm:$0xff]   ;;  %v14111_v4 = vld [vmem:[%s17124_s12 + $0x60] sm:$0xff]  }
 0xe4d   :  { %v9229_v54 = vpop.f32.mrf.mxu1  ;;  %v9489_v47 = vpop.f32.mrf.mxu0 }
 0xe4e   :  { %v9233_v58 = vpack.c.bf16 %v9229_v54, %v9226_v20  ;;  %12533 = vmatpush3.bf16.msra.mxu0 %v14067_v49  ;;  %v9493_v60 = vpack.c.bf16 %v9489_v47, %v9486_v10  ;;  %v14106_v20 = vld [vmem:[%s17124_s12 + $0x30] sm:$0xff]   ;;  %v14108_v49 = vld [vmem:[%s17124_s12 + $0x28] sm:$0xff]   ;;  %v14112_v54 = vld [vmem:[%s17124_s12 + $0x18] sm:$0xff]  }
 0xe4f   :  { %12534 = vmatprep.subr.bf16.mxu0 %v14069_v19  ;;  %v13202_v63 = vpop.f32.mrf.mxu1  ;;  %v13232_v44 = vpop.f32.mrf.mxu0  ;;  %v14107_v10 = vld [vmem:[%s17124_s12 + $0x70] sm:$0xff]   ;;  %v14110_v19 = vld [vmem:[%s17124_s12 + $0x20] sm:$0xff]  }
 0xe50   :  { %10203 = vmatmul.mubr.bf16.vlgmr.msra.gmra.mxu1 %v9233_v58  ;;  %v14114_v47 = vld [vmem:[%s17124_s12 + $0x10] sm:$0xff]  }
 0xe51   :  { %12553 = vmatpush3.bf16.msra.mxu1 %v14070_v42  ;;  %v9330_v56 = vpop.f32.mrf.mxu1  ;;  %10284 = vmatprep.mubr.bf16.mxu1 %v9493_v60  ;;  %v14113_v42 = vld [vmem:[%s17124_s12 + $0x58] sm:$0xff]   ;;  %v14115_v58 = vld [vmem:[%s17124_s12 + $0x50] sm:$0xff]   ;;  %v14118_v60 = vld [vmem:[%s17124_s12] sm:$0xff]  }
 0xe52   :  { %12535 = vmatpush3.bf16.msra.mxu0 %v14071_v21  ;;  %12554 = vmatprep.subr.bf16.mxu1 %v14072_v31  ;;  %v14116_v21 = vld [vmem:[%s17124_s12 + $0x8] sm:$0xff]  }
 0xe53   :  { %12536 = vmatprep.subr.bf16.mxu0 %v14073_v34  ;;  %v13213_v55 = vpop.f32.mrf.mxu1  ;;  %v14117_v31 = vld [vmem:[%s17124_s12 + $0x48] sm:$0xff]   ;;  %v14119_v34 = vld [vmem:[%s17124_s12 + $0x40] sm:$0xff]  }
 0xe55   :  { %12555 = vmatpush3.bf16.msra.mxu1 %v14074_v41  ;;  %v9333_v48 = vpop.f32.mrf.mxu1 }
 0xe56   :  { %12537 = vmatpush3.bf16.msra.mxu0 %v14075_v25  ;;  %12556 = vmatprep.subr.bf16.mxu1 %v14076_v27  ;;  %v9337_v13 = vpack.c.bf16 %v9333_v48, %v9330_v56 }
 0xe57   :  { %12538 = vmatprep.subr.bf16.mxu0 %v14077_v28  ;;  %v13214_v52 = vpop.f32.mrf.mxu1 }
 0xe59   :  { %12557 = vmatpush3.bf16.msra.mxu1 %v14078_v53  ;;  %v9434_v62 = vpop.f32.mrf.mxu1 }
 0xe5a   :  { %12539 = vmatpush3.bf16.msra.mxu0 %v14079_v45  ;;  %12558 = vmatprep.subr.bf16.mxu1 %v14080_v2 }
 0xe5b   :  { %12540 = vmatprep.subr.bf16.mxu0 %v14081_v22  ;;  %v13225_v37 = vpop.f32.mrf.mxu1 }
 0xe5d   :  { %12559 = vmatpush3.bf16.msra.mxu1 %v14082_v1  ;;  %v9437_v39 = vpop.f32.mrf.mxu1  ;;  %v11556_v1 = vld [vmem:[%s17123_s11] ss:$0 sm:$0xff] }
 0xe5e   :  { %12541 = vmatpush3.bf16.msra.mxu0 %v14083_v43  ;;  %12560 = vmatprep.subr.bf16.mxu1 %v14084_v50  ;;  %v9441_v6 = vpack.c.bf16 %v9437_v39, %v9434_v62 }
 0xe5f   :  { %12542 = vmatprep.subr.bf16.mxu0 %v14085_v33  ;;  %v13226_v7 = vpop.f32.mrf.mxu1 }
 0xe61   :  { %12561 = vmatpush3.bf16.msra.mxu1 %v14086_v17  ;;  %v9538_v16 = vpop.f32.mrf.mxu1 }
 0xe62   :  { %12543 = vmatpush3.bf16.msra.mxu0 %v14087_v59  ;;  %12562 = vmatprep.subr.bf16.mxu1 %v14088_v18 }
 0xe63   :  { %12544 = vmatprep.subr.bf16.mxu0 %v14089_v35  ;;  %v13237_v61 = vpop.f32.mrf.mxu1 }
 0xe65   :  { %12563 = vmatpush3.bf16.msra.mxu1 %v14090_v0  ;;  %v9541_v9 = vpop.f32.mrf.mxu1 }
 0xe66   :  { %12545 = vmatpush3.bf16.msra.mxu0 %v14091_v51  ;;  %12564 = vmatprep.subr.bf16.mxu1 %v14092_v38  ;;  %v9545_v40 = vpack.c.bf16 %v9541_v9, %v9538_v16 }
 0xe67   :  { %13239 = vmatprep.subr.bf16.mxu0 %v17148_v36  ;;  %v13238_v46 = vpop.f32.mrf.mxu1 }
 0xe69   :  { %10244 = vmatmul.mubr.bf16.vlgmr.msra.gmra.mxu0 %v9337_v13  ;;  %12565 = vmatpush3.bf16.msra.mxu1 %v14093_v5 }
 0xe6a   :  { %13240 = vmatpush3.bf16.msra.mxu0 %v14094_v14  ;;  %12566 = vmatprep.subr.bf16.mxu1 %v14095_v11 }
 0xe6b   :  { %13241 = vmatprep.subr.bf16.mxu0 %v17148_v36  ;;  %13255 = vmatprep.mubr.msk.bf16.mxu0 %vm14297_vm1, %v17148_v36 }
 0xe6d   :  { %12567 = vmatpush3.bf16.msra.mxu1 %v14096_v8 }
 0xe6e   :  { %13242 = vmatpush3.bf16.msra.mxu0 %v14097_v30  ;;  %13259 = vmatprep.subr.bf16.mxu1 %v17148_v36 }
 0xe6f   :  { %13243 = vmatprep.subr.bf16.mxu0 %v17148_v36 }
 0xe70   :  { %10285 = vmatmul.mubr.bf16.vlgmr.msra.gmra.mxu1 %v9441_v6 }
 0xe71   :  { %13275 = vmatprep.mubr.msk.bf16.mxu1 %vm14297_vm1, %v17148_v36  ;;  %13260 = vmatpush3.bf16.msra.mxu1 %v14104_v32  ;;  %v14124_v32 = vld [vmem:[%s17124_s12 + $0xa8] sm:$0xff]  }
 0xe72   :  { %13244 = vmatpush3.bf16.msra.mxu0 %v14098_v24  ;;  %13261 = vmatprep.subr.bf16.mxu1 %v17148_v36 }
 0xe73   :  { %13245 = vmatprep.subr.bf16.mxu0 %v17148_v36 }
 0xe75   :  { %13262 = vmatpush3.bf16.msra.mxu1 %v14106_v20  ;;  %v14126_v20 = vld [vmem:[%s17124_s12 + $0xa0] sm:$0xff]  }
 0xe76   :  { %13246 = vmatpush3.bf16.msra.mxu0 %v14099_v12  ;;  %13263 = vmatprep.subr.bf16.mxu1 %v17148_v36  ;;  %v14120_v12 = vld [vmem:[%s17124_s12 + $0xb8] sm:$0xff]  }
 0xe77   :  { %13247 = vmatprep.subr.bf16.mxu0 %v17148_v36 }
 0xe79   :  { %13264 = vmatpush3.bf16.msra.mxu1 %v14108_v49  ;;  %v14128_v49 = vld [vmem:[%s17124_s12 + $0x98] sm:$0xff]  }
 0xe7a   :  { %13248 = vmatpush3.bf16.msra.mxu0 %v14100_v3  ;;  %13265 = vmatprep.subr.bf16.mxu1 %v17148_v36 }
 0xe7b   :  { %13249 = vmatprep.subr.bf16.mxu0 %v17148_v36 }
 0xe7d   :  { %13266 = vmatpush3.bf16.msra.mxu1 %v14110_v19  ;;  %v14130_v19 = vld [vmem:[%s17124_s12 + $0x90] sm:$0xff]  }
 0xe7e   :  { %13250 = vmatpush3.bf16.msra.mxu0 %v14101_v29  ;;  %13267 = vmatprep.subr.bf16.mxu1 %v17148_v36  ;;  %v14121_v29 = vld [vmem:[%s17124_s12 + $0xf8] sm:$0xff]  }
 0xe7f   :  { %13251 = vmatprep.subr.bf16.mxu0 %v17148_v36 }
 0xe81   :  { %13268 = vmatpush3.bf16.msra.mxu1 %v14112_v54  ;;  %v14132_v54 = vld [vmem:[%s17124_s12 + $0x88] sm:$0xff]  }
 0xe82   :  { %13252 = vmatpush3.bf16.msra.mxu0 %v14102_v26  ;;  %13269 = vmatprep.subr.bf16.mxu1 %v17148_v36 }
 0xe83   :  { %13253 = vmatprep.subr.bf16.mxu0 %v17148_v36 }
 0xe85   :  { %13270 = vmatpush3.bf16.msra.mxu1 %v14114_v47  ;;  %v14134_v47 = vld [vmem:[%s17124_s12 + $0x80] sm:$0xff]  }
 0xe86   :  { %13254 = vmatpush3.bf16.msra.mxu0 %v14103_v23  ;;  %13271 = vmatprep.subr.bf16.mxu1 %v17148_v36  ;;  %v14122_v23 = vld [vmem:[%s17124_s12 + $0xb0] sm:$0xff]  }
 0xe87   :  { %13279 = vmatprep.subr.bf16.mxu0 %v17148_v36 }
 0xe89   :  { %13256 = vmatmul.mubr.bf16.vlgmr.msra.gmra.mxu0 %v9545_v40  ;;  %13272 = vmatpush3.bf16.msra.mxu1 %v14116_v21  ;;  %v14123_v40 = vld [vmem:[%s17124_s12 + $0xf0] sm:$0xff]  }
 0xe8a   :  { %13295 = vmatprep.mubr.msk.bf16.mxu0 %vm14297_vm1, %v17148_v36  ;;  %13280 = vmatpush3.bf16.msra.mxu0 %v14105_v57  ;;  %v14125_v57 = vld [vmem:[%s17124_s12 + $0xe8] sm:$0xff]  }
 0xe8b   :  { %13281 = vmatprep.subr.bf16.mxu0 %v17148_v36  ;;  %13273 = vmatprep.subr.bf16.mxu1 %v17148_v36 }
 0xe8d   :  { %13274 = vmatpush3.bf16.msra.mxu1 %v14118_v60 }
 0xe8e   :  { %13282 = vmatpush3.bf16.msra.mxu0 %v14107_v10  ;;  %13299 = vmatprep.subr.bf16.mxu1 %v17148_v36  ;;  %v14127_v10 = vld [vmem:[%s17124_s12 + $0xe0] sm:$0xff]  }
 0xe8f   :  { %13283 = vmatprep.subr.bf16.mxu0 %v17148_v36 }
 0xe92   :  { %13284 = vmatpush3.bf16.msra.mxu0 %v14109_v15  ;;  %v14129_v15 = vld [vmem:[%s17124_s12 + $0xd8] sm:$0xff]  }
 0xe93   :  { %13285 = vmatprep.subr.bf16.mxu0 %v17148_v36 }
 0xe96   :  { %13286 = vmatpush3.bf16.msra.mxu0 %v14111_v4  ;;  %v14131_v4 = vld [vmem:[%s17124_s12 + $0xd0] sm:$0xff]  }
 0xe97   :  { %13287 = vmatprep.subr.bf16.mxu0 %v17148_v36 }
 0xe9a   :  { %13288 = vmatpush3.bf16.msra.mxu0 %v14113_v42  ;;  %v14133_v42 = vld [vmem:[%s17124_s12 + $0xc8] sm:$0xff]  }
 0xe9b   :  { %13289 = vmatprep.subr.bf16.mxu0 %v17148_v36 }
 0xe9e   :  { %13290 = vmatpush3.bf16.msra.mxu0 %v14115_v58  ;;  %v14135_v58 = vld [vmem:[%s17124_s12 + $0xc0] sm:$0xff]   ;;  %s14300_s12 = smov [#allocation13]  }
 0xe9f   :  { %13291 = vmatprep.subr.bf16.mxu0 %v17148_v36  ;;  %s10774_s15 = sshll.u32 %s14300_s12, 4  ;;  %s10775_s15 = int_to_ptr.vmem [resolvable:$true] %s10774_s15 }
 0xea0   :  { %s14256_s16 = scalar_lea.vmem %s10775_s15, 32  ;;  %p14261_p3 = scmp.lt.s32.totalorder %s10775_s15, %s10775_s15 }
 0xea1   :  { %p14257_p2 = scmp.ne.s32.totalorder %s10775_s15, %s14256_s16  ;;  %p14262_p4 = scmp.lt.s32.totalorder %s14256_s16, %s14256_s16 }
 0xea2   :  { %13292 = vmatpush3.bf16.msra.mxu0 %v14117_v31 }
 0xea3   :  { %13293 = vmatprep.subr.bf16.mxu0 %v17148_v36  ;;  %p14263_p5 = por %p14262_p4, %p14261_p3 }
 0xea5   :  { %p14264_p6 = pnand %p14263_p5, %p14257_p2 }
 0xea6   :  { %13294 = vmatpush3.bf16.msra.mxu0 %v14119_v34 }
 0xea7   :  { %13319 = vmatprep.subr.bf16.mxu0 %v17148_v36 }
 0xf09   :  { %v12502_v63 = vpop.f32.mrf.mxu0 }
 0xf0b   :  { %v12503_v41 = vpop.f32.mrf.mxu0 }
 0xf0c   :  { %v12504_v52 = vadd.f32 %v12503_v41, %v12502_v63 }
 0xf0d   :  { %v12505_v25 = vpop.f32.mrf.mxu0 }
 0xf0e   :  { %v10164_v37 = vadd.f32 %v12504_v52, %v11556_v1 }
 0xf0f   :  { %v12506_v28 = vpop.f32.mrf.mxu0 }
 0xf10   :  { %v12524_v44 = vpop.f32.mrf.mxu1  ;;  %v12507_v43 = vadd.f32 %v12506_v28, %v12505_v25  ;;  %v10337_v28 = vld [vmem:[%s17125_s13] sm:$0x1] }
 0xf12   :  { %v12525_v56 = vpop.f32.mrf.mxu1  ;;  %v10167_v18 = vadd.f32 %v12507_v43, %v11556_v1 }
 0xf13   :  { %v12526_v50 = vadd.f32 %v12525_v56, %v12524_v44 }
 0xf14   :  { %v12527_v27 = vpop.f32.mrf.mxu1 }
 0xf15   :  { %v10205_v35 = vadd.f32 %v12526_v50, %v10164_v37 }
 0xf16   :  { %v12528_v55 = vpop.f32.mrf.mxu1 }
 0xf17   :  { %v12529_v17 = vadd.f32 %v12528_v55, %v12527_v27 }
 0xf19   :  { %v10208_v16 = vadd.f32 %v12529_v17, %v10167_v18 }
 0xf29   :  { %v12546_v53 = vpop.f32.mrf.mxu0 }
 0xf2b   :  { %v12547_v45 = vpop.f32.mrf.mxu0 }
 0xf2c   :  { %v12548_v39 = vadd.f32 %v12547_v45, %v12546_v53 }
 0xf2d   :  { %v12549_v22 = vpop.f32.mrf.mxu0 }
 0xf2e   :  { %v10246_v51 = vadd.f32 %v12548_v39, %v10205_v35 }
 0xf2f   :  { %v12550_v33 = vpop.f32.mrf.mxu0 }
 0xf30   :  { %v12568_v48 = vpop.f32.mrf.mxu1  ;;  %v12551_v7 = vadd.f32 %v12550_v33, %v12549_v22 }
 0xf32   :  { %v12569_v2 = vpop.f32.mrf.mxu1  ;;  %v10249_v5 = vadd.f32 %v12551_v7, %v10208_v16 }
 0xf33   :  { %v12570_v0 = vadd.f32 %v12569_v2, %v12568_v48 }
 0xf34   :  { %v12571_v62 = vpop.f32.mrf.mxu1 }
 0xf35   :  { %v10287_v9 = vadd.f32 %v12570_v0, %v10246_v51 }
 0xf36   :  { %v12572_v59 = vpop.f32.mrf.mxu1 }
 0xf37   :  { %v12573_v38 = vadd.f32 %v12572_v59, %v12571_v62 }
 0xf39   :  { %v10290_v13 = vadd.f32 %v12573_v38, %v10249_v5 }
 0xf49   :  { %v10327_v61 = vpop.f32.mrf.mxu0 }
 0xf4a   :  { %v10328_v11 = vadd.f32 %v10327_v61, %v10287_v9 }
 0xf4b   :  { %v13257_v14 = vpop.f32.mrf.mxu0 }
 0xf4c   :  { %v10334_v6 = vmax.f32 %v10328_v11, 0.0 }
 0xf4d   :  { %v10330_v46 = vpop.f32.mrf.mxu0 }
 0xf4e   :  { %v10331_v8 = vadd.f32 %v10330_v46, %v10290_v13 }
 0xf4f   :  { %v13258_v30 = vpop.f32.mrf.mxu0 }
 0xf50   :  { %v10335_v24 = vmax.f32 %v10331_v8, 0.0 }
 0xf52   :  { %v10336_v3 = vpack.c.bf16 %v10335_v24, %v10334_v6 }
 0xf54   :  { %v10460_v26 = vshrl.u32 %v10336_v3, 16  ;;  %13276 = vmatmul.mubr.bf16.vlgmr.msra.gmra.mxu1 %v10336_v3  ;;  %v10569_v21 = vrot.slane %v10336_v3, 1 }
 0xf55   :  { %13300 = vmatpush3.bf16.msra.mxu1 %v14120_v12  ;;  %13315 = vmatprep.mubr.msk.bf16.mxu1 %vm14297_vm1, %v17148_v36 }
 0xf56   :  { %13296 = vmatmul.mubr.bf16.vlgmr.msra.gmra.mxu0 %v10460_v26  ;;  %13301 = vmatprep.subr.bf16.mxu1 %v17148_v36  ;;  %v10676_v31 = vrot.slane %v10460_v26, 1 }
 0xf57   :  { %13320 = vmatpush3.bf16.msra.mxu0 %v14121_v29  ;;  %13335 = vmatprep.mubr.msk.bf16.mxu0 %vm14297_vm1, %v17148_v36 }
 0xf58   :  { %13321 = vmatprep.subr.bf16.mxu0 %v17148_v36 }
 0xf59   :  { %13302 = vmatpush3.bf16.msra.mxu1 %v14122_v23 }
 0xf5a   :  { %13303 = vmatprep.subr.bf16.mxu1 %v17148_v36 }
 0xf5b   :  { %13322 = vmatpush3.bf16.msra.mxu0 %v14123_v40 }
 0xf5c   :  { %13323 = vmatprep.subr.bf16.mxu0 %v17148_v36 }
 0xf5d   :  { %13304 = vmatpush3.bf16.msra.mxu1 %v14124_v32 }
 0xf5e   :  { %13305 = vmatprep.subr.bf16.mxu1 %v17148_v36 }
 0xf5f   :  { %13324 = vmatpush3.bf16.msra.mxu0 %v14125_v57 }
 0xf60   :  { %13325 = vmatprep.subr.bf16.mxu0 %v17148_v36 }
 0xf61   :  { %13306 = vmatpush3.bf16.msra.mxu1 %v14126_v20 }
 0xf62   :  { %13307 = vmatprep.subr.bf16.mxu1 %v17148_v36 }
 0xf63   :  { %13326 = vmatpush3.bf16.msra.mxu0 %v14127_v10 }
 0xf64   :  { %13327 = vmatprep.subr.bf16.mxu0 %v17148_v36 }
 0xf65   :  { %13308 = vmatpush3.bf16.msra.mxu1 %v14128_v49 }
 0xf66   :  { %13309 = vmatprep.subr.bf16.mxu1 %v17148_v36 }
 0xf67   :  { %13328 = vmatpush3.bf16.msra.mxu0 %v14129_v15 }
 0xf68   :  { %13329 = vmatprep.subr.bf16.mxu0 %v17148_v36 }
 0xf69   :  { %13310 = vmatpush3.bf16.msra.mxu1 %v14130_v19 }
 0xf6a   :  { %13311 = vmatprep.subr.bf16.mxu1 %v17148_v36 }
 0xf6b   :  { %13330 = vmatpush3.bf16.msra.mxu0 %v14131_v4 }
 0xf6c   :  { %13331 = vmatprep.subr.bf16.mxu0 %v17148_v36 }
 0xf6d   :  { %13312 = vmatpush3.bf16.msra.mxu1 %v14132_v54 }
 0xf6e   :  { %13313 = vmatprep.subr.bf16.mxu1 %v17148_v36 }
 0xf6f   :  { %13332 = vmatpush3.bf16.msra.mxu0 %v14133_v42 }
 0xf70   :  { %13333 = vmatprep.subr.bf16.mxu0 %v17148_v36 }
 0xf71   :  { %13314 = vmatpush3.bf16.msra.mxu1 %v14134_v47 }
 0xf73   :  { %13334 = vmatpush3.bf16.msra.mxu0 %v14135_v58 }
 0xf74   :  { %13316 = vmatmul.mubr.bf16.vlgmr.msra.gmra.mxu1 %v10569_v21 }
 0xf76   :  { %13336 = vmatmul.mubr.bf16.vlgmr.msra.gmra.mxu0 %v10676_v31 }
0x1014   :  { %v10436_v60 = vpop.f32.mrf.mxu1 }
0x1015   :  { %v10442_v55 = vadd.f32 %v10436_v60, %v10337_v28 }
0x1016   :  { %v13277_v34 = vpop.f32.mrf.mxu1  ;;  %v10545_v63 = vpop.f32.mrf.mxu0 }
0x1017   :  { %v10551_v36 = vadd.f32 %v10545_v63, %v10442_v55 }
0x1018   :  { %v10439_v44 = vpop.f32.mrf.mxu1  ;;  %v13297_v41 = vpop.f32.mrf.mxu0 }
0x101a   :  { %v13278_v56 = vpop.f32.mrf.mxu1  ;;  %v10548_v25 = vpop.f32.mrf.mxu0 }
0x101c   :  { %v13298_v27 = vpop.f32.mrf.mxu0 }
0x1034   :  { %v10653_v53 = vpop.f32.mrf.mxu1 }
0x1035   :  { %v10659_v48 = vadd.f32 %v10653_v53, %v10551_v36 }
0x1036   :  { %v13317_v45 = vpop.f32.mrf.mxu1  ;;  %v10760_v2 = vpop.f32.mrf.mxu0 }
0x1037   :  { %v10766_v22 = vadd.f32 %v10760_v2, %v10659_v48 }
0x1038   :  { %v10656_v52 = vpop.f32.mrf.mxu1  ;;  %v13337_v1 = vpop.f32.mrf.mxu0 }
0x1039   :  { %10768 = vst [vmem:[#allocation13 + $0x1] sm:$0x1] %v10766_v22 }
0x103a   :  { %v13318_v62 = vpop.f32.mrf.mxu1  ;;  %v10763_v43 = vpop.f32.mrf.mxu0 }
0x103b   :  { %14267 = shalt.err (!%p14264_p6)
}
0x103c   :  { %s14301_s13 = smov 16   ;;  %s14302_s1 = smov 1   ;;  %v13338_v50 = vpop.f32.mrf.mxu0 }
0x103d   :  { %10780 = dma.vmem_to_hbm [thread:$0]  %s10775_s15, 32, %s17126_s14, [#allocation4], %s14301_s13, %s14301_s13, %s14302_s1  }
0x103e   :  { %14284 = dma.done.wait [#allocation4], 32  }
0x103f   :  { %14285 = vsyncadd [#allocation4], 4294967264 }
0x1040   :  { %10784 = vsyncpa [#allocation3], 1 }
0x1041   :  { %10785 = vsyncpa [#allocation6], 1 }
0x1042   :  { %10786 = vsyncpa [#allocation9], 1 }
0x1043   :  { %10787 = vsyncpa [#allocation12], 1 }
0x1044   :  { %10788 = vsyncpa [#allocation4], 1 }

</bundles_post_ra>
